<compile_context>
chip_gen: v7x
topology: tpu7x:2x2x1
jax: 0.10.0
libtpu: 0.0.40
codegen_flags: <defaults>
</compile_context>

<pallas_src>
import functools

import jax
import jax.numpy as jnp
from jax.experimental import pallas as pl
from jax.experimental.pallas import tpu as pltpu

_LANE = 128
_EPS = 1e-5

# CompilerParams is the current name; fall back gracefully on older jax.
_CP = getattr(pltpu, "CompilerParams", None) or getattr(pltpu, "TPUCompilerParams", None)


def _compiler_params(n_grid_dims):
    if _CP is None:
        return None
    return _CP(dimension_semantics=("parallel",) * n_grid_dims,
               vmem_limit_bytes=32 * 1024 * 1024)


def _round_up(x, m):
    return (x + m - 1) // m * m


# ---------------------------------------------------------------------------
# Pallas kernels
# ---------------------------------------------------------------------------
def _conv3x3_bn_relu_kernel(x0_ref, x1_ref, x2_ref, w_ref, b_ref, o_ref, *, relu):
    """Fused 3x3 conv + folded eval-BN bias (+ ReLU) for one (row-tile, Cout-tile).

    x{k}_ref : (1, th, W+2, Cin) bf16 -- padded-input rows shifted by k (tap row k)
    w_ref    : (3, 3, Cin, Ct)   bf16 -- BN scale folded in
    b_ref    : (1, Ct)           f32  -- conv bias + BN shift folded
    o_ref    : (1, th, W, Ct)    bf16
    """
    th = o_ref.shape[1]
    wdt = o_ref.shape[2]
    ct = o_ref.shape[3]
    cin = x0_ref.shape[3]

    w = w_ref[...]                                    # (3, 3, Cin, Ct) bf16
    acc = jnp.zeros((th * wdt, ct), jnp.float32)
    for dy, xr in enumerate((x0_ref, x1_ref, x2_ref)):
        x = xr[0]                                     # (th, W+2, Cin) bf16
        for dx in range(3):
            patch = x[:, dx:dx + wdt, :].reshape(th * wdt, cin)
            acc = acc + jnp.dot(patch, w[dy, dx],
                                preferred_element_type=jnp.float32)

    y = acc + b_ref[...]                              # f32 epilogue
    if relu:
        y = jnp.maximum(y, 0.0)
    o_ref[...] = y.reshape(1, th, wdt, ct).astype(o_ref.dtype)


def _pred_softmax_kernel(x_ref, w_ref, b_ref, o_ref, *, n_valid):
    """Fused 1x1 conv + channel softmax on a (tm, C) pixel tile.

    x_ref : (tm, Cin_pad) bf16,  w_ref : (Cin_pad, Co_pad) bf16
    b_ref : (1, Co_pad) f32,     o_ref : (tm, Co_pad) f32
    Lanes >= n_valid are zero-padded classes and are masked out of the softmax.
    """
    logits = jnp.dot(x_ref[...], w_ref[...],
                     preferred_element_type=jnp.float32) + b_ref[...]
    lane = jax.lax.broadcasted_iota(jnp.int32, logits.shape, 1)
    valid = lane < n_valid
    logits = jnp.where(valid, logits, jnp.full_like(logits, -1e30))
    m = jnp.max(logits, axis=-1, keepdims=True)
    e = jnp.where(valid, jnp.exp(logits - m), 0.0)
    denom = jnp.sum(e, axis=-1, keepdims=True)
    o_ref[...] = e * pl.reciprocal(denom, approx=True)


# ---------------------------------------------------------------------------
# Wrappers around the kernels
# ---------------------------------------------------------------------------
def _pick_row_tile(h, w, cin, cout, budget_bytes=2 * 1024 * 1024):
    """Largest row tile (divisor of H) keeping per-step VMEM blocks small."""
    # ~VMEM per output row in one grid step: 3 halo'd bf16 input rows +
    # bf16 output row + f32 accumulator row.
    per_row = 3 * (w + 2) * cin * 2 + w * cout * (2 + 4)
    th = max(1, min(h, budget_bytes // max(per_row, 1)))
    while h % th:
        th -= 1
    return th


def conv3x3_bn_relu(x_nhwc, p, relu=True):
    """3x3 / stride-1 / pad-1 conv + folded BN + ReLU.  x: (N,H,W,Cin) bf16."""
    n, h, w, cin = x_nhwc.shape
    wgt, bias = p["w"], p["b"]
    assert wgt.shape[2] == cin, (wgt.shape, cin)
    co = wgt.shape[3]                                  # padded multiple of 128

    xp = jnp.pad(x_nhwc, ((0, 0), (1, 1), (1, 1), (0, 0)))
    # Three row-shifted halo views: view k, row r == padded row r + k.
    x0, x1, x2 = (xp[:, k:k + h] for k in range(3))    # each (N, H, W+2, Cin)

    th = _pick_row_tile(h, w, cin, co)
    grid = (n, h // th, co // _LANE)
    x_spec = pl.BlockSpec((1, th, w + 2, cin), lambda b, i, j: (b, i, 0, 0))

    return pl.pallas_call(
        functools.partial(_conv3x3_bn_relu_kernel, relu=relu),
        out_shape=jax.ShapeDtypeStruct((n, h, w, co), jnp.bfloat16),
        grid=grid,
        in_specs=[
            x_spec, x_spec, x_spec,
            pl.BlockSpec((3, 3, cin, _LANE), lambda b, i, j: (0, 0, 0, j)),
            pl.BlockSpec((1, _LANE), lambda b, i, j: (0, j)),
        ],
        out_specs=pl.BlockSpec((1, th, w, _LANE), lambda b, i, j: (b, i, 0, j)),
        compiler_params=_compiler_params(len(grid)),
    )(x0, x1, x2, wgt, bias)


def _pick_m_tile(m, cap=1024):
    if m <= cap:
        return m
    for tm in range(cap, 7, -1):
        if m % tm == 0 and tm % 8 == 0:
            return tm
    return m


def pred_softmax(x_nhwc, p, n_pred):
    """Fused 1x1 conv + softmax over channels.  Returns NCHW f32 probabilities."""
    n, h, w, c = x_nhwc.shape
    m = n * h * w
    wgt, bias = p["w"], p["b"]
    co = wgt.shape[1]
    x2d = x_nhwc.reshape(m, c)
    tm = _pick_m_tile(m)
    grid = (m // tm,)

    out = pl.pallas_call(
        functools.partial(_pred_softmax_kernel, n_valid=n_pred),
        out_shape=jax.ShapeDtypeStruct((m, co), jnp.float32),
        grid=grid,
        in_specs=[
            pl.BlockSpec((tm, c), lambda i: (i, 0)),
            pl.BlockSpec((c, co), lambda i: (0, 0)),
            pl.BlockSpec((1, co), lambda i: (0, 0)),
        ],
        out_specs=pl.BlockSpec((tm, co), lambda i: (i, 0)),
        compiler_params=_compiler_params(len(grid)),
    )(x2d, wgt, bias)

    probs = out[:, :n_pred].reshape(n, h, w, n_pred)
    return jnp.transpose(probs, (0, 3, 1, 2))          # back to NCHW


def segmentor_forward(params, x, n_pred):
    """x: (N, C, H, W) f32 NCHW (PyTorch layout) -> (N, n_pred, H, W) f32."""
    xh = jnp.transpose(x, (0, 2, 3, 1)).astype(jnp.bfloat16)   # NHWC bf16 MXU feed
    h1 = conv3x3_bn_relu(xh, params["conv1"])   # (N,H,W,128); chans 64..127 == 0
    h2 = conv3x3_bn_relu(h1, params["conv2"])   # (N,H,W,128)
    return pred_softmax(h2, params["pred"], n_pred)


# ---------------------------------------------------------------------------
# Parameters: synthetic raw params (PyTorch layout) + packed/folded Pallas params
# ---------------------------------------------------------------------------
def init_segmentor_raw_params(key, num_output_channels, num_classes):
    nc = num_classes + 1
    k1, k2, k3, k4 = jax.random.split(key, 4)

    def conv_bn(k, cin, cout):
        kw, kb, kg, kbt, km, kv = jax.random.split(k, 6)
        return {
            "w": jax.random.normal(kw, (cout, cin, 3, 3), jnp.float32)
                 / jnp.sqrt(9.0 * cin),
            "b": 0.05 * jax.random.normal(kb, (cout,), jnp.float32),
            "gamma": 1.0 + 0.1 * jax.random.normal(kg, (cout,), jnp.float32),
            "beta": 0.1 * jax.random.normal(kbt, (cout,), jnp.float32),
            "mean": 0.1 * jax.random.normal(km, (cout,), jnp.float32),
            "var": 1.0 + 0.1 * jax.random.uniform(kv, (cout,), jnp.float32),
        }

    return {
        "conv1": conv_bn(k1, num_output_channels, 64),
        "conv2": conv_bn(k2, 64, 64),
        "pred": {
            "w": jax.random.normal(k3, (nc, 64, 1, 1), jnp.float32) / 8.0,
            "b": 0.05 * jax.random.normal(k4, (nc,), jnp.float32),
        },
    }


def pack_params(raw):
    """Fold eval-mode BN into the conv weights/bias and lay everything out for
    the Pallas kernels: (3,3,Cin_pad,Cout_pad) bf16 weights, (1,Cout_pad) f32
    bias, Cout padded to a multiple of 128 (lane-dense outputs).  Padded
    channels get zero weight / zero bias so they stay exactly zero."""

    def pack3x3(pr, cin_pad):
        scale = pr["gamma"] / jnp.sqrt(pr["var"] + _EPS)
        w_f = pr["w"] * scale[:, None, None, None]                 # (Co,Ci,3,3)
        b_f = (pr["b"] - pr["mean"]) * scale + pr["beta"]
        co, ci = w_f.shape[0], w_f.shape[1]
        co_pad = _round_up(co, _LANE)
        w = jnp.transpose(w_f, (2, 3, 1, 0))                       # (3,3,Ci,Co)
        w = jnp.pad(w, ((0, 0), (0, 0), (0, cin_pad - ci), (0, co_pad - co)))
        b = jnp.pad(b_f, (0, co_pad - co)).reshape(1, co_pad)
        return {"w": w.astype(jnp.bfloat16), "b": b.astype(jnp.float32)}

    def pack1x1(pr, cin_pad):
        co, ci = pr["w"].shape[0], pr["w"].shape[1]
        co_pad = _round_up(co, _LANE)
        w = jnp.transpose(pr["w"][:, :, 0, 0], (1, 0))             # (Ci,Co)
        w = jnp.pad(w, ((0, cin_pad - ci), (0, co_pad - co)))
        b = jnp.pad(pr["b"], (0, co_pad - co)).reshape(1, co_pad)
        return {"w": w.astype(jnp.bfloat16), "b": b.astype(jnp.float32)}

    conv1 = pack3x3(raw["conv1"], raw["conv1"]["w"].shape[1])
    conv2 = pack3x3(raw["conv2"], conv1["w"].shape[3])
    pred = pack1x1(raw["pred"], conv2["w"].shape[3])
    return {"conv1": conv1, "conv2": conv2, "pred": pred}


# ---------------------------------------------------------------------------
# Pure-JAX f32 reference (mirrors the PyTorch forward) for validation
# ---------------------------------------------------------------------------
def segmentor_reference(raw, x):
    def conv(h, w, b, pad):
        y = jax.lax.conv_general_dilated(
            h, w, window_strides=(1, 1), padding=((pad, pad), (pad, pad)),
            dimension_numbers=("NCHW", "OIHW", "NCHW"))
        return y + b[None, :, None, None]

    def block(h, pr):
        y = conv(h, pr["w"], pr["b"], 1)
        scale = (pr["gamma"] / jnp.sqrt(pr["var"] + _EPS))[None, :, None, None]
        y = (y - pr["mean"][None, :, None, None]) * scale \
            + pr["beta"][None, :, None, None]
        return jnp.maximum(y, 0.0)

    h = block(x, raw["conv1"])
    h = block(h, raw["conv2"])
    logits = conv(h, raw["pred"]["w"], raw["pred"]["b"], 0)
    return jax.nn.softmax(logits, axis=1)


# ---------------------------------------------------------------------------
if __name__ == "__main__":
    key = jax.random.PRNGKey(0)
    kp, kx = jax.random.split(key)

    # Small shapes consistent with the module:
    # Segmentor(num_output_channels=4, num_classes=3) on x:(2, 4, 16, 16).
    N, C_IN, H, W = 2, 4, 16, 16
    NUM_CLASSES = 3
    N_PRED = NUM_CLASSES + 1

    raw = init_segmentor_raw_params(kp, C_IN, NUM_CLASSES)
    params = pack_params(raw)
    x = jax.random.normal(kx, (N, C_IN, H, W), jnp.float32)

    fwd = jax.jit(functools.partial(segmentor_forward, n_pred=N_PRED))
    out = fwd(params, x)
    jax.block_until_ready(out)

    assert out.shape == (N, N_PRED, H, W), out.shape
    assert bool(jnp.all(jnp.isfinite(out)))
    chan_sum = jnp.sum(out, axis=1)     # softmax rows sum to ~1 (approx recip)
    assert bool(jnp.all(jnp.abs(chan_sum - 1.0) < 1e-2)), float(
        jnp.max(jnp.abs(chan_sum - 1.0)))
    ref = segmentor_reference(raw, x)   # f32 reference; bf16 MXU => loose tol
    max_err = float(jnp.max(jnp.abs(out - ref)))
    assert max_err < 0.1, max_err
    print("KERNEL_OK")
</pallas_src>

<mosaic_0001>
module attributes {stable_mosaic.version = 11 : i64} {
  func.func @_conv3x3_bn_relu_kernel(%arg0: i32, %arg1: i32, %arg2: i32, %arg3: memref<1x16x18x4xbf16, #tpu.memory_space<vmem>>, %arg4: memref<1x16x18x4xbf16, #tpu.memory_space<vmem>>, %arg5: memref<1x16x18x4xbf16, #tpu.memory_space<vmem>>, %arg6: memref<3x3x4x128xbf16, #tpu.memory_space<vmem>>, %arg7: memref<1x128xf32, #tpu.memory_space<vmem>>, %arg8: memref<1x16x16x128xbf16, #tpu.memory_space<vmem>>) attributes {dimension_semantics = [#tpu.dimension_semantics<parallel>, #tpu.dimension_semantics<parallel>, #tpu.dimension_semantics<parallel>], iteration_bounds = array<i64: 2, 1, 1>, scalar_prefetch = 0 : i64, scratch_operands = 0 : i64, tpu.core_type = #tpu.core_type<tc>, window_params = [{transform_indices = @transform_0, window_bounds = array<i64: 1, 16, 18, 4>}, {transform_indices = @transform_1, window_bounds = array<i64: 1, 16, 18, 4>}, {transform_indices = @transform_2, window_bounds = array<i64: 1, 16, 18, 4>}, {transform_indices = @transform_3, window_bounds = array<i64: 3, 3, 4, 128>}, {transform_indices = @transform_4, window_bounds = array<i64: 1, 128>}, {transform_indices = @transform_5, window_bounds = array<i64: 1, 16, 16, 128>}]} {
    %c0 = arith.constant 0 : index
    %c0_0 = arith.constant 0 : index
    %c0_1 = arith.constant 0 : index
    %c0_2 = arith.constant 0 : index
    %0 = vector.load %arg6[%c0, %c0_0, %c0_1, %c0_2] : memref<3x3x4x128xbf16, #tpu.memory_space<vmem>>, vector<3x3x4x128xbf16>
    %cst = arith.constant 0.000000e+00 : f32
    %1 = vector.broadcast %cst : f32 to vector<256x128xf32>
    %c0_3 = arith.constant 0 : index
    %c0_4 = arith.constant 0 : index
    %c0_5 = arith.constant 0 : index
    %c0_6 = arith.constant 0 : index
    %2 = vector.load %arg3[%c0_3, %c0_4, %c0_5, %c0_6] : memref<1x16x18x4xbf16, #tpu.memory_space<vmem>>, vector<1x16x18x4xbf16>
    %3 = vector.shape_cast %2 : vector<1x16x18x4xbf16> to vector<16x18x4xbf16>
    %4 = vector.extract_strided_slice %3 {offsets = [0, 0, 0], sizes = [16, 16, 4], strides = [1, 1, 1]} : vector<16x18x4xbf16> to vector<16x16x4xbf16>
    %5 = vector.shape_cast %4 : vector<16x16x4xbf16> to vector<256x4xbf16>
    %6 = vector.extract_strided_slice %0 {offsets = [0, 0, 0, 0], sizes = [1, 1, 4, 128], strides = [1, 1, 1, 1]} : vector<3x3x4x128xbf16> to vector<1x1x4x128xbf16>
    %7 = vector.shape_cast %6 : vector<1x1x4x128xbf16> to vector<4x128xbf16>
    %cst_7 = arith.constant dense<0.000000e+00> : vector<256x128xf32>
    %8 = tpu.matmul %5, %7, %cst_7 {dimension_numbers = #tpu.dot_dimension_numbers<[1], [0], [0], [1], [0, 0, 1, 1], [], []>} : vector<256x4xbf16>, vector<4x128xbf16>, vector<256x128xf32> -> vector<256x128xf32>
    %9 = arith.addf %1, %8 : vector<256x128xf32>
    %10 = vector.extract_strided_slice %3 {offsets = [0, 1, 0], sizes = [16, 16, 4], strides = [1, 1, 1]} : vector<16x18x4xbf16> to vector<16x16x4xbf16>
    %11 = vector.shape_cast %10 : vector<16x16x4xbf16> to vector<256x4xbf16>
    %12 = vector.extract_strided_slice %0 {offsets = [0, 1, 0, 0], sizes = [1, 1, 4, 128], strides = [1, 1, 1, 1]} : vector<3x3x4x128xbf16> to vector<1x1x4x128xbf16>
    %13 = vector.shape_cast %12 : vector<1x1x4x128xbf16> to vector<4x128xbf16>
    %cst_8 = arith.constant dense<0.000000e+00> : vector<256x128xf32>
    %14 = tpu.matmul %11, %13, %cst_8 {dimension_numbers = #tpu.dot_dimension_numbers<[1], [0], [0], [1], [0, 0, 1, 1], [], []>} : vector<256x4xbf16>, vector<4x128xbf16>, vector<256x128xf32> -> vector<256x128xf32>
    %15 = arith.addf %9, %14 : vector<256x128xf32>
    %16 = vector.extract_strided_slice %3 {offsets = [0, 2, 0], sizes = [16, 16, 4], strides = [1, 1, 1]} : vector<16x18x4xbf16> to vector<16x16x4xbf16>
    %17 = vector.shape_cast %16 : vector<16x16x4xbf16> to vector<256x4xbf16>
    %18 = vector.extract_strided_slice %0 {offsets = [0, 2, 0, 0], sizes = [1, 1, 4, 128], strides = [1, 1, 1, 1]} : vector<3x3x4x128xbf16> to vector<1x1x4x128xbf16>
    %19 = vector.shape_cast %18 : vector<1x1x4x128xbf16> to vector<4x128xbf16>
    %cst_9 = arith.constant dense<0.000000e+00> : vector<256x128xf32>
    %20 = tpu.matmul %17, %19, %cst_9 {dimension_numbers = #tpu.dot_dimension_numbers<[1], [0], [0], [1], [0, 0, 1, 1], [], []>} : vector<256x4xbf16>, vector<4x128xbf16>, vector<256x128xf32> -> vector<256x128xf32>
    %21 = arith.addf %15, %20 : vector<256x128xf32>
    %c0_10 = arith.constant 0 : index
    %c0_11 = arith.constant 0 : index
    %c0_12 = arith.constant 0 : index
    %c0_13 = arith.constant 0 : index
    %22 = vector.load %arg4[%c0_10, %c0_11, %c0_12, %c0_13] : memref<1x16x18x4xbf16, #tpu.memory_space<vmem>>, vector<1x16x18x4xbf16>
    %23 = vector.shape_cast %22 : vector<1x16x18x4xbf16> to vector<16x18x4xbf16>
    %24 = vector.extract_strided_slice %23 {offsets = [0, 0, 0], sizes = [16, 16, 4], strides = [1, 1, 1]} : vector<16x18x4xbf16> to vector<16x16x4xbf16>
    %25 = vector.shape_cast %24 : vector<16x16x4xbf16> to vector<256x4xbf16>
    %26 = vector.extract_strided_slice %0 {offsets = [1, 0, 0, 0], sizes = [1, 1, 4, 128], strides = [1, 1, 1, 1]} : vector<3x3x4x128xbf16> to vector<1x1x4x128xbf16>
    %27 = vector.shape_cast %26 : vector<1x1x4x128xbf16> to vector<4x128xbf16>
    %cst_14 = arith.constant dense<0.000000e+00> : vector<256x128xf32>
    %28 = tpu.matmul %25, %27, %cst_14 {dimension_numbers = #tpu.dot_dimension_numbers<[1], [0], [0], [1], [0, 0, 1, 1], [], []>} : vector<256x4xbf16>, vector<4x128xbf16>, vector<256x128xf32> -> vector<256x128xf32>
    %29 = arith.addf %21, %28 : vector<256x128xf32>
    %30 = vector.extract_strided_slice %23 {offsets = [0, 1, 0], sizes = [16, 16, 4], strides = [1, 1, 1]} : vector<16x18x4xbf16> to vector<16x16x4xbf16>
    %31 = vector.shape_cast %30 : vector<16x16x4xbf16> to vector<256x4xbf16>
    %32 = vector.extract_strided_slice %0 {offsets = [1, 1, 0, 0], sizes = [1, 1, 4, 128], strides = [1, 1, 1, 1]} : vector<3x3x4x128xbf16> to vector<1x1x4x128xbf16>
    %33 = vector.shape_cast %32 : vector<1x1x4x128xbf16> to vector<4x128xbf16>
    %cst_15 = arith.constant dense<0.000000e+00> : vector<256x128xf32>
    %34 = tpu.matmul %31, %33, %cst_15 {dimension_numbers = #tpu.dot_dimension_numbers<[1], [0], [0], [1], [0, 0, 1, 1], [], []>} : vector<256x4xbf16>, vector<4x128xbf16>, vector<256x128xf32> -> vector<256x128xf32>
    %35 = arith.addf %29, %34 : vector<256x128xf32>
    %36 = vector.extract_strided_slice %23 {offsets = [0, 2, 0], sizes = [16, 16, 4], strides = [1, 1, 1]} : vector<16x18x4xbf16> to vector<16x16x4xbf16>
    %37 = vector.shape_cast %36 : vector<16x16x4xbf16> to vector<256x4xbf16>
    %38 = vector.extract_strided_slice %0 {offsets = [1, 2, 0, 0], sizes = [1, 1, 4, 128], strides = [1, 1, 1, 1]} : vector<3x3x4x128xbf16> to vector<1x1x4x128xbf16>
    %39 = vector.shape_cast %38 : vector<1x1x4x128xbf16> to vector<4x128xbf16>
    %cst_16 = arith.constant dense<0.000000e+00> : vector<256x128xf32>
    %40 = tpu.matmul %37, %39, %cst_16 {dimension_numbers = #tpu.dot_dimension_numbers<[1], [0], [0], [1], [0, 0, 1, 1], [], []>} : vector<256x4xbf16>, vector<4x128xbf16>, vector<256x128xf32> -> vector<256x128xf32>
    %41 = arith.addf %35, %40 : vector<256x128xf32>
    %c0_17 = arith.constant 0 : index
    %c0_18 = arith.constant 0 : index
    %c0_19 = arith.constant 0 : index
    %c0_20 = arith.constant 0 : index
    %42 = vector.load %arg5[%c0_17, %c0_18, %c0_19, %c0_20] : memref<1x16x18x4xbf16, #tpu.memory_space<vmem>>, vector<1x16x18x4xbf16>
    %43 = vector.shape_cast %42 : vector<1x16x18x4xbf16> to vector<16x18x4xbf16>
    %44 = vector.extract_strided_slice %43 {offsets = [0, 0, 0], sizes = [16, 16, 4], strides = [1, 1, 1]} : vector<16x18x4xbf16> to vector<16x16x4xbf16>
    %45 = vector.shape_cast %44 : vector<16x16x4xbf16> to vector<256x4xbf16>
    %46 = vector.extract_strided_slice %0 {offsets = [2, 0, 0, 0], sizes = [1, 1, 4, 128], strides = [1, 1, 1, 1]} : vector<3x3x4x128xbf16> to vector<1x1x4x128xbf16>
    %47 = vector.shape_cast %46 : vector<1x1x4x128xbf16> to vector<4x128xbf16>
    %cst_21 = arith.constant dense<0.000000e+00> : vector<256x128xf32>
    %48 = tpu.matmul %45, %47, %cst_21 {dimension_numbers = #tpu.dot_dimension_numbers<[1], [0], [0], [1], [0, 0, 1, 1], [], []>} : vector<256x4xbf16>, vector<4x128xbf16>, vector<256x128xf32> -> vector<256x128xf32>
    %49 = arith.addf %41, %48 : vector<256x128xf32>
    %50 = vector.extract_strided_slice %43 {offsets = [0, 1, 0], sizes = [16, 16, 4], strides = [1, 1, 1]} : vector<16x18x4xbf16> to vector<16x16x4xbf16>
    %51 = vector.shape_cast %50 : vector<16x16x4xbf16> to vector<256x4xbf16>
    %52 = vector.extract_strided_slice %0 {offsets = [2, 1, 0, 0], sizes = [1, 1, 4, 128], strides = [1, 1, 1, 1]} : vector<3x3x4x128xbf16> to vector<1x1x4x128xbf16>
    %53 = vector.shape_cast %52 : vector<1x1x4x128xbf16> to vector<4x128xbf16>
    %cst_22 = arith.constant dense<0.000000e+00> : vector<256x128xf32>
    %54 = tpu.matmul %51, %53, %cst_22 {dimension_numbers = #tpu.dot_dimension_numbers<[1], [0], [0], [1], [0, 0, 1, 1], [], []>} : vector<256x4xbf16>, vector<4x128xbf16>, vector<256x128xf32> -> vector<256x128xf32>
    %55 = arith.addf %49, %54 : vector<256x128xf32>
    %56 = vector.extract_strided_slice %43 {offsets = [0, 2, 0], sizes = [16, 16, 4], strides = [1, 1, 1]} : vector<16x18x4xbf16> to vector<16x16x4xbf16>
    %57 = vector.shape_cast %56 : vector<16x16x4xbf16> to vector<256x4xbf16>
    %58 = vector.extract_strided_slice %0 {offsets = [2, 2, 0, 0], sizes = [1, 1, 4, 128], strides = [1, 1, 1, 1]} : vector<3x3x4x128xbf16> to vector<1x1x4x128xbf16>
    %59 = vector.shape_cast %58 : vector<1x1x4x128xbf16> to vector<4x128xbf16>
    %cst_23 = arith.constant dense<0.000000e+00> : vector<256x128xf32>
    %60 = tpu.matmul %57, %59, %cst_23 {dimension_numbers = #tpu.dot_dimension_numbers<[1], [0], [0], [1], [0, 0, 1, 1], [], []>} : vector<256x4xbf16>, vector<4x128xbf16>, vector<256x128xf32> -> vector<256x128xf32>
    %61 = arith.addf %55, %60 : vector<256x128xf32>
    %c0_24 = arith.constant 0 : index
    %c0_25 = arith.constant 0 : index
    %62 = vector.load %arg7[%c0_24, %c0_25] : memref<1x128xf32, #tpu.memory_space<vmem>>, vector<1x128xf32>
    %63 = vector.broadcast %62 : vector<1x128xf32> to vector<256x128xf32>
    %64 = arith.addf %61, %63 : vector<256x128xf32>
    %cst_26 = arith.constant 0.000000e+00 : f32
    %65 = vector.broadcast %cst_26 : f32 to vector<256x128xf32>
    %66 = arith.maximumf %64, %65 : vector<256x128xf32>
    %67 = vector.shape_cast %66 : vector<256x128xf32> to vector<1x16x16x128xf32>
    %68 = arith.truncf %67 : vector<1x16x16x128xf32> to vector<1x16x16x128xbf16>
    %c0_27 = arith.constant 0 : index
    %c0_28 = arith.constant 0 : index
    %c0_29 = arith.constant 0 : index
    %c0_30 = arith.constant 0 : index
    %69 = vector.load %arg8[%c0_27, %c0_28, %c0_29, %c0_30] : memref<1x16x16x128xbf16, #tpu.memory_space<vmem>>, vector<1x16x16x128xbf16>
    tpu.vector_store %arg8[%c0_27, %c0_28, %c0_29, %c0_30], %68 {strides = array<i32>} : memref<1x16x16x128xbf16, #tpu.memory_space<vmem>>, vector<1x16x16x128xbf16>,
    return
  }
  func.func @transform_0(%arg0: i32, %arg1: i32, %arg2: i32) -> (i32, i32, i32, i32) {
    %c0_i32 = arith.constant 0 : i32
    %c0_i32_0 = arith.constant 0 : i32
    %c0_i32_1 = arith.constant 0 : i32
    return %arg0, %arg1, %c0_i32, %c0_i32_0 : i32, i32, i32, i32
  }
  func.func @transform_1(%arg0: i32, %arg1: i32, %arg2: i32) -> (i32, i32, i32, i32) {
    %c0_i32 = arith.constant 0 : i32
    %c0_i32_0 = arith.constant 0 : i32
    %c0_i32_1 = arith.constant 0 : i32
    return %arg0, %arg1, %c0_i32, %c0_i32_0 : i32, i32, i32, i32
  }
  func.func @transform_2(%arg0: i32, %arg1: i32, %arg2: i32) -> (i32, i32, i32, i32) {
    %c0_i32 = arith.constant 0 : i32
    %c0_i32_0 = arith.constant 0 : i32
    %c0_i32_1 = arith.constant 0 : i32
    return %arg0, %arg1, %c0_i32, %c0_i32_0 : i32, i32, i32, i32
  }
  func.func @transform_3(%arg0: i32, %arg1: i32, %arg2: i32) -> (i32, i32, i32, i32) {
    %c0_i32 = arith.constant 0 : i32
    %c0_i32_0 = arith.constant 0 : i32
    %c0_i32_1 = arith.constant 0 : i32
    %c0_i32_2 = arith.constant 0 : i32
    return %c0_i32, %c0_i32_0, %c0_i32_1, %arg2 : i32, i32, i32, i32
  }
  func.func @transform_4(%arg0: i32, %arg1: i32, %arg2: i32) -> (i32, i32) {
    %c0_i32 = arith.constant 0 : i32
    %c0_i32_0 = arith.constant 0 : i32
    return %c0_i32, %arg2 : i32, i32
  }
  func.func @transform_5(%arg0: i32, %arg1: i32, %arg2: i32) -> (i32, i32, i32, i32) {
    %c0_i32 = arith.constant 0 : i32
    %c0_i32_0 = arith.constant 0 : i32
    return %arg0, %arg1, %c0_i32, %arg2 : i32, i32, i32, i32
  }
}

module attributes {stable_mosaic.version = 11 : i64} {
  func.func @_conv3x3_bn_relu_kernel(%arg0: i32, %arg1: i32, %arg2: i32, %arg3: memref<1x16x18x128xbf16, #tpu.memory_space<vmem>>, %arg4: memref<1x16x18x128xbf16, #tpu.memory_space<vmem>>, %arg5: memref<1x16x18x128xbf16, #tpu.memory_space<vmem>>, %arg6: memref<3x3x128x128xbf16, #tpu.memory_space<vmem>>, %arg7: memref<1x128xf32, #tpu.memory_space<vmem>>, %arg8: memref<1x16x16x128xbf16, #tpu.memory_space<vmem>>) attributes {dimension_semantics = [#tpu.dimension_semantics<parallel>, #tpu.dimension_semantics<parallel>, #tpu.dimension_semantics<parallel>], iteration_bounds = array<i64: 2, 1, 1>, scalar_prefetch = 0 : i64, scratch_operands = 0 : i64, tpu.core_type = #tpu.core_type<tc>, window_params = [{transform_indices = @transform_0, window_bounds = array<i64: 1, 16, 18, 128>}, {transform_indices = @transform_1, window_bounds = array<i64: 1, 16, 18, 128>}, {transform_indices = @transform_2, window_bounds = array<i64: 1, 16, 18, 128>}, {transform_indices = @transform_3, window_bounds = array<i64: 3, 3, 128, 128>}, {transform_indices = @transform_4, window_bounds = array<i64: 1, 128>}, {transform_indices = @transform_5, window_bounds = array<i64: 1, 16, 16, 128>}]} {
    %c0 = arith.constant 0 : index
    %c0_0 = arith.constant 0 : index
    %c0_1 = arith.constant 0 : index
    %c0_2 = arith.constant 0 : index
    %0 = vector.load %arg6[%c0, %c0_0, %c0_1, %c0_2] : memref<3x3x128x128xbf16, #tpu.memory_space<vmem>>, vector<3x3x128x128xbf16>
    %cst = arith.constant 0.000000e+00 : f32
    %1 = vector.broadcast %cst : f32 to vector<256x128xf32>
    %c0_3 = arith.constant 0 : index
    %c0_4 = arith.constant 0 : index
    %c0_5 = arith.constant 0 : index
    %c0_6 = arith.constant 0 : index
    %2 = vector.load %arg3[%c0_3, %c0_4, %c0_5, %c0_6] : memref<1x16x18x128xbf16, #tpu.memory_space<vmem>>, vector<1x16x18x128xbf16>
    %3 = vector.shape_cast %2 : vector<1x16x18x128xbf16> to vector<16x18x128xbf16>
    %4 = vector.extract_strided_slice %3 {offsets = [0, 0, 0], sizes = [16, 16, 128], strides = [1, 1, 1]} : vector<16x18x128xbf16> to vector<16x16x128xbf16>
    %5 = vector.shape_cast %4 : vector<16x16x128xbf16> to vector<256x128xbf16>
    %6 = vector.extract_strided_slice %0 {offsets = [0, 0, 0, 0], sizes = [1, 1, 128, 128], strides = [1, 1, 1, 1]} : vector<3x3x128x128xbf16> to vector<1x1x128x128xbf16>
    %7 = vector.shape_cast %6 : vector<1x1x128x128xbf16> to vector<128x128xbf16>
    %cst_7 = arith.constant dense<0.000000e+00> : vector<256x128xf32>
    %8 = tpu.matmul %5, %7, %cst_7 {dimension_numbers = #tpu.dot_dimension_numbers<[1], [0], [0], [1], [0, 0, 1, 1], [], []>} : vector<256x128xbf16>, vector<128x128xbf16>, vector<256x128xf32> -> vector<256x128xf32>
    %9 = arith.addf %1, %8 : vector<256x128xf32>
    %10 = vector.extract_strided_slice %3 {offsets = [0, 1, 0], sizes = [16, 16, 128], strides = [1, 1, 1]} : vector<16x18x128xbf16> to vector<16x16x128xbf16>
    %11 = vector.shape_cast %10 : vector<16x16x128xbf16> to vector<256x128xbf16>
    %12 = vector.extract_strided_slice %0 {offsets = [0, 1, 0, 0], sizes = [1, 1, 128, 128], strides = [1, 1, 1, 1]} : vector<3x3x128x128xbf16> to vector<1x1x128x128xbf16>
    %13 = vector.shape_cast %12 : vector<1x1x128x128xbf16> to vector<128x128xbf16>
    %cst_8 = arith.constant dense<0.000000e+00> : vector<256x128xf32>
    %14 = tpu.matmul %11, %13, %cst_8 {dimension_numbers = #tpu.dot_dimension_numbers<[1], [0], [0], [1], [0, 0, 1, 1], [], []>} : vector<256x128xbf16>, vector<128x128xbf16>, vector<256x128xf32> -> vector<256x128xf32>
    %15 = arith.addf %9, %14 : vector<256x128xf32>
    %16 = vector.extract_strided_slice %3 {offsets = [0, 2, 0], sizes = [16, 16, 128], strides = [1, 1, 1]} : vector<16x18x128xbf16> to vector<16x16x128xbf16>
    %17 = vector.shape_cast %16 : vector<16x16x128xbf16> to vector<256x128xbf16>
    %18 = vector.extract_strided_slice %0 {offsets = [0, 2, 0, 0], sizes = [1, 1, 128, 128], strides = [1, 1, 1, 1]} : vector<3x3x128x128xbf16> to vector<1x1x128x128xbf16>
    %19 = vector.shape_cast %18 : vector<1x1x128x128xbf16> to vector<128x128xbf16>
    %cst_9 = arith.constant dense<0.000000e+00> : vector<256x128xf32>
    %20 = tpu.matmul %17, %19, %cst_9 {dimension_numbers = #tpu.dot_dimension_numbers<[1], [0], [0], [1], [0, 0, 1, 1], [], []>} : vector<256x128xbf16>, vector<128x128xbf16>, vector<256x128xf32> -> vector<256x128xf32>
    %21 = arith.addf %15, %20 : vector<256x128xf32>
    %c0_10 = arith.constant 0 : index
    %c0_11 = arith.constant 0 : index
    %c0_12 = arith.constant 0 : index
    %c0_13 = arith.constant 0 : index
    %22 = vector.load %arg4[%c0_10, %c0_11, %c0_12, %c0_13] : memref<1x16x18x128xbf16, #tpu.memory_space<vmem>>, vector<1x16x18x128xbf16>
    %23 = vector.shape_cast %22 : vector<1x16x18x128xbf16> to vector<16x18x128xbf16>
    %24 = vector.extract_strided_slice %23 {offsets = [0, 0, 0], sizes = [16, 16, 128], strides = [1, 1, 1]} : vector<16x18x128xbf16> to vector<16x16x128xbf16>
    %25 = vector.shape_cast %24 : vector<16x16x128xbf16> to vector<256x128xbf16>
    %26 = vector.extract_strided_slice %0 {offsets = [1, 0, 0, 0], sizes = [1, 1, 128, 128], strides = [1, 1, 1, 1]} : vector<3x3x128x128xbf16> to vector<1x1x128x128xbf16>
    %27 = vector.shape_cast %26 : vector<1x1x128x128xbf16> to vector<128x128xbf16>
    %cst_14 = arith.constant dense<0.000000e+00> : vector<256x128xf32>
    %28 = tpu.matmul %25, %27, %cst_14 {dimension_numbers = #tpu.dot_dimension_numbers<[1], [0], [0], [1], [0, 0, 1, 1], [], []>} : vector<256x128xbf16>, vector<128x128xbf16>, vector<256x128xf32> -> vector<256x128xf32>
    %29 = arith.addf %21, %28 : vector<256x128xf32>
    %30 = vector.extract_strided_slice %23 {offsets = [0, 1, 0], sizes = [16, 16, 128], strides = [1, 1, 1]} : vector<16x18x128xbf16> to vector<16x16x128xbf16>
    %31 = vector.shape_cast %30 : vector<16x16x128xbf16> to vector<256x128xbf16>
    %32 = vector.extract_strided_slice %0 {offsets = [1, 1, 0, 0], sizes = [1, 1, 128, 128], strides = [1, 1, 1, 1]} : vector<3x3x128x128xbf16> to vector<1x1x128x128xbf16>
    %33 = vector.shape_cast %32 : vector<1x1x128x128xbf16> to vector<128x128xbf16>
    %cst_15 = arith.constant dense<0.000000e+00> : vector<256x128xf32>
    %34 = tpu.matmul %31, %33, %cst_15 {dimension_numbers = #tpu.dot_dimension_numbers<[1], [0], [0], [1], [0, 0, 1, 1], [], []>} : vector<256x128xbf16>, vector<128x128xbf16>, vector<256x128xf32> -> vector<256x128xf32>
    %35 = arith.addf %29, %34 : vector<256x128xf32>
    %36 = vector.extract_strided_slice %23 {offsets = [0, 2, 0], sizes = [16, 16, 128], strides = [1, 1, 1]} : vector<16x18x128xbf16> to vector<16x16x128xbf16>
    %37 = vector.shape_cast %36 : vector<16x16x128xbf16> to vector<256x128xbf16>
    %38 = vector.extract_strided_slice %0 {offsets = [1, 2, 0, 0], sizes = [1, 1, 128, 128], strides = [1, 1, 1, 1]} : vector<3x3x128x128xbf16> to vector<1x1x128x128xbf16>
    %39 = vector.shape_cast %38 : vector<1x1x128x128xbf16> to vector<128x128xbf16>
    %cst_16 = arith.constant dense<0.000000e+00> : vector<256x128xf32>
    %40 = tpu.matmul %37, %39, %cst_16 {dimension_numbers = #tpu.dot_dimension_numbers<[1], [0], [0], [1], [0, 0, 1, 1], [], []>} : vector<256x128xbf16>, vector<128x128xbf16>, vector<256x128xf32> -> vector<256x128xf32>
    %41 = arith.addf %35, %40 : vector<256x128xf32>
    %c0_17 = arith.constant 0 : index
    %c0_18 = arith.constant 0 : index
    %c0_19 = arith.constant 0 : index
    %c0_20 = arith.constant 0 : index
    %42 = vector.load %arg5[%c0_17, %c0_18, %c0_19, %c0_20] : memref<1x16x18x128xbf16, #tpu.memory_space<vmem>>, vector<1x16x18x128xbf16>
    %43 = vector.shape_cast %42 : vector<1x16x18x128xbf16> to vector<16x18x128xbf16>
    %44 = vector.extract_strided_slice %43 {offsets = [0, 0, 0], sizes = [16, 16, 128], strides = [1, 1, 1]} : vector<16x18x128xbf16> to vector<16x16x128xbf16>
    %45 = vector.shape_cast %44 : vector<16x16x128xbf16> to vector<256x128xbf16>
    %46 = vector.extract_strided_slice %0 {offsets = [2, 0, 0, 0], sizes = [1, 1, 128, 128], strides = [1, 1, 1, 1]} : vector<3x3x128x128xbf16> to vector<1x1x128x128xbf16>
    %47 = vector.shape_cast %46 : vector<1x1x128x128xbf16> to vector<128x128xbf16>
    %cst_21 = arith.constant dense<0.000000e+00> : vector<256x128xf32>
    %48 = tpu.matmul %45, %47, %cst_21 {dimension_numbers = #tpu.dot_dimension_numbers<[1], [0], [0], [1], [0, 0, 1, 1], [], []>} : vector<256x128xbf16>, vector<128x128xbf16>, vector<256x128xf32> -> vector<256x128xf32>
    %49 = arith.addf %41, %48 : vector<256x128xf32>
    %50 = vector.extract_strided_slice %43 {offsets = [0, 1, 0], sizes = [16, 16, 128], strides = [1, 1, 1]} : vector<16x18x128xbf16> to vector<16x16x128xbf16>
    %51 = vector.shape_cast %50 : vector<16x16x128xbf16> to vector<256x128xbf16>
    %52 = vector.extract_strided_slice %0 {offsets = [2, 1, 0, 0], sizes = [1, 1, 128, 128], strides = [1, 1, 1, 1]} : vector<3x3x128x128xbf16> to vector<1x1x128x128xbf16>
    %53 = vector.shape_cast %52 : vector<1x1x128x128xbf16> to vector<128x128xbf16>
    %cst_22 = arith.constant dense<0.000000e+00> : vector<256x128xf32>
    %54 = tpu.matmul %51, %53, %cst_22 {dimension_numbers = #tpu.dot_dimension_numbers<[1], [0], [0], [1], [0, 0, 1, 1], [], []>} : vector<256x128xbf16>, vector<128x128xbf16>, vector<256x128xf32> -> vector<256x128xf32>
    %55 = arith.addf %49, %54 : vector<256x128xf32>
    %56 = vector.extract_strided_slice %43 {offsets = [0, 2, 0], sizes = [16, 16, 128], strides = [1, 1, 1]} : vector<16x18x128xbf16> to vector<16x16x128xbf16>
    %57 = vector.shape_cast %56 : vector<16x16x128xbf16> to vector<256x128xbf16>
    %58 = vector.extract_strided_slice %0 {offsets = [2, 2, 0, 0], sizes = [1, 1, 128, 128], strides = [1, 1, 1, 1]} : vector<3x3x128x128xbf16> to vector<1x1x128x128xbf16>
    %59 = vector.shape_cast %58 : vector<1x1x128x128xbf16> to vector<128x128xbf16>
    %cst_23 = arith.constant dense<0.000000e+00> : vector<256x128xf32>
    %60 = tpu.matmul %57, %59, %cst_23 {dimension_numbers = #tpu.dot_dimension_numbers<[1], [0], [0], [1], [0, 0, 1, 1], [], []>} : vector<256x128xbf16>, vector<128x128xbf16>, vector<256x128xf32> -> vector<256x128xf32>
    %61 = arith.addf %55, %60 : vector<256x128xf32>
    %c0_24 = arith.constant 0 : index
    %c0_25 = arith.constant 0 : index
    %62 = vector.load %arg7[%c0_24, %c0_25] : memref<1x128xf32, #tpu.memory_space<vmem>>, vector<1x128xf32>
    %63 = vector.broadcast %62 : vector<1x128xf32> to vector<256x128xf32>
    %64 = arith.addf %61, %63 : vector<256x128xf32>
    %cst_26 = arith.constant 0.000000e+00 : f32
    %65 = vector.broadcast %cst_26 : f32 to vector<256x128xf32>
    %66 = arith.maximumf %64, %65 : vector<256x128xf32>
    %67 = vector.shape_cast %66 : vector<256x128xf32> to vector<1x16x16x128xf32>
    %68 = arith.truncf %67 : vector<1x16x16x128xf32> to vector<1x16x16x128xbf16>
    %c0_27 = arith.constant 0 : index
    %c0_28 = arith.constant 0 : index
    %c0_29 = arith.constant 0 : index
    %c0_30 = arith.constant 0 : index
    %69 = vector.load %arg8[%c0_27, %c0_28, %c0_29, %c0_30] : memref<1x16x16x128xbf16, #tpu.memory_space<vmem>>, vector<1x16x16x128xbf16>
    tpu.vector_store %arg8[%c0_27, %c0_28, %c0_29, %c0_30], %68 {strides = array<i32>} : memref<1x16x16x128xbf16, #tpu.memory_space<vmem>>, vector<1x16x16x128xbf16>,
    return
  }
  func.func @transform_0(%arg0: i32, %arg1: i32, %arg2: i32) -> (i32, i32, i32, i32) {
    %c0_i32 = arith.constant 0 : i32
    %c0_i32_0 = arith.constant 0 : i32
    %c0_i32_1 = arith.constant 0 : i32
    return %arg0, %arg1, %c0_i32, %c0_i32_0 : i32, i32, i32, i32
  }
  func.func @transform_1(%arg0: i32, %arg1: i32, %arg2: i32) -> (i32, i32, i32, i32) {
    %c0_i32 = arith.constant 0 : i32
    %c0_i32_0 = arith.constant 0 : i32
    %c0_i32_1 = arith.constant 0 : i32
    return %arg0, %arg1, %c0_i32, %c0_i32_0 : i32, i32, i32, i32
  }
  func.func @transform_2(%arg0: i32, %arg1: i32, %arg2: i32) -> (i32, i32, i32, i32) {
    %c0_i32 = arith.constant 0 : i32
    %c0_i32_0 = arith.constant 0 : i32
    %c0_i32_1 = arith.constant 0 : i32
    return %arg0, %arg1, %c0_i32, %c0_i32_0 : i32, i32, i32, i32
  }
  func.func @transform_3(%arg0: i32, %arg1: i32, %arg2: i32) -> (i32, i32, i32, i32) {
    %c0_i32 = arith.constant 0 : i32
    %c0_i32_0 = arith.constant 0 : i32
    %c0_i32_1 = arith.constant 0 : i32
    %c0_i32_2 = arith.constant 0 : i32
    return %c0_i32, %c0_i32_0, %c0_i32_1, %arg2 : i32, i32, i32, i32
  }
  func.func @transform_4(%arg0: i32, %arg1: i32, %arg2: i32) -> (i32, i32) {
    %c0_i32 = arith.constant 0 : i32
    %c0_i32_0 = arith.constant 0 : i32
    return %c0_i32, %arg2 : i32, i32
  }
  func.func @transform_5(%arg0: i32, %arg1: i32, %arg2: i32) -> (i32, i32, i32, i32) {
    %c0_i32 = arith.constant 0 : i32
    %c0_i32_0 = arith.constant 0 : i32
    return %arg0, %arg1, %c0_i32, %arg2 : i32, i32, i32, i32
  }
}

module attributes {stable_mosaic.version = 11 : i64} {
  func.func @_pred_softmax_kernel(%arg0: i32, %arg1: memref<512x128xbf16, #tpu.memory_space<vmem>>, %arg2: memref<128x128xbf16, #tpu.memory_space<vmem>>, %arg3: memref<1x128xf32, #tpu.memory_space<vmem>>, %arg4: memref<512x128xf32, #tpu.memory_space<vmem>>) attributes {dimension_semantics = [#tpu.dimension_semantics<parallel>], iteration_bounds = array<i64: 1>, scalar_prefetch = 0 : i64, scratch_operands = 0 : i64, tpu.core_type = #tpu.core_type<tc>, window_params = [{transform_indices = @transform_0, window_bounds = array<i64: 512, 128>}, {pipeline_mode = #tpu.pipeline_mode<synchronous>, transform_indices = @transform_1, window_bounds = array<i64: 128, 128>}, {pipeline_mode = #tpu.pipeline_mode<synchronous>, transform_indices = @transform_2, window_bounds = array<i64: 1, 128>}, {transform_indices = @transform_3, window_bounds = array<i64: 512, 128>}]} {
    %c0 = arith.constant 0 : index
    %c0_0 = arith.constant 0 : index
    %0 = vector.load %arg1[%c0, %c0_0] : memref<512x128xbf16, #tpu.memory_space<vmem>>, vector<512x128xbf16>
    %c0_1 = arith.constant 0 : index
    %c0_2 = arith.constant 0 : index
    %1 = vector.load %arg2[%c0_1, %c0_2] : memref<128x128xbf16, #tpu.memory_space<vmem>>, vector<128x128xbf16>
    %cst = arith.constant dense<0.000000e+00> : vector<512x128xf32>
    %2 = tpu.matmul %0, %1, %cst {dimension_numbers = #tpu.dot_dimension_numbers<[1], [0], [0], [1], [0, 0, 1, 1], [], []>} : vector<512x128xbf16>, vector<128x128xbf16>, vector<512x128xf32> -> vector<512x128xf32>
    %c0_3 = arith.constant 0 : index
    %c0_4 = arith.constant 0 : index
    %3 = vector.load %arg3[%c0_3, %c0_4] : memref<1x128xf32, #tpu.memory_space<vmem>>, vector<1x128xf32>
    %4 = vector.broadcast %3 : vector<1x128xf32> to vector<512x128xf32>
    %5 = arith.addf %2, %4 : vector<512x128xf32>
    %6 = tpu.iota {dimensions = array<i32: 1>} : vector<512x128xi32>
    %c4_i32 = arith.constant 4 : i32
    %7 = vector.broadcast %c4_i32 : i32 to vector<512x128xi32>
    %8 = arith.cmpi slt, %6, %7 : vector<512x128xi32>
    %cst_5 = arith.constant -1.000000e+30 : f32
    %9 = vector.broadcast %cst_5 : f32 to vector<512x128xf32>
    %10 = arith.select %8, %5, %9 : vector<512x128xi1>, vector<512x128xf32>
    %cst_6 = arith.constant dense<0xFF800000> : vector<512xf32>
    %11 = vector.multi_reduction <maximumf>, %10, %cst_6 [1] : vector<512x128xf32> to vector<512xf32>
    %12 = vector.shape_cast %11 : vector<512xf32> to vector<512x1xf32>
    %13 = vector.broadcast %12 : vector<512x1xf32> to vector<512x128xf32>
    %14 = arith.subf %10, %13 : vector<512x128xf32>
    %15 = math.exp %14 : vector<512x128xf32>
    %cst_7 = arith.constant 0.000000e+00 : f32
    %16 = vector.broadcast %cst_7 : f32 to vector<512x128xf32>
    %17 = arith.select %8, %15, %16 : vector<512x128xi1>, vector<512x128xf32>
    %cst_8 = arith.constant dense<0.000000e+00> : vector<512xf32>
    %18 = vector.multi_reduction <add>, %17, %cst_8 [1] : vector<512x128xf32> to vector<512xf32>
    %19 = vector.shape_cast %18 : vector<512xf32> to vector<512x1xf32>
    %20 = tpu.reciprocal %19 {approx = true} : vector<512x1xf32> -> vector<512x1xf32>
    %21 = vector.broadcast %20 : vector<512x1xf32> to vector<512x128xf32>
    %22 = arith.mulf %17, %21 : vector<512x128xf32>
    %c0_9 = arith.constant 0 : index
    %c0_10 = arith.constant 0 : index
    %23 = vector.load %arg4[%c0_9, %c0_10] : memref<512x128xf32, #tpu.memory_space<vmem>>, vector<512x128xf32>
    tpu.vector_store %arg4[%c0_9, %c0_10], %22 {strides = array<i32>} : memref<512x128xf32, #tpu.memory_space<vmem>>, vector<512x128xf32>,
    return
  }
  func.func @transform_0(%arg0: i32) -> (i32, i32) {
    %c0_i32 = arith.constant 0 : i32
    %c0_i32_0 = arith.constant 0 : i32
    return %arg0, %c0_i32 : i32, i32
  }
  func.func @transform_1(%arg0: i32) -> (i32, i32) {
    %c0_i32 = arith.constant 0 : i32
    %c0_i32_0 = arith.constant 0 : i32
    %c0_i32_1 = arith.constant 0 : i32
    return %c0_i32, %c0_i32_0 : i32, i32
  }
  func.func @transform_2(%arg0: i32) -> (i32, i32) {
    %c0_i32 = arith.constant 0 : i32
    %c0_i32_0 = arith.constant 0 : i32
    %c0_i32_1 = arith.constant 0 : i32
    return %c0_i32, %c0_i32_0 : i32, i32
  }
  func.func @transform_3(%arg0: i32) -> (i32, i32) {
    %c0_i32 = arith.constant 0 : i32
    %c0_i32_0 = arith.constant 0 : i32
    return %arg0, %c0_i32 : i32, i32
  }
}

</mosaic_0001>

<bundles_post_ra>
// kernel: segmentor_forward.5
= control target key start
LH: loop header
LB: loop body
LE: loop exit
PB: predicated region body
PF: predicated region fallthrough
CT: control target
= control target key end

     0   :  { %v631_v40 = vlaneseq  ;;  %s3168_s1 = inlined_call_operand.vmem [shape: bf16[128,128], index: 1, kind: input, shape index: {}]   ;;  %s3169_s0 = inlined_call_operand.vmem [shape: bf16[512,128], index: 0, kind: input, shape index: {}]   ;;  %s3170_s2 = inlined_call_operand.vmem [shape: f32[1,128], index: 2, kind: input, shape index: {}]   ;;  %s3171_s3 = inlined_call_operand.vmem [shape: f32[512,128], index: 3, kind: output, shape index: {}]  }
   0x1   :  { %v1583_v0 = vld [vmem:[%s3168_s1] sm:$0xff]   ;;  %v1584_v1 = vld [vmem:[%s3168_s1 + $0x8] sm:$0xff]   ;;  %v1585_v2 = vld [vmem:[%s3168_s1 + $0x10] sm:$0xff]  }
   0x2   :  { %1487 = vmatprep.subr.bf16.mxu0 %v1583_v0  ;;  %1567 = vmatprep.subr.bf16.mxu1 %v1583_v0  ;;  %v1586_v3 = vld [vmem:[%s3168_s1 + $0x18] sm:$0xff]   ;;  %v1591_v4 = vld [vmem:[%s3169_s0] sm:$0xff]   ;;  %v1588_v7 = vld [vmem:[%s3168_s1 + $0x28] sm:$0xff]   ;;  %v2019_v41 = vand.u32 127, %v631_v40 }
   0x3   :  { %1488 = vmatpush3.bf16.msra.mxu0 %v1583_v0  ;;  %1575 = vmatpush3.bf16.msra.mxu1 %v1583_v0  ;;  %v1592_v5 = vld [vmem:[%s3169_s0 + $0x80] sm:$0xff]   ;;  %v1589_v8 = vld [vmem:[%s3168_s1 + $0x30] sm:$0xff]   ;;  %v1590_v9 = vld [vmem:[%s3168_s1 + $0x38] sm:$0xff]  }
   0x4   :  { %1489 = vmatprep.subr.bf16.mxu0 %v1584_v1  ;;  %1568 = vmatprep.subr.bf16.mxu1 %v1584_v1  ;;  %v1587_v6 = vld [vmem:[%s3168_s1 + $0x20] sm:$0xff]   ;;  %v1593_v10 = vld [vmem:[%s3169_s0 + $0x8] sm:$0xff]   ;;  %v1595_v12 = vld [vmem:[%s3169_s0 + $0x10] sm:$0xff]   ;;  %vm633_vm0 = vcmp.lt.s32.totalorder %v2019_v41, 4 }
   0x5   :  { %1503 = vmatprep.mubr.bf16.mxu0 %v1591_v4  ;;  %1535 = vmatprep.mubr.bf16.mxu1 %v1592_v5  ;;  %v1594_v11 = vld [vmem:[%s3169_s0 + $0x88] sm:$0xff]   ;;  %v1597_v13 = vld [vmem:[%s3169_s0 + $0x90] sm:$0xff]   ;;  %v1596_v14 = vld [vmem:[%s3169_s0 + $0x18] sm:$0xff]  }
   0x6   :  { %v1598_v15 = vld [vmem:[%s3169_s0 + $0x98] sm:$0xff]   ;;  %v1599_v16 = vld [vmem:[%s3169_s0 + $0x20] sm:$0xff]   ;;  %v1600_v18 = vld [vmem:[%s3169_s0 + $0x28] sm:$0xff]  }
   0x7   :  { %1490 = vmatpush3.bf16.msra.mxu0 %v1584_v1  ;;  %1576 = vmatpush3.bf16.msra.mxu1 %v1584_v1  ;;  %v1601_v17 = vld [vmem:[%s3169_s0 + $0xa0] sm:$0xff]   ;;  %v1602_v19 = vld [vmem:[%s3169_s0 + $0xa8] sm:$0xff]   ;;  %v1603_v20 = vld [vmem:[%s3169_s0 + $0x30] sm:$0xff]  }
   0x8   :  { %1491 = vmatprep.subr.bf16.mxu0 %v1585_v2  ;;  %1569 = vmatprep.subr.bf16.mxu1 %v1585_v2  ;;  %v1605_v21 = vld [vmem:[%s3169_s0 + $0xb0] sm:$0xff]   ;;  %v1604_v22 = vld [vmem:[%s3169_s0 + $0x38] sm:$0xff]   ;;  %v1607_v24 = vld [vmem:[%s3169_s0 + $0x40] sm:$0xff]  }
   0x9   :  { %v1606_v23 = vld [vmem:[%s3169_s0 + $0xb8] sm:$0xff]   ;;  %v1609_v25 = vld [vmem:[%s3169_s0 + $0xc0] sm:$0xff]   ;;  %v1608_v26 = vld [vmem:[%s3169_s0 + $0x48] sm:$0xff]  }
   0xa   :  { %v1610_v27 = vld [vmem:[%s3169_s0 + $0xc8] sm:$0xff]   ;;  %v1611_v28 = vld [vmem:[%s3169_s0 + $0x50] sm:$0xff]   ;;  %v1612_v30 = vld [vmem:[%s3169_s0 + $0x58] sm:$0xff]  }
   0xb   :  { %1492 = vmatpush3.bf16.msra.mxu0 %v1585_v2  ;;  %1577 = vmatpush3.bf16.msra.mxu1 %v1585_v2  ;;  %v1613_v29 = vld [vmem:[%s3169_s0 + $0xd0] sm:$0xff]   ;;  %v1614_v31 = vld [vmem:[%s3169_s0 + $0xd8] sm:$0xff]   ;;  %v1615_v32 = vld [vmem:[%s3169_s0 + $0x60] sm:$0xff]  }
   0xc   :  { %1493 = vmatprep.subr.bf16.mxu0 %v1586_v3  ;;  %1570 = vmatprep.subr.bf16.mxu1 %v1586_v3  ;;  %v1617_v33 = vld [vmem:[%s3169_s0 + $0xe0] sm:$0xff]   ;;  %v1616_v34 = vld [vmem:[%s3169_s0 + $0x68] sm:$0xff]   ;;  %v1619_v36 = vld [vmem:[%s3169_s0 + $0x70] sm:$0xff]  }
   0xd   :  { %v1618_v35 = vld [vmem:[%s3169_s0 + $0xe8] sm:$0xff]   ;;  %v1621_v37 = vld [vmem:[%s3169_s0 + $0xf0] sm:$0xff]   ;;  %v1620_v38 = vld [vmem:[%s3169_s0 + $0x78] sm:$0xff]  }
   0xe   :  { %v1622_v39 = vld [vmem:[%s3169_s0 + $0xf8] sm:$0xff]   ;;  %v2024_v42 = vld [vmem:[%s3170_s2] ss:$0 sm:$0xff] }
   0xf   :  { %1494 = vmatpush3.bf16.msra.mxu0 %v1586_v3  ;;  %1578 = vmatpush3.bf16.msra.mxu1 %v1586_v3 }
  0x10   :  { %1495 = vmatprep.subr.bf16.mxu0 %v1587_v6  ;;  %1571 = vmatprep.subr.bf16.mxu1 %v1587_v6 }
  0x13   :  { %1496 = vmatpush3.bf16.msra.mxu0 %v1587_v6  ;;  %1579 = vmatpush3.bf16.msra.mxu1 %v1587_v6 }
  0x14   :  { %1497 = vmatprep.subr.bf16.mxu0 %v1588_v7  ;;  %1572 = vmatprep.subr.bf16.mxu1 %v1588_v7 }
  0x17   :  { %1498 = vmatpush3.bf16.msra.mxu0 %v1588_v7  ;;  %1580 = vmatpush3.bf16.msra.mxu1 %v1588_v7 }
  0x18   :  { %1499 = vmatprep.subr.bf16.mxu0 %v1589_v8  ;;  %1573 = vmatprep.subr.bf16.mxu1 %v1589_v8 }
  0x1b   :  { %1500 = vmatpush3.bf16.msra.mxu0 %v1589_v8  ;;  %1581 = vmatpush3.bf16.msra.mxu1 %v1589_v8 }
  0x1c   :  { %1501 = vmatprep.subr.bf16.mxu0 %v1590_v9  ;;  %1574 = vmatprep.subr.bf16.mxu1 %v1590_v9 }
  0x1f   :  { %1502 = vmatpush3.bf16.msra.mxu0 %v1590_v9  ;;  %1582 = vmatpush3.bf16.msra.mxu1 %v1590_v9 }
  0x22   :  { %1504 = vmatmul.mubr.bf16.vlgmr.msra.gmra.mrb[0].mxu0 %v1593_v10  ;;  %1536 = vmatmul.mubr.bf16.vlgmr.msra.gmra.mrb[0].mxu1 %v1594_v11 }
  0x23   :  { %1507 = vmatprep.mubr.bf16.mxu0 %v1595_v12  ;;  %1539 = vmatprep.mubr.bf16.mxu1 %v1597_v13 }
  0x2a   :  { %1508 = vmatmul.mubr.bf16.gmra.mrb[4].mxu0 %v1596_v14  ;;  %1540 = vmatmul.mubr.bf16.gmra.mrb[4].mxu1 %v1598_v15 }
  0x2b   :  { %1511 = vmatprep.mubr.bf16.mxu0 %v1599_v16  ;;  %1543 = vmatprep.mubr.bf16.mxu1 %v1601_v17 }
  0x32   :  { %1512 = vmatmul.mubr.bf16.gmra.mrb[8].mxu0 %v1600_v18  ;;  %1544 = vmatmul.mubr.bf16.gmra.mrb[8].mxu1 %v1602_v19 }
  0x33   :  { %1515 = vmatprep.mubr.bf16.mxu0 %v1603_v20  ;;  %1547 = vmatprep.mubr.bf16.mxu1 %v1605_v21 }
  0x3a   :  { %1516 = vmatmul.mubr.bf16.gmra.mrb[12].mxu0 %v1604_v22  ;;  %1548 = vmatmul.mubr.bf16.gmra.mrb[12].mxu1 %v1606_v23 }
  0x3b   :  { %1519 = vmatprep.mubr.bf16.mxu0 %v1607_v24  ;;  %1551 = vmatprep.mubr.bf16.mxu1 %v1609_v25 }
  0x42   :  { %1520 = vmatmul.mubr.bf16.gmra.mrb[16].mxu0 %v1608_v26  ;;  %1552 = vmatmul.mubr.bf16.gmra.mrb[16].mxu1 %v1610_v27 }
  0x43   :  { %1523 = vmatprep.mubr.bf16.mxu0 %v1611_v28  ;;  %1555 = vmatprep.mubr.bf16.mxu1 %v1613_v29 }
  0x4a   :  { %1524 = vmatmul.mubr.bf16.gmra.mrb[20].mxu0 %v1612_v30  ;;  %1556 = vmatmul.mubr.bf16.gmra.mrb[20].mxu1 %v1614_v31 }
  0x4b   :  { %1527 = vmatprep.mubr.bf16.mxu0 %v1615_v32  ;;  %1559 = vmatprep.mubr.bf16.mxu1 %v1617_v33 }
  0x52   :  { %1528 = vmatmul.mubr.bf16.gmra.mrb[24].mxu0 %v1616_v34  ;;  %1560 = vmatmul.mubr.bf16.gmra.mrb[24].mxu1 %v1618_v35 }
  0x53   :  { %1531 = vmatprep.mubr.bf16.mxu0 %v1619_v36  ;;  %1563 = vmatprep.mubr.bf16.mxu1 %v1621_v37 }
  0x5a   :  { %1532 = vmatmul.mubr.bf16.gmra.mrb[28].mxu0 %v1620_v38  ;;  %1564 = vmatmul.mubr.bf16.gmra.mrb[28].mxu1 %v1622_v39 }
  0xf5   :  { %v1505_v43 = vpop.f32.mrb[0].mxu0  ;;  %v1537_v44 = vpop.f32.mrb[0].mxu1 }
  0xf6   :  { %v385_v45 = vadd.f32 %v1505_v43, %v2024_v42  ;;  %v513_v46 = vadd.f32 %v1537_v44, %v2024_v42  ;;  %v376_v47 = vpop.f32.mrb[1].mxu0  ;;  %v504_v48 = vpop.f32.mrb[1].mxu1 }
  0xf7   :  { %v1506_v49 = vpop.f32.mrb[2].mxu0  ;;  %v1538_v50 = vpop.f32.mrb[2].mxu1  ;;  %v377_v51 = vadd.f32 %v2024_v42, %v376_v47  ;;  %v505_v57 = vadd.f32 %v2024_v42, %v504_v48 }
  0xf8   :  { %v388_v52 = vadd.f32 %v1506_v49, %v2024_v42  ;;  %v379_v53 = vpop.f32.mrb[3].mxu0  ;;  %v507_v54 = vpop.f32.mrb[3].mxu1  ;;  %v2033_v55 = vsel %vm633_vm0, %v513_v46, -1e+30  ;;  %v2037_v56 = vsel %vm633_vm0, %v385_v45, -1e+30  ;;  %v516_v58 = vadd.f32 %v1538_v50, %v2024_v42 }
  0xf9   :  { %766 = vmax.xlane.f32.xlu0 %v2033_v55  ;;  %702 = vmax.xlane.f32.xlu1 %v2037_v56  ;;  %v2049_v60 = vsel %vm633_vm0, %v377_v51, -1e+30  ;;  %v380_v3 = vadd.f32 %v2024_v42, %v379_v53  ;;  %v508_v4 = vadd.f32 %v2024_v42, %v507_v54  ;;  %v2061_v6 = vsel %vm633_vm0, %v505_v57, -1e+30 }
  0xfa   :  { %v2045_v59 = vsel %vm633_vm0, %v388_v52, -1e+30  ;;  %v2057_v5 = vsel %vm633_vm0, %v516_v58, -1e+30 }
  0xfb   :  { %v2069_v11 = vsel %vm633_vm0, %v508_v4, -1e+30  ;;  %v2073_v12 = vsel %vm633_vm0, %v380_v3, -1e+30 }
  0xfd   :  { %704 = vmax.xlane.f32.xlu1 %v2045_v59  ;;  %698 = vmax.xlane.f32.xlu0 %v2049_v60  ;;  %v1509_v61 = vpop.f32.mrb[4].mxu0  ;;  %v1541_v62 = vpop.f32.mrb[4].mxu1 }
  0xfe   :  { %v392_v63 = vpop.f32.mrb[5].mxu0  ;;  %v520_v0 = vpop.f32.mrb[5].mxu1  ;;  %v401_v9 = vadd.f32 %v1509_v61, %v2024_v42  ;;  %v529_v19 = vadd.f32 %v1541_v62, %v2024_v42 }
  0xff   :  { %v1510_v1 = vpop.f32.mrb[6].mxu0  ;;  %v1542_v2 = vpop.f32.mrb[6].mxu1  ;;  %v393_v25 = vadd.f32 %v2024_v42, %v392_v63  ;;  %v521_v35 = vadd.f32 %v2024_v42, %v520_v0 }
 0x100   :  { %v395_v7 = vpop.f32.mrb[7].mxu0  ;;  %v523_v8 = vpop.f32.mrb[7].mxu1  ;;  %v404_v10 = vadd.f32 %v1510_v1, %v2024_v42  ;;  %v532_v20 = vadd.f32 %v1542_v2, %v2024_v42  ;;  %v2087_v22 = vsel %vm633_vm0, %v401_v9, -1e+30  ;;  %v2101_v28 = vsel %vm633_vm0, %v529_v19, -1e+30 }
 0x101   :  { %768 = vmax.xlane.f32.xlu1 %v2057_v5  ;;  %762 = vmax.xlane.f32.xlu0 %v2061_v6  ;;  %v396_v26 = vadd.f32 %v2024_v42, %v395_v7  ;;  %v524_v36 = vadd.f32 %v2024_v42, %v523_v8  ;;  %v2125_v38 = vsel %vm633_vm0, %v393_v25, -1e+30  ;;  %v2141_v46 = vsel %vm633_vm0, %v521_v35, -1e+30 }
 0x102   :  { %v2083_v21 = vsel %vm633_vm0, %v404_v10, -1e+30  ;;  %v2097_v27 = vsel %vm633_vm0, %v532_v20, -1e+30 }
 0x103   :  { %v2121_v37 = vsel %vm633_vm0, %v396_v26, -1e+30  ;;  %v2137_v45 = vsel %vm633_vm0, %v524_v36, -1e+30 }
 0x105   :  { %764 = vmax.xlane.f32.xlu1 %v2069_v11  ;;  %700 = vmax.xlane.f32.xlu0 %v2073_v12  ;;  %v1513_v13 = vpop.f32.mrb[8].mxu0  ;;  %v1545_v14 = vpop.f32.mrb[8].mxu1 }
 0x106   :  { %v408_v15 = vpop.f32.mrb[9].mxu0  ;;  %v2077_v16 = vpop.f32.mrb[9].mxu1  ;;  %v417_v43 = vadd.f32 %v1513_v13, %v2024_v42  ;;  %v545_v53 = vadd.f32 %v1545_v14, %v2024_v42 }
 0x107   :  { %v1514_v17 = vpop.f32.mrb[10].mxu0  ;;  %v1546_v18 = vpop.f32.mrb[10].mxu1  ;;  %v409_v9 = vadd.f32 %v2024_v42, %v408_v15  ;;  %v537_v25 = vadd.f32 %v2024_v42, %v2077_v16 }
 0x108   :  { %v411_v23 = vpop.f32.mrb[11].mxu0  ;;  %v2089_v24 = vpop.f32.mrb[11].mxu1  ;;  %v420_v44 = vadd.f32 %v1514_v17, %v2024_v42  ;;  %v548_v54 = vadd.f32 %v1546_v18, %v2024_v42  ;;  %v2165_v0 = vsel %vm633_vm0, %v417_v43, -1e+30  ;;  %v2189_v14 = vsel %vm633_vm0, %v545_v53, -1e+30 }
 0x109   :  { %712 = vmax.xlane.f32.xlu1 %v2083_v21  ;;  %710 = vmax.xlane.f32.xlu0 %v2087_v22  ;;  %v412_v10 = vadd.f32 %v2024_v42, %v411_v23  ;;  %v540_v26 = vadd.f32 %v2024_v42, %v2089_v24 }
 0x10a   :  { %v2161_v63 = vsel %vm633_vm0, %v420_v44, -1e+30  ;;  %v2185_v13 = vsel %vm633_vm0, %v548_v54, -1e+30 }
 0x10d   :  { %776 = vmax.xlane.f32.xlu1 %v2097_v27  ;;  %774 = vmax.xlane.f32.xlu0 %v2101_v28  ;;  %v2105_v29 = vpop.f32.mrb[12].mxu0  ;;  %v2107_v30 = vpop.f32.mrb[12].mxu1 }
 0x10e   :  { %v2109_v31 = vpop.f32.mrb[13].mxu0  ;;  %v2111_v32 = vpop.f32.mrb[13].mxu1 }
 0x10f   :  { %v2113_v33 = vpop.f32.mrb[14].mxu0  ;;  %v2115_v34 = vpop.f32.mrb[14].mxu1 }
 0x110   :  { %v2127_v39 = vpop.f32.mrb[15].mxu0  ;;  %v2129_v40 = vpop.f32.mrb[15].mxu1 }
 0x111   :  { %708 = vmax.xlane.f32.xlu1 %v2121_v37  ;;  %706 = vmax.xlane.f32.xlu0 %v2125_v38 }
 0x115   :  { %772 = vmax.xlane.f32.xlu1 %v2137_v45  ;;  %770 = vmax.xlane.f32.xlu0 %v2141_v46  ;;  %v1521_v47 = vpop.f32.mrb[16].mxu0  ;;  %v1553_v48 = vpop.f32.mrb[16].mxu1 }
 0x116   :  { %v2146_v49 = vadd.f32 %v1521_v47, %v2024_v42  ;;  %v440_v50 = vpop.f32.mrb[17].mxu0  ;;  %v2149_v51 = vadd.f32 %v1553_v48, %v2024_v42  ;;  %v568_v52 = vpop.f32.mrb[17].mxu1  ;;  %v2211_v47 = vsel %vm633_vm0, %v412_v10, -1e+30  ;;  %v2215_v48 = vsel %vm633_vm0, %v409_v9, -1e+30 }
 0x117   :  { %v2154_v57 = vadd.f32 %v2024_v42, %v440_v50  ;;  %v1522_v58 = vpop.f32.mrb[18].mxu0  ;;  %v2157_v61 = vadd.f32 %v2024_v42, %v568_v52  ;;  %v1554_v62 = vpop.f32.mrb[18].mxu1  ;;  %3199 = vst [vmem:[#allocation2_spill] sm:$0xff] %v2211_v47  ;;  %3200 = vst [vmem:[#allocation3_spill] sm:$0xff] %v2215_v48 }
 0x118   :  { %v2168_v1 = vadd.f32 %v1522_v58, %v2024_v42  ;;  %v443_v2 = vpop.f32.mrb[19].mxu0  ;;  %v2171_v3 = vadd.f32 %v1554_v62, %v2024_v42  ;;  %v571_v4 = vpop.f32.mrb[19].mxu1  ;;  %v433_v58 = vadd.f32 %v2105_v29, %v2024_v42  ;;  %v436_v62 = vadd.f32 %v2113_v33, %v2024_v42 }
 0x119   :  { %720 = vmax.xlane.f32.xlu1 %v2161_v63  ;;  %718 = vmax.xlane.f32.xlu0 %v2165_v0  ;;  %v2176_v7 = vadd.f32 %v2024_v42, %v443_v2  ;;  %v2179_v8 = vadd.f32 %v2024_v42, %v571_v4  ;;  %v2237_v2 = vsel %vm633_vm0, %v540_v26, -1e+30  ;;  %v2241_v4 = vsel %vm633_vm0, %v537_v25, -1e+30 }
 0x11a   :  { %3201 = vst [vmem:[#allocation4_spill] sm:$0xff] %v2237_v2  ;;  %3202 = vst [vmem:[#allocation5_spill] sm:$0xff] %v2241_v4 }
 0x11d   :  { %784 = vmax.xlane.f32.xlu1 %v2185_v13  ;;  %782 = vmax.xlane.f32.xlu0 %v2189_v14  ;;  %v1525_v17 = vpop.f32.mrb[20].mxu0  ;;  %v1557_v18 = vpop.f32.mrb[20].mxu1 }
 0x11e   :  { %v2194_v19 = vadd.f32 %v1525_v17, %v2024_v42  ;;  %v456_v15 = vpop.f32.mrb[21].mxu0  ;;  %v2197_v20 = vadd.f32 %v1557_v18, %v2024_v42  ;;  %v584_v23 = vpop.f32.mrb[21].mxu1 }
 0x11f   :  { %v2204_v35 = vadd.f32 %v2024_v42, %v456_v15  ;;  %v1526_v36 = vpop.f32.mrb[22].mxu0  ;;  %v2207_v43 = vadd.f32 %v2024_v42, %v584_v23  ;;  %v1558_v44 = vpop.f32.mrb[22].mxu1  ;;  %v561_v15 = vadd.f32 %v2107_v30, %v2024_v42  ;;  %v564_v23 = vadd.f32 %v2115_v34, %v2024_v42 }
 0x120   :  { %v2218_v16 = vadd.f32 %v1526_v36, %v2024_v42  ;;  %v459_v24 = vpop.f32.mrb[23].mxu0  ;;  %v2221_v50 = vadd.f32 %v1558_v44, %v2024_v42  ;;  %v587_v52 = vpop.f32.mrb[23].mxu1 }
 0x121   :  { %716 = vmax.xlane.f32.xlu1 %v2211_v47  ;;  %714 = vmax.xlane.f32.xlu0 %v2215_v48  ;;  %v2226_v53 = vadd.f32 %v2024_v42, %v459_v24  ;;  %v2229_v54 = vadd.f32 %v2024_v42, %v587_v52  ;;  %v2263_v24 = vsel %vm633_vm0, %v436_v62, -1e+30  ;;  %v2267_v52 = vsel %vm633_vm0, %v433_v58, -1e+30 }
 0x122   :  { %3203 = vst [vmem:[#allocation6_spill] sm:$0xff] %v2263_v24  ;;  %3204 = vst [vmem:[#allocation7_spill] sm:$0xff] %v2267_v52  ;;  %v425_v58 = vadd.f32 %v2024_v42, %v2109_v31 }
 0x125   :  { %780 = vmax.xlane.f32.xlu1 %v2237_v2  ;;  %778 = vmax.xlane.f32.xlu0 %v2241_v4  ;;  %v1529_v9 = vpop.f32.mrb[24].mxu0  ;;  %v1561_v10 = vpop.f32.mrb[24].mxu1 }
 0x126   :  { %v2246_v17 = vadd.f32 %v1529_v9, %v2024_v42  ;;  %v472_v29 = vpop.f32.mrb[25].mxu0  ;;  %v2249_v33 = vadd.f32 %v1561_v10, %v2024_v42  ;;  %v600_v18 = vpop.f32.mrb[25].mxu1 }
 0x127   :  { %v2256_v25 = vadd.f32 %v2024_v42, %v472_v29  ;;  %v1530_v26 = vpop.f32.mrb[26].mxu0  ;;  %v2259_v36 = vadd.f32 %v2024_v42, %v600_v18  ;;  %v1562_v44 = vpop.f32.mrb[26].mxu1  ;;  %v428_v18 = vadd.f32 %v2024_v42, %v2127_v39 }
 0x128   :  { %v2270_v30 = vadd.f32 %v1530_v26, %v2024_v42  ;;  %v475_v34 = vpop.f32.mrb[27].mxu0  ;;  %v2273_v9 = vadd.f32 %v1562_v44, %v2024_v42  ;;  %v603_v10 = vpop.f32.mrb[27].mxu1  ;;  %v2289_v26 = vsel %vm633_vm0, %v564_v23, -1e+30  ;;  %v2293_v44 = vsel %vm633_vm0, %v561_v15, -1e+30 }
 0x129   :  { %728 = vmax.xlane.f32.xlu1 %v2263_v24  ;;  %726 = vmax.xlane.f32.xlu0 %v2267_v52  ;;  %v2278_v29 = vadd.f32 %v2024_v42, %v475_v34  ;;  %v2281_v62 = vadd.f32 %v2024_v42, %v603_v10  ;;  %3205 = vst [vmem:[#allocation8_spill] sm:$0xff] %v2289_v26  ;;  %3206 = vst [vmem:[#allocation9_spill] sm:$0xff] %v2293_v44  ;;  %v2315_v2 = vsel %vm633_vm0, %v428_v18, -1e+30 }
 0x12a   :  { %v553_v23 = vadd.f32 %v2024_v42, %v2111_v32  ;;  %v556_v15 = vadd.f32 %v2024_v42, %v2129_v40 }
 0x12c   :  { %v2331_v18 = vsel %vm633_vm0, %v556_v15, -1e+30 }
 0x12d   :  { %792 = vmax.xlane.f32.xlu1 %v2289_v26  ;;  %790 = vmax.xlane.f32.xlu0 %v2293_v44  ;;  %v1533_v34 = vpop.f32.mrb[28].mxu0  ;;  %v1565_v10 = vpop.f32.mrb[28].mxu1 }
 0x12e   :  { %v2298_v52 = vadd.f32 %v1533_v34, %v2024_v42  ;;  %v488_v31 = vpop.f32.mrb[29].mxu0  ;;  %v2301_v39 = vadd.f32 %v1565_v10, %v2024_v42  ;;  %v616_v24 = vpop.f32.mrb[29].mxu1  ;;  %v2319_v10 = vsel %vm633_vm0, %v425_v58, -1e+30  ;;  %v2335_v58 = vsel %vm633_vm0, %v553_v23, -1e+30 }
 0x12f   :  { %v2308_v26 = vadd.f32 %v2024_v42, %v488_v31  ;;  %v1534_v44 = vpop.f32.mrb[30].mxu0  ;;  %v2311_v4 = vadd.f32 %v2024_v42, %v616_v24  ;;  %v1566_v34 = vpop.f32.mrb[30].mxu1  ;;  %v2359_v23 = vsel %vm633_vm0, %v2149_v51, -1e+30  ;;  %v2378_v51 = vsel %vm633_vm0, %v2179_v8, -1e+30 }
 0x130   :  { %v500_v32 = vadd.f32 %v1534_v44, %v2024_v42  ;;  %v491_v48 = vpop.f32.mrb[31].mxu0  ;;  %v628_v40 = vadd.f32 %v1566_v34, %v2024_v42  ;;  %v619_v31 = vpop.f32.mrb[31].mxu1  ;;  %v2342_v44 = vsel %vm633_vm0, %v2168_v1, -1e+30  ;;  %v2371_v1 = vsel %vm633_vm0, %v2154_v57, -1e+30 }
 0x131   :  { %724 = vmax.xlane.f32.xlu1 %v2315_v2  ;;  %722 = vmax.xlane.f32.xlu0 %v2319_v10  ;;  %v492_v24 = vadd.f32 %v2024_v42, %v491_v48  ;;  %v2327_v47 = vadd.f32 %v2024_v42, %v619_v31  ;;  %v2347_v42 = vsel %vm633_vm0, %v2146_v49, -1e+30  ;;  %v2354_v48 = vsel %vm633_vm0, %v2171_v3, -1e+30 }
 0x132   :  { %v2366_v49 = vsel %vm633_vm0, %v2176_v7, -1e+30  ;;  %v2383_v3 = vsel %vm633_vm0, %v2157_v61, -1e+30  ;;  %v2390_v57 = vsel %vm633_vm0, %v2218_v16, -1e+30 }
 0x133   :  { %v2395_v7 = vsel %vm633_vm0, %v2194_v19, -1e+30  ;;  %v2402_v61 = vsel %vm633_vm0, %v2221_v50, -1e+30  ;;  %v2407_v8 = vsel %vm633_vm0, %v2197_v20, -1e+30 }
 0x134   :  { %v2414_v19 = vsel %vm633_vm0, %v2226_v53, -1e+30  ;;  %v2419_v16 = vsel %vm633_vm0, %v2204_v35, -1e+30  ;;  %v2426_v20 = vsel %vm633_vm0, %v2229_v54, -1e+30 }
 0x135   :  { %788 = vmax.xlane.f32.xlu1 %v2331_v18  ;;  %786 = vmax.xlane.f32.xlu0 %v2335_v58  ;;  %v2431_v50 = vsel %vm633_vm0, %v2207_v43, -1e+30  ;;  %v2438_v35 = vsel %vm633_vm0, %v2270_v30, -1e+30  ;;  %v2443_v53 = vsel %vm633_vm0, %v2246_v17, -1e+30 }
 0x136   :  { %v2450_v43 = vsel %vm633_vm0, %v2273_v9, -1e+30  ;;  %v2455_v54 = vsel %vm633_vm0, %v2249_v33, -1e+30  ;;  %v2462_v17 = vsel %vm633_vm0, %v2278_v29, -1e+30 }
 0x137   :  { %v2467_v30 = vsel %vm633_vm0, %v2256_v25, -1e+30  ;;  %v2474_v33 = vsel %vm633_vm0, %v2281_v62, -1e+30  ;;  %v2479_v9 = vsel %vm633_vm0, %v2259_v36, -1e+30 }
 0x138   :  { %v2485_v25 = vsel %vm633_vm0, %v500_v32, -1e+30  ;;  %v2490_v29 = vsel %vm633_vm0, %v2298_v52, -1e+30  ;;  %v2496_v36 = vsel %vm633_vm0, %v628_v40, -1e+30 }
 0x139   :  { %736 = vmax.xlane.f32.xlu1 %v2342_v44  ;;  %734 = vmax.xlane.f32.xlu0 %v2347_v42  ;;  %3207 = vst [vmem:[#allocation10_spill] sm:$0xff] %v2485_v25  ;;  %3208 = vst [vmem:[#allocation11_spill] sm:$0xff] %v2490_v29  ;;  %v2501_v62 = vsel %vm633_vm0, %v2301_v39, -1e+30  ;;  %v2507_v52 = vsel %vm633_vm0, %v492_v24, -1e+30 }
 0x13a   :  { %3209 = vst [vmem:[#allocation12_spill] sm:$0xff] %v2496_v36  ;;  %3210 = vst [vmem:[#allocation13_spill] sm:$0xff] %v2501_v62  ;;  %v2512_v15 = vsel %vm633_vm0, %v2308_v26, -1e+30  ;;  %v2519_v39 = vsel %vm633_vm0, %v2327_v47, -1e+30 }
 0x13b   :  { %3211 = vst [vmem:[#allocation14_spill] sm:$0xff] %v2507_v52  ;;  %3212 = vst [vmem:[#allocation15_spill] sm:$0xff] %v2512_v15  ;;  %v2524_v34 = vsel %vm633_vm0, %v2311_v4, -1e+30 }
 0x13c   :  { %3213 = vst [vmem:[#allocation16_spill] sm:$0xff] %v2519_v39  ;;  %3214 = vst [vmem:[#allocation17_spill] sm:$0xff] %v2524_v34 }
 0x13d   :  { %800 = vmax.xlane.f32.xlu1 %v2354_v48  ;;  %798 = vmax.xlane.f32.xlu0 %v2359_v23 }
 0x141   :  { %732 = vmax.xlane.f32.xlu1 %v2366_v49  ;;  %730 = vmax.xlane.f32.xlu0 %v2371_v1 }
 0x145   :  { %796 = vmax.xlane.f32.xlu1 %v2378_v51  ;;  %794 = vmax.xlane.f32.xlu0 %v2383_v3 }
 0x149   :  { %744 = vmax.xlane.f32.xlu1 %v2390_v57  ;;  %742 = vmax.xlane.f32.xlu0 %v2395_v7 }
 0x14d   :  { %808 = vmax.xlane.f32.xlu1 %v2402_v61  ;;  %806 = vmax.xlane.f32.xlu0 %v2407_v8 }
 0x151   :  { %740 = vmax.xlane.f32.xlu1 %v2414_v19  ;;  %738 = vmax.xlane.f32.xlu0 %v2419_v16 }
 0x155   :  { %804 = vmax.xlane.f32.xlu1 %v2426_v20  ;;  %802 = vmax.xlane.f32.xlu0 %v2431_v50 }
 0x159   :  { %752 = vmax.xlane.f32.xlu1 %v2438_v35  ;;  %750 = vmax.xlane.f32.xlu0 %v2443_v53 }
 0x15d   :  { %816 = vmax.xlane.f32.xlu1 %v2450_v43  ;;  %814 = vmax.xlane.f32.xlu0 %v2455_v54 }
 0x161   :  { %748 = vmax.xlane.f32.xlu1 %v2462_v17  ;;  %746 = vmax.xlane.f32.xlu0 %v2467_v30 }
 0x165   :  { %812 = vmax.xlane.f32.xlu1 %v2474_v33  ;;  %810 = vmax.xlane.f32.xlu0 %v2479_v9 }
 0x169   :  { %760 = vmax.xlane.f32.xlu1 %v2485_v25  ;;  %758 = vmax.xlane.f32.xlu0 %v2490_v29 }
 0x16d   :  { %824 = vmax.xlane.f32.xlu1 %v2496_v36  ;;  %822 = vmax.xlane.f32.xlu0 %v2501_v62 }
 0x171   :  { %756 = vmax.xlane.f32.xlu1 %v2507_v52  ;;  %754 = vmax.xlane.f32.xlu0 %v2512_v15 }
 0x175   :  { %820 = vmax.xlane.f32.xlu1 %v2519_v39  ;;  %818 = vmax.xlane.f32.xlu0 %v2524_v34 }
 0x186   :  { %v767_v26 = vpop.xlane.xlu0 %766  ;;  %v703_v32 = vpop.xlane.xlu1 %702 }
 0x187   :  { %v860_v40 = vsub.f32 %v2033_v55, %v767_v26  ;;  %v828_v31 = vsub.f32 %v2037_v56, %v703_v32 }
 0x189   :  { %v894_v24 = vmul.f32 1.442695, %v828_v31  ;;  %v958_v62 = vmul.f32 1.442695, %v860_v40 }
 0x18a   :  { %v705_v36 = vpop.xlane.xlu1 %704  ;;  %v699_v47 = vpop.xlane.xlu0 %698 }
 0x18b   :  { %v829_v15 = vsub.f32 %v2045_v59, %v705_v36  ;;  %v826_v52 = vsub.f32 %v2049_v60, %v699_v47  ;;  %1623 = vpow2.f32 %v894_v24 }
 0x18c   :  { %1625 = vpow2.f32 %v958_v62 }
 0x18d   :  { %v896_v4 = vmul.f32 1.442695, %v829_v15  ;;  %v890_v39 = vmul.f32 1.442695, %v826_v52 }
 0x18e   :  { %v769_v29 = vpop.xlane.xlu1 %768  ;;  %v763_v34 = vpop.xlane.xlu0 %762 }
 0x18f   :  { %1627 = vpow2.f32 %v896_v4  ;;  %v861_v25 = vsub.f32 %v2057_v5, %v769_v29  ;;  %v858_v55 = vsub.f32 %v2061_v6, %v763_v34 }
 0x190   :  { %1629 = vpow2.f32 %v890_v39 }
 0x191   :  { %v960_v56 = vmul.f32 1.442695, %v861_v25  ;;  %v954_v26 = vmul.f32 1.442695, %v858_v55 }
 0x192   :  { %v765_v32 = vpop.xlane.xlu1 %764  ;;  %v701_v40 = vpop.xlane.xlu0 %700 }
 0x193   :  { %1631 = vpow2.f32 %v960_v56  ;;  %v859_v59 = vsub.f32 %v2069_v11, %v765_v32  ;;  %v827_v60 = vsub.f32 %v2073_v12, %v701_v40 }
 0x194   :  { %1633 = vpow2.f32 %v954_v26 }
 0x195   :  { %v892_v36 = vmul.f32 1.442695, %v827_v60  ;;  %v1624_v62 = vpop.eup %1623  ;;  %v956_v52 = vmul.f32 1.442695, %v859_v59 }
 0x196   :  { %v713_v15 = vpop.xlane.xlu1 %712  ;;  %v711_v31 = vpop.xlane.xlu0 %710  ;;  %v2540_v25 = vsel %vm633_vm0, %v1624_v62, 0.0 }
 0x197   :  { %v833_v5 = vsub.f32 %v2083_v21, %v713_v15  ;;  %v832_v6 = vsub.f32 %v2087_v22, %v711_v31  ;;  %v1626_v29 = vpop.eup %1625  ;;  %1635 = vpow2.f32 %v892_v36  ;;  %1086 = vadd.xlane.f32.xlu0 %v2540_v25 }
 0x198   :  { %1637 = vpow2.f32 %v956_v52  ;;  %v2552_v4 = vsel %vm633_vm0, %v1626_v29, 0.0 }
 0x199   :  { %v1628_v11 = vpop.eup %1627  ;;  %v902_v12 = vmul.f32 1.442695, %v832_v6  ;;  %v904_v39 = vmul.f32 1.442695, %v833_v5 }
 0x19a   :  { %v777_v34 = vpop.xlane.xlu1 %776  ;;  %v775_v24 = vpop.xlane.xlu0 %774  ;;  %v2545_v47 = vsel %vm633_vm0, %v1628_v11, 0.0 }
 0x19b   :  { %v865_v21 = vsub.f32 %v2097_v27, %v777_v34  ;;  %v864_v22 = vsub.f32 %v2101_v28, %v775_v24  ;;  %1088 = vadd.xlane.f32.xlu1 %v2545_v47  ;;  %v1630_v55 = vpop.eup %1629  ;;  %1639 = vpow2.f32 %v902_v12  ;;  %1150 = vadd.xlane.f32.xlu0 %v2552_v4 }
 0x19c   :  { %1641 = vpow2.f32 %v904_v39  ;;  %v2564_v36 = vsel %vm633_vm0, %v1630_v55, 0.0 }
 0x19d   :  { %v1632_v56 = vpop.eup %1631  ;;  %v966_v26 = vmul.f32 1.442695, %v864_v22  ;;  %v968_v32 = vmul.f32 1.442695, %v865_v21 }
 0x19e   :  { %v709_v40 = vpop.xlane.xlu1 %708  ;;  %v707_v59 = vpop.xlane.xlu0 %706  ;;  %v2557_v27 = vsel %vm633_vm0, %v1632_v56, 0.0 }
 0x19f   :  { %v831_v28 = vsub.f32 %v2121_v37, %v709_v40  ;;  %v830_v60 = vsub.f32 %v2125_v38, %v707_v59  ;;  %1152 = vadd.xlane.f32.xlu1 %v2557_v27  ;;  %v1634_v62 = vpop.eup %1633  ;;  %1643 = vpow2.f32 %v966_v26  ;;  %1082 = vadd.xlane.f32.xlu0 %v2564_v36 }
 0x1a0   :  { %1645 = vpow2.f32 %v968_v32  ;;  %v2571_v29 = vsel %vm633_vm0, %v1634_v62, 0.0 }
 0x1a1   :  { %v898_v52 = vmul.f32 1.442695, %v830_v60  ;;  %v1636_v15 = vpop.eup %1635  ;;  %v900_v31 = vmul.f32 1.442695, %v831_v28 }
 0x1a2   :  { %v773_v5 = vpop.xlane.xlu1 %772  ;;  %v771_v6 = vpop.xlane.xlu0 %770  ;;  %v2575_v11 = vsel %vm633_vm0, %v1636_v15, 0.0 }
 0x1a3   :  { %v863_v37 = vsub.f32 %v2137_v45, %v773_v5  ;;  %v862_v38 = vsub.f32 %v2141_v46, %v771_v6  ;;  %v1638_v12 = vpop.eup %1637  ;;  %1647 = vpow2.f32 %v898_v52  ;;  %1146 = vadd.xlane.f32.xlu0 %v2571_v29  ;;  %1084 = vadd.xlane.f32.xlu1 %v2575_v11 }
 0x1a4   :  { %1649 = vpow2.f32 %v900_v31  ;;  %v2583_v55 = vsel %vm633_vm0, %v1638_v12, 0.0  ;;  %v3216_v12 = vld [vmem:[#allocation3_spill] sm:$0xff] }
 0x1a5   :  { %v962_v39 = vmul.f32 1.442695, %v862_v38  ;;  %v1640_v34 = vpop.eup %1639  ;;  %v964_v45 = vmul.f32 1.442695, %v863_v37  ;;  %v3215_v37 = vld [vmem:[#allocation2_spill] sm:$0xff] }
 0x1a6   :  { %v721_v24 = vpop.xlane.xlu1 %720  ;;  %v719_v46 = vpop.xlane.xlu0 %718  ;;  %v2587_v56 = vsel %vm633_vm0, %v1640_v34, 0.0 }
 0x1a7   :  { %v837_v21 = vsub.f32 %v2161_v63, %v721_v24  ;;  %v836_v22 = vsub.f32 %v2165_v0, %v719_v46  ;;  %v1642_v26 = vpop.eup %1641  ;;  %1651 = vpow2.f32 %v962_v39  ;;  %1148 = vadd.xlane.f32.xlu1 %v2583_v55  ;;  %1094 = vadd.xlane.f32.xlu0 %v2587_v56 }
 0x1a8   :  { %1653 = vpow2.f32 %v964_v45  ;;  %v2595_v62 = vsel %vm633_vm0, %v1642_v26, 0.0 }
 0x1a9   :  { %v910_v32 = vmul.f32 1.442695, %v836_v22  ;;  %v1644_v40 = vpop.eup %1643  ;;  %v912_v63 = vmul.f32 1.442695, %v837_v21 }
 0x1aa   :  { %v785_v59 = vpop.xlane.xlu1 %784  ;;  %v783_v0 = vpop.xlane.xlu0 %782  ;;  %v2599_v52 = vsel %vm633_vm0, %v1644_v40, 0.0  ;;  %v3217_v40 = vld [vmem:[#allocation4_spill] sm:$0xff] }
 0x1ab   :  { %v869_v28 = vsub.f32 %v2185_v13, %v785_v59  ;;  %v868_v60 = vsub.f32 %v2189_v14, %v783_v0  ;;  %v1646_v15 = vpop.eup %1645  ;;  %1655 = vpow2.f32 %v910_v32  ;;  %1096 = vadd.xlane.f32.xlu1 %v2595_v62  ;;  %1158 = vadd.xlane.f32.xlu0 %v2599_v52  ;;  %v3218_v59 = vld [vmem:[#allocation5_spill] sm:$0xff] }
 0x1ac   :  { %1657 = vpow2.f32 %v912_v63  ;;  %v2607_v34 = vsel %vm633_vm0, %v1646_v15, 0.0 }
 0x1ad   :  { %v974_v31 = vmul.f32 1.442695, %v868_v60  ;;  %v1648_v5 = vpop.eup %1647  ;;  %v976_v13 = vmul.f32 1.442695, %v869_v28 }
 0x1ae   :  { %v717_v6 = vpop.xlane.xlu1 %716  ;;  %v715_v14 = vpop.xlane.xlu0 %714  ;;  %v2611_v45 = vsel %vm633_vm0, %v1648_v5, 0.0 }
 0x1af   :  { %v835_v38 = vsub.f32 %v3215_v37, %v717_v6  ;;  %v834_v39 = vsub.f32 %v3216_v12, %v715_v14  ;;  %v1650_v24 = vpop.eup %1649  ;;  %1659 = vpow2.f32 %v974_v31  ;;  %1160 = vadd.xlane.f32.xlu1 %v2607_v34  ;;  %1090 = vadd.xlane.f32.xlu0 %v2611_v45  ;;  %v3219_v37 = vld [vmem:[#allocation6_spill] sm:$0xff]  ;;  %v3220_v12 = vld [vmem:[#allocation7_spill] sm:$0xff] }
 0x1b0   :  { %1661 = vpow2.f32 %v976_v13  ;;  %v2619_v28 = vsel %vm633_vm0, %v1650_v24, 0.0 }
 0x1b1   :  { %v906_v46 = vmul.f32 1.442695, %v834_v39  ;;  %v1652_v21 = vpop.eup %1651  ;;  %v908_v22 = vmul.f32 1.442695, %v835_v38 }
 0x1b2   :  { %v781_v26 = vpop.xlane.xlu1 %780  ;;  %v779_v32 = vpop.xlane.xlu0 %778  ;;  %v2623_v60 = vsel %vm633_vm0, %v1652_v21, 0.0 }
 0x1b3   :  { %v867_v63 = vsub.f32 %v3217_v40, %v781_v26  ;;  %v866_v0 = vsub.f32 %v3218_v59, %v779_v32  ;;  %v1654_v15 = vpop.eup %1653  ;;  %1663 = vpow2.f32 %v906_v46  ;;  %1092 = vadd.xlane.f32.xlu1 %v2619_v28  ;;  %1154 = vadd.xlane.f32.xlu0 %v2623_v60  ;;  %v3221_v59 = vld [vmem:[#allocation8_spill] sm:$0xff] }
 0x1b4   :  { %1665 = vpow2.f32 %v908_v22  ;;  %v2631_v24 = vsel %vm633_vm0, %v1654_v15, 0.0  ;;  %v3222_v15 = vld [vmem:[#allocation9_spill] sm:$0xff] }
 0x1b5   :  { %v970_v31 = vmul.f32 1.442695, %v866_v0  ;;  %v1656_v5 = vpop.eup %1655  ;;  %v972_v13 = vmul.f32 1.442695, %v867_v63 }
 0x1b6   :  { %v729_v6 = vpop.xlane.xlu1 %728  ;;  %v727_v14 = vpop.xlane.xlu0 %726  ;;  %v2635_v46 = vsel %vm633_vm0, %v1656_v5, 0.0 }
 0x1b7   :  { %v841_v38 = vsub.f32 %v3219_v37, %v729_v6  ;;  %v840_v39 = vsub.f32 %v3220_v12, %v727_v14  ;;  %v1658_v21 = vpop.eup %1657  ;;  %1667 = vpow2.f32 %v970_v31  ;;  %1156 = vadd.xlane.f32.xlu1 %v2631_v24  ;;  %1102 = vadd.xlane.f32.xlu0 %v2635_v46 }
 0x1b8   :  { %1669 = vpow2.f32 %v972_v13  ;;  %v2643_v5 = vsel %vm633_vm0, %v1658_v21, 0.0 }
 0x1b9   :  { %v918_v22 = vmul.f32 1.442695, %v840_v39  ;;  %v1660_v26 = vpop.eup %1659  ;;  %v920_v32 = vmul.f32 1.442695, %v841_v38 }
 0x1ba   :  { %v793_v40 = vpop.xlane.xlu1 %792  ;;  %v791_v63 = vpop.xlane.xlu0 %790  ;;  %v2647_v31 = vsel %vm633_vm0, %v1660_v26, 0.0 }
 0x1bb   :  { %v873_v0 = vsub.f32 %v3221_v59, %v793_v40  ;;  %v872_v6 = vsub.f32 %v3222_v15, %v791_v63  ;;  %v1662_v14 = vpop.eup %1661  ;;  %1671 = vpow2.f32 %v918_v22  ;;  %1104 = vadd.xlane.f32.xlu1 %v2643_v5  ;;  %1166 = vadd.xlane.f32.xlu0 %v2647_v31 }
 0x1bc   :  { %1673 = vpow2.f32 %v920_v32  ;;  %v2655_v26 = vsel %vm633_vm0, %v1662_v14, 0.0 }
 0x1bd   :  { %v982_v13 = vmul.f32 1.442695, %v872_v6  ;;  %v1664_v37 = vpop.eup %1663  ;;  %v984_v38 = vmul.f32 1.442695, %v873_v0 }
 0x1be   :  { %v725_v12 = vpop.xlane.xlu1 %724  ;;  %v723_v39 = vpop.xlane.xlu0 %722  ;;  %v2659_v22 = vsel %vm633_vm0, %v1664_v37, 0.0 }
 0x1bf   :  { %v839_v40 = vsub.f32 %v2315_v2, %v725_v12  ;;  %v838_v21 = vsub.f32 %v2319_v10, %v723_v39  ;;  %v1666_v63 = vpop.eup %1665  ;;  %1675 = vpow2.f32 %v982_v13  ;;  %1168 = vadd.xlane.f32.xlu1 %v2655_v26  ;;  %1098 = vadd.xlane.f32.xlu0 %v2659_v22 }
 0x1c0   :  { %1677 = vpow2.f32 %v984_v38  ;;  %v2667_v14 = vsel %vm633_vm0, %v1666_v63, 0.0 }
 0x1c1   :  { %v914_v32 = vmul.f32 1.442695, %v838_v21  ;;  %v1668_v59 = vpop.eup %1667  ;;  %v916_v2 = vmul.f32 1.442695, %v839_v40 }
 0x1c2   :  { %v789_v0 = vpop.xlane.xlu1 %788  ;;  %v787_v10 = vpop.xlane.xlu0 %786  ;;  %v2671_v13 = vsel %vm633_vm0, %v1668_v59, 0.0 }
 0x1c3   :  { %v871_v15 = vsub.f32 %v2331_v18, %v789_v0  ;;  %v870_v6 = vsub.f32 %v2335_v58, %v787_v10  ;;  %v1670_v37 = vpop.eup %1669  ;;  %1679 = vpow2.f32 %v914_v32  ;;  %1100 = vadd.xlane.f32.xlu1 %v2667_v14  ;;  %1162 = vadd.xlane.f32.xlu0 %v2671_v13 }
 0x1c4   :  { %1681 = vpow2.f32 %v916_v2  ;;  %v2679_v63 = vsel %vm633_vm0, %v1670_v37, 0.0 }
 0x1c5   :  { %v978_v38 = vmul.f32 1.442695, %v870_v6  ;;  %v1672_v12 = vpop.eup %1671  ;;  %v980_v18 = vmul.f32 1.442695, %v871_v15 }
 0x1c6   :  { %v737_v39 = vpop.xlane.xlu1 %736  ;;  %v735_v58 = vpop.xlane.xlu0 %734  ;;  %v2683_v32 = vsel %vm633_vm0, %v1672_v12, 0.0 }
 0x1c7   :  { %v845_v40 = vsub.f32 %v2342_v44, %v737_v39  ;;  %v844_v21 = vsub.f32 %v2347_v42, %v735_v58  ;;  %v1674_v59 = vpop.eup %1673  ;;  %1683 = vpow2.f32 %v978_v38  ;;  %1164 = vadd.xlane.f32.xlu1 %v2679_v63  ;;  %1110 = vadd.xlane.f32.xlu0 %v2683_v32 }
 0x1c8   :  { %1685 = vpow2.f32 %v980_v18  ;;  %v2691_v37 = vsel %vm633_vm0, %v1674_v59, 0.0 }
 0x1c9   :  { %v926_v2 = vmul.f32 1.442695, %v844_v21  ;;  %v1676_v0 = vpop.eup %1675  ;;  %v928_v44 = vmul.f32 1.442695, %v845_v40 }
 0x1ca   :  { %v801_v10 = vpop.xlane.xlu1 %800  ;;  %v799_v42 = vpop.xlane.xlu0 %798  ;;  %v2695_v38 = vsel %vm633_vm0, %v1676_v0, 0.0 }
 0x1cb   :  { %v877_v15 = vsub.f32 %v2354_v48, %v801_v10  ;;  %v876_v6 = vsub.f32 %v2359_v23, %v799_v42  ;;  %v1678_v12 = vpop.eup %1677  ;;  %1687 = vpow2.f32 %v926_v2  ;;  %1112 = vadd.xlane.f32.xlu1 %v2691_v37  ;;  %1174 = vadd.xlane.f32.xlu0 %v2695_v38 }
 0x1cc   :  { %1689 = vpow2.f32 %v928_v44  ;;  %v2703_v59 = vsel %vm633_vm0, %v1678_v12, 0.0 }
 0x1cd   :  { %v990_v18 = vmul.f32 1.442695, %v876_v6  ;;  %v1680_v39 = vpop.eup %1679  ;;  %v992_v48 = vmul.f32 1.442695, %v877_v15 }
 0x1ce   :  { %v733_v58 = vpop.xlane.xlu1 %732  ;;  %v731_v23 = vpop.xlane.xlu0 %730  ;;  %v2707_v2 = vsel %vm633_vm0, %v1680_v39, 0.0 }
 0x1cf   :  { %v843_v40 = vsub.f32 %v2366_v49, %v733_v58  ;;  %v842_v21 = vsub.f32 %v2371_v1, %v731_v23  ;;  %v1682_v0 = vpop.eup %1681  ;;  %1691 = vpow2.f32 %v990_v18  ;;  %1176 = vadd.xlane.f32.xlu1 %v2703_v59  ;;  %1106 = vadd.xlane.f32.xlu0 %v2707_v2 }
 0x1d0   :  { %1693 = vpow2.f32 %v992_v48  ;;  %v2715_v12 = vsel %vm633_vm0, %v1682_v0, 0.0 }
 0x1d1   :  { %v922_v44 = vmul.f32 1.442695, %v842_v21  ;;  %v1684_v10 = vpop.eup %1683  ;;  %v924_v49 = vmul.f32 1.442695, %v843_v40 }
 0x1d2   :  { %v797_v42 = vpop.xlane.xlu1 %796  ;;  %v795_v1 = vpop.xlane.xlu0 %794  ;;  %v2719_v18 = vsel %vm633_vm0, %v1684_v10, 0.0 }
 0x1d3   :  { %v875_v15 = vsub.f32 %v2378_v51, %v797_v42  ;;  %v874_v6 = vsub.f32 %v2383_v3, %v795_v1  ;;  %v1686_v39 = vpop.eup %1685  ;;  %1695 = vpow2.f32 %v922_v44  ;;  %1108 = vadd.xlane.f32.xlu1 %v2715_v12  ;;  %1170 = vadd.xlane.f32.xlu0 %v2719_v18 }
 0x1d4   :  { %1697 = vpow2.f32 %v924_v49  ;;  %v2727_v0 = vsel %vm633_vm0, %v1686_v39, 0.0 }
 0x1d5   :  { %v986_v48 = vmul.f32 1.442695, %v874_v6  ;;  %v1688_v58 = vpop.eup %1687  ;;  %v988_v51 = vmul.f32 1.442695, %v875_v15 }
 0x1d6   :  { %v745_v23 = vpop.xlane.xlu1 %744  ;;  %v743_v3 = vpop.xlane.xlu0 %742  ;;  %v2731_v44 = vsel %vm633_vm0, %v1688_v58, 0.0 }
 0x1d7   :  { %v849_v40 = vsub.f32 %v2390_v57, %v745_v23  ;;  %v848_v21 = vsub.f32 %v2395_v7, %v743_v3  ;;  %v1690_v10 = vpop.eup %1689  ;;  %1699 = vpow2.f32 %v986_v48  ;;  %1172 = vadd.xlane.f32.xlu1 %v2727_v0  ;;  %1118 = vadd.xlane.f32.xlu0 %v2731_v44 }
 0x1d8   :  { %1701 = vpow2.f32 %v988_v51  ;;  %v2739_v39 = vsel %vm633_vm0, %v1690_v10, 0.0 }
 0x1d9   :  { %v934_v49 = vmul.f32 1.442695, %v848_v21  ;;  %v1692_v42 = vpop.eup %1691  ;;  %v936_v57 = vmul.f32 1.442695, %v849_v40 }
 0x1da   :  { %v809_v1 = vpop.xlane.xlu1 %808  ;;  %v807_v7 = vpop.xlane.xlu0 %806  ;;  %v2743_v48 = vsel %vm633_vm0, %v1692_v42, 0.0 }
 0x1db   :  { %v881_v15 = vsub.f32 %v2402_v61, %v809_v1  ;;  %v880_v6 = vsub.f32 %v2407_v8, %v807_v7  ;;  %v1694_v58 = vpop.eup %1693  ;;  %1703 = vpow2.f32 %v934_v49  ;;  %1120 = vadd.xlane.f32.xlu1 %v2739_v39  ;;  %1182 = vadd.xlane.f32.xlu0 %v2743_v48 }
 0x1dc   :  { %1705 = vpow2.f32 %v936_v57  ;;  %v2751_v10 = vsel %vm633_vm0, %v1694_v58, 0.0 }
 0x1dd   :  { %v998_v51 = vmul.f32 1.442695, %v880_v6  ;;  %v1696_v23 = vpop.eup %1695  ;;  %v1000_v61 = vmul.f32 1.442695, %v881_v15 }
 0x1de   :  { %v741_v3 = vpop.xlane.xlu1 %740  ;;  %v739_v8 = vpop.xlane.xlu0 %738  ;;  %v2755_v49 = vsel %vm633_vm0, %v1696_v23, 0.0 }
 0x1df   :  { %v847_v40 = vsub.f32 %v2414_v19, %v741_v3  ;;  %v846_v21 = vsub.f32 %v2419_v16, %v739_v8  ;;  %v1698_v42 = vpop.eup %1697  ;;  %1707 = vpow2.f32 %v998_v51  ;;  %1184 = vadd.xlane.f32.xlu1 %v2751_v10  ;;  %1114 = vadd.xlane.f32.xlu0 %v2755_v49 }
 0x1e0   :  { %1709 = vpow2.f32 %v1000_v61  ;;  %v2763_v58 = vsel %vm633_vm0, %v1698_v42, 0.0 }
 0x1e1   :  { %v930_v57 = vmul.f32 1.442695, %v846_v21  ;;  %v1700_v1 = vpop.eup %1699  ;;  %v932_v19 = vmul.f32 1.442695, %v847_v40 }
 0x1e2   :  { %v805_v7 = vpop.xlane.xlu1 %804  ;;  %v803_v16 = vpop.xlane.xlu0 %802  ;;  %v2767_v51 = vsel %vm633_vm0, %v1700_v1, 0.0 }
 0x1e3   :  { %v879_v15 = vsub.f32 %v2426_v20, %v805_v7  ;;  %v878_v6 = vsub.f32 %v2431_v50, %v803_v16  ;;  %v1702_v23 = vpop.eup %1701  ;;  %1711 = vpow2.f32 %v930_v57  ;;  %1116 = vadd.xlane.f32.xlu1 %v2763_v58  ;;  %1178 = vadd.xlane.f32.xlu0 %v2767_v51 }
 0x1e4   :  { %1713 = vpow2.f32 %v932_v19  ;;  %v2775_v42 = vsel %vm633_vm0, %v1702_v23, 0.0 }
 0x1e5   :  { %v994_v61 = vmul.f32 1.442695, %v878_v6  ;;  %v1704_v3 = vpop.eup %1703  ;;  %v996_v20 = vmul.f32 1.442695, %v879_v15 }
 0x1e6   :  { %v753_v8 = vpop.xlane.xlu1 %752  ;;  %v751_v50 = vpop.xlane.xlu0 %750  ;;  %v2779_v57 = vsel %vm633_vm0, %v1704_v3, 0.0 }
 0x1e7   :  { %v853_v40 = vsub.f32 %v2438_v35, %v753_v8  ;;  %v852_v21 = vsub.f32 %v2443_v53, %v751_v50  ;;  %v1706_v1 = vpop.eup %1705  ;;  %1715 = vpow2.f32 %v994_v61  ;;  %1180 = vadd.xlane.f32.xlu1 %v2775_v42  ;;  %1126 = vadd.xlane.f32.xlu0 %v2779_v57 }
 0x1e8   :  { %1717 = vpow2.f32 %v996_v20  ;;  %v2787_v23 = vsel %vm633_vm0, %v1706_v1, 0.0 }
 0x1e9   :  { %v942_v19 = vmul.f32 1.442695, %v852_v21  ;;  %v1708_v7 = vpop.eup %1707  ;;  %v944_v35 = vmul.f32 1.442695, %v853_v40 }
 0x1ea   :  { %v817_v16 = vpop.xlane.xlu1 %816  ;;  %v815_v53 = vpop.xlane.xlu0 %814  ;;  %v2791_v61 = vsel %vm633_vm0, %v1708_v7, 0.0 }
 0x1eb   :  { %v885_v15 = vsub.f32 %v2450_v43, %v817_v16  ;;  %v884_v6 = vsub.f32 %v2455_v54, %v815_v53  ;;  %v1710_v3 = vpop.eup %1709  ;;  %1719 = vpow2.f32 %v942_v19  ;;  %1128 = vadd.xlane.f32.xlu1 %v2787_v23  ;;  %1190 = vadd.xlane.f32.xlu0 %v2791_v61 }
 0x1ec   :  { %1721 = vpow2.f32 %v944_v35  ;;  %v2799_v1 = vsel %vm633_vm0, %v1710_v3, 0.0 }
 0x1ed   :  { %v1006_v20 = vmul.f32 1.442695, %v884_v6  ;;  %v1712_v8 = vpop.eup %1711  ;;  %v1008_v43 = vmul.f32 1.442695, %v885_v15  ;;  %3223 = vst [vmem:[#allocation2_spill] sm:$0xff] %v2799_v1 }
 0x1ee   :  { %v749_v50 = vpop.xlane.xlu1 %748  ;;  %v747_v54 = vpop.xlane.xlu0 %746  ;;  %v2803_v19 = vsel %vm633_vm0, %v1712_v8, 0.0 }
 0x1ef   :  { %v851_v40 = vsub.f32 %v2462_v17, %v749_v50  ;;  %v850_v21 = vsub.f32 %v2467_v30, %v747_v54  ;;  %3224 = vst [vmem:[#allocation3_spill] sm:$0xff] %v2803_v19  ;;  %v1714_v7 = vpop.eup %1713  ;;  %1723 = vpow2.f32 %v1006_v20  ;;  %1192 = vadd.xlane.f32.xlu1 %v2799_v1  ;;  %1122 = vadd.xlane.f32.xlu0 %v2803_v19  ;;  %v3240_v1 = vld [vmem:[#allocation17_spill] sm:$0xff] }
 0x1f0   :  { %1725 = vpow2.f32 %v1008_v43  ;;  %v2811_v3 = vsel %vm633_vm0, %v1714_v7, 0.0  ;;  %v3228_v7 = vld [vmem:[#allocation11_spill] sm:$0xff] }
 0x1f1   :  { %v940_v35 = vmul.f32 1.442695, %v851_v40  ;;  %v938_v16 = vmul.f32 1.442695, %v850_v21  ;;  %v1716_v53 = vpop.eup %1715  ;;  %3225 = vst [vmem:[#allocation4_spill] sm:$0xff] %v2811_v3  ;;  %v3227_v40 = vld [vmem:[#allocation10_spill] sm:$0xff] }
 0x1f2   :  { %v813_v17 = vpop.xlane.xlu1 %812  ;;  %v811_v30 = vpop.xlane.xlu0 %810  ;;  %v2815_v20 = vsel %vm633_vm0, %v1716_v53, 0.0 }
 0x1f3   :  { %v883_v15 = vsub.f32 %v2474_v33, %v813_v17  ;;  %v882_v6 = vsub.f32 %v2479_v9, %v811_v30  ;;  %3226 = vst [vmem:[#allocation5_spill] sm:$0xff] %v2815_v20  ;;  %v1718_v8 = vpop.eup %1717  ;;  %1727 = vpow2.f32 %v938_v16  ;;  %1124 = vadd.xlane.f32.xlu1 %v2811_v3  ;;  %1186 = vadd.xlane.f32.xlu0 %v2815_v20 }
 0x1f4   :  { %1729 = vpow2.f32 %v940_v35  ;;  %v2823_v53 = vsel %vm633_vm0, %v1718_v8, 0.0 }
 0x1f5   :  { %v1002_v43 = vmul.f32 1.442695, %v882_v6  ;;  %v1720_v50 = vpop.eup %1719  ;;  %v1004_v33 = vmul.f32 1.442695, %v883_v15  ;;  %3229 = vst [vmem:[#allocation6_spill] sm:$0xff] %v2823_v53 }
 0x1f6   :  { %v761_v54 = vpop.xlane.xlu1 %760  ;;  %v759_v9 = vpop.xlane.xlu0 %758  ;;  %v2827_v16 = vsel %vm633_vm0, %v1720_v50, 0.0 }
 0x1f7   :  { %v857_v21 = vsub.f32 %v3227_v40, %v761_v54  ;;  %v856_v17 = vsub.f32 %v3228_v7, %v759_v9  ;;  %3230 = vst [vmem:[#allocation7_spill] sm:$0xff] %v2827_v16  ;;  %v1722_v30 = vpop.eup %1721  ;;  %1731 = vpow2.f32 %v1002_v43  ;;  %1188 = vadd.xlane.f32.xlu1 %v2823_v53  ;;  %1134 = vadd.xlane.f32.xlu0 %v2827_v16  ;;  %v3234_v53 = vld [vmem:[#allocation15_spill] sm:$0xff] }
 0x1f8   :  { %1733 = vpow2.f32 %v1004_v33  ;;  %v2833_v8 = vsel %vm633_vm0, %v1722_v30, 0.0 }
 0x1f9   :  { %v950_v35 = vmul.f32 1.442695, %v856_v17  ;;  %v1724_v15 = vpop.eup %1723  ;;  %v952_v6 = vmul.f32 1.442695, %v857_v21  ;;  %3231 = vst [vmem:[#allocation8_spill] sm:$0xff] %v2833_v8  ;;  %v3233_v17 = vld [vmem:[#allocation14_spill] sm:$0xff] }
 0x1fa   :  { %v825_v54 = vpop.xlane.xlu1 %824  ;;  %v823_v9 = vpop.xlane.xlu0 %822  ;;  %v2837_v50 = vsel %vm633_vm0, %v1724_v15, 0.0  ;;  %v3237_v15 = vld [vmem:[#allocation12_spill] sm:$0xff] }
 0x1fb   :  { %3232 = vst [vmem:[#allocation9_spill] sm:$0xff] %v2837_v50  ;;  %v1726_v40 = vpop.eup %1725  ;;  %1735 = vpow2.f32 %v950_v35  ;;  %1136 = vadd.xlane.f32.xlu1 %v2833_v8  ;;  %1198 = vadd.xlane.f32.xlu0 %v2837_v50 }
 0x1fc   :  { %1737 = vpow2.f32 %v952_v6  ;;  %v2845_v20 = vsel %vm633_vm0, %v1726_v40, 0.0  ;;  %v889_v6 = vsub.f32 %v3237_v15, %v825_v54 }
 0x1fd   :  { %v1728_v43 = vpop.eup %1727  ;;  %3235 = vst [vmem:[#allocation10_spill] sm:$0xff] %v2845_v20 }
 0x1fe   :  { %v757_v33 = vpop.xlane.xlu1 %756  ;;  %v755_v21 = vpop.xlane.xlu0 %754  ;;  %v2849_v35 = vsel %vm633_vm0, %v1728_v43, 0.0  ;;  %v3239_v43 = vld [vmem:[#allocation16_spill] sm:$0xff]  ;;  %v1016_v54 = vmul.f32 1.442695, %v889_v6 }
 0x1ff   :  { %v1730_v7 = vpop.eup %1729  ;;  %v855_v16 = vsub.f32 %v3233_v17, %v757_v33  ;;  %v854_v30 = vsub.f32 %v3234_v53, %v755_v21  ;;  %3236 = vst [vmem:[#allocation11_spill] sm:$0xff] %v2849_v35  ;;  %1200 = vadd.xlane.f32.xlu1 %v2845_v20  ;;  %1130 = vadd.xlane.f32.xlu0 %v2849_v35  ;;  %v3238_v33 = vld [vmem:[#allocation13_spill] sm:$0xff] }
 0x200   :  { %v888_v17 = vsub.f32 %v3238_v33, %v823_v9  ;;  %v2857_v40 = vsel %vm633_vm0, %v1730_v7, 0.0 }
 0x201   :  { %v948_v50 = vmul.f32 1.442695, %v855_v16  ;;  %v946_v8 = vmul.f32 1.442695, %v854_v30  ;;  %v1732_v3 = vpop.eup %1731 }
 0x202   :  { %v821_v53 = vpop.xlane.xlu1 %820  ;;  %v819_v21 = vpop.xlane.xlu0 %818  ;;  %v2863_v35 = vsel %vm633_vm0, %v1732_v3, 0.0  ;;  %v1014_v15 = vmul.f32 1.442695, %v888_v17 }
 0x203   :  { %1739 = vpow2.f32 %v948_v50  ;;  %v887_v19 = vsub.f32 %v3239_v43, %v821_v53  ;;  %v886_v20 = vsub.f32 %v3240_v1, %v819_v21  ;;  %v1734_v16 = vpop.eup %1733  ;;  %1132 = vadd.xlane.f32.xlu1 %v2857_v40  ;;  %1194 = vadd.xlane.f32.xlu0 %v2863_v35 }
 0x204   :  { %1741 = vpow2.f32 %v946_v8  ;;  %v2869_v50 = vsel %vm633_vm0, %v1734_v16, 0.0 }
 0x205   :  { %v1012_v9 = vmul.f32 1.442695, %v887_v19  ;;  %v1010_v30 = vmul.f32 1.442695, %v886_v20  ;;  %v1736_v7 = vpop.eup %1735 }
 0x206   :  { %v2873_v1 = vsel %vm633_vm0, %v1736_v7, 0.0  ;;  %v1738_v3 = vpop.eup %1737 }
 0x207   :  { %1743 = vpow2.f32 %v1012_v9  ;;  %1196 = vadd.xlane.f32.xlu1 %v2869_v50  ;;  %1142 = vadd.xlane.f32.xlu0 %v2873_v1  ;;  %v2879_v19 = vsel %vm633_vm0, %v1738_v3, 0.0 }
 0x208   :  { %1745 = vpow2.f32 %v1010_v30 }
 0x209   :  { %1747 = vpow2.f32 %v1016_v54 }
 0x20a   :  { %1749 = vpow2.f32 %v1014_v15 }
 0x20b   :  { %1144 = vadd.xlane.f32.xlu1 %v2879_v19 }
 0x20d   :  { %v1740_v20 = vpop.eup %1739 }
 0x20e   :  { %v1742_v8 = vpop.eup %1741  ;;  %v2884_v6 = vsel %vm633_vm0, %v1740_v20, 0.0 }
 0x20f   :  { %v2888_v33 = vsel %vm633_vm0, %v1742_v8, 0.0  ;;  %1140 = vadd.xlane.f32.xlu1 %v2884_v6 }
 0x210   :  { %1138 = vadd.xlane.f32.xlu0 %v2888_v33 }
 0x211   :  { %v1744_v17 = vpop.eup %1743 }
 0x212   :  { %v1746_v53 = vpop.eup %1745  ;;  %v2894_v21 = vsel %vm633_vm0, %v1744_v17, 0.0 }
 0x213   :  { %v1748_v43 = vpop.eup %1747  ;;  %v2898_v16 = vsel %vm633_vm0, %v1746_v53, 0.0  ;;  %1204 = vadd.xlane.f32.xlu1 %v2894_v21 }
 0x214   :  { %v1750_v54 = vpop.eup %1749  ;;  %1202 = vadd.xlane.f32.xlu0 %v2898_v16  ;;  %v2904_v9 = vsel %vm633_vm0, %v1748_v43, 0.0 }
 0x215   :  { %v2908_v30 = vsel %vm633_vm0, %v1750_v54, 0.0 }
 0x216   :  { %3241 = vst [vmem:[#allocation14_spill] sm:$0xff] %v2908_v30 }
 0x217   :  { %1208 = vadd.xlane.f32.xlu1 %v2904_v9 }
 0x218   :  { %1206 = vadd.xlane.f32.xlu0 %v2908_v30 }
 0x224   :  { %v1087_v7 = vpop.xlane.xlu0 %1086 }
 0x225   :  { %1751 = vrcp.f32 %v1087_v7 }
 0x228   :  { %v1089_v15 = vpop.xlane.xlu1 %1088  ;;  %v1151_v3 = vpop.xlane.xlu0 %1150 }
 0x229   :  { %1753 = vrcp.f32 %v1089_v15 }
 0x22a   :  { %1755 = vrcp.f32 %v1151_v3 }
 0x22c   :  { %v1153_v20 = vpop.xlane.xlu1 %1152  ;;  %v1083_v8 = vpop.xlane.xlu0 %1082 }
 0x22d   :  { %1757 = vrcp.f32 %v1153_v20 }
 0x22e   :  { %1759 = vrcp.f32 %v1083_v8 }
 0x22f   :  { %v1752_v17 = vpop.eup %1751 }
 0x230   :  { %v1276_v53 = vmul.f32 %v1752_v17, %v2540_v25  ;;  %v1085_v41 = vpop.xlane.xlu1 %1084  ;;  %v1147_v43 = vpop.xlane.xlu0 %1146 }
 0x231   :  { %1761 = vrcp.f32 %v1085_v41 }
 0x232   :  { %1340 = vst [vmem:[%s3171_s3 + $0x10] sm:$0xff] %v1276_v53  ;;  %1763 = vrcp.f32 %v1147_v43 }
 0x233   :  { %v1754_v54 = vpop.eup %1753 }
 0x234   :  { %v1756_v7 = vpop.eup %1755  ;;  %v1277_v15 = vmul.f32 %v1754_v54, %v2545_v47  ;;  %v1149_v20 = vpop.xlane.xlu1 %1148 }
 0x235   :  { %v1308_v3 = vmul.f32 %v1756_v7, %v2552_v4  ;;  %v1095_v30 = vpop.xlane.xlu0 %1094  ;;  %1765 = vrcp.f32 %v1149_v20 }
 0x236   :  { %1341 = vst [vmem:[%s3171_s3 + $0x18] sm:$0xff] %v1277_v15  ;;  %1767 = vrcp.f32 %v1095_v30 }
 0x237   :  { %v1758_v25 = vpop.eup %1757  ;;  %1372 = vst [vmem:[%s3171_s3 + $0x110] sm:$0xff] %v1308_v3 }
 0x238   :  { %v1760_v8 = vpop.eup %1759  ;;  %v1309_v17 = vmul.f32 %v1758_v25, %v2557_v27  ;;  %v1097_v53 = vpop.xlane.xlu1 %1096 }
 0x239   :  { %v1274_v47 = vmul.f32 %v1760_v8, %v2564_v36  ;;  %v1159_v4 = vpop.xlane.xlu0 %1158  ;;  %1769 = vrcp.f32 %v1097_v53 }
 0x23a   :  { %1373 = vst [vmem:[%s3171_s3 + $0x118] sm:$0xff] %v1309_v17  ;;  %1771 = vrcp.f32 %v1159_v4 }
 0x23b   :  { %1338 = vst [vmem:[%s3171_s3] sm:$0xff] %v1274_v47  ;;  %v1762_v41 = vpop.eup %1761 }
 0x23c   :  { %v1764_v43 = vpop.eup %1763  ;;  %v1275_v30 = vmul.f32 %v1762_v41, %v2575_v11  ;;  %v1161_v54 = vpop.xlane.xlu1 %1160 }
 0x23d   :  { %v1091_v27 = vpop.xlane.xlu0 %1090  ;;  %v1306_v36 = vmul.f32 %v1764_v43, %v2571_v29  ;;  %1773 = vrcp.f32 %v1161_v54 }
 0x23e   :  { %1339 = vst [vmem:[%s3171_s3 + $0x8] sm:$0xff] %v1275_v30  ;;  %1775 = vrcp.f32 %v1091_v27 }
 0x23f   :  { %v1766_v7 = vpop.eup %1765  ;;  %1370 = vst [vmem:[%s3171_s3 + $0x100] sm:$0xff] %v1306_v36 }
 0x240   :  { %v1768_v15 = vpop.eup %1767  ;;  %v1307_v3 = vmul.f32 %v1766_v7, %v2583_v55  ;;  %v1093_v20 = vpop.xlane.xlu1 %1092 }
 0x241   :  { %v1155_v11 = vpop.xlane.xlu0 %1154  ;;  %v1280_v25 = vmul.f32 %v1768_v15, %v2587_v56  ;;  %1777 = vrcp.f32 %v1093_v20 }
 0x242   :  { %1371 = vst [vmem:[%s3171_s3 + $0x108] sm:$0xff] %v1307_v3  ;;  %1779 = vrcp.f32 %v1155_v11 }
 0x243   :  { %v1770_v29 = vpop.eup %1769  ;;  %1344 = vst [vmem:[%s3171_s3 + $0x30] sm:$0xff] %v1280_v25 }
 0x244   :  { %v1772_v8 = vpop.eup %1771  ;;  %v1281_v17 = vmul.f32 %v1770_v29, %v2595_v62  ;;  %v1157_v47 = vpop.xlane.xlu1 %1156 }
 0x245   :  { %v1103_v55 = vpop.xlane.xlu0 %1102  ;;  %v1312_v53 = vmul.f32 %v1772_v8, %v2599_v52  ;;  %1781 = vrcp.f32 %v1157_v47 }
 0x246   :  { %1345 = vst [vmem:[%s3171_s3 + $0x38] sm:$0xff] %v1281_v17  ;;  %1783 = vrcp.f32 %v1103_v55 }
 0x247   :  { %v1774_v56 = vpop.eup %1773  ;;  %1376 = vst [vmem:[%s3171_s3 + $0x130] sm:$0xff] %v1312_v53 }
 0x248   :  { %v1776_v4 = vpop.eup %1775  ;;  %v1313_v41 = vmul.f32 %v1774_v56, %v2607_v34  ;;  %v1105_v43 = vpop.xlane.xlu1 %1104 }
 0x249   :  { %v1167_v62 = vpop.xlane.xlu0 %1166  ;;  %v1278_v30 = vmul.f32 %v1776_v4, %v2611_v45  ;;  %1785 = vrcp.f32 %v1105_v43 }
 0x24a   :  { %1377 = vst [vmem:[%s3171_s3 + $0x138] sm:$0xff] %v1313_v41  ;;  %1787 = vrcp.f32 %v1167_v62 }
 0x24b   :  { %v1778_v52 = vpop.eup %1777  ;;  %1342 = vst [vmem:[%s3171_s3 + $0x20] sm:$0xff] %v1278_v30 }
 0x24c   :  { %v1780_v54 = vpop.eup %1779  ;;  %v1279_v27 = vmul.f32 %v1778_v52, %v2619_v28  ;;  %v1169_v36 = vpop.xlane.xlu1 %1168 }
 0x24d   :  { %v1099_v34 = vpop.xlane.xlu0 %1098  ;;  %v1310_v7 = vmul.f32 %v1780_v54, %v2623_v60  ;;  %1789 = vrcp.f32 %v1169_v36 }
 0x24e   :  { %1343 = vst [vmem:[%s3171_s3 + $0x28] sm:$0xff] %v1279_v27  ;;  %1791 = vrcp.f32 %v1099_v34 }
 0x24f   :  { %v1782_v45 = vpop.eup %1781  ;;  %1374 = vst [vmem:[%s3171_s3 + $0x120] sm:$0xff] %v1310_v7 }
 0x250   :  { %v1784_v15 = vpop.eup %1783  ;;  %v1311_v3 = vmul.f32 %v1782_v45, %v2631_v24  ;;  %v1101_v20 = vpop.xlane.xlu1 %1100 }
 0x251   :  { %v1163_v28 = vpop.xlane.xlu0 %1162  ;;  %v1284_v11 = vmul.f32 %v1784_v15, %v2635_v46  ;;  %1793 = vrcp.f32 %v1101_v20 }
 0x252   :  { %1375 = vst [vmem:[%s3171_s3 + $0x128] sm:$0xff] %v1311_v3  ;;  %1795 = vrcp.f32 %v1163_v28 }
 0x253   :  { %v1786_v60 = vpop.eup %1785  ;;  %1348 = vst [vmem:[%s3171_s3 + $0x50] sm:$0xff] %v1284_v11 }
 0x254   :  { %v1788_v25 = vpop.eup %1787  ;;  %v1285_v29 = vmul.f32 %v1786_v60, %v2643_v5  ;;  %v1165_v8 = vpop.xlane.xlu1 %1164 }
 0x255   :  { %v1111_v24 = vpop.xlane.xlu0 %1110  ;;  %v1316_v17 = vmul.f32 %v1788_v25, %v2647_v31  ;;  %1797 = vrcp.f32 %v1165_v8 }
 0x256   :  { %1349 = vst [vmem:[%s3171_s3 + $0x58] sm:$0xff] %v1285_v29  ;;  %1799 = vrcp.f32 %v1111_v24 }
 0x257   :  { %v1790_v46 = vpop.eup %1789  ;;  %1380 = vst [vmem:[%s3171_s3 + $0x150] sm:$0xff] %v1316_v17 }
 0x258   :  { %v1792_v47 = vpop.eup %1791  ;;  %v1317_v55 = vmul.f32 %v1790_v46, %v2655_v26  ;;  %v1113_v53 = vpop.xlane.xlu1 %1112 }
 0x259   :  { %v1175_v5 = vpop.xlane.xlu0 %1174  ;;  %v1282_v56 = vmul.f32 %v1792_v47, %v2659_v22  ;;  %1801 = vrcp.f32 %v1113_v53 }
 0x25a   :  { %1381 = vst [vmem:[%s3171_s3 + $0x158] sm:$0xff] %v1317_v55  ;;  %1803 = vrcp.f32 %v1175_v5 }
 0x25b   :  { %v1794_v31 = vpop.eup %1793  ;;  %1346 = vst [vmem:[%s3171_s3 + $0x40] sm:$0xff] %v1282_v56 }
 0x25c   :  { %v1796_v4 = vpop.eup %1795  ;;  %v1283_v41 = vmul.f32 %v1794_v31, %v2667_v14  ;;  %v1177_v43 = vpop.xlane.xlu1 %1176 }
 0x25d   :  { %v1107_v26 = vpop.xlane.xlu0 %1106  ;;  %v1314_v62 = vmul.f32 %v1796_v4, %v2671_v13  ;;  %1805 = vrcp.f32 %v1177_v43 }
 0x25e   :  { %1347 = vst [vmem:[%s3171_s3 + $0x48] sm:$0xff] %v1283_v41  ;;  %1807 = vrcp.f32 %v1107_v26 }
 0x25f   :  { %v1798_v22 = vpop.eup %1797  ;;  %1378 = vst [vmem:[%s3171_s3 + $0x140] sm:$0xff] %v1314_v62 }
 0x260   :  { %v1800_v30 = vpop.eup %1799  ;;  %v1315_v52 = vmul.f32 %v1798_v22, %v2679_v63  ;;  %v1109_v54 = vpop.xlane.xlu1 %1108 }
 0x261   :  { %v1171_v14 = vpop.xlane.xlu0 %1170  ;;  %v1288_v27 = vmul.f32 %v1800_v30, %v2683_v32  ;;  %1809 = vrcp.f32 %v1109_v54 }
 0x262   :  { %1379 = vst [vmem:[%s3171_s3 + $0x148] sm:$0xff] %v1315_v52  ;;  %1811 = vrcp.f32 %v1171_v14 }
 0x263   :  { %v1802_v13 = vpop.eup %1801  ;;  %1352 = vst [vmem:[%s3171_s3 + $0x70] sm:$0xff] %v1288_v27 }
 0x264   :  { %v1804_v36 = vpop.eup %1803  ;;  %v1289_v34 = vmul.f32 %v1802_v13, %v2691_v37  ;;  %v1173_v7 = vpop.xlane.xlu1 %1172 }
 0x265   :  { %v1119_v63 = vpop.xlane.xlu0 %1118  ;;  %v1320_v45 = vmul.f32 %v1804_v36, %v2695_v38  ;;  %1813 = vrcp.f32 %v1173_v7 }
 0x266   :  { %1353 = vst [vmem:[%s3171_s3 + $0x78] sm:$0xff] %v1289_v34  ;;  %1815 = vrcp.f32 %v1119_v63  ;;  %v3242_v63 = vld [vmem:[#allocation2_spill] sm:$0xff] }
 0x267   :  { %v1806_v32 = vpop.eup %1805  ;;  %1384 = vst [vmem:[%s3171_s3 + $0x170] sm:$0xff] %v1320_v45 }
 0x268   :  { %v1808_v15 = vpop.eup %1807  ;;  %v1321_v3 = vmul.f32 %v1806_v32, %v2703_v59  ;;  %v1121_v20 = vpop.xlane.xlu1 %1120 }
 0x269   :  { %v1183_v37 = vpop.xlane.xlu0 %1182  ;;  %v1286_v28 = vmul.f32 %v1808_v15, %v2707_v2  ;;  %1817 = vrcp.f32 %v1121_v20  ;;  %v3243_v15 = vld [vmem:[#allocation3_spill] sm:$0xff] }
 0x26a   :  { %1385 = vst [vmem:[%s3171_s3 + $0x178] sm:$0xff] %v1321_v3  ;;  %1819 = vrcp.f32 %v1183_v37  ;;  %v3244_v37 = vld [vmem:[#allocation4_spill] sm:$0xff] }
 0x26b   :  { %v1810_v38 = vpop.eup %1809  ;;  %1350 = vst [vmem:[%s3171_s3 + $0x60] sm:$0xff] %v1286_v28 }
 0x26c   :  { %v1812_v11 = vpop.eup %1811  ;;  %v1287_v60 = vmul.f32 %v1810_v38, %v2715_v12  ;;  %v1185_v25 = vpop.xlane.xlu1 %1184 }
 0x26d   :  { %v1115_v59 = vpop.xlane.xlu0 %1114  ;;  %v1318_v29 = vmul.f32 %v1812_v11, %v2719_v18  ;;  %1821 = vrcp.f32 %v1185_v25 }
 0x26e   :  { %1351 = vst [vmem:[%s3171_s3 + $0x68] sm:$0xff] %v1287_v60  ;;  %1823 = vrcp.f32 %v1115_v59  ;;  %v3245_v60 = vld [vmem:[#allocation5_spill] sm:$0xff] }
 0x26f   :  { %v1814_v2 = vpop.eup %1813  ;;  %1382 = vst [vmem:[%s3171_s3 + $0x160] sm:$0xff] %v1318_v29 }
 0x270   :  { %v1816_v8 = vpop.eup %1815  ;;  %v1319_v24 = vmul.f32 %v1814_v2, %v2727_v0  ;;  %v1117_v17 = vpop.xlane.xlu1 %1116  ;;  %v3246_v2 = vld [vmem:[#allocation6_spill] sm:$0xff] }
 0x271   :  { %v1179_v12 = vpop.xlane.xlu0 %1178  ;;  %v1292_v46 = vmul.f32 %v1816_v8, %v2731_v44  ;;  %1825 = vrcp.f32 %v1117_v17 }
 0x272   :  { %1383 = vst [vmem:[%s3171_s3 + $0x168] sm:$0xff] %v1319_v24  ;;  %1827 = vrcp.f32 %v1179_v12  ;;  %v3247_v12 = vld [vmem:[#allocation7_spill] sm:$0xff] }
 0x273   :  { %v1818_v18 = vpop.eup %1817  ;;  %1356 = vst [vmem:[%s3171_s3 + $0x90] sm:$0xff] %v1292_v46 }
 0x274   :  { %v1820_v47 = vpop.eup %1819  ;;  %v1293_v55 = vmul.f32 %v1818_v18, %v2739_v39  ;;  %v1181_v53 = vpop.xlane.xlu1 %1180 }
 0x275   :  { %v1127_v0 = vpop.xlane.xlu0 %1126  ;;  %v1324_v5 = vmul.f32 %v1820_v47, %v2743_v48  ;;  %1829 = vrcp.f32 %v1181_v53 }
 0x276   :  { %1357 = vst [vmem:[%s3171_s3 + $0x98] sm:$0xff] %v1293_v55  ;;  %1831 = vrcp.f32 %v1127_v0  ;;  %v3248_v55 = vld [vmem:[#allocation8_spill] sm:$0xff] }
 0x277   :  { %v1822_v44 = vpop.eup %1821  ;;  %1388 = vst [vmem:[%s3171_s3 + $0x190] sm:$0xff] %v1324_v5 }
 0x278   :  { %v1824_v56 = vpop.eup %1823  ;;  %v1325_v31 = vmul.f32 %v1822_v44, %v2751_v10  ;;  %v1129_v4 = vpop.xlane.xlu1 %1128  ;;  %v3249_v44 = vld [vmem:[#allocation9_spill] sm:$0xff] }
 0x279   :  { %v1191_v39 = vpop.xlane.xlu0 %1190  ;;  %v1290_v41 = vmul.f32 %v1824_v56, %v2755_v49  ;;  %1833 = vrcp.f32 %v1129_v4 }
 0x27a   :  { %1389 = vst [vmem:[%s3171_s3 + $0x198] sm:$0xff] %v1325_v31  ;;  %1835 = vrcp.f32 %v1191_v39  ;;  %v3250_v39 = vld [vmem:[#allocation10_spill] sm:$0xff] }
 0x27b   :  { %v1826_v48 = vpop.eup %1825  ;;  %1354 = vst [vmem:[%s3171_s3 + $0x80] sm:$0xff] %v1290_v41 }
 0x27c   :  { %v1828_v43 = vpop.eup %1827  ;;  %v1291_v26 = vmul.f32 %v1826_v48, %v2763_v58  ;;  %v1193_v62 = vpop.xlane.xlu1 %1192 }
 0x27d   :  { %v1123_v10 = vpop.xlane.xlu0 %1122  ;;  %v1322_v22 = vmul.f32 %v1828_v43, %v2767_v51  ;;  %1837 = vrcp.f32 %v1193_v62  ;;  %v3251_v43 = vld [vmem:[#allocation11_spill] sm:$0xff] }
 0x27e   :  { %1355 = vst [vmem:[%s3171_s3 + $0x88] sm:$0xff] %v1291_v26  ;;  %1839 = vrcp.f32 %v1123_v10 }
 0x27f   :  { %v1830_v49 = vpop.eup %1829  ;;  %1386 = vst [vmem:[%s3171_s3 + $0x180] sm:$0xff] %v1322_v22 }
 0x280   :  { %v1832_v30 = vpop.eup %1831  ;;  %v1323_v52 = vmul.f32 %v1830_v49, %v2775_v42  ;;  %v1125_v54 = vpop.xlane.xlu1 %1124 }
 0x281   :  { %v1187_v58 = vpop.xlane.xlu0 %1186  ;;  %v1296_v14 = vmul.f32 %v1832_v30, %v2779_v57  ;;  %1841 = vrcp.f32 %v1125_v54 }
 0x282   :  { %1387 = vst [vmem:[%s3171_s3 + $0x188] sm:$0xff] %v1323_v52  ;;  %1843 = vrcp.f32 %v1187_v58 }
 0x283   :  { %v1834_v51 = vpop.eup %1833  ;;  %1360 = vst [vmem:[%s3171_s3 + $0xb0] sm:$0xff] %v1296_v14 }
 0x284   :  { %v1836_v27 = vpop.eup %1835  ;;  %v1297_v13 = vmul.f32 %v1834_v51, %v2787_v23  ;;  %v1189_v36 = vpop.xlane.xlu1 %1188 }
 0x285   :  { %v1135_v42 = vpop.xlane.xlu0 %1134  ;;  %v1328_v34 = vmul.f32 %v1836_v27, %v2791_v61  ;;  %1845 = vrcp.f32 %v1189_v36 }
 0x286   :  { %1361 = vst [vmem:[%s3171_s3 + $0xb8] sm:$0xff] %v1297_v13  ;;  %1847 = vrcp.f32 %v1135_v42 }
 0x287   :  { %v1838_v57 = vpop.eup %1837  ;;  %1392 = vst [vmem:[%s3171_s3 + $0x1b0] sm:$0xff] %v1328_v34 }
 0x288   :  { %v1840_v7 = vpop.eup %1839  ;;  %v1329_v45 = vmul.f32 %v1838_v57, %v3242_v63  ;;  %v1137_v32 = vpop.xlane.xlu1 %1136 }
 0x289   :  { %v1199_v23 = vpop.xlane.xlu0 %1198  ;;  %v1294_v3 = vmul.f32 %v1840_v7, %v3243_v15  ;;  %1849 = vrcp.f32 %v1137_v32 }
 0x28a   :  { %1393 = vst [vmem:[%s3171_s3 + $0x1b8] sm:$0xff] %v1329_v45  ;;  %1851 = vrcp.f32 %v1199_v23  ;;  %v3252_v23 = vld [vmem:[#allocation14_spill] sm:$0xff] }
 0x28b   :  { %v1842_v61 = vpop.eup %1841  ;;  %1358 = vst [vmem:[%s3171_s3 + $0xa0] sm:$0xff] %v1294_v3 }
 0x28c   :  { %v1844_v20 = vpop.eup %1843  ;;  %v1295_v28 = vmul.f32 %v1842_v61, %v3244_v37  ;;  %v1201_v38 = vpop.xlane.xlu1 %1200 }
 0x28d   :  { %v1131_v11 = vpop.xlane.xlu0 %1130  ;;  %v1326_v25 = vmul.f32 %v1844_v20, %v3245_v60  ;;  %1853 = vrcp.f32 %v1201_v38 }
 0x28e   :  { %1359 = vst [vmem:[%s3171_s3 + $0xa8] sm:$0xff] %v1295_v28  ;;  %1855 = vrcp.f32 %v1131_v11 }
 0x28f   :  { %v1846_v59 = vpop.eup %1845  ;;  %1390 = vst [vmem:[%s3171_s3 + $0x1a0] sm:$0xff] %v1326_v25 }
 0x290   :  { %v1848_v29 = vpop.eup %1847  ;;  %v1327_v8 = vmul.f32 %v1846_v59, %v3246_v2  ;;  %v1133_v24 = vpop.xlane.xlu1 %1132 }
 0x291   :  { %v1195_v17 = vpop.xlane.xlu0 %1194  ;;  %v1300_v46 = vmul.f32 %v1848_v29, %v3247_v12  ;;  %1857 = vrcp.f32 %v1133_v24 }
 0x292   :  { %1391 = vst [vmem:[%s3171_s3 + $0x1a8] sm:$0xff] %v1327_v8  ;;  %1859 = vrcp.f32 %v1195_v17 }
 0x293   :  { %v1850_v18 = vpop.eup %1849  ;;  %1364 = vst [vmem:[%s3171_s3 + $0xd0] sm:$0xff] %v1300_v46 }
 0x294   :  { %v1852_v47 = vpop.eup %1851  ;;  %v1301_v53 = vmul.f32 %v1850_v18, %v3248_v55  ;;  %v1197_v0 = vpop.xlane.xlu1 %1196 }
 0x295   :  { %v1143_v5 = vpop.xlane.xlu0 %1142  ;;  %v1332_v56 = vmul.f32 %v1852_v47, %v3249_v44  ;;  %1861 = vrcp.f32 %v1197_v0 }
 0x296   :  { %1365 = vst [vmem:[%s3171_s3 + $0xd8] sm:$0xff] %v1301_v53  ;;  %1863 = vrcp.f32 %v1143_v5 }
 0x297   :  { %v1854_v31 = vpop.eup %1853  ;;  %1396 = vst [vmem:[%s3171_s3 + $0x1d0] sm:$0xff] %v1332_v56 }
 0x298   :  { %v1856_v4 = vpop.eup %1855  ;;  %v1333_v41 = vmul.f32 %v1854_v31, %v3250_v39  ;;  %v1145_v48 = vpop.xlane.xlu1 %1144 }
 0x299   :  { %v1298_v26 = vmul.f32 %v1856_v4, %v3251_v43  ;;  %1865 = vrcp.f32 %v1145_v48 }
 0x29a   :  { %1397 = vst [vmem:[%s3171_s3 + $0x1d8] sm:$0xff] %v1333_v41 }
 0x29b   :  { %v1858_v62 = vpop.eup %1857  ;;  %1362 = vst [vmem:[%s3171_s3 + $0xc0] sm:$0xff] %v1298_v26 }
 0x29c   :  { %v1860_v10 = vpop.eup %1859  ;;  %v1299_v22 = vmul.f32 %v1858_v62, %v2857_v40  ;;  %v1141_v49 = vpop.xlane.xlu1 %1140 }
 0x29d   :  { %v1139_v30 = vpop.xlane.xlu0 %1138  ;;  %v1330_v52 = vmul.f32 %v1860_v10, %v2863_v35  ;;  %1867 = vrcp.f32 %v1141_v49 }
 0x29e   :  { %1363 = vst [vmem:[%s3171_s3 + $0xc8] sm:$0xff] %v1299_v22  ;;  %1869 = vrcp.f32 %v1139_v30 }
 0x29f   :  { %v1862_v54 = vpop.eup %1861  ;;  %1394 = vst [vmem:[%s3171_s3 + $0x1c0] sm:$0xff] %v1330_v52 }
 0x2a0   :  { %v1864_v58 = vpop.eup %1863  ;;  %v1331_v14 = vmul.f32 %v1862_v54, %v2869_v50  ;;  %v1205_v51 = vpop.xlane.xlu1 %1204 }
 0x2a1   :  { %v1203_v40 = vpop.xlane.xlu0 %1202  ;;  %v1304_v27 = vmul.f32 %v1864_v58, %v2873_v1  ;;  %1871 = vrcp.f32 %v1205_v51 }
 0x2a2   :  { %1395 = vst [vmem:[%s3171_s3 + $0x1c8] sm:$0xff] %v1331_v14  ;;  %1873 = vrcp.f32 %v1203_v40 }
 0x2a3   :  { %v1866_v35 = vpop.eup %1865  ;;  %1368 = vst [vmem:[%s3171_s3 + $0xf0] sm:$0xff] %v1304_v27 }
 0x2a4   :  { %v1305_v13 = vmul.f32 %v1866_v35, %v2879_v19  ;;  %v1209_v36 = vpop.xlane.xlu1 %1208 }
 0x2a5   :  { %v1207_v42 = vpop.xlane.xlu0 %1206  ;;  %1875 = vrcp.f32 %v1209_v36 }
 0x2a6   :  { %1369 = vst [vmem:[%s3171_s3 + $0xf8] sm:$0xff] %v1305_v13  ;;  %1877 = vrcp.f32 %v1207_v42 }
 0x2a7   :  { %v1868_v50 = vpop.eup %1867 }
 0x2a8   :  { %v1870_v1 = vpop.eup %1869  ;;  %v1303_v34 = vmul.f32 %v1868_v50, %v2884_v6 }
 0x2a9   :  { %v1302_v57 = vmul.f32 %v1870_v1, %v2888_v33 }
 0x2aa   :  { %1367 = vst [vmem:[%s3171_s3 + $0xe8] sm:$0xff] %v1303_v34 }
 0x2ab   :  { %v1872_v7 = vpop.eup %1871  ;;  %1366 = vst [vmem:[%s3171_s3 + $0xe0] sm:$0xff] %v1302_v57 }
 0x2ac   :  { %v1874_v19 = vpop.eup %1873  ;;  %v1335_v63 = vmul.f32 %v1872_v7, %v2894_v21 }
 0x2ad   :  { %v1334_v45 = vmul.f32 %v1874_v19, %v2898_v16 }
 0x2ae   :  { %1399 = vst [vmem:[%s3171_s3 + $0x1e8] sm:$0xff] %v1335_v63 }
 0x2af   :  { %v1876_v6 = vpop.eup %1875  ;;  %1398 = vst [vmem:[%s3171_s3 + $0x1e0] sm:$0xff] %v1334_v45 }
 0x2b0   :  { %v1878_v33 = vpop.eup %1877  ;;  %v1337_v32 = vmul.f32 %v1876_v6, %v2904_v9 }
 0x2b1   :  { %v1336_v15 = vmul.f32 %v1878_v33, %v3252_v23 }
 0x2b2   :  { %1401 = vst [vmem:[%s3171_s3 + $0x1f8] sm:$0xff] %v1337_v32 }
 0x2b3   :  { %1400 = vst [vmem:[%s3171_s3 + $0x1f0] sm:$0xff] %v1336_v15 }

// kernel: segmentor_forward.3
= control target key start
LH: loop header
LB: loop body
LE: loop exit
PB: predicated region body
PF: predicated region fallthrough
CT: control target
= control target key end

     0   :  { %s6637_s18 = smov 0   ;;  %s6639_s19 = smov 0   ;;  %s8708_s0 = inlined_call_operand.vmem [shape: bf16[2,16,18,4], index: 0, kind: input, shape index: {}]   ;;  %s8709_s1 = inlined_call_operand.vmem [shape: bf16[2,16,18,4], index: 1, kind: input, shape index: {}]   ;;  %s8710_s2 = inlined_call_operand.vmem [shape: bf16[2,16,18,4], index: 2, kind: input, shape index: {}]   ;;  %s8711_s3 = inlined_call_operand.vmem [shape: bf16[3,3,4,128], index: 3, kind: input, shape index: {}]   ;;  %s8712_s4 = inlined_call_operand.vmem [shape: f32[1,128], index: 4, kind: input, shape index: {}]   ;;  %s8713_s5 = inlined_call_operand.vmem [shape: bf16[2,16,16,128], index: 5, kind: output, shape index: {}]  }
   0x1   :  { %s6641_s20 = smov 0  }
   0x2 LB: > { %s34_s21 = sadd.s32 1, %s6601_s19  ;;  %p5166_p0 = scmp.ge.s32.totalorder %s6605_s20, 1  ;;  %s6605_s20 = sphi %s6641_s20, %s15_s20   ;;  %s6601_s19 = sphi %s6639_s19, %s8827_s19   ;;  %s6597_s18 = sphi %s6637_s18, %s8826_s18  }
   0x3   : > { %p36_p1 = scmp.ge.s32.totalorder %s34_s21, 2  ;;  %p271_p2 = scmp.lt.s32.totalorder %s6605_s20, 3 }
   0x5   : > { %s8829_s21 = smov (%p36_p1, %s34_s21), 0  ;;  %p272_p3 = pnand %p5166_p0, %p271_p2 }
   0x7   : > { %275 = sbr.rel (%p272_p3) target bundleno = 594 (0x252), region = 40 }
   0xe   : > { %v395_v0 = vld [vmem:[%s8711_s3 + $0x2] sm:$0x3]  ;;  %vm935_vm0 = vcmask 1041408   ;;  %v398_v1 = vld [vmem:[%s8711_s3 + $0x8] sm:$0x3]  ;;  %p340_p4 = scmp.lt.s32.totalorder %s6597_s18, 1 }
   0xf   : > { %6388 = vmatprep.subr.msk.bf16.mxu1 %vm935_vm0, %v395_v0  ;;  %6392 = vmatprep.subr.msk.bf16.mxu0 %vm935_vm0, %v398_v1  ;;  %v937_v2 = vsel %vm935_vm0, %v395_v0, 0  ;;  %v6665_v3 = vsel %vm935_vm0, %v398_v1, 0  ;;  %v394_v4 = vld [vmem:[%s8711_s3] sm:$0x3]  ;;  %v399_v5 = vld [vmem:[%s8711_s3 + $0xa] sm:$0x3] }
  0x10   : > { %8736 = vst [vmem:[#allocation2_spill] sm:$0xff] %v6665_v3  ;;  %5825 = vmatpush3.bf16.msra.mxu1 %v937_v2  ;;  %5961 = vmatpush3.bf16.msra.mxu0 %v6665_v3  ;;  %s8831_s18 = smov (!%p340_p4, %s6597_s18), 1  ;;  %vm451_vm1 = vsmask.f32 3328  ;;  %vm452_vm2 = vsmask.f32 7440 }
  0x11   : > { %6389 = vmatprep.subr.msk.bf16.mxu1 %vm935_vm0, %v394_v4  ;;  %6394 = vmatprep.subr.msk.bf16.mxu0 %vm935_vm0, %v399_v5  ;;  %s6679_s30 = smul.u32 192, %s8831_s18  ;;  %vm886_vm3 = vcmask 31744   ;;  %v6706_v17 = vsel %vm935_vm0, %v394_v4, 0  ;;  %vm6717_vm4 = vmor %vm451_vm1, %vm452_vm2  ;;  %v6722_v36 = vsel %vm935_vm0, %v399_v5, 0  ;;  %v6732_v50 = vld [vmem:[%s8711_s3 + $0xc] sm:$0x3] }
  0x12   : > { %v6749_v1 = vsel %vm935_vm0, %v6732_v50, 0  ;;  %vm1408_vm5 = vcmask 1042432   ;;  %vm1409_vm6 = vcmask 1046532   ;;  %s5543_s10 = sshll.u32 %s8831_s18, 7 }
  0x13   : > { %s6685_s8 = scalar_lea.vmem %s8708_s0, %s6679_s30  ;;  %s6691_s11 = scalar_lea.vmem %s8709_s1, %s6679_s30  ;;  %vm6983_vm7 = vmor %vm1408_vm5, %vm1409_vm6 }
  0x14   : > { %v403_v6 = vld [vmem:[%s6685_s8] sm:$0xf]  ;;  %v404_v7 = vld [vmem:[%s6685_s8 + $0x4] sm:$0xf]  ;;  %v405_v8 = vld [vmem:[%s6685_s8 + $0x8] sm:$0x1]  ;;  %s7308_s28 = scalar_lea.vmem %s8710_s2, %s6679_s30  ;;  %s8649_s13 = scalar_lea.vmem %s8713_s5, %s5543_s10 }
  0x15   : > { %v455_v9 = vshrl.u32 %v403_v6, 16  ;;  %v458_v10 = vshll.u32 %v403_v6, 16  ;;  %v464_v11 = vshll.u32 %v404_v7, 16  ;;  %v468_v12 = vshrl.u32 %v404_v7, 16  ;;  %v6697_v13 = vld [vmem:[%s6691_s11] sm:$0xf] }
  0x16   : > { %v474_v14 = vshll.u32 %v405_v8, 16  ;;  %v6700_v15 = vld [vmem:[%s6691_s11 + $0x4] sm:$0xf]  ;;  %v6703_v16 = vld [vmem:[%s6691_s11 + $0x8] sm:$0x1]  ;;  %v2188_v23 = vshrl.u32 %v6697_v13, 16 }
  0x17   : > { %v457_v18 = vrot.slane %v455_v9, 4  ;;  %v460_v19 = vrot.slane %v458_v10, 5  ;;  %v466_v20 = vrot.slane %v464_v11, 5  ;;  %v470_v21 = vrot.slane %v468_v12, 4  ;;  %v406_v30 = vld [vmem:[%s6685_s8 + $0xc] sm:$0xf] }
  0x18   : > { %v476_v22 = vrot.slane %v474_v14, 5  ;;  %v2191_v24 = vshll.u32 %v6697_v13, 16  ;;  %v2197_v25 = vshll.u32 %v6700_v15, 16  ;;  %v2201_v28 = vshrl.u32 %v6700_v15, 16  ;;  %v407_v31 = vld [vmem:[%s6685_s8 + $0x10] sm:$0xf] }
  0x19   : > { %v461_v26 = vor.u32 %v460_v19, %v457_v18  ;;  %v471_v27 = vor.u32 %v470_v21, %v466_v20  ;;  %v2207_v29 = vshll.u32 %v6703_v16, 16  ;;  %v2190_v33 = vrot.slane %v2188_v23, 4  ;;  %v408_v42 = vld [vmem:[%s6685_s8 + $0x14] sm:$0x1]  ;;  %v6735_v55 = vld [vmem:[%s6691_s11 + $0xc] sm:$0xf] }
  0x1a   : > { %v2193_v34 = vrot.slane %v2191_v24, 5  ;;  %v2199_v35 = vrot.slane %v2197_v25, 5  ;;  %v2203_v39 = vrot.slane %v2201_v28, 4  ;;  %v479_v43 = vshrl.u32 %v406_v30, 16  ;;  %v6738_v60 = vld [vmem:[%s6691_s11 + $0x10] sm:$0xf] }
  0x1b   : > { %v462_v37 = vrot.slane %v461_v26, 4  ;;  %v472_v38 = vrot.slane %v471_v27, 4  ;;  %v2209_v40 = vrot.slane %v2207_v29, 5  ;;  %v482_v44 = vshll.u32 %v406_v30, 16  ;;  %v6745_v0 = vld [vmem:[%s6691_s11 + $0x14] sm:$0x1] }
  0x1c   : > { %v2194_v41 = vor.u32 %v2193_v34, %v2190_v33  ;;  %v488_v45 = vshll.u32 %v407_v31, 16  ;;  %v2204_v48 = vor.u32 %v2203_v39, %v2199_v35  ;;  %v492_v49 = vshrl.u32 %v407_v31, 16  ;;  %v409_v11 = vld [vmem:[%s6685_s8 + $0x18] sm:$0xf]  ;;  %v411_v25 = vld [vmem:[%s6685_s8 + $0x20] sm:$0x1] }
  0x1d   : > { %v467_v46 = vsel %vm6717_vm4, %v462_v37, %v466_v20  ;;  %v477_v47 = vsel %vm6717_vm4, %v472_v38, %v476_v22  ;;  %v481_v53 = vrot.slane %v479_v43, 4  ;;  %v484_v54 = vrot.slane %v482_v44, 5  ;;  %v410_v20 = vld [vmem:[%s6685_s8 + $0x1c] sm:$0xf]  ;;  %v6769_v30 = vld [vmem:[%s6691_s11 + $0x18] sm:$0xf] }
  0x1e   : > { %v5172_v51 = vcombine.low %v467_v46, %v477_v47  ;;  %v2195_v52 = vrot.slane %v2194_v41, 4  ;;  %v2205_v56 = vrot.slane %v2204_v48, 4  ;;  %v490_v57 = vrot.slane %v488_v45, 5  ;;  %v396_v41 = vld [vmem:[%s8711_s3 + $0x4] sm:$0x3] }
  0x1f   : > { %v494_v58 = vrot.slane %v492_v49, 4  ;;  %v498_v59 = vshll.u32 %v408_v42, 16  ;;  %v2884_v62 = vrot.slane %v6703_v16, 5  ;;  %v485_v63 = vor.u32 %v484_v54, %v481_v53  ;;  %v6776_v45 = vld [vmem:[%s6691_s11 + $0x1c] sm:$0xf] }
  0x20   : > { %5826 = vmatprep.mubr.msk.bf16.mxu1 %vm886_vm3, %v5172_v51  ;;  %v2200_v61 = vsel %vm6717_vm4, %v2195_v52, %v2199_v35  ;;  %v2210_v2 = vsel %vm6717_vm4, %v2205_v56, %v2209_v40  ;;  %v2212_v6 = vshrl.u32 %v6735_v55, 16  ;;  %v2215_v9 = vshll.u32 %v6735_v55, 16  ;;  %v6781_v52 = vld [vmem:[%s6691_s11 + $0x20] sm:$0x1] }
  0x21   : > { %v495_v4 = vor.u32 %v494_v58, %v490_v57  ;;  %v500_v5 = vrot.slane %v498_v59, 5  ;;  %v5316_v7 = vcombine.low %v2200_v61, %v2210_v2  ;;  %v486_v8 = vrot.slane %v485_v63, 4  ;;  %v412_v58 = vld [vmem:[%s6685_s8 + $0x24] sm:$0xf]  ;;  %v7571_v3 = vld [vmem:[%s7308_s28 + $0xa0] sm:$0xf] }
  0x22   : > { %v2221_v10 = vshll.u32 %v6738_v60, 16  ;;  %v2214_v14 = vrot.slane %v2212_v6, 4  ;;  %v2225_v18 = vshrl.u32 %v6738_v60, 16  ;;  %v2231_v19 = vshll.u32 %v6745_v0, 16 }
  0x23   : > { %v496_v12 = vrot.slane %v495_v4, 4  ;;  %5962 = vmatprep.mubr.msk.bf16.mxu0 %vm886_vm3, %v5316_v7  ;;  %v491_v21 = vsel %vm6717_vm4, %v486_v8, %v490_v57  ;;  %v2217_v22 = vrot.slane %v2215_v9, 5  ;;  %v2888_v24 = vrot.slane %v6738_v60, 5  ;;  %v413_v7 = vld [vmem:[%s6685_s8 + $0x28] sm:$0xf] }
  0x24   : > { %v2223_v23 = vrot.slane %v2221_v10, 5  ;;  %v2227_v27 = vrot.slane %v2225_v18, 4  ;;  %v2233_v28 = vrot.slane %v2231_v19, 5  ;;  %v2891_v29 = vrot.slane %v6745_v0, 5  ;;  %v414_v19 = vld [vmem:[%s6685_s8 + $0x2c] sm:$0x1] }
  0x25   : > { %v501_v26 = vsel %vm6717_vm4, %v496_v12, %v500_v5  ;;  %v2218_v33 = vor.u32 %v2217_v22, %v2214_v14  ;;  %v503_v34 = vshrl.u32 %v409_v11, 16  ;;  %v506_v35 = vshll.u32 %v409_v11, 16 }
  0x26   : > { %v5173_v31 = vcombine.low %v491_v21, %v501_v26  ;;  %v2228_v37 = vor.u32 %v2227_v27, %v2223_v23  ;;  %v512_v38 = vshll.u32 %v410_v20, 16  ;;  %v516_v39 = vshrl.u32 %v410_v20, 16  ;;  %v6799_v21 = vld [vmem:[%s6691_s11 + $0x24] sm:$0xf] }
  0x27   : > { %v522_v40 = vshll.u32 %v411_v25, 16  ;;  %v2219_v42 = vrot.slane %v2218_v33, 4  ;;  %v505_v43 = vrot.slane %v503_v34, 4  ;;  %v508_v44 = vrot.slane %v506_v35, 5  ;;  %v6805_v34 = vld [vmem:[%s6691_s11 + $0x28] sm:$0xf] }
  0x28   : > { %5827 = vmatmul.mubr.msk.bf16.vlgmr.msra.gmra.mrb[0].mxu1 %vm886_vm3, %v5173_v31  ;;  %v2236_v46 = vshrl.u32 %v6769_v30, 16  ;;  %v2229_v47 = vrot.slane %v2228_v37, 4  ;;  %v514_v48 = vrot.slane %v512_v38, 5  ;;  %v518_v49 = vrot.slane %v516_v39, 4 }
  0x29   : > { %5859 = vmatpush3.bf16.msra.mxu1 %v6706_v17  ;;  %v524_v51 = vrot.slane %v522_v40, 5  ;;  %v2224_v53 = vsel %vm6717_vm4, %v2219_v42, %v2223_v23  ;;  %v509_v54 = vor.u32 %v508_v44, %v505_v43  ;;  %v2239_v57 = vshll.u32 %v6769_v30, 16  ;;  %v6814_v42 = vld [vmem:[%s6691_s11 + $0x2c] sm:$0x1]  ;;  %v6818_v44 = vld [vmem:[%s6685_s8 + $0x30] sm:$0xf] }
  0x2a   : > { %v2238_v56 = vrot.slane %v2236_v46, 4  ;;  %6390 = vmatprep.subr.msk.bf16.mxu1 %vm935_vm0, %v396_v41  ;;  %v2234_v17 = vsel %vm6717_vm4, %v2229_v47, %v2233_v28  ;;  %v519_v59 = vor.u32 %v518_v49, %v514_v48  ;;  %v2245_v61 = vshll.u32 %v6776_v45, 16 }
  0x2b   : > { %v2249_v63 = vshrl.u32 %v6776_v45, 16  ;;  %v5317_v2 = vcombine.low %v2224_v53, %v2234_v17  ;;  %v510_v4 = vrot.slane %v509_v54, 4  ;;  %v2241_v5 = vrot.slane %v2239_v57, 5 }
  0x2c   : > { %v2255_v6 = vshll.u32 %v6781_v52, 16  ;;  %v520_v8 = vrot.slane %v519_v59, 4  ;;  %v2247_v9 = vrot.slane %v2245_v61, 5  ;;  %v527_v11 = vshrl.u32 %v412_v58, 16 }
  0x2d   : > { %v2251_v10 = vrot.slane %v2249_v63, 4  ;;  %5963 = vmatmul.mubr.msk.bf16.vlgmr.msra.gmra.mrb[0].mxu0 %vm886_vm3, %v5317_v2  ;;  %v515_v12 = vsel %vm6717_vm4, %v510_v4, %v514_v48  ;;  %v2242_v14 = vor.u32 %v2241_v5, %v2238_v56  ;;  %v530_v20 = vshll.u32 %v412_v58, 16  ;;  %v6824_v56 = vld [vmem:[%s6685_s8 + $0x34] sm:$0xf]  ;;  %v417_v4 = vld [vmem:[%s6685_s8 + $0x38] sm:$0x1] }
  0x2e   : > { %v2257_v18 = vrot.slane %v2255_v6, 5  ;;  %5995 = vmatpush3.bf16.msra.mxu0 %v6722_v36  ;;  %v525_v22 = vsel %vm6717_vm4, %v520_v8, %v524_v51  ;;  %v529_v25 = vrot.slane %v527_v11, 4  ;;  %v536_v26 = vshll.u32 %v413_v7, 16 }
  0x2f   : > { %v2252_v23 = vor.u32 %v2251_v10, %v2247_v9  ;;  %v5174_v27 = vcombine.low %v515_v12, %v525_v22  ;;  %v2243_v28 = vrot.slane %v2242_v14, 4  ;;  %v532_v31 = vrot.slane %v530_v20, 5  ;;  %6395 = vmatprep.subr.msk.bf16.mxu0 %vm935_vm0, %v6732_v50  ;;  %v6836_v10 = vld [vmem:[%s6691_s11 + $0x30] sm:$0xf] }
  0x30   : > { %v540_v33 = vshrl.u32 %v413_v7, 16  ;;  %v538_v37 = vrot.slane %v536_v26, 5  ;;  %v546_v36 = vshll.u32 %v414_v19, 16  ;;  %v2260_v38 = vshrl.u32 %v6799_v21, 16  ;;  %v6842_v19 = vld [vmem:[%s6691_s11 + $0x34] sm:$0xf] }
  0x31   : > { %v2253_v35 = vrot.slane %v2252_v23, 4  ;;  %5830 = vmatprep.mubr.msk.bf16.mxu1 %vm886_vm3, %v5174_v27  ;;  %v2248_v39 = vsel %vm6717_vm4, %v2243_v28, %v2247_v9  ;;  %v533_v40 = vor.u32 %v532_v31, %v529_v25  ;;  %v2263_v43 = vshll.u32 %v6799_v21, 16  ;;  %v6847_v31 = vld [vmem:[%s6691_s11 + $0x38] sm:$0x1] }
  0x32   : > { %v542_v41 = vrot.slane %v540_v33, 4  ;;  %v548_v46 = vrot.slane %v546_v36, 5  ;;  %v2262_v47 = vrot.slane %v2260_v38, 4  ;;  %v2269_v48 = vshll.u32 %v6805_v34, 16 }
  0x33   : > { %v2258_v50 = vsel %vm6717_vm4, %v2253_v35, %v2257_v18  ;;  %v534_v51 = vrot.slane %v533_v40, 4  ;;  %v2265_v54 = vrot.slane %v2263_v43, 5  ;;  %v2273_v58 = vshrl.u32 %v6805_v34, 16 }
  0x34   : > { %v5318_v49 = vcombine.low %v2248_v39, %v2258_v50  ;;  %v543_v53 = vor.u32 %v542_v41, %v538_v37  ;;  %v2271_v57 = vrot.slane %v2269_v48, 5  ;;  %v2279_v17 = vshll.u32 %v6814_v42, 16  ;;  %v6855_v50 = vld [vmem:[%s6685_s8 + $0x3c] sm:$0xf] }
  0x35   : > { %v551_v59 = vshrl.u32 %v6818_v44, 16  ;;  %v539_v61 = vsel %vm6717_vm4, %v534_v51, %v538_v37  ;;  %v2266_v2 = vor.u32 %v2265_v54, %v2262_v47  ;;  %v554_v5 = vshll.u32 %v6818_v44, 16  ;;  %v6861_v51 = vld [vmem:[%s6685_s8 + $0x40] sm:$0xf] }
  0x36   : > { %5966 = vmatprep.mubr.msk.bf16.mxu0 %vm886_vm3, %v5318_v49  ;;  %v544_v63 = vrot.slane %v543_v53, 4  ;;  %v2275_v6 = vrot.slane %v2273_v58, 4  ;;  %v2281_v7 = vrot.slane %v2279_v17, 5  ;;  %v560_v9 = vshll.u32 %v6824_v56, 16 }
  0x37   : > { %v553_v8 = vrot.slane %v551_v59, 4  ;;  %v2267_v12 = vrot.slane %v2266_v2, 4  ;;  %v556_v14 = vrot.slane %v554_v5, 5  ;;  %v564_v18 = vshrl.u32 %v6824_v56, 16 }
  0x38   : > { %v549_v11 = vsel %vm6717_vm4, %v544_v63, %v548_v46  ;;  %v2276_v22 = vor.u32 %v2275_v6, %v2271_v57  ;;  %v562_v23 = vrot.slane %v560_v9, 5  ;;  %v570_v25 = vshll.u32 %v417_v4, 16 }
  0x39   : > { %v5175_v20 = vcombine.low %v539_v61, %v549_v11  ;;  %v2272_v26 = vsel %vm6717_vm4, %v2267_v12, %v2271_v57  ;;  %v557_v27 = vor.u32 %v556_v14, %v553_v8  ;;  %v566_v28 = vrot.slane %v564_v18, 4  ;;  %v420_v61 = vld [vmem:[%s6685_s8 + $0x44] sm:$0x1]  ;;  %v6874_v8 = vld [vmem:[%s6691_s11 + $0x3c] sm:$0xf] }
  0x3a   : > { %v2284_v33 = vshrl.u32 %v6836_v10, 16  ;;  %v2277_v35 = vrot.slane %v2276_v22, 4  ;;  %v572_v37 = vrot.slane %v570_v25, 5  ;;  %v2287_v36 = vshll.u32 %v6836_v10, 16  ;;  %v6877_v18 = vld [vmem:[%s6691_s11 + $0x40] sm:$0xf] }
  0x3b   : > { %5831 = vmatmul.mubr.msk.bf16.gmra.mrb[4].mxu1 %vm886_vm3, %v5175_v20  ;;  %v2293_v38 = vshll.u32 %v6842_v19, 16  ;;  %v558_v39 = vrot.slane %v557_v27, 4  ;;  %v567_v40 = vor.u32 %v566_v28, %v562_v23  ;;  %v2297_v43 = vshrl.u32 %v6842_v19, 16  ;;  %v6883_v28 = vld [vmem:[%s6691_s11 + $0x44] sm:$0x1] }
  0x3c   : > { %v2286_v41 = vrot.slane %v2284_v33, 4  ;;  %v2282_v46 = vsel %vm6717_vm4, %v2277_v35, %v2281_v7  ;;  %v2289_v47 = vrot.slane %v2287_v36, 5  ;;  %v2303_v49 = vshll.u32 %v6847_v31, 16 }
  0x3d   : > { %v2295_v48 = vrot.slane %v2293_v38, 5  ;;  %v5319_v53 = vcombine.low %v2272_v26, %v2282_v46  ;;  %v563_v54 = vsel %vm6717_vm4, %v558_v39, %v562_v23  ;;  %v568_v57 = vrot.slane %v567_v40, 4  ;;  %v6891_v40 = vld [vmem:[%s6685_s8 + $0x48] sm:$0xf] }
  0x3e   : > { %v2299_v58 = vrot.slane %v2297_v43, 4  ;;  %v2290_v17 = vor.u32 %v2289_v47, %v2286_v41  ;;  %v2305_v59 = vrot.slane %v2303_v49, 5  ;;  %v575_v63 = vshrl.u32 %v6855_v50, 16 }
  0x3f   : > { %v578_v2 = vshll.u32 %v6855_v50, 16  ;;  %5967 = vmatmul.mubr.msk.bf16.gmra.mrb[4].mxu0 %vm886_vm3, %v5319_v53  ;;  %v573_v4 = vsel %vm6717_vm4, %v568_v57, %v572_v37  ;;  %v584_v6 = vshll.u32 %v6861_v51, 16  ;;  %v588_v7 = vshrl.u32 %v6861_v51, 16 }
  0x40   : > { %v2300_v5 = vor.u32 %v2299_v58, %v2295_v48  ;;  %v5176_v9 = vcombine.low %v563_v54, %v573_v4  ;;  %v2291_v11 = vrot.slane %v2290_v17, 4  ;;  %v577_v12 = vrot.slane %v575_v63, 4 }
  0x41   : > { %v580_v14 = vrot.slane %v578_v2, 5  ;;  %v586_v22 = vrot.slane %v584_v6, 5  ;;  %v590_v23 = vrot.slane %v588_v7, 4  ;;  %v594_v25 = vshll.u32 %v420_v61, 16  ;;  %v6908_v7 = vld [vmem:[%s6691_s11 + $0x48] sm:$0xf] }
  0x42   : > { %v2301_v20 = vrot.slane %v2300_v5, 4  ;;  %5834 = vmatprep.mubr.msk.bf16.mxu1 %vm886_vm3, %v5176_v9  ;;  %v2296_v26 = vsel %vm6717_vm4, %v2291_v11, %v2295_v48  ;;  %v2308_v33 = vshrl.u32 %v6874_v8, 16  ;;  %v2311_v35 = vshll.u32 %v6874_v8, 16  ;;  %v6894_v48 = vld [vmem:[%s6685_s8 + $0x4c] sm:$0xf] }
  0x43   : > { %v581_v27 = vor.u32 %v580_v14, %v577_v12  ;;  %v591_v36 = vor.u32 %v590_v23, %v586_v22  ;;  %v596_v38 = vrot.slane %v594_v25, 5  ;;  %v2317_v39 = vshll.u32 %v6877_v18, 16 }
  0x44   : > { %v2306_v37 = vsel %vm6717_vm4, %v2301_v20, %v2305_v59  ;;  %v2310_v46 = vrot.slane %v2308_v33, 4  ;;  %v2313_v47 = vrot.slane %v2311_v35, 5  ;;  %v2321_v54 = vshrl.u32 %v6877_v18, 16  ;;  %v423_v59 = vld [vmem:[%s6685_s8 + $0x50] sm:$0x1] }
  0x45   : > { %v5320_v41 = vcombine.low %v2296_v26, %v2306_v37  ;;  %v582_v43 = vrot.slane %v581_v27, 4  ;;  %v592_v49 = vrot.slane %v591_v36, 4  ;;  %v2319_v53 = vrot.slane %v2317_v39, 5  ;;  %v6911_v20 = vld [vmem:[%s6691_s11 + $0x4c] sm:$0xf] }
  0x46   : > { %v2327_v57 = vshll.u32 %v6883_v28, 16  ;;  %v2314_v17 = vor.u32 %v2313_v47, %v2310_v46  ;;  %v599_v61 = vshrl.u32 %v6891_v40, 16  ;;  %v602_v63 = vshll.u32 %v6891_v40, 16  ;;  %v6918_v35 = vld [vmem:[%s6691_s11 + $0x50] sm:$0x1] }
  0x47   : > { %5970 = vmatprep.mubr.msk.bf16.mxu0 %vm886_vm3, %v5320_v41  ;;  %v587_v58 = vsel %vm6717_vm4, %v582_v43, %v586_v22  ;;  %v597_v2 = vsel %vm6717_vm4, %v592_v49, %v596_v38  ;;  %v2323_v4 = vrot.slane %v2321_v54, 4  ;;  %v608_v6 = vshll.u32 %v6894_v48, 16 }
  0x48   : > { %v2329_v5 = vrot.slane %v2327_v57, 5  ;;  %v5177_v9 = vcombine.low %v587_v58, %v597_v2  ;;  %v2315_v11 = vrot.slane %v2314_v17, 4  ;;  %v601_v12 = vrot.slane %v599_v61, 4  ;;  %v6931_v61 = vld [vmem:[%s6685_s8 + $0x58] sm:$0xf] }
  0x49   : > { %v604_v14 = vrot.slane %v602_v63, 5  ;;  %v2324_v22 = vor.u32 %v2323_v4, %v2319_v53  ;;  %v610_v23 = vrot.slane %v608_v6, 5  ;;  %v612_v25 = vshrl.u32 %v6894_v48, 16 }
  0x4a   : > { %v618_v26 = vshll.u32 %v423_v59, 16  ;;  %5835 = vmatmul.mubr.msk.bf16.gmra.mrb[8].mxu1 %vm886_vm3, %v5177_v9  ;;  %v2320_v27 = vsel %vm6717_vm4, %v2315_v11, %v2319_v53  ;;  %v2332_v37 = vshrl.u32 %v6908_v7, 16  ;;  %v2335_v36 = vshll.u32 %v6908_v7, 16  ;;  %v6925_v53 = vld [vmem:[%s6685_s8 + $0x54] sm:$0xf] }
  0x4b   : > { %v605_v33 = vor.u32 %v604_v14, %v601_v12  ;;  %v2325_v38 = vrot.slane %v2324_v22, 4  ;;  %v614_v39 = vrot.slane %v612_v25, 4  ;;  %v2341_v43 = vshll.u32 %v6911_v20, 16  ;;  %v426_v9 = vld [vmem:[%s6685_s8 + $0x5c] sm:$0x1] }
  0x4c   : > { %v620_v41 = vrot.slane %v618_v26, 5  ;;  %v2334_v47 = vrot.slane %v2332_v37, 4  ;;  %v2337_v49 = vrot.slane %v2335_v36, 5  ;;  %v2345_v54 = vshrl.u32 %v6911_v20, 16 }
  0x4d   : > { %v606_v46 = vrot.slane %v605_v33, 4  ;;  %v2330_v57 = vsel %vm6717_vm4, %v2325_v38, %v2329_v5  ;;  %v615_v58 = vor.u32 %v614_v39, %v610_v23  ;;  %v2343_v17 = vrot.slane %v2341_v43, 5  ;;  %v6947_v39 = vld [vmem:[%s6691_s11 + $0x58] sm:$0xf] }
  0x4e   : > { %v2351_v59 = vshll.u32 %v6918_v35, 16  ;;  %v5321_v63 = vcombine.low %v2320_v27, %v2330_v57  ;;  %v2338_v4 = vor.u32 %v2337_v49, %v2334_v47  ;;  %v2347_v6 = vrot.slane %v2345_v54, 4 }
  0x4f   : > { %v611_v2 = vsel %vm6717_vm4, %v606_v46, %v610_v23  ;;  %v616_v11 = vrot.slane %v615_v58, 4  ;;  %v623_v14 = vshrl.u32 %v6925_v53, 16  ;;  %v626_v5 = vshll.u32 %v6925_v53, 16  ;;  %v6942_v23 = vld [vmem:[%s6691_s11 + $0x54] sm:$0xf] }
  0x50   : > { %v2353_v12 = vrot.slane %v2351_v59, 5  ;;  %5971 = vmatmul.mubr.msk.bf16.gmra.mrb[8].mxu0 %vm886_vm3, %v5321_v63  ;;  %v2339_v22 = vrot.slane %v2338_v4, 4  ;;  %v2348_v25 = vor.u32 %v2347_v6, %v2343_v17  ;;  %v632_v26 = vshll.u32 %v6931_v61, 16  ;;  %v6952_v59 = vld [vmem:[%s6691_s11 + $0x5c] sm:$0x1] }
  0x51   : > { %v636_v27 = vshrl.u32 %v6931_v61, 16  ;;  %v621_v33 = vsel %vm6717_vm4, %v616_v11, %v620_v41  ;;  %v625_v37 = vrot.slane %v623_v14, 4  ;;  %v628_v36 = vrot.slane %v626_v5, 5  ;;  %v6962_v6 = vld [vmem:[%s6685_s8 + $0x60] sm:$0xf] }
  0x52   : > { %v642_v38 = vshll.u32 %v426_v9, 16  ;;  %v5178_v43 = vcombine.low %v611_v2, %v621_v33  ;;  %v2344_v46 = vsel %vm6717_vm4, %v2339_v22, %v2343_v17  ;;  %v2349_v47 = vrot.slane %v2348_v25, 4  ;;  %v6965_v22 = vld [vmem:[%s6685_s8 + $0x64] sm:$0xf] }
  0x53   : > { %v634_v49 = vrot.slane %v632_v26, 5  ;;  %v629_v54 = vor.u32 %v628_v36, %v625_v37  ;;  %v638_v57 = vrot.slane %v636_v27, 4  ;;  %v2356_v41 = vshrl.u32 %v6942_v23, 16 }
  0x54   : > { %v644_v58 = vrot.slane %v642_v38, 5  ;;  %5838 = vmatprep.mubr.msk.bf16.mxu1 %vm886_vm3, %v5178_v43  ;;  %v2354_v63 = vsel %vm6717_vm4, %v2349_v47, %v2353_v12  ;;  %v2359_v2 = vshll.u32 %v6942_v23, 16  ;;  %v2365_v4 = vshll.u32 %v6947_v39, 16 }
  0x55   : > { %v2369_v17 = vshrl.u32 %v6947_v39, 16  ;;  %v5322_v9 = vcombine.low %v2344_v46, %v2354_v63  ;;  %v630_v11 = vrot.slane %v629_v54, 4  ;;  %v639_v14 = vor.u32 %v638_v57, %v634_v49  ;;  %v429_v54 = vld [vmem:[%s6685_s8 + $0x68] sm:$0x1] }
  0x56   : > { %v2358_v5 = vrot.slane %v2356_v41, 4  ;;  %v2361_v25 = vrot.slane %v2359_v2, 5  ;;  %v2367_v26 = vrot.slane %v2365_v4, 5  ;;  %v2375_v12 = vshll.u32 %v6952_v59, 16 }
  0x57   : > { %v2371_v27 = vrot.slane %v2369_v17, 4  ;;  %5974 = vmatprep.mubr.msk.bf16.mxu0 %vm886_vm3, %v5322_v9  ;;  %v635_v33 = vsel %vm6717_vm4, %v630_v11, %v634_v49  ;;  %v640_v37 = vrot.slane %v639_v14, 4  ;;  %v647_v36 = vshrl.u32 %v6962_v6, 16  ;;  %v6979_v49 = vld [vmem:[%s6685_s8 + $0x6c] sm:$0xf] }
  0x58   : > { %v650_v38 = vshll.u32 %v6962_v6, 16  ;;  %v2362_v43 = vor.u32 %v2361_v25, %v2358_v5  ;;  %v2377_v47 = vrot.slane %v2375_v12, 5  ;;  %v656_v57 = vshll.u32 %v6965_v22, 16 }
  0x59   : > { %v2372_v46 = vor.u32 %v2371_v27, %v2367_v26  ;;  %v645_v41 = vsel %vm6717_vm4, %v640_v37, %v644_v58  ;;  %v649_v63 = vrot.slane %v647_v36, 4  ;;  %v660_v4 = vshrl.u32 %v6965_v22, 16 }
  0x5a   : > { %v652_v2 = vrot.slane %v650_v38, 5  ;;  %v5179_v17 = vcombine.low %v635_v33, %v645_v41  ;;  %v2363_v9 = vrot.slane %v2362_v43, 4  ;;  %v658_v14 = vrot.slane %v656_v57, 5  ;;  %v6995_v38 = vld [vmem:[%s6685_s8 + $0x70] sm:$0xf] }
  0x5b   : > { %v2373_v11 = vrot.slane %v2372_v46, 4  ;;  %v662_v25 = vrot.slane %v660_v4, 4  ;;  %v666_v27 = vshll.u32 %v429_v54, 16  ;;  %v5348_v58 = vrot.slane %v6697_v13, 9  ;;  %v432_v13 = vld [vmem:[%s6685_s8 + $0x74] sm:$0x1] }
  0x5c   : > { %v653_v5 = vor.u32 %v652_v2, %v649_v63  ;;  %5839 = vmatmul.mubr.msk.bf16.gmra.mrb[12].mxu1 %vm886_vm3, %v5179_v17  ;;  %v2368_v33 = vsel %vm6717_vm4, %v2363_v9, %v2367_v26  ;;  %v2881_v36 = vrot.slane %v6700_v15, 5  ;;  %v671_v43 = vshrl.u32 %v6979_v49, 16 }
  0x5d   : > { %v2378_v37 = vsel %vm6717_vm4, %v2373_v11, %v2377_v47  ;;  %v663_v57 = vor.u32 %v662_v25, %v658_v14  ;;  %v668_v41 = vrot.slane %v666_v27, 5  ;;  %v674_v47 = vshll.u32 %v6979_v49, 16 }
  0x5e   : > { %v5323_v46 = vcombine.low %v2368_v33, %v2378_v37  ;;  %v654_v54 = vrot.slane %v653_v5, 4  ;;  %v2882_v63 = vsel %vm6983_vm7, %v5348_v58, %v2881_v36  ;;  %v2883_v2 = vrot.slane %v2881_v36, 4  ;;  %v7013_v58 = vld [vmem:[%s6685_s8 + $0x78] sm:$0xf] }
  0x5f   : > { %v673_v26 = vrot.slane %v671_v43, 4  ;;  %v664_v4 = vrot.slane %v663_v57, 4  ;;  %v680_v17 = vshll.u32 %v6995_v38, 16  ;;  %v684_v9 = vshrl.u32 %v6995_v38, 16  ;;  %v7018_v43 = vld [vmem:[%s6685_s8 + $0x7c] sm:$0xf] }
  0x60   : > { %5975 = vmatmul.mubr.msk.bf16.gmra.mrb[12].mxu0 %vm886_vm3, %v5323_v46  ;;  %v659_v15 = vsel %vm6717_vm4, %v654_v54, %v658_v14  ;;  %v2885_v11 = vsel %vm6983_vm7, %v2883_v2, %v2884_v62  ;;  %v676_v5 = vrot.slane %v674_v47, 5  ;;  %v690_v25 = vshll.u32 %v432_v13, 16  ;;  %v435_v46 = vld [vmem:[%s6685_s8 + $0x80] sm:$0x1] }
  0x61   : > { %v5349_v27 = vrot.slane %v6735_v55, 9  ;;  %v669_v33 = vsel %vm6717_vm4, %v664_v4, %v668_v41  ;;  %v5364_v14 = vcombine.low %v2882_v63, %v2885_v11  ;;  %v682_v37 = vrot.slane %v680_v17, 5 }
  0x62   : > { %v686_v36 = vrot.slane %v684_v9, 4  ;;  %v5180_v54 = vcombine.low %v659_v15, %v669_v33  ;;  %v677_v16 = vor.u32 %v676_v5, %v673_v26  ;;  %v692_v57 = vrot.slane %v690_v25, 5  ;;  %v7043_v33 = vld [vmem:[%s6685_s8 + $0x88] sm:$0xf] }
  0x63   : > { %v2889_v62 = vsel %vm6983_vm7, %v5349_v27, %v2888_v24  ;;  %5996 = vmatprep.mubr.msk.bf16.mxu0 %vm886_vm3, %v5364_v14  ;;  %v2890_v41 = vrot.slane %v2888_v24, 4  ;;  %v695_v13 = vshrl.u32 %v7013_v58, 16  ;;  %v698_v63 = vshll.u32 %v7013_v58, 16  ;;  %v7040_v27 = vld [vmem:[%s6685_s8 + $0x84] sm:$0xf] }
  0x64   : > { %v687_v55 = vor.u32 %v686_v36, %v682_v37  ;;  %5842 = vmatprep.mubr.msk.bf16.mxu1 %vm886_vm3, %v5180_v54  ;;  %v678_v2 = vrot.slane %v677_v16, 4  ;;  %v704_v26 = vshll.u32 %v7018_v43, 16  ;;  %v708_v47 = vshrl.u32 %v7018_v43, 16 }
  0x65   : > { %v714_v15 = vshll.u32 %v435_v46, 16  ;;  %v2892_v60 = vsel %vm6983_vm7, %v2890_v41, %v2891_v29  ;;  %v697_v24 = vrot.slane %v695_v13, 4  ;;  %v700_v17 = vrot.slane %v698_v63, 5  ;;  %v7051_v46 = vld [vmem:[%s8711_s3 + $0xe] sm:$0x3] }
  0x66   : > { %v688_v4 = vrot.slane %v687_v55, 4  ;;  %v683_v9 = vsel %vm6717_vm4, %v678_v2, %v682_v37  ;;  %v5365_v11 = vcombine.low %v2889_v62, %v2892_v60  ;;  %v706_v5 = vrot.slane %v704_v26, 5  ;;  %v438_v55 = vld [vmem:[%s6685_s8 + $0x8c] sm:$0x1] }
  0x67   : > { %v710_v25 = vrot.slane %v708_v47, 4  ;;  %v701_v0 = vor.u32 %v700_v17, %v697_v24  ;;  %v716_v36 = vrot.slane %v714_v15, 5  ;;  %v5350_v29 = vrot.slane %v6769_v30, 9 }
  0x68   : > { %v693_v14 = vsel %vm6717_vm4, %v688_v4, %v692_v57  ;;  %5997 = vmatmul.mubr.msk.bf16.vlgmr.msra.gmra.mrb[0].mxu0 %vm886_vm3, %v5365_v11  ;;  %v2895_v16 = vrot.slane %v6776_v45, 5  ;;  %v2898_v62 = vrot.slane %v6781_v52, 5  ;;  %v719_v41 = vshrl.u32 %v7040_v27, 16  ;;  %v7077_v11 = vld [vmem:[%s6685_s8 + $0x94] sm:$0xf] }
  0x69   : > { %v5181_v37 = vcombine.low %v683_v9, %v693_v14  ;;  %v711_v54 = vor.u32 %v710_v25, %v706_v5  ;;  %6029 = vmatpush3.bf16.msra.mxu0 %v6749_v1  ;;  %v702_v57 = vrot.slane %v701_v0, 4  ;;  %v722_v30 = vshll.u32 %v7040_v27, 16  ;;  %v7074_v9 = vld [vmem:[%s6685_s8 + $0x90] sm:$0xf] }
  0x6a   : > { %v728_v13 = vshll.u32 %v7043_v33, 16  ;;  %v2896_v45 = vsel %vm6983_vm7, %v5350_v29, %v2895_v16  ;;  %v2897_v2 = vrot.slane %v2895_v16, 4  ;;  %v732_v52 = vshrl.u32 %v7043_v33, 16  ;;  %6396 = vmatprep.subr.msk.bf16.mxu0 %vm935_vm0, %v7051_v46 }
  0x6b   : > { %5843 = vmatmul.mubr.msk.bf16.gmra.mrb[16].mxu1 %vm886_vm3, %v5181_v37  ;;  %v712_v63 = vrot.slane %v711_v54, 4  ;;  %v707_v1 = vsel %vm6717_vm4, %v702_v57, %v706_v5  ;;  %v721_v26 = vrot.slane %v719_v41, 4  ;;  %v724_v47 = vrot.slane %v722_v30, 5 }
  0x6c   : > { %v730_v15 = vrot.slane %v728_v13, 5  ;;  %v2899_v60 = vsel %vm6983_vm7, %v2897_v2, %v2898_v62  ;;  %v734_v24 = vrot.slane %v732_v52, 4  ;;  %v738_v17 = vshll.u32 %v438_v55, 16  ;;  %v7085_v62 = vld [vmem:[%s6685_s8 + $0x98] sm:$0x1] }
  0x6d   : > { %v717_v4 = vsel %vm6717_vm4, %v712_v63, %v716_v36  ;;  %v5366_v14 = vcombine.low %v2896_v45, %v2899_v60  ;;  %v725_v0 = vor.u32 %v724_v47, %v721_v26  ;;  %v5351_v5 = vrot.slane %v6799_v21, 9  ;;  %v7104_v60 = vld [vmem:[%s6685_s8 + $0xa0] sm:$0xf] }
  0x6e   : > { %v5182_v25 = vcombine.low %v707_v1, %v717_v4  ;;  %v735_v29 = vor.u32 %v734_v24, %v730_v15  ;;  %v740_v37 = vrot.slane %v738_v17, 5  ;;  %v2902_v54 = vrot.slane %v6805_v34, 5  ;;  %v7101_v4 = vld [vmem:[%s6685_s8 + $0x9c] sm:$0xf] }
  0x6f   : > { %v2905_v36 = vrot.slane %v6814_v42, 5  ;;  %6000 = vmatprep.mubr.msk.bf16.mxu0 %vm886_vm3, %v5366_v14  ;;  %v726_v16 = vrot.slane %v725_v0, 4  ;;  %v743_v57 = vshrl.u32 %v7074_v9, 16  ;;  %v746_v55 = vshll.u32 %v7074_v9, 16 }
  0x70   : > { %5846 = vmatprep.mubr.msk.bf16.mxu1 %vm886_vm3, %v5182_v25  ;;  %v752_v21 = vshll.u32 %v7077_v11, 16  ;;  %v736_v41 = vrot.slane %v735_v29, 4  ;;  %v2903_v34 = vsel %vm6983_vm7, %v5351_v5, %v2902_v54  ;;  %v2904_v42 = vrot.slane %v2902_v54, 4  ;;  %v444_v54 = vld [vmem:[%s6685_s8 + $0xa4] sm:$0x1] }
  0x71   : > { %v756_v30 = vshrl.u32 %v7077_v11, 16  ;;  %v731_v13 = vsel %vm6717_vm4, %v726_v16, %v730_v15  ;;  %v745_v63 = vrot.slane %v743_v57, 4  ;;  %v748_v45 = vrot.slane %v746_v55, 5 }
  0x72   : > { %v754_v2 = vrot.slane %v752_v21, 5  ;;  %v741_v52 = vsel %vm6717_vm4, %v736_v41, %v740_v37  ;;  %v2906_v1 = vsel %vm6983_vm7, %v2904_v42, %v2905_v36  ;;  %v762_v47 = vshll.u32 %v7085_v62, 16 }
  0x73   : > { %v758_v26 = vrot.slane %v756_v30, 4  ;;  %v5183_v24 = vcombine.low %v731_v13, %v741_v52  ;;  %v5367_v17 = vcombine.low %v2903_v34, %v2906_v1  ;;  %v749_v15 = vor.u32 %v748_v45, %v745_v63  ;;  %v7125_v52 = vld [vmem:[%s6685_s8 + $0xa8] sm:$0xf]  ;;  %v7128_v1 = vld [vmem:[%s6685_s8 + $0xac] sm:$0xf] }
  0x74   : > { %v5352_v25 = vrot.slane %v6836_v10, 9  ;;  %v764_v0 = vrot.slane %v762_v47, 5  ;;  %v2909_v5 = vrot.slane %v6842_v19, 5  ;;  %v2912_v29 = vrot.slane %v6847_v31, 5  ;;  %8741 = vst [vmem:[#allocation3_spill] sm:$0xff] %v7125_v52 }
  0x75   : > { %v759_v14 = vor.u32 %v758_v26, %v754_v2  ;;  %5847 = vmatmul.mubr.msk.bf16.gmra.mrb[20].mxu1 %vm886_vm3, %v5183_v24  ;;  %6001 = vmatmul.mubr.msk.bf16.gmra.mrb[4].mxu0 %vm886_vm3, %v5367_v17  ;;  %v750_v37 = vrot.slane %v749_v15, 4  ;;  %v767_v36 = vshrl.u32 %v7101_v4, 16  ;;  %v770_v16 = vshll.u32 %v7101_v4, 16 }
  0x76   : > { %v776_v10 = vshll.u32 %v7104_v60, 16  ;;  %v2910_v19 = vsel %vm6983_vm7, %v5352_v25, %v2909_v5  ;;  %v2911_v55 = vrot.slane %v2909_v5, 4  ;;  %v780_v31 = vshrl.u32 %v7104_v60, 16  ;;  %v7136_v5 = vld [vmem:[%s6685_s8 + $0xb0] sm:$0x1] }
  0x77   : > { %v760_v57 = vrot.slane %v759_v14, 4  ;;  %v755_v21 = vsel %vm6717_vm4, %v750_v37, %v754_v2  ;;  %v769_v41 = vrot.slane %v767_v36, 4  ;;  %v772_v34 = vrot.slane %v770_v16, 5  ;;  %8742 = vst [vmem:[#allocation4_spill] sm:$0xff] %v7136_v5 }
  0x78   : > { %v778_v42 = vrot.slane %v776_v10, 5  ;;  %v2913_v13 = vsel %vm6983_vm7, %v2911_v55, %v2912_v29  ;;  %v782_v63 = vrot.slane %v780_v31, 4  ;;  %v786_v45 = vshll.u32 %v444_v54, 16 }
  0x79   : > { %v765_v30 = vsel %vm6717_vm4, %v760_v57, %v764_v0  ;;  %v5368_v47 = vcombine.low %v2910_v19, %v2913_v13  ;;  %v773_v24 = vor.u32 %v772_v34, %v769_v41  ;;  %v5353_v2 = vrot.slane %v6874_v8, 9  ;;  %v7152_v34 = vld [vmem:[%s6685_s8 + $0xb4] sm:$0xf] }
  0x7a   : > { %v5184_v26 = vcombine.low %v755_v21, %v765_v30  ;;  %v783_v17 = vor.u32 %v782_v63, %v778_v42  ;;  %v788_v15 = vrot.slane %v786_v45, 5  ;;  %v2916_v25 = vrot.slane %v6877_v18, 5  ;;  %8743 = vst [vmem:[#allocation5_spill] sm:$0xff] %v7152_v34  ;;  %v7155_v30 = vld [vmem:[%s6685_s8 + $0xb8] sm:$0xf] }
  0x7b   : > { %v2919_v14 = vrot.slane %v6883_v28, 5  ;;  %6004 = vmatprep.mubr.msk.bf16.mxu0 %vm886_vm3, %v5368_v47  ;;  %v774_v0 = vrot.slane %v773_v24, 4  ;;  %v791_v29 = vshrl.u32 %v7125_v52, 16  ;;  %v794_v37 = vshll.u32 %v7125_v52, 16  ;;  %8744 = vst [vmem:[#allocation6_spill] sm:$0xff] %v7155_v30 }
  0x7c   : > { %5850 = vmatprep.mubr.msk.bf16.mxu1 %vm886_vm3, %v5184_v26  ;;  %v800_v8 = vshll.u32 %v7128_v1, 16  ;;  %v784_v54 = vrot.slane %v783_v17, 4  ;;  %v2917_v18 = vsel %vm6983_vm7, %v5353_v2, %v2916_v25  ;;  %v2918_v28 = vrot.slane %v2916_v25, 4 }
  0x7d   : > { %v804_v36 = vshrl.u32 %v7128_v1, 16  ;;  %v779_v16 = vsel %vm6717_vm4, %v774_v0, %v778_v42  ;;  %v793_v10 = vrot.slane %v791_v29, 4  ;;  %v796_v57 = vrot.slane %v794_v37, 5 }
  0x7e   : > { %v802_v19 = vrot.slane %v800_v8, 5  ;;  %v789_v55 = vsel %vm6717_vm4, %v784_v54, %v788_v15  ;;  %v2920_v31 = vsel %vm6983_vm7, %v2918_v28, %v2919_v14  ;;  %v810_v41 = vshll.u32 %v7136_v5, 16  ;;  %v7163_v15 = vld [vmem:[%s6685_s8 + $0xbc] sm:$0x1]  ;;  %v1839_v28 = vld [vmem:[%s6691_s11 + $0x60] sm:$0xf] }
  0x7f   : > { %v806_v21 = vrot.slane %v804_v36, 4  ;;  %v5185_v13 = vcombine.low %v779_v16, %v789_v55  ;;  %v5369_v63 = vcombine.low %v2917_v18, %v2920_v31  ;;  %v797_v42 = vor.u32 %v796_v57, %v793_v10  ;;  %8745 = vst [vmem:[#allocation7_spill] sm:$0xff] %v7163_v15  ;;  %v1840_v55 = vld [vmem:[%s6691_s11 + $0x64] sm:$0xf]  ;;  %v1841_v31 = vld [vmem:[%s6691_s11 + $0x68] sm:$0x1] }
  0x80   : > { %v5354_v45 = vrot.slane %v6908_v7, 9  ;;  %v812_v47 = vrot.slane %v810_v41, 5  ;;  %v2923_v24 = vrot.slane %v6911_v20, 5  ;;  %v2926_v2 = vrot.slane %v6918_v35, 5  ;;  %v6496_v5 = vld [vmem:[%s6685_s8 + $0x64] sm:$0xf] }
  0x81   : > { %v807_v26 = vor.u32 %v806_v21, %v802_v19  ;;  %5851 = vmatmul.mubr.msk.bf16.gmra.mrb[24].mxu1 %vm886_vm3, %v5185_v13  ;;  %6005 = vmatmul.mubr.msk.bf16.gmra.mrb[8].mxu0 %vm886_vm3, %v5369_v63  ;;  %v798_v17 = vrot.slane %v797_v42, 4  ;;  %v815_v25 = vshrl.u32 %v7152_v34, 16  ;;  %v818_v14 = vshll.u32 %v7152_v34, 16 }
  0x82   : > { %v824_v7 = vshll.u32 %v7155_v30, 16  ;;  %v2924_v20 = vsel %vm6983_vm7, %v5354_v45, %v2923_v24  ;;  %v2925_v35 = vrot.slane %v2923_v24, 4  ;;  %v828_v29 = vshrl.u32 %v7155_v30, 16 }
  0x83   : > { %v808_v0 = vrot.slane %v807_v26, 4  ;;  %v803_v37 = vsel %vm6717_vm4, %v798_v17, %v802_v19  ;;  %v817_v8 = vrot.slane %v815_v25, 4  ;;  %v820_v54 = vrot.slane %v818_v14, 5 }
  0x84   : > { %v826_v18 = vrot.slane %v824_v7, 5  ;;  %v2927_v16 = vsel %vm6983_vm7, %v2925_v35, %v2926_v2  ;;  %v830_v10 = vrot.slane %v828_v29, 4  ;;  %v834_v57 = vshll.u32 %v7163_v15, 16  ;;  %v7197_v35 = vld [vmem:[%s6685_s8] sm:$0xf] }
  0x85   : > { %v813_v36 = vsel %vm6717_vm4, %v808_v0, %v812_v47  ;;  %v5370_v41 = vcombine.low %v2924_v20, %v2927_v16  ;;  %v821_v13 = vor.u32 %v820_v54, %v817_v8  ;;  %v5355_v19 = vrot.slane %v6942_v23, 9  ;;  %v7200_v29 = vld [vmem:[%s6685_s8 + $0x4] sm:$0xf]  ;;  %v1842_v8 = vld [vmem:[%s6691_s11 + $0x6c] sm:$0xf] }
  0x86   : > { %v5186_v21 = vcombine.low %v803_v37, %v813_v36  ;;  %v831_v63 = vor.u32 %v830_v10, %v826_v18  ;;  %v836_v42 = vrot.slane %v834_v57, 5  ;;  %v2930_v45 = vrot.slane %v6947_v39, 5  ;;  %v1843_v54 = vld [vmem:[%s6691_s11 + $0x70] sm:$0xf]  ;;  %v1844_v16 = vld [vmem:[%s6691_s11 + $0x74] sm:$0x1] }
  0x87   : > { %v2933_v26 = vrot.slane %v6952_v59, 5  ;;  %6008 = vmatprep.mubr.msk.bf16.mxu0 %vm886_vm3, %v5370_v41  ;;  %v822_v47 = vrot.slane %v821_v13, 4  ;;  %v5356_v24 = vrot.slane %v1839_v28, 9  ;;  %v2937_v2 = vrot.slane %v1840_v55, 5  ;;  %v1845_v10 = vld [vmem:[%s6691_s11 + $0x78] sm:$0xf] }
  0x88   : > { %5854 = vmatprep.mubr.msk.bf16.mxu1 %vm886_vm3, %v5186_v21  ;;  %v2940_v17 = vrot.slane %v1841_v31, 5  ;;  %v832_v25 = vrot.slane %v831_v63, 4  ;;  %v2931_v23 = vsel %vm6983_vm7, %v5355_v19, %v2930_v45  ;;  %v2932_v39 = vrot.slane %v2930_v45, 4  ;;  %v1846_v55 = vld [vmem:[%s6691_s11 + $0x7c] sm:$0xf] }
  0x89   : > { %v827_v59 = vsel %vm6717_vm4, %v822_v47, %v826_v18  ;;  %v2938_v14 = vsel %vm6983_vm7, %v5356_v24, %v2937_v2  ;;  %v2939_v7 = vrot.slane %v2937_v2, 4  ;;  %v5204_v37 = vcombine.low %v7197_v35, %v7200_v29  ;;  %v1847_v41 = vld [vmem:[%s6691_s11 + $0x80] sm:$0x1]  ;;  %v1849_v13 = vld [vmem:[%s6691_s11 + $0x88] sm:$0xf] }
  0x8a   : > { %v837_v0 = vsel %vm6717_vm4, %v832_v25, %v836_v42  ;;  %v2934_v20 = vsel %vm6983_vm7, %v2932_v39, %v2933_v26  ;;  %v5357_v31 = vrot.slane %v1842_v8, 9  ;;  %v2944_v21 = vrot.slane %v1843_v54, 5  ;;  %v1848_v42 = vld [vmem:[%s6691_s11 + $0x84] sm:$0xf]  ;;  %v1850_v45 = vld [vmem:[%s6691_s11 + $0x8c] sm:$0x1] }
  0x8b   : > { %v5187_v18 = vcombine.low %v827_v59, %v837_v0  ;;  %v5371_v28 = vcombine.low %v2931_v23, %v2934_v20  ;;  %v2941_v36 = vsel %vm6983_vm7, %v2939_v7, %v2940_v17  ;;  %v2947_v19 = vrot.slane %v1844_v16, 5  ;;  %v1851_v2 = vld [vmem:[%s6691_s11 + $0x90] sm:$0xf]  ;;  %v1852_v17 = vld [vmem:[%s6691_s11 + $0x94] sm:$0xf] }
  0x8c   : > { %v5372_v57 = vcombine.low %v2938_v14, %v2941_v36  ;;  %v5358_v63 = vrot.slane %v1845_v10, 9  ;;  %v2945_v26 = vsel %vm6983_vm7, %v5357_v31, %v2944_v21  ;;  %v2946_v47 = vrot.slane %v2944_v21, 4  ;;  %v7224_v25 = vld [vmem:[%s6685_s8 + $0xc] sm:$0xf]  ;;  %v7227_v23 = vld [vmem:[%s6685_s8 + $0x10] sm:$0xf] }
  0x8d   : > { %5855 = vmatmul.mubr.msk.bf16.gmra.mrb[28].mxu1 %vm886_vm3, %v5187_v18  ;;  %6009 = vmatmul.mubr.msk.bf16.gmra.mrb[12].mxu0 %vm886_vm3, %v5371_v28  ;;  %v2951_v24 = vrot.slane %v1846_v55, 5  ;;  %v5205_v39 = vcombine.low %v7224_v25, %v7227_v23  ;;  %v6475_v59 = vld [vmem:[%s8711_s3 + $0x4] sm:$0x3]  ;;  %v2954_v7 = vrot.slane %v1847_v41, 5  ;;  %v2958_v0 = vrot.slane %v1849_v13, 5 }
  0x8e   : > { %5860 = vmatprep.mubr.msk.bf16.mxu1 %vm886_vm3, %v5204_v37  ;;  %6012 = vmatprep.mubr.msk.bf16.mxu0 %vm886_vm3, %v5372_v57  ;;  %v1620_v14 = vsel %vm935_vm0, %v6475_v59, 0  ;;  %v1853_v20 = vld [vmem:[%s6691_s11 + $0x98] sm:$0x1]  ;;  %v2948_v37 = vsel %vm6983_vm7, %v2946_v47, %v2947_v19  ;;  %v7242_v54 = vld [vmem:[%s6685_s8 + $0x1c] sm:$0xf]  ;;  %v5359_v10 = vrot.slane %v1848_v42, 9 }
  0x8f   : > { %v7239_v8 = vld [vmem:[%s6685_s8 + $0x18] sm:$0xf]  ;;  %v2952_v28 = vsel %vm6983_vm7, %v5358_v63, %v2951_v24  ;;  %v2953_v36 = vrot.slane %v2951_v24, 4  ;;  %v5373_v16 = vcombine.low %v2945_v26, %v2948_v37  ;;  %v2960_v57 = vrot.slane %v2958_v0, 4  ;;  %v1855_v19 = vld [vmem:[%s6691_s11 + $0xa0] sm:$0xf] }
  0x90   : > { %v5206_v18 = vcombine.low %v7239_v8, %v7242_v54  ;;  %v2961_v55 = vrot.slane %v1850_v45, 5  ;;  %v5360_v21 = vrot.slane %v1851_v2, 9  ;;  %v2965_v41 = vrot.slane %v1852_v17, 5  ;;  %v1858_v59 = vld [vmem:[%s6691_s11 + $0xac] sm:$0xf] }
  0x91   : > { %v2955_v31 = vsel %vm6983_vm7, %v2953_v36, %v2954_v7  ;;  %v2968_v13 = vrot.slane %v1853_v20, 5  ;;  %v7255_v63 = vld [vmem:[%s8711_s3 + $0x6] sm:$0x3]  ;;  %v2959_v45 = vsel %vm6983_vm7, %v5359_v10, %v2958_v0  ;;  %v2972_v24 = vrot.slane %v1855_v19, 5  ;;  %v1856_v7 = vld [vmem:[%s6691_s11 + $0xa4] sm:$0x1] }
  0x92   : > { %v5374_v47 = vcombine.low %v2952_v28, %v2955_v31  ;;  %v2967_v42 = vrot.slane %v2965_v41, 4  ;;  %v2962_v26 = vsel %vm6983_vm7, %v2960_v57, %v2961_v55  ;;  %v2966_v2 = vsel %vm6983_vm7, %v5360_v21, %v2965_v41  ;;  %v1857_v0 = vld [vmem:[%s6691_s11 + $0xa8] sm:$0xf]  ;;  %v1859_v20 = vld [vmem:[%s6691_s11 + $0xb0] sm:$0x1] }
  0x93   : > { %v7276_v37 = vld [vmem:[%s6685_s8 + $0x24] sm:$0xf]  ;;  %v5375_v36 = vcombine.low %v2959_v45, %v2962_v26  ;;  %v2974_v55 = vrot.slane %v2972_v24, 4  ;;  %v2975_v31 = vrot.slane %v1856_v7, 5  ;;  %v5362_v21 = vrot.slane %v1857_v0, 9 }
  0x94   : > { %v2969_v17 = vsel %vm6983_vm7, %v2967_v42, %v2968_v13  ;;  %v2982_v13 = vrot.slane %v1859_v20, 5  ;;  %v1861_v19 = vld [vmem:[%s6691_s11 + $0xb8] sm:$0xf]  ;;  %v1860_v45 = vld [vmem:[%s6691_s11 + $0xb4] sm:$0xf] }
  0x95   : > { %5861 = vmatmul.mubr.msk.bf16.vlgmr.msra.gmra.mrb[0].mxu1 %vm886_vm3, %v5205_v39  ;;  %6013 = vmatmul.mubr.msk.bf16.gmra.mrb[16].mxu0 %vm886_vm3, %v5373_v16  ;;  %v1854_v39 = vld [vmem:[%s6691_s11 + $0x9c] sm:$0xf]  ;;  %v5208_v16 = vcombine.low %v6818_v44, %v6824_v56  ;;  %v5376_v10 = vcombine.low %v2966_v2, %v2969_v17  ;;  %v2976_v56 = vsel %vm6983_vm7, %v2974_v55, %v2975_v31  ;;  %v5363_v7 = vrot.slane %v1860_v45, 9 }
  0x96   : > { %5893 = vmatpush3.bf16.msra.mxu1 %v1620_v14  ;;  %5864 = vmatprep.mubr.msk.bf16.mxu1 %vm886_vm3, %v5206_v18  ;;  %v2979_v14 = vrot.slane %v1858_v59, 5  ;;  %v7279_v18 = vld [vmem:[%s6685_s8 + $0x28] sm:$0xf]  ;;  %v5361_v57 = vrot.slane %v1854_v39, 9  ;;  %v1862_v26 = vld [vmem:[%s6691_s11 + $0xbc] sm:$0x1]  ;;  %v5209_v2 = vcombine.low %v6855_v50, %v6861_v51  ;;  %v5210_v39 = vcombine.low %v6891_v40, %v6894_v48 }
  0x97   : > { %6016 = vmatprep.mubr.msk.bf16.mxu0 %vm886_vm3, %v5374_v47  ;;  %6391 = vmatprep.subr.msk.bf16.mxu1 %vm935_vm0, %v7255_v63  ;;  %v5207_v28 = vcombine.low %v7276_v37, %v7279_v18  ;;  %v2986_v47 = vrot.slane %v1861_v19, 5  ;;  %v2989_v20 = vrot.slane %v1862_v26, 5  ;;  %v7319_v40 = vld [vmem:[%s7308_s28] sm:$0xf]  ;;  %v7322_v48 = vld [vmem:[%s7308_s28 + $0x4] sm:$0xf]  ;;  %v5214_v55 = vcombine.low %v7013_v58, %v7018_v43 }
  0x98   : > { %v2981_v41 = vrot.slane %v2979_v14, 4  ;;  %v2973_v44 = vsel %vm6983_vm7, %v5361_v57, %v2972_v24  ;;  %v2980_v59 = vsel %vm6983_vm7, %v5362_v21, %v2979_v14  ;;  %v5211_v14 = vcombine.low %v6925_v53, %v6931_v61  ;;  %v7338_v53 = vld [vmem:[%s7308_s28 + $0x10] sm:$0xf]  ;;  %v7341_v61 = vld [vmem:[%s7308_s28 + $0x18] sm:$0xf] }
  0x99   : > { %v5377_v17 = vcombine.low %v2973_v44, %v2976_v56  ;;  %v2988_v0 = vrot.slane %v2986_v47, 4  ;;  %v2987_v50 = vsel %vm6983_vm7, %v5363_v7, %v2986_v47  ;;  %v4136_v31 = vsel %vm935_vm0, %v7051_v46, 0  ;;  %v7368_v58 = vld [vmem:[%s7308_s28 + $0x28] sm:$0xf]  ;;  %v7372_v46 = vld [vmem:[%s7308_s28 + $0x30] sm:$0xf] }
  0x9a   : > { %v2983_v42 = vsel %vm6983_vm7, %v2981_v41, %v2982_v13  ;;  %v7359_v41 = vld [vmem:[%s8711_s3 + $0x10] sm:$0x3]  ;;  %v7375_v13 = vld [vmem:[%s7308_s28 + $0x34] sm:$0xf]  ;;  %v7380_v19 = vld [vmem:[%s6685_s8 + $0x8] sm:$0x1]  ;;  %v5215_v45 = vcombine.low %v7040_v27, %v7043_v33 }
  0x9b   : > { %v5378_v24 = vcombine.low %v2980_v59, %v2983_v42  ;;  %v2990_v51 = vsel %vm6983_vm7, %v2988_v0, %v2989_v20  ;;  %v1416_v44 = vrot.slane %v7380_v19, 5  ;;  %v1420_v56 = vrot.slane %v7227_v23, 5  ;;  %v7385_v47 = vld [vmem:[%s6685_s8 + $0x14] sm:$0x1]  ;;  %v7403_v7 = vld [vmem:[%s7308_s28 + $0x40] sm:$0xf] }
  0x9c   : > { %v1423_v59 = vrot.slane %v7385_v47, 5  ;;  %v5216_v23 = vcombine.low %v7074_v9, %v7077_v11  ;;  %v1427_v9 = vrot.slane %v7242_v54, 5  ;;  %v7472_v33 = vld [vmem:[%s7308_s28 + $0x70] sm:$0xf]  ;;  %v5238_v27 = vrot.slane %v7239_v8, 9 }
  0x9d   : > { %5865 = vmatmul.mubr.msk.bf16.gmra.mrb[4].mxu1 %vm886_vm3, %v5207_v28  ;;  %6017 = vmatmul.mubr.msk.bf16.gmra.mrb[20].mxu0 %vm886_vm3, %v5375_v36  ;;  %v5379_v28 = vcombine.low %v2987_v50, %v2990_v51  ;;  %v5212_v36 = vcombine.low %v6962_v6, %v6965_v22  ;;  %v7344_v6 = vld [vmem:[%s7308_s28 + $0x1c] sm:$0xf]  ;;  %v5213_v22 = vcombine.low %v6979_v49, %v6995_v38  ;;  %v7365_v49 = vld [vmem:[%s7308_s28 + $0x24] sm:$0xf]  ;;  %v7410_v50 = vld [vmem:[%s7308_s28 + $0x48] sm:$0xf] }
  0x9e   : > { %5868 = vmatprep.mubr.msk.bf16.mxu1 %vm886_vm3, %v5208_v16  ;;  %6020 = vmatprep.mubr.msk.bf16.mxu0 %vm886_vm3, %v5376_v10  ;;  %v5396_v16 = vcombine.low %v7319_v40, %v7322_v48  ;;  %v7335_v10 = vld [vmem:[%s7308_s28 + $0xc] sm:$0xf]  ;;  %v5398_v21 = vcombine.low %v7341_v61, %v7344_v6  ;;  %v5399_v26 = vcombine.low %v7365_v49, %v7368_v58  ;;  %v7496_v0 = vld [vmem:[%s7308_s28 + $0x7c] sm:$0xf]  ;;  %v7504_v19 = vsel %vm935_vm0, %v7255_v63, 0 }
  0x9f   : > { %v5397_v57 = vcombine.low %v7335_v10, %v7338_v53  ;;  %8746 = vst [vmem:[#allocation8_spill] sm:$0xff] %v7410_v50  ;;  %v5219_v51 = vcombine.low %v7152_v34, %v7155_v30  ;;  %v7522_v8 = vld [vmem:[%s7308_s28 + $0x84] sm:$0xf]  ;;  %v7534_v54 = vld [vmem:[%s7308_s28 + $0x90] sm:$0xf] }
  0xa0   : > { %v6487_v42 = vld [vmem:[%s6685_s8 + $0x40] sm:$0xf]  ;;  %v7603_v34 = vld [vmem:[%s7308_s28 + $0xac] sm:$0xf] }
  0xa5   : > { %5869 = vmatmul.mubr.msk.bf16.gmra.mrb[8].mxu1 %vm886_vm3, %v5209_v2  ;;  %6021 = vmatmul.mubr.msk.bf16.gmra.mrb[24].mxu0 %vm886_vm3, %v5377_v17  ;;  %v7486_v17 = vld [vmem:[%s7308_s28 + $0x78] sm:$0xf]  ;;  %v7539_v2 = vld [vmem:[%s7308_s28 + $0x94] sm:$0xf] }
  0xa6   : > { %5872 = vmatprep.mubr.msk.bf16.mxu1 %vm886_vm3, %v5210_v39  ;;  %6024 = vmatprep.mubr.msk.bf16.mxu0 %vm886_vm3, %v5378_v24  ;;  %v5400_v39 = vcombine.low %v7372_v46, %v7375_v13  ;;  %v7400_v24 = vld [vmem:[%s7308_s28 + $0x3c] sm:$0xf]  ;;  %8752 = vst [vmem:[#allocation14_spill] sm:$0xff] %v7486_v17 }
  0xa7   : > { %v5401_v47 = vcombine.low %v7400_v24, %v7403_v7 }
  0xad   : > { %5873 = vmatmul.mubr.msk.bf16.gmra.mrb[12].mxu1 %vm886_vm3, %v5211_v14  ;;  %6025 = vmatmul.mubr.msk.bf16.gmra.mrb[28].mxu0 %vm886_vm3, %v5379_v28  ;;  %v1448_v28 = vrot.slane %v6487_v42, 5  ;;  %v6488_v42 = vld [vmem:[%s6685_s8 + $0x4c] sm:$0xf] }
  0xae   : > { %5876 = vmatprep.mubr.msk.bf16.mxu1 %vm886_vm3, %v5212_v36  ;;  %6030 = vmatprep.mubr.msk.bf16.mxu0 %vm886_vm3, %v5396_v16  ;;  %v7417_v36 = vld [vmem:[%s7308_s28 + $0x4c] sm:$0xf] }
  0xb5   : > { %5877 = vmatmul.mubr.msk.bf16.gmra.mrb[16].mxu1 %vm886_vm3, %v5213_v22  ;;  %6031 = vmatmul.mubr.msk.bf16.vlgmr.msra.gmra.mrb[0].mxu0 %vm886_vm3, %v5397_v57  ;;  %v7451_v22 = vld [vmem:[%s7308_s28 + $0x64] sm:$0xf]  ;;  %v1422_v57 = vrot.slane %v1420_v56, 4 }
  0xb6   : > { %6063 = vmatpush3.bf16.msra.mxu0 %v4136_v31  ;;  %5880 = vmatprep.mubr.msk.bf16.mxu1 %vm886_vm3, %v5214_v55  ;;  %v1413_v55 = vrot.slane %v7200_v29, 5  ;;  %v7443_v31 = vld [vmem:[%s7308_s28 + $0x58] sm:$0xf]  ;;  %8750 = vst [vmem:[#allocation12_spill] sm:$0xff] %v7451_v22  ;;  %v5237_v29 = vrot.slane %v7224_v25, 9 }
  0xb7   : > { %6034 = vmatprep.mubr.msk.bf16.mxu0 %vm886_vm3, %v5398_v21  ;;  %6397 = vmatprep.subr.msk.bf16.mxu0 %vm935_vm0, %v7359_v41  ;;  %v5217_v21 = vcombine.low %v7101_v4, %v7104_v60  ;;  %8748 = vst [vmem:[#allocation10_spill] sm:$0xff] %v7443_v31  ;;  %v7446_v4 = vld [vmem:[%s7308_s28 + $0x60] sm:$0xf]  ;;  %v7464_v25 = vld [vmem:[%s7308_s28 + $0x6c] sm:$0xf]  ;;  %v7482_v16 = vsel %vm6983_vm7, %v1422_v57, %v1423_v59  ;;  %v1434_v59 = vrot.slane %v7279_v18, 5 }
  0xb8   : > { %8749 = vst [vmem:[#allocation11_spill] sm:$0xff] %v7446_v4  ;;  %v1415_v14 = vrot.slane %v1413_v55, 4  ;;  %8751 = vst [vmem:[#allocation13_spill] sm:$0xff] %v7464_v25  ;;  %v7478_v20 = vsel %vm6983_vm7, %v5237_v29, %v1420_v56  ;;  %v1429_v56 = vrot.slane %v1427_v9, 4  ;;  %v6486_v18 = vld [vmem:[%s6685_s8 + $0x38] sm:$0x1] }
  0xbd   : > { %5881 = vmatmul.mubr.msk.bf16.gmra.mrb[20].mxu1 %vm886_vm3, %v5215_v45  ;;  %6035 = vmatmul.mubr.msk.bf16.gmra.mrb[4].mxu0 %vm886_vm3, %v5399_v26  ;;  %v7434_v26 = vld [vmem:[%s7308_s28 + $0x54] sm:$0xf]  ;;  %v5236_v45 = vrot.slane %v7197_v35, 9 }
  0xbe   : > { %5884 = vmatprep.mubr.msk.bf16.mxu1 %vm886_vm3, %v5216_v23  ;;  %6038 = vmatprep.mubr.msk.bf16.mxu0 %vm886_vm3, %v5400_v39  ;;  %8747 = vst [vmem:[#allocation9_spill] sm:$0xff] %v7434_v26  ;;  %v5218_v23 = vcombine.low %v7125_v52, %v7128_v1  ;;  %v5402_v39 = vcombine.low %v7410_v50, %v7417_v36  ;;  %v8755_v52 = vshll.u32 %v7319_v40, 16 }
  0xbf   : > { %v5403_v35 = vcombine.low %v7434_v26, %v7443_v31  ;;  %v1414_v60 = vsel %vm6983_vm7, %v5236_v45, %v1413_v55  ;;  %v1417_v55 = vsel %vm6983_vm7, %v1415_v14, %v1416_v44  ;;  %v6482_v45 = vld [vmem:[%s6685_s8 + $0x20] sm:$0x1]  ;;  %v6483_v14 = vld [vmem:[%s6685_s8 + $0x34] sm:$0xf]  ;;  %v1469_v31 = vrot.slane %v6496_v5, 5 }
  0xc0   : > { %v1430_v29 = vrot.slane %v6482_v45, 5  ;;  %v1441_v57 = vrot.slane %v6483_v14, 5  ;;  %v5252_v63 = vcombine.low %v1414_v60, %v1417_v55  ;;  %v5239_v14 = vrot.slane %v7276_v37, 9  ;;  %v6484_v55 = vld [vmem:[%s6685_s8 + $0x2c] sm:$0x1] }
  0xc1   : > { %v1436_v60 = vrot.slane %v1434_v59, 4  ;;  %v1444_v37 = vrot.slane %v6486_v18, 5  ;;  %v6491_v45 = vld [vmem:[%s6685_s8 + $0x58] sm:$0xf]  ;;  %v6494_v26 = vld [vmem:[%s6685_s8 + $0x54] sm:$0xf] }
  0xc2   : > { %v1443_v44 = vrot.slane %v1441_v57, 4  ;;  %v7551_v18 = vsel %vm6983_vm7, %v5239_v14, %v1434_v59  ;;  %v7568_v14 = vld [vmem:[%s7308_s28 + $0x9c] sm:$0xf]  ;;  %v5243_v30 = vrot.slane %v6494_v26, 9  ;;  %v8756_v5 = vshrl.u32 %v7322_v48, 16 }
  0xc5   : > { %5885 = vmatmul.mubr.msk.bf16.gmra.mrb[24].mxu1 %vm886_vm3, %v5217_v21  ;;  %6039 = vmatmul.mubr.msk.bf16.gmra.mrb[8].mxu0 %vm886_vm3, %v5401_v47  ;;  %v7525_v21 = vld [vmem:[%s7308_s28 + $0x88] sm:$0xf]  ;;  %v1437_v47 = vrot.slane %v6484_v55, 5 }
  0xc6   : > { %5888 = vmatprep.mubr.msk.bf16.mxu1 %vm886_vm3, %v5218_v23  ;;  %6042 = vmatprep.mubr.msk.bf16.mxu0 %vm886_vm3, %v5402_v39  ;;  %v7516_v39 = vsel %vm6983_vm7, %v5238_v27, %v1427_v9  ;;  %v7529_v23 = vsel %vm6983_vm7, %v1429_v56, %v1430_v29  ;;  %v6485_v27 = vld [vmem:[%s6685_s8 + $0x30] sm:$0xf]  ;;  %v6490_v56 = vld [vmem:[%s6685_s8 + $0x44] sm:$0x1] }
  0xc7   : > { %v5240_v9 = vrot.slane %v6485_v27, 9  ;;  %v7559_v27 = vsel %vm6983_vm7, %v1436_v60, %v1437_v47  ;;  %v6489_v47 = vld [vmem:[%s6685_s8 + $0x3c] sm:$0xf]  ;;  %v1451_v59 = vrot.slane %v6490_v56, 5  ;;  %v7595_v56 = vld [vmem:[%s7308_s28 + $0xa8] sm:$0xf] }
  0xc8   : > { %v5241_v60 = vrot.slane %v6489_v47, 9  ;;  %v6492_v47 = vld [vmem:[%s6685_s8 + $0x48] sm:$0xf] }
  0xc9   : > { %v7563_v29 = vsel %vm6983_vm7, %v5240_v9, %v1441_v57  ;;  %v7581_v57 = vsel %vm6983_vm7, %v1443_v44, %v1444_v37  ;;  %v1450_v9 = vrot.slane %v1448_v28, 4  ;;  %v5242_v15 = vrot.slane %v6492_v47, 9 }
  0xca   : > { %v7607_v37 = vsel %vm6983_vm7, %v5241_v60, %v1448_v28  ;;  %v3661_v28 = vrot.slane %v8755_v52, 5  ;;  %v8758_v52 = vcombine.low %v7464_v25, %v7472_v33 }
  0xcb   : > { %v7611_v47 = vsel %vm6983_vm7, %v1450_v9, %v1451_v59  ;;  %v7627_v59 = vld [vmem:[%s7308_s28 + $0xb4] sm:$0xf]  ;;  %v3671_v9 = vrot.slane %v8756_v5, 4 }
  0xcd   : > { %5889 = vmatmul.mubr.msk.bf16.gmra.mrb[28].mxu1 %vm886_vm3, %v5219_v51  ;;  %6043 = vmatmul.mubr.msk.bf16.gmra.mrb[12].mxu0 %vm886_vm3, %v5403_v35  ;;  %v1455_v51 = vrot.slane %v6488_v42, 5  ;;  %v8753_v35 = vcombine.low %v7446_v4, %v7451_v22  ;;  %v3665_v42 = vshll.u32 %v7322_v48, 16  ;;  %v6493_v4 = vld [vmem:[%s6685_s8 + $0x50] sm:$0x1]  ;;  %v6495_v22 = vld [vmem:[%s6685_s8 + $0x5c] sm:$0x1] }
  0xce   : > { %5894 = vmatprep.mubr.msk.bf16.mxu1 %vm886_vm3, %v5252_v63  ;;  %v1458_v44 = vrot.slane %v6493_v4, 5  ;;  %v1465_v55 = vrot.slane %v6495_v22, 5  ;;  %v8754_v4 = vshrl.u32 %v7319_v40, 16  ;;  %v7648_v48 = vld [vmem:[%s7308_s28 + $0xb8] sm:$0xf] }
  0xcf   : > { %6046 = vmatprep.mubr.msk.bf16.mxu0 %vm886_vm3, %v8753_v35  ;;  %v1462_v35 = vrot.slane %v6491_v45, 5  ;;  %v1457_v45 = vrot.slane %v1455_v51, 4  ;;  %v7622_v60 = vsel %vm6983_vm7, %v5242_v15, %v1455_v51  ;;  %v7629_v22 = vrot.slane %v3665_v42, 5  ;;  %v7651_v51 = vld [vmem:[%s7308_s28 + $0x8] sm:$0x1] }
  0xd0   : > { %v3658_v50 = vrot.slane %v8754_v4, 4  ;;  %v8757_v4 = vcombine.low %v7478_v20, %v7482_v16  ;;  %8759 = vst [vmem:[#allocation15_spill] sm:$0xff] %v7651_v51  ;;  %v1476_v20 = vrot.slane %v6995_v38, 5  ;;  %v3689_v16 = vshll.u32 %v7338_v53, 16  ;;  %v6501_v15 = vld [vmem:[%s6685_s8 + $0x74] sm:$0x1] }
  0xd1   : > { %v1464_v63 = vrot.slane %v1462_v35, 4  ;;  %v7645_v40 = vsel %vm6983_vm7, %v1457_v45, %v1458_v44  ;;  %v8760_v42 = vcombine.low %v7516_v39, %v7529_v23  ;;  %v7662_v5 = vsel %vm6983_vm7, %v5243_v30, %v1462_v35  ;;  %v6497_v44 = vld [vmem:[%s6685_s8 + $0x60] sm:$0xf]  ;;  %v6498_v39 = vld [vmem:[%s6685_s8 + $0x68] sm:$0x1] }
  0xd2   : > { %v5244_v45 = vrot.slane %v6497_v44, 9  ;;  %v8762_v38 = vshll.u32 %v7335_v10, 16  ;;  %v1471_v23 = vrot.slane %v1469_v31, 4  ;;  %v1472_v35 = vrot.slane %v6498_v39, 5  ;;  %v7689_v39 = vld [vmem:[%s7308_s28 + $0x14] sm:$0x1] }
  0xd3   : > { %v7675_v30 = vsel %vm6983_vm7, %v1464_v63, %v1465_v55  ;;  %v1478_v63 = vrot.slane %v1476_v20, 4 }
  0xd4   : > { %v3685_v26 = vrot.slane %v8762_v38, 5  ;;  %v3675_v38 = vshll.u32 %v7651_v51, 16  ;;  %v1483_v51 = vrot.slane %v7018_v43, 5 }
  0xd5   : > { %5895 = vmatmul.mubr.msk.bf16.vlgmr.msra.gmra.mrb[0].mxu1 %vm886_vm3, %v8757_v4  ;;  %6047 = vmatmul.mubr.msk.bf16.gmra.mrb[16].mxu0 %vm886_vm3, %v8758_v52  ;;  %v8761_v4 = vshrl.u32 %v7335_v10, 16  ;;  %v6499_v10 = vld [vmem:[%s8711_s3 + $0x8] sm:$0x3] }
  0xd6   : > { %5927 = vmatpush3.bf16.msra.mxu1 %v7504_v19  ;;  %5898 = vmatprep.mubr.msk.bf16.mxu1 %vm886_vm3, %v8760_v42  ;;  %v8763_v19 = vcombine.low %v7486_v17, %v7496_v0  ;;  %v3662_v42 = vor.u32 %v3661_v28, %v3658_v50  ;;  %v1479_v17 = vrot.slane %v6501_v15, 5  ;;  %v7691_v50 = vrot.slane %v3689_v16, 5 }
  0xd7   : > { %v3682_v52 = vrot.slane %v8761_v4, 4  ;;  %6393 = vmatprep.subr.msk.bf16.mxu1 %vm935_vm0, %v6499_v10  ;;  %v3672_v4 = vor.u32 %v3671_v9, %v7629_v22  ;;  %v8764_v28 = vshrl.u32 %v7338_v53, 16  ;;  %v5258_v10 = vcombine.low %v7622_v60, %v7645_v40  ;;  %v6507_v9 = vld [vmem:[%s6685_s8 + $0x90] sm:$0xf] }
  0xd8   : > { %6050 = vmatprep.mubr.msk.bf16.mxu0 %vm886_vm3, %v8763_v19  ;;  %v6500_v19 = vld [vmem:[%s6685_s8 + $0x6c] sm:$0xf]  ;;  %v7706_v15 = vsel %vm6983_vm7, %v1471_v23, %v1472_v35  ;;  %v7708_v53 = vrot.slane %v3662_v42, 4  ;;  %v3713_v16 = vshll.u32 %v7344_v6, 16  ;;  %v7713_v40 = vrot.slane %v3675_v38, 5 }
  0xd9   : > { %v5245_v55 = vrot.slane %v6500_v19, 9  ;;  %v3695_v25 = vrot.slane %v8764_v28, 4  ;;  %v3686_v44 = vor.u32 %v3685_v26, %v3682_v52  ;;  %v7702_v19 = vsel %vm6983_vm7, %v5244_v45, %v1469_v31  ;;  %v6502_v38 = vld [vmem:[%s6685_s8 + $0x78] sm:$0xf] }
  0xda   : > { %v7711_v60 = vrot.slane %v3672_v4, 4  ;;  %v3699_v31 = vshll.u32 %v7689_v39, 16  ;;  %v8765_v26 = vcombine.low %v7551_v18, %v7559_v27  ;;  %v8766_v45 = vcombine.low %v7522_v8, %v7525_v21 }
  0xdb   : > { %v7717_v43 = vsel %vm6983_vm7, %v5245_v55, %v1476_v20  ;;  %v7730_v52 = vsel %vm6983_vm7, %v1478_v63, %v1479_v17  ;;  %v3696_v20 = vor.u32 %v3695_v25, %v7691_v50  ;;  %v8767_v23 = vshrl.u32 %v7341_v61, 16  ;;  %v6503_v63 = vld [vmem:[%s6685_s8 + $0x80] sm:$0x1] }
  0xdc   : > { %v8768_v42 = vshll.u32 %v7341_v61, 16  ;;  %v8769_v27 = vcombine.low %v7563_v29, %v7581_v57  ;;  %v8770_v18 = vcombine.low %v7534_v54, %v7539_v2  ;;  %v3687_v17 = vrot.slane %v3686_v44, 4  ;;  %v7825_v61 = vld [vmem:[%s7308_s28 + $0x38] sm:$0x1] }
  0xdd   : > { %5899 = vmatmul.mubr.msk.bf16.gmra.mrb[4].mxu1 %vm886_vm3, %v8765_v26  ;;  %6051 = vmatmul.mubr.msk.bf16.gmra.mrb[20].mxu0 %vm886_vm3, %v8766_v45  ;;  %v3706_v35 = vrot.slane %v8767_v23, 4  ;;  %v5246_v55 = vrot.slane %v6502_v38, 9  ;;  %v1485_v25 = vrot.slane %v1483_v51, 4  ;;  %v1486_v28 = vrot.slane %v6503_v63, 5  ;;  %v7748_v26 = vld [vmem:[%s7308_s28 + $0x20] sm:$0x1] }
  0xde   : > { %v3709_v4 = vrot.slane %v8768_v42, 5  ;;  %5902 = vmatprep.mubr.msk.bf16.mxu1 %vm886_vm3, %v8769_v27  ;;  %6054 = vmatprep.mubr.msk.bf16.mxu0 %vm886_vm3, %v8770_v18  ;;  %8771 = vst [vmem:[#allocation16_spill] sm:$0xff] %v7748_v26  ;;  %v3668_v29 = vsel %vm6717_vm4, %v7708_v53, %v7629_v22  ;;  %v7756_v57 = vrot.slane %v3713_v16, 5  ;;  %v8772_v44 = vshrl.u32 %v7344_v6, 16 }
  0xdf   : > { %v3678_v23 = vsel %vm6717_vm4, %v7711_v60, %v7713_v40  ;;  %v7768_v27 = vsel %vm935_vm0, %v7359_v41, 0  ;;  %v3737_v22 = vshll.u32 %v7368_v58, 16  ;;  %v3697_v53 = vrot.slane %v3696_v20, 4 }
  0xe0   : > { %v3719_v45 = vrot.slane %v8772_v44, 4  ;;  %v3701_v16 = vrot.slane %v3699_v31, 5  ;;  %v3710_v6 = vor.u32 %v3709_v4, %v3706_v35  ;;  %v3723_v18 = vshll.u32 %v7748_v26, 16  ;;  %v6504_v31 = vld [vmem:[%s6685_s8 + $0x88] sm:$0xf] }
  0xe1   : > { %v3692_v60 = vsel %vm6717_vm4, %v3687_v17, %v7691_v50  ;;  %v7777_v40 = vsel %vm6983_vm7, %v5246_v55, %v1483_v51  ;;  %v7781_v41 = vsel %vm6983_vm7, %v1485_v25, %v1486_v28  ;;  %v3761_v38 = vshll.u32 %v7375_v13, 16  ;;  %v6505_v44 = vld [vmem:[%s6685_s8 + $0x84] sm:$0xf]  ;;  %v7792_v55 = vld [vmem:[%s7308_s28 + $0x2c] sm:$0x1] }
  0xe2   : > { %v3720_v20 = vor.u32 %v3719_v45, %v7756_v57  ;;  %v1490_v35 = vrot.slane %v6504_v31, 5  ;;  %v8773_v4 = vshrl.u32 %v7365_v49, 16  ;;  %v8774_v50 = vshll.u32 %v7365_v49, 16 }
  0xe3   : > { %v5247_v51 = vrot.slane %v6505_v44, 9  ;;  %v7794_v42 = vrot.slane %v3737_v22, 5  ;;  %v8775_v25 = vshrl.u32 %v7368_v58, 16  ;;  %v1497_v45 = vrot.slane %v7077_v11, 5 }
  0xe4   : > { %v3730_v63 = vrot.slane %v8773_v4, 4  ;;  %v3733_v17 = vrot.slane %v8774_v50, 5  ;;  %v8776_v31 = vcombine.low %v7607_v37, %v7611_v47  ;;  %v8777_v49 = vcombine.low %v7568_v14, %v7571_v3  ;;  %v6506_v50 = vld [vmem:[%s6685_s8 + $0x8c] sm:$0x1] }
  0xe5   : > { %v3743_v28 = vrot.slane %v8775_v25, 4  ;;  %v3702_v22 = vsel %vm6717_vm4, %v3697_v53, %v3701_v16  ;;  %v3711_v4 = vrot.slane %v3710_v6, 4  ;;  %v3725_v58 = vrot.slane %v3723_v18, 5 }
  0xe6   : > { %5903 = vmatmul.mubr.msk.bf16.gmra.mrb[8].mxu1 %vm886_vm3, %v8776_v31  ;;  %6055 = vmatmul.mubr.msk.bf16.gmra.mrb[24].mxu0 %vm886_vm3, %v8777_v49  ;;  %v1493_v44 = vrot.slane %v6506_v50, 5  ;;  %v8778_v11 = vcombine.low %v7595_v56, %v7603_v34  ;;  %v8779_v37 = vshrl.u32 %v7372_v46, 16  ;;  %v8780_v25 = vshll.u32 %v7372_v46, 16 }
  0xe7   : > { %5906 = vmatprep.mubr.msk.bf16.mxu1 %vm886_vm3, %v5258_v10  ;;  %v7819_v49 = vrot.slane %v3761_v38, 5  ;;  %v8781_v53 = vshrl.u32 %v7375_v13, 16  ;;  %v3721_v6 = vrot.slane %v3720_v20, 4  ;;  %v1492_v18 = vrot.slane %v1490_v35, 4 }
  0xe8   : > { %6058 = vmatprep.mubr.msk.bf16.mxu0 %vm886_vm3, %v8778_v11  ;;  %v3754_v47 = vrot.slane %v8779_v37, 4  ;;  %v3757_v31 = vrot.slane %v8780_v25, 5  ;;  %v3734_v50 = vor.u32 %v3733_v17, %v3730_v63  ;;  %v3747_v10 = vshll.u32 %v7792_v55, 16 }
  0xe9   : > { %v3767_v16 = vrot.slane %v8781_v53, 4  ;;  %v3744_v11 = vor.u32 %v3743_v28, %v7794_v42  ;;  %v5248_v26 = vrot.slane %v6507_v9, 9  ;;  %v1499_v37 = vrot.slane %v1497_v45, 4 }
  0xea   : > { %v1500_v46 = vrot.slane %v7085_v62, 5  ;;  %v5428_v25 = vcombine.low %v3668_v29, %v3678_v23  ;;  %v5429_v38 = vcombine.low %v3692_v60, %v3702_v22  ;;  %v5262_v13 = vcombine.low %v7777_v40, %v7781_v41 }
  0xeb   : > { %v3785_v20 = vshll.u32 %v7403_v7, 16  ;;  %v7835_v63 = vsel %vm6983_vm7, %v5247_v51, %v1490_v35  ;;  %v3758_v17 = vor.u32 %v3757_v31, %v3754_v47  ;;  %v3768_v28 = vor.u32 %v3767_v16, %v7819_v49 }
  0xec   : > { %v3771_v9 = vshll.u32 %v7825_v61, 16  ;;  %v3716_v62 = vsel %vm6717_vm4, %v3711_v4, %v7756_v57  ;;  %v3726_v29 = vsel %vm6717_vm4, %v3721_v6, %v3725_v58  ;;  %v7846_v23 = vsel %vm6983_vm7, %v1492_v18, %v1493_v44  ;;  %v7865_v4 = vld [vmem:[%s7308_s28 + $0x44] sm:$0x1]  ;;  %v6508_v18 = vld [vmem:[%s6685_s8 + $0xa0] sm:$0xf] }
  0xed   : > { %v3735_v60 = vrot.slane %v3734_v50, 4  ;;  %v3745_v40 = vrot.slane %v3744_v11, 4  ;;  %v3749_v41 = vrot.slane %v3747_v10, 5  ;;  %v7850_v35 = vsel %vm6983_vm7, %v5248_v26, %v1497_v45 }
  0xee   : > { %v7854_v51 = vsel %vm6983_vm7, %v1499_v37, %v1500_v46  ;;  %v8782_v57 = vcombine.low %v7662_v5, %v7675_v30  ;;  %v8783_v22 = vcombine.low %v7627_v59, %v7648_v48  ;;  %v8784_v58 = vshrl.u32 %v7400_v24, 16  ;;  %v6509_v37 = vld [vmem:[%s6685_s8 + $0x9c] sm:$0xf] }
  0xef   : > { %v8785_v45 = vshll.u32 %v7400_v24, 16  ;;  %v7871_v47 = vrot.slane %v3785_v20, 5  ;;  %v8786_v5 = vshrl.u32 %v7403_v7, 16  ;;  %v8787_v31 = vcombine.low %v7702_v19, %v7706_v15  ;;  %v6510_v20 = vld [vmem:[%s6685_s8 + $0xa4] sm:$0x1] }
  0xf0   : > { %5907 = vmatmul.mubr.msk.bf16.gmra.mrb[12].mxu1 %vm886_vm3, %v8782_v57  ;;  %6059 = vmatmul.mubr.msk.bf16.gmra.mrb[28].mxu0 %vm886_vm3, %v8783_v22  ;;  %v3778_v26 = vrot.slane %v8784_v58, 4  ;;  %v3759_v53 = vrot.slane %v3758_v17, 4  ;;  %v3769_v16 = vrot.slane %v3768_v28, 4  ;;  %v3773_v6 = vrot.slane %v3771_v9, 5  ;;  %v8789_v57 = vld [vmem:[#allocation8_spill] sm:$0xff] }
  0xf1   : > { %v3781_v44 = vrot.slane %v8785_v45, 5  ;;  %v3791_v30 = vrot.slane %v8786_v5, 4  ;;  %5910 = vmatprep.mubr.msk.bf16.mxu1 %vm886_vm3, %v8787_v31  ;;  %6064 = vmatprep.mubr.msk.bf16.mxu0 %vm886_vm3, %v5428_v25  ;;  %v1504_v24 = vrot.slane %v6508_v18, 5  ;;  %v5430_v50 = vcombine.low %v3716_v62, %v3726_v29 }
  0xf2   : > { %v5263_v10 = vcombine.low %v7835_v63, %v7846_v23  ;;  %v3740_v7 = vsel %vm6717_vm4, %v3735_v60, %v7794_v42  ;;  %v3809_v19 = vshll.u32 %v7417_v36, 16  ;;  %v3750_v15 = vsel %vm6717_vm4, %v3745_v40, %v3749_v41  ;;  %v8788_v40 = vld [vmem:[#allocation3_spill] sm:$0xff] }
  0xf3   : > { %v5264_v11 = vcombine.low %v7850_v35, %v7854_v51  ;;  %v5249_v46 = vrot.slane %v6509_v37, 9  ;;  %v3795_v25 = vshll.u32 %v7865_v4, 16  ;;  %v1507_v17 = vrot.slane %v6510_v20, 5 }
  0xf4   : > { %v3782_v28 = vor.u32 %v3781_v44, %v3778_v26  ;;  %v3792_v9 = vor.u32 %v3791_v30, %v7871_v47  ;;  %v1511_v42 = vrot.slane %v7128_v1, 5  ;;  %v3764_v62 = vsel %vm6717_vm4, %v3759_v53, %v7819_v49  ;;  %v7915_v53 = vld [vmem:[%s7308_s28 + $0x50] sm:$0x1] }
  0xf5   : > { %v3774_v29 = vsel %vm6717_vm4, %v3769_v16, %v3773_v6  ;;  %v1506_v60 = vrot.slane %v1504_v24, 4  ;;  %v5250_v41 = vrot.slane %v8788_v40, 9  ;;  %v8790_v22 = vshrl.u32 %v8789_v57, 16  ;;  %v8793_v16 = vld [vmem:[#allocation10_spill] sm:$0xff] }
  0xf6   : > { %v8791_v45 = vshll.u32 %v8789_v57, 16  ;;  %v7906_v44 = vrot.slane %v3809_v19, 5  ;;  %v8792_v1 = vshrl.u32 %v7417_v36, 16  ;;  %v5431_v30 = vcombine.low %v3740_v7, %v3750_v15  ;;  %v8795_v7 = vld [vmem:[#allocation4_spill] sm:$0xff] }
  0xf7   : > { %v3802_v58 = vrot.slane %v8790_v22, 4  ;;  %v7912_v49 = vsel %vm6983_vm7, %v5249_v46, %v1504_v24  ;;  %v3797_v31 = vrot.slane %v3795_v25, 5  ;;  %v3833_v6 = vshll.u32 %v8793_v16, 16 }
  0xf8   : > { %v3805_v26 = vrot.slane %v8791_v45, 5  ;;  %v3815_v5 = vrot.slane %v8792_v1, 4  ;;  %v8794_v18 = vcombine.low %v7717_v43, %v7730_v52  ;;  %6065 = vmatmul.mubr.msk.bf16.vlgmr.msra.gmra.mrb[0].mxu0 %vm886_vm3, %v5429_v38  ;;  %v3783_v19 = vrot.slane %v3782_v28, 4  ;;  %v8796_v52 = vld [vmem:[#allocation12_spill] sm:$0xff]  ;;  %v8803_v1 = vld [vmem:[#allocation11_spill] sm:$0xff] }
  0xf9   : > { %v3793_v36 = vrot.slane %v3792_v9, 4  ;;  %v1513_v37 = vrot.slane %v1511_v42, 4  ;;  %v1514_v15 = vrot.slane %v8795_v7, 5  ;;  %6097 = vmatpush3.bf16.msra.mxu0 %v7768_v27  ;;  %v5432_v24 = vcombine.low %v3764_v62, %v3774_v29  ;;  %6068 = vmatprep.mubr.msk.bf16.mxu0 %vm886_vm3, %v5430_v50  ;;  %v8798_v9 = vld [vmem:[#allocation9_spill] sm:$0xff] }
  0xfa   : > { %5911 = vmatmul.mubr.msk.bf16.gmra.mrb[16].mxu1 %vm886_vm3, %v8794_v18  ;;  %v7928_v46 = vsel %vm6983_vm7, %v1506_v60, %v1507_v17  ;;  %v7932_v43 = vsel %vm6983_vm7, %v5250_v41, %v1511_v42  ;;  %v3857_v38 = vshll.u32 %v8796_v52, 16  ;;  %v3806_v25 = vor.u32 %v3805_v26, %v3802_v58  ;;  %v8802_v58 = vld [vmem:[#allocation5_spill] sm:$0xff] }
  0xfb   : > { %5914 = vmatprep.mubr.msk.bf16.mxu1 %vm886_vm3, %v5262_v13  ;;  %v3816_v20 = vor.u32 %v3815_v5, %v7906_v44  ;;  %v3819_v27 = vshll.u32 %v7915_v53, 16  ;;  %v8797_v13 = vld [vmem:[#allocation6_spill] sm:$0xff]  ;;  %v8799_v62 = vshrl.u32 %v8798_v9, 16  ;;  %v8800_v29 = vshll.u32 %v8798_v9, 16  ;;  %v7958_v26 = vld [vmem:[%s7308_s28 + $0x5c] sm:$0x1] }
  0xfc   : > { %v1518_v28 = vrot.slane %v8797_v13, 5  ;;  %v7943_v42 = vrot.slane %v3833_v6, 5  ;;  %v8801_v40 = vshrl.u32 %v8793_v16, 16  ;;  %v3788_v50 = vsel %vm6717_vm4, %v3783_v19, %v7871_v47  ;;  %v7970_v9 = vld [vmem:[%s7308_s28 + $0x68] sm:$0x1] }
  0xfd   : > { %v3826_v17 = vrot.slane %v8799_v62, 4  ;;  %v3829_v60 = vrot.slane %v8800_v29, 5  ;;  %v3798_v57 = vsel %vm6717_vm4, %v3793_v36, %v3797_v31  ;;  %v7954_v22 = vsel %vm6983_vm7, %v1513_v37, %v1514_v15  ;;  %v8807_v37 = vld [vmem:[#allocation7_spill] sm:$0xff] }
  0xfe   : > { %v3839_v41 = vrot.slane %v8801_v40, 4  ;;  %v5251_v45 = vrot.slane %v8802_v58, 9  ;;  %v8804_v5 = vshrl.u32 %v8803_v1, 16  ;;  %v8805_v16 = vshll.u32 %v8803_v1, 16 }
  0xff   : > { %v7964_v7 = vrot.slane %v3857_v38, 5  ;;  %v8806_v47 = vshrl.u32 %v8796_v52, 16  ;;  %v3807_v31 = vrot.slane %v3806_v25, 4  ;;  %v3817_v36 = vrot.slane %v3816_v20, 4 }
 0x100   : > { %v3850_v6 = vrot.slane %v8804_v5, 4  ;;  %v3853_v18 = vrot.slane %v8805_v16, 5  ;;  %v3821_v13 = vrot.slane %v3819_v27, 5  ;;  %v1521_v15 = vrot.slane %v8807_v37, 5  ;;  %6069 = vmatmul.mubr.msk.bf16.gmra.mrb[4].mxu0 %vm886_vm3, %v5431_v30  ;;  %v8808_v27 = vld [vmem:[#allocation13_spill] sm:$0xff] }
 0x101   : > { %v3863_v19 = vrot.slane %v8806_v47, 4  ;;  %v1520_v62 = vrot.slane %v1518_v28, 4  ;;  %v3830_v29 = vor.u32 %v3829_v60, %v3826_v17  ;;  %v3840_v40 = vor.u32 %v3839_v41, %v7943_v42  ;;  %6072 = vmatprep.mubr.msk.bf16.mxu0 %vm886_vm3, %v5432_v24  ;;  %v8015_v16 = vld [vmem:[%s7308_s28 + $0x74] sm:$0x1] }
 0x102   : > { %v3843_v58 = vshll.u32 %v7958_v26, 16  ;;  %v3971_v1 = vshll.u32 %v7568_v14, 16  ;;  %5915 = vmatmul.mubr.msk.bf16.gmra.mrb[20].mxu1 %vm886_vm3, %v5263_v10  ;;  %v5265_v52 = vcombine.low %v7912_v49, %v7928_v46  ;;  %v5266_v38 = vcombine.low %v7932_v43, %v7954_v22 }
 0x103   : > { %v3881_v25 = vshll.u32 %v7472_v33, 16  ;;  %5918 = vmatprep.mubr.msk.bf16.mxu1 %vm886_vm3, %v5264_v11  ;;  %v5433_v63 = vcombine.low %v3788_v50, %v3798_v57  ;;  %v3854_v23 = vor.u32 %v3853_v18, %v3850_v6  ;;  %v3864_v10 = vor.u32 %v3863_v19, %v7964_v7  ;;  %v8812_v18 = vld [vmem:[#allocation14_spill] sm:$0xff] }
 0x104   : > { %v3867_v30 = vshll.u32 %v7970_v9, 16  ;;  %v3812_v49 = vsel %vm6717_vm4, %v3807_v31, %v7906_v44  ;;  %v3822_v46 = vsel %vm6717_vm4, %v3817_v36, %v3821_v13  ;;  %v7999_v35 = vsel %vm6983_vm7, %v5251_v45, %v1518_v28 }
 0x105   : > { %v3905_v51 = vshll.u32 %v7496_v0, 16  ;;  %v8004_v11 = vsel %vm6983_vm7, %v1520_v62, %v1521_v15  ;;  %v3831_v24 = vrot.slane %v3830_v29, 4  ;;  %v3841_v43 = vrot.slane %v3840_v40, 4  ;;  %v8032_v40 = vld [vmem:[%s7308_s28 + $0x80] sm:$0x1] }
 0x106   : > { %v3845_v20 = vrot.slane %v3843_v58, 5  ;;  %v8809_v17 = vshrl.u32 %v8808_v27, 16  ;;  %v8810_v60 = vshll.u32 %v8808_v27, 16  ;;  %v8010_v50 = vrot.slane %v3881_v25, 5  ;;  %v6511_v25 = vld [vmem:[%s6691_s11] sm:$0xf] }
 0x107   : > { %v8811_v28 = vshrl.u32 %v7472_v33, 16  ;;  %v5434_v22 = vcombine.low %v3812_v49, %v3822_v46  ;;  %v3855_v45 = vrot.slane %v3854_v23, 4  ;;  %v3865_v5 = vrot.slane %v3864_v10, 4 }
 0x108   : > { %v3874_v44 = vrot.slane %v8809_v17, 4  ;;  %v3877_v41 = vrot.slane %v8810_v60, 5  ;;  %v3869_v6 = vrot.slane %v3867_v30, 5  ;;  %v8813_v47 = vshrl.u32 %v8812_v18, 16  ;;  %6073 = vmatmul.mubr.msk.bf16.gmra.mrb[8].mxu0 %vm886_vm3, %v5433_v63 }
 0x109   : > { %v3887_v57 = vrot.slane %v8811_v28, 4  ;;  %v8814_v31 = vshll.u32 %v8812_v18, 16  ;;  %v8021_v13 = vrot.slane %v3905_v51, 5  ;;  %v8815_v37 = vshrl.u32 %v7496_v0, 16  ;;  %v6512_v0 = vld [vmem:[%s6691_s11 + $0x4] sm:$0xf]  ;;  %6076 = vmatprep.mubr.msk.bf16.mxu0 %vm886_vm3, %v5434_v22 }
 0x10a   : > { %v3898_v19 = vrot.slane %v8813_v47, 4  ;;  %v3981_v15 = vshrl.u32 %v7571_v3, 16  ;;  %v3836_v62 = vsel %vm6717_vm4, %v3831_v24, %v7943_v42  ;;  %v3846_v29 = vsel %vm6717_vm4, %v3841_v43, %v3845_v20  ;;  %5919 = vmatmul.mubr.msk.bf16.gmra.mrb[24].mxu1 %vm886_vm3, %v5265_v52  ;;  %v8062_v22 = vld [vmem:[%s7308_s28 + $0x8c] sm:$0x1] }
 0x10b   : > { %v3901_v36 = vrot.slane %v8814_v31, 5  ;;  %v3911_v33 = vrot.slane %v8815_v37, 4  ;;  %v3929_v58 = vshll.u32 %v7525_v21, 16  ;;  %v5284_v23 = vcombine.low %v6511_v25, %v6512_v0  ;;  %5922 = vmatprep.mubr.msk.bf16.mxu1 %vm886_vm3, %v5266_v38 }
 0x10c   : > { %v3878_v10 = vor.u32 %v3877_v41, %v3874_v44  ;;  %v3888_v30 = vor.u32 %v3887_v57, %v8010_v50  ;;  %v3891_v49 = vshll.u32 %v8015_v16, 16  ;;  %v5267_v42 = vcombine.low %v7999_v35, %v8004_v11 }
 0x10d   : > { %v3860_v52 = vsel %vm6717_vm4, %v3855_v45, %v7964_v7  ;;  %v3870_v63 = vsel %vm6717_vm4, %v3865_v5, %v3869_v6  ;;  %v3953_v46 = vshll.u32 %v7539_v2, 16  ;;  %v5435_v51 = vcombine.low %v3836_v62, %v3846_v29 }
 0x10e   : > { %v3902_v24 = vor.u32 %v3901_v36, %v3898_v19  ;;  %v3912_v43 = vor.u32 %v3911_v33, %v8021_v13  ;;  %v3915_v38 = vshll.u32 %v8032_v40, 16  ;;  %v8816_v20 = vshrl.u32 %v7522_v8, 16  ;;  %v8074_v33 = vld [vmem:[%s7308_s28 + $0x98] sm:$0x1] }
 0x10f   : > { %v8817_v35 = vshll.u32 %v7522_v8, 16  ;;  %v8057_v17 = vrot.slane %v3929_v58, 5  ;;  %v8818_v7 = vshrl.u32 %v7525_v21, 16  ;;  %v5436_v60 = vcombine.low %v3860_v52, %v3870_v63 }
 0x110   : > { %v3922_v27 = vrot.slane %v8816_v20, 4  ;;  %v3879_v41 = vrot.slane %v3878_v10, 4  ;;  %v3889_v28 = vrot.slane %v3888_v30, 4  ;;  %v3893_v57 = vrot.slane %v3891_v49, 5  ;;  %6077 = vmatmul.mubr.msk.bf16.gmra.mrb[12].mxu0 %vm886_vm3, %v5435_v51  ;;  %v6513_v10 = vld [vmem:[%s6691_s11 + $0xc] sm:$0xf] }
 0x111   : > { %v3925_v11 = vrot.slane %v8817_v35, 5  ;;  %v3935_v44 = vrot.slane %v8818_v7, 4  ;;  %v8819_v45 = vshrl.u32 %v7534_v54, 16  ;;  %v8820_v6 = vshll.u32 %v7534_v54, 16  ;;  %6080 = vmatprep.mubr.msk.bf16.mxu0 %vm886_vm3, %v5436_v60  ;;  %v6514_v30 = vld [vmem:[%s6691_s11 + $0x10] sm:$0xf] }
 0x112   : > { %v8068_v8 = vrot.slane %v3953_v46, 5  ;;  %v8821_v47 = vshrl.u32 %v7539_v2, 16  ;;  %v3992_v21 = vshrl.u32 %v7595_v56, 16  ;;  %v3903_v31 = vrot.slane %v3902_v24, 4  ;;  %5923 = vmatmul.mubr.msk.bf16.gmra.mrb[28].mxu1 %vm886_vm3, %v5267_v42  ;;  %v6515_v46 = vld [vmem:[%s6691_s11 + $0x18] sm:$0xf] }
 0x113   : > { %v3946_v5 = vrot.slane %v8819_v45, 4  ;;  %v3949_v18 = vrot.slane %v8820_v6, 5  ;;  %v3913_v36 = vrot.slane %v3912_v43, 4  ;;  %v3917_v37 = vrot.slane %v3915_v38, 5  ;;  %5928 = vmatprep.mubr.msk.bf16.mxu1 %vm886_vm3, %v5284_v23 }
 0x114   : > { %v3959_v19 = vrot.slane %v8821_v47, 4  ;;  %v3995_v62 = vshll.u32 %v7595_v56, 16  ;;  %v3926_v29 = vor.u32 %v3925_v11, %v3922_v27  ;;  %v3936_v54 = vor.u32 %v3935_v44, %v8057_v17  ;;  %v8103_v11 = vld [vmem:[%s7308_s28 + $0xa4] sm:$0x1] }
 0x115   : > { %v3939_v58 = vshll.u32 %v8062_v22, 16  ;;  %v4005_v2 = vshrl.u32 %v7603_v34, 16  ;;  %v3884_v25 = vsel %vm6717_vm4, %v3879_v41, %v8010_v50  ;;  %v3894_v56 = vsel %vm6717_vm4, %v3889_v28, %v3893_v57  ;;  %v6516_v50 = vld [vmem:[%s6691_s11 + $0x1c] sm:$0xf] }
 0x116   : > { %v3977_v0 = vshll.u32 %v7571_v3, 16  ;;  %v5285_v49 = vcombine.low %v6513_v10, %v6514_v30  ;;  %v3950_v42 = vor.u32 %v3949_v18, %v3946_v5  ;;  %v3960_v52 = vor.u32 %v3959_v19, %v8068_v8 }
 0x117   : > { %v3963_v63 = vshll.u32 %v8074_v33, 16  ;;  %v5286_v51 = vcombine.low %v6515_v46, %v6516_v50  ;;  %v3908_v24 = vsel %vm6717_vm4, %v3903_v31, %v8021_v13  ;;  %v3918_v23 = vsel %vm6717_vm4, %v3913_v36, %v3917_v37  ;;  %v8121_v31 = vld [vmem:[%s7308_s28 + $0xb0] sm:$0x1]  ;;  %v8823_v37 = vld [vmem:[#allocation2_spill] sm:$0xff] }
 0x118   : > { %v4001_v43 = vshll.u32 %v7603_v34, 16  ;;  %v5437_v38 = vcombine.low %v3884_v25, %v3894_v56  ;;  %v3927_v20 = vrot.slane %v3926_v29, 4  ;;  %v3937_v27 = vrot.slane %v3936_v54, 4  ;;  %v6517_v25 = vld [vmem:[%s6691_s11 + $0x24] sm:$0xf] }
 0x119   : > { %v3941_v35 = vrot.slane %v3939_v58, 5  ;;  %v8822_v7 = vshrl.u32 %v7568_v14, 16  ;;  %v3973_v60 = vrot.slane %v3971_v1, 5  ;;  %v8109_v41 = vrot.slane %v3977_v0, 5  ;;  %v6518_v56 = vld [vmem:[%s6691_s11 + $0x28] sm:$0xf] }
 0x11a   : > { %v3983_v13 = vrot.slane %v3981_v15, 4  ;;  %v5438_v28 = vcombine.low %v3908_v24, %v3918_v23  ;;  %v3951_v34 = vrot.slane %v3950_v42, 4  ;;  %v3961_v57 = vrot.slane %v3960_v52, 4  ;;  %5929 = vmatmul.mubr.msk.bf16.vlgmr.msra.gmra.mrb[0].mxu1 %vm886_vm3, %v5285_v49  ;;  %6081 = vmatmul.mubr.msk.bf16.gmra.mrb[16].mxu0 %vm886_vm3, %v5437_v38  ;;  %v6519_v52 = vld [vmem:[%s6691_s11 + $0x30] sm:$0xf] }
 0x11b   : > { %v3970_v44 = vrot.slane %v8822_v7, 4  ;;  %v3965_v45 = vrot.slane %v3963_v63, 5  ;;  %v3994_v5 = vrot.slane %v3992_v21, 4  ;;  %v3997_v6 = vrot.slane %v3995_v62, 5  ;;  %6131 = vmatpush3.bf16.msra.mxu1 %v8823_v37  ;;  %5932 = vmatprep.mubr.msk.bf16.mxu1 %vm886_vm3, %v5286_v51  ;;  %v6520_v63 = vld [vmem:[%s6691_s11 + $0x34] sm:$0xf] }
 0x11c   : > { %v8113_v18 = vrot.slane %v4001_v43, 5  ;;  %v4007_v47 = vrot.slane %v4005_v2, 4  ;;  %v4016_v19 = vshrl.u32 %v7627_v59, 16  ;;  %v3932_v14 = vsel %vm6717_vm4, %v3927_v20, %v8057_v17  ;;  %6084 = vmatprep.mubr.msk.bf16.mxu0 %vm886_vm3, %v5438_v28  ;;  %v8148_v20 = vld [vmem:[%s7308_s28 + $0xbc] sm:$0x1] }
 0x11d   : > { %v3987_v1 = vshll.u32 %v8103_v11, 16  ;;  %v4019_v3 = vshll.u32 %v7627_v59, 16  ;;  %v3942_v15 = vsel %vm6717_vm4, %v3937_v27, %v3941_v35  ;;  %v3974_v21 = vor.u32 %v3973_v60, %v3970_v44  ;;  %v6521_v44 = vld [vmem:[%s7308_s28 + $0x4] sm:$0xf] }
 0x11e   : > { %v3984_v36 = vor.u32 %v3983_v13, %v8109_v41  ;;  %v4029_v17 = vshrl.u32 %v7648_v48, 16  ;;  %v3956_v59 = vsel %vm6717_vm4, %v3951_v34, %v8068_v8  ;;  %v4025_v62 = vshll.u32 %v7648_v48, 16  ;;  %v8159_v13 = vld [vmem:[%s6691_s11 + $0x6c] sm:$0xf] }
 0x11f   : > { %v3966_v29 = vsel %vm6717_vm4, %v3961_v57, %v3965_v45  ;;  %v3998_v54 = vor.u32 %v3997_v6, %v3994_v5  ;;  %v4008_v58 = vor.u32 %v4007_v47, %v8113_v18  ;;  %v4011_v2 = vshll.u32 %v8121_v31, 16  ;;  %v8168_v45 = vld [vmem:[%s6691_s11 + $0x70] sm:$0xf] }
 0x120   : > { %v5287_v0 = vcombine.low %v6517_v25, %v6518_v56  ;;  %v5439_v10 = vcombine.low %v3932_v14, %v3942_v15  ;;  %v3989_v8 = vrot.slane %v3987_v1, 5  ;;  %v3975_v30 = vrot.slane %v3974_v21, 4  ;;  %v6525_v14 = vld [vmem:[%s6691_s11 + $0x40] sm:$0xf]  ;;  %v6526_v15 = vld [vmem:[%s6691_s11 + $0x48] sm:$0xf] }
 0x121   : > { %v3985_v49 = vrot.slane %v3984_v36, 4  ;;  %v4018_v48 = vrot.slane %v4016_v19, 4  ;;  %v4021_v42 = vrot.slane %v4019_v3, 5  ;;  %v5288_v46 = vcombine.low %v6519_v52, %v6520_v63  ;;  %v6524_v19 = vld [vmem:[%s6691_s11 + $0x3c] sm:$0xf] }
 0x122   : > { %v5440_v50 = vcombine.low %v3956_v59, %v3966_v29  ;;  %v8145_v51 = vrot.slane %v4025_v62, 5  ;;  %v4031_v24 = vrot.slane %v4029_v17, 4  ;;  %v3999_v23 = vrot.slane %v3998_v54, 4  ;;  %5933 = vmatmul.mubr.msk.bf16.gmra.mrb[4].mxu1 %vm886_vm3, %v5287_v0  ;;  %6085 = vmatmul.mubr.msk.bf16.gmra.mrb[20].mxu0 %vm886_vm3, %v5439_v10  ;;  %v6527_v21 = vld [vmem:[%s6691_s11 + $0x4c] sm:$0xf] }
 0x123   : > { %v4009_v43 = vrot.slane %v4008_v58, 4  ;;  %v4013_v38 = vrot.slane %v4011_v2, 5  ;;  %v3980_v27 = vsel %vm6717_vm4, %v3975_v30, %v8109_v41  ;;  %v3990_v35 = vsel %vm6717_vm4, %v3985_v49, %v3989_v8  ;;  %5936 = vmatprep.mubr.msk.bf16.mxu1 %vm886_vm3, %v5288_v46  ;;  %v6528_v17 = vld [vmem:[%s7308_s28 + $0x10] sm:$0xf]  ;;  %v6529_v62 = vld [vmem:[%s7308_s28] sm:$0xf] }
 0x124   : > { %v4022_v7 = vor.u32 %v4021_v42, %v4018_v48  ;;  %v4349_v60 = vrot.slane %v6521_v44, 5  ;;  %v2404_v28 = vshrl.u32 %v8159_v13, 16  ;;  %6088 = vmatprep.mubr.msk.bf16.mxu0 %vm886_vm3, %v5440_v50  ;;  %v4032_v41 = vor.u32 %v4031_v24, %v8145_v51  ;;  %v8824_v58 = vld [vmem:[#allocation15_spill] sm:$0xff]  ;;  %v6530_v0 = vld [vmem:[%s7308_s28 + $0x1c] sm:$0xf] }
 0x125   : > { %v4035_v34 = vshll.u32 %v8148_v20, 16  ;;  %v2407_v57 = vshll.u32 %v8159_v13, 16  ;;  %v2413_v5 = vshll.u32 %v8168_v45, 16  ;;  %v4004_v6 = vsel %vm6717_vm4, %v3999_v23, %v8113_v18  ;;  %v6531_v42 = vld [vmem:[%s7308_s28 + $0xc] sm:$0xf] }
 0x126   : > { %v4014_v47 = vsel %vm6717_vm4, %v4009_v43, %v4013_v38  ;;  %v5289_v1 = vcombine.low %v6524_v19, %v6525_v14  ;;  %v5441_v3 = vcombine.low %v3980_v27, %v3990_v35  ;;  %v5290_v36 = vcombine.low %v6526_v15, %v6527_v21  ;;  %v6532_v43 = vld [vmem:[%s7308_s28 + $0x18] sm:$0xf]  ;;  %v8236_v21 = vld [vmem:[%s6691_s11 + $0x7c] sm:$0xf] }
 0x127   : > { %v4356_v37 = vrot.slane %v6528_v17, 5  ;;  %v4023_v59 = vrot.slane %v4022_v7, 4  ;;  %v5460_v29 = vrot.slane %v6529_v62, 9  ;;  %v4351_v54 = vrot.slane %v4349_v60, 4  ;;  %v6533_v7 = vld [vmem:[%s7308_s28 + $0x28] sm:$0xf] }
 0x128   : > { %v4352_v18 = vrot.slane %v8824_v58, 5  ;;  %v5442_v2 = vcombine.low %v4004_v6, %v4014_v47  ;;  %v4033_v25 = vrot.slane %v4032_v41, 4  ;;  %v4037_v56 = vrot.slane %v4035_v34, 5  ;;  %v6535_v34 = vld [vmem:[%s6691_s11 + $0x54] sm:$0xf] }
 0x129   : > { %v4363_v10 = vrot.slane %v6530_v0, 5  ;;  %v8184_v8 = vrot.slane %v2404_v28, 4  ;;  %v8186_v30 = vrot.slane %v2407_v57, 5  ;;  %v2417_v49 = vshrl.u32 %v8168_v45, 16  ;;  %v8212_v28 = vld [vmem:[%s6691_s11 + $0x74] sm:$0x1] }
 0x12a   : > { %v8189_v48 = vrot.slane %v2413_v5, 5  ;;  %v5461_v52 = vrot.slane %v6531_v42, 9  ;;  %v4358_v63 = vrot.slane %v4356_v37, 4  ;;  %v4359_v46 = vrot.slane %v7689_v39, 5  ;;  %5937 = vmatmul.mubr.msk.bf16.gmra.mrb[8].mxu1 %vm886_vm3, %v5289_v1  ;;  %6089 = vmatmul.mubr.msk.bf16.gmra.mrb[24].mxu0 %vm886_vm3, %v5441_v3  ;;  %v6536_v57 = vld [vmem:[%s6691_s11 + $0x58] sm:$0xf] }
 0x12b   : > { %v4028_v50 = vsel %vm6717_vm4, %v4023_v59, %v8145_v51  ;;  %v4350_v24 = vsel %vm6983_vm7, %v5460_v29, %v4349_v60  ;;  %v4353_v23 = vsel %vm6983_vm7, %v4351_v54, %v4352_v18  ;;  %v5462_v39 = vrot.slane %v6532_v43, 9  ;;  %5940 = vmatprep.mubr.msk.bf16.mxu1 %vm886_vm3, %v5290_v36  ;;  %6092 = vmatprep.mubr.msk.bf16.mxu0 %vm886_vm3, %v5442_v2  ;;  %v8825_v51 = vld [vmem:[#allocation16_spill] sm:$0xff]  ;;  %v6537_v6 = vld [vmem:[%s6691_s11 + $0x60] sm:$0xf]  ;;  %v8219_v47 = vld [vmem:[%s6691_s11 + $0x64] sm:$0xf] }
 0x12c   : > { %v4038_v38 = vsel %vm6717_vm4, %v4033_v25, %v4037_v56  ;;  %v4365_v27 = vrot.slane %v4363_v10, 4  ;;  %v4366_v35 = vrot.slane %v8825_v51, 5  ;;  %v4370_v44 = vrot.slane %v6533_v7, 5  ;;  %v8233_v15 = vld [vmem:[%s6691_s11 + $0x78] sm:$0xf] }
 0x12d   : > { %v8209_v60 = vrot.slane %v2417_v49, 4  ;;  %v2423_v41 = vshll.u32 %v8212_v28, 16  ;;  %v5291_v5 = vcombine.low %v6535_v34, %v6536_v57  ;;  %v5292_v19 = vcombine.low %v6537_v6, %v8219_v47  ;;  %v6541_v62 = vld [vmem:[%s7308_s28 + $0x24] sm:$0xf]  ;;  %v8250_v58 = vld [vmem:[%s6691_s11 + $0x88] sm:$0xf] }
 0x12e   : > { %v5293_v14 = vcombine.low %v8159_v13, %v8168_v45  ;;  %v8226_v1 = vsel %vm6983_vm7, %v5461_v52, %v4356_v37  ;;  %v8230_v3 = vsel %vm6983_vm7, %v4358_v63, %v4359_v46  ;;  %v5294_v36 = vcombine.low %v8233_v15, %v8236_v21  ;;  %v8253_v18 = vld [vmem:[%s6691_s11 + $0x84] sm:$0xf]  ;;  %v8262_v63 = vld [vmem:[%s6691_s11 + $0x90] sm:$0xf]  ;;  %v8265_v46 = vld [vmem:[%s6691_s11 + $0x94] sm:$0xf] }
 0x12f   : > { %v5443_v17 = vcombine.low %v4028_v50, %v4038_v38  ;;  %v5476_v59 = vcombine.low %v4350_v24, %v4353_v23  ;;  %v8242_v37 = vsel %vm6983_vm7, %v5462_v39, %v4363_v10  ;;  %v5463_v29 = vrot.slane %v6541_v62, 9  ;;  %v6544_v10 = vld [vmem:[%s7308_s28 + $0x34] sm:$0xf]  ;;  %v6547_v24 = vld [vmem:[%s7308_s28 + $0x30] sm:$0xf] }
 0x130   : > { %v8247_v54 = vsel %vm6983_vm7, %v4365_v27, %v4366_v35  ;;  %v5295_v2 = vcombine.low %v8253_v18, %v8250_v58  ;;  %v4372_v25 = vrot.slane %v4370_v44, 4  ;;  %v4373_v56 = vrot.slane %v7792_v55, 5  ;;  %v6548_v43 = vld [vmem:[%s7308_s28 + $0x40] sm:$0xf]  ;;  %v6549_v39 = vld [vmem:[%s7308_s28 + $0x4c] sm:$0xf] }
 0x131   : > { %v5477_v0 = vcombine.low %v8226_v1, %v8230_v3  ;;  %v4377_v49 = vrot.slane %v6544_v10, 5  ;;  %v2380_v42 = vshrl.u32 %v6537_v6, 16  ;;  %v2383_v52 = vshll.u32 %v6537_v6, 16  ;;  %v6550_v7 = vld [vmem:[%s7308_s28 + $0x58] sm:$0xf] }
 0x132   : > { %v5296_v50 = vcombine.low %v8262_v63, %v8265_v46  ;;  %v5464_v23 = vrot.slane %v6547_v24, 9  ;;  %v4384_v55 = vrot.slane %v6548_v43, 5  ;;  %v4391_v38 = vrot.slane %v6549_v39, 5  ;;  %5941 = vmatmul.mubr.msk.bf16.gmra.mrb[12].mxu1 %vm886_vm3, %v5291_v5  ;;  %6093 = vmatmul.mubr.msk.bf16.gmra.mrb[28].mxu0 %vm886_vm3, %v5443_v17  ;;  %v6551_v5 = vld [vmem:[%s7308_s28 + $0x3c] sm:$0xf] }
 0x133   : > { %v5478_v27 = vcombine.low %v8242_v37, %v8247_v54  ;;  %v8278_v51 = vsel %vm6983_vm7, %v5463_v29, %v4370_v44  ;;  %v4380_v35 = vrot.slane %v7825_v61, 5  ;;  %v4398_v34 = vrot.slane %v6550_v7, 5  ;;  %5944 = vmatprep.mubr.msk.bf16.mxu1 %vm886_vm3, %v5292_v19  ;;  %6098 = vmatprep.mubr.msk.bf16.mxu0 %vm886_vm3, %v5476_v59  ;;  %v6552_v62 = vld [vmem:[%s7308_s28 + $0x48] sm:$0xf]  ;;  %v6555_v10 = vld [vmem:[%s7308_s28 + $0x54] sm:$0xf] }
 0x134   : > { %v8286_v57 = vsel %vm6983_vm7, %v4372_v25, %v4373_v56  ;;  %v5465_v6 = vrot.slane %v6551_v5, 9  ;;  %v2389_v44 = vshll.u32 %v8219_v47, 16  ;;  %v2393_v1 = vshrl.u32 %v8219_v47, 16  ;;  %v8295_v25 = vld [vmem:[%s6691_s11 + $0xa0] sm:$0xf] }
 0x135   : > { %v4379_v61 = vrot.slane %v4377_v49, 4  ;;  %v4387_v3 = vrot.slane %v7865_v4, 5  ;;  %v2382_v17 = vrot.slane %v2380_v42, 4  ;;  %v2385_v19 = vrot.slane %v2383_v52, 5  ;;  %v8298_v56 = vld [vmem:[%s6691_s11 + $0x9c] sm:$0xf] }
 0x136   : > { %v4386_v37 = vrot.slane %v4384_v55, 4  ;;  %v5466_v59 = vrot.slane %v6552_v62, 9  ;;  %v4393_v29 = vrot.slane %v4391_v38, 4  ;;  %v4394_v54 = vrot.slane %v7915_v53, 5  ;;  %v8322_v62 = vld [vmem:[%s6691_s11 + $0xa8] sm:$0xf] }
 0x137   : > { %v5297_v47 = vcombine.low %v8298_v56, %v8295_v25  ;;  %v5467_v24 = vrot.slane %v6555_v10, 9  ;;  %v4400_v4 = vrot.slane %v4398_v34, 4  ;;  %v4401_v42 = vrot.slane %v7958_v26, 5  ;;  %v8319_v26 = vld [vmem:[%s6691_s11 + $0xac] sm:$0xf] }
 0x138   : > { %v5479_v52 = vcombine.low %v8278_v51, %v8286_v57  ;;  %v8308_v43 = vsel %vm6983_vm7, %v5464_v23, %v4377_v49  ;;  %v8310_v53 = vrot.slane %v2389_v44, 5  ;;  %v2395_v39 = vrot.slane %v2393_v1, 4  ;;  %v6558_v57 = vld [vmem:[%s7308_s28 + $0x64] sm:$0xf]  ;;  %v6559_v1 = vld [vmem:[%s6691_s11 + $0x68] sm:$0x1] }
 0x139   : > { %v4381_v7 = vsel %vm6983_vm7, %v4379_v61, %v4380_v35  ;;  %v8316_v5 = vsel %vm6983_vm7, %v5465_v6, %v4384_v55  ;;  %v5298_v49 = vcombine.low %v8322_v62, %v8319_v26  ;;  %v2386_v23 = vor.u32 %v2385_v19, %v2382_v17  ;;  %v8365_v45 = vld [vmem:[%s6691_s11 + $0xb8] sm:$0xf] }
 0x13a   : > { %v8328_v51 = vsel %vm6983_vm7, %v4386_v37, %v4387_v3  ;;  %v8332_v35 = vsel %vm6983_vm7, %v5466_v59, %v4391_v38  ;;  %v8336_v55 = vsel %vm6983_vm7, %v4393_v29, %v4394_v54  ;;  %v4405_v6 = vrot.slane %v6558_v57, 5  ;;  %5945 = vmatmul.mubr.msk.bf16.gmra.mrb[16].mxu1 %vm886_vm3, %v5293_v14  ;;  %6099 = vmatmul.mubr.msk.bf16.vlgmr.msra.gmra.mrb[0].mxu0 %vm886_vm3, %v5477_v0  ;;  %v6560_v3 = vld [vmem:[%s7308_s28 + $0x60] sm:$0xf]  ;;  %v8368_v14 = vld [vmem:[%s6691_s11 + $0xb4] sm:$0xf] }
 0x13b   : > { %v8346_v44 = vsel %vm6983_vm7, %v5467_v24, %v4398_v34  ;;  %v8350_v38 = vsel %vm6983_vm7, %v4400_v4, %v4401_v42  ;;  %v2399_v61 = vshll.u32 %v6559_v1, 16  ;;  %v5468_v17 = vrot.slane %v6560_v3, 9  ;;  %5948 = vmatprep.mubr.msk.bf16.mxu1 %vm886_vm3, %v5294_v36  ;;  %6102 = vmatprep.mubr.msk.bf16.mxu0 %vm886_vm3, %v5478_v27  ;;  %v6563_v4 = vld [vmem:[%s7308_s28 + $0x6c] sm:$0xf]  ;;  %v6564_v57 = vld [vmem:[%s7308_s28 + $0x70] sm:$0xf] }
 0x13c   : > { %v8356_v19 = vrot.slane %v2423_v41, 5  ;;  %v5480_v13 = vcombine.low %v8308_v43, %v4381_v7  ;;  %v5299_v0 = vcombine.low %v8368_v14, %v8365_v45  ;;  %v2396_v28 = vor.u32 %v2395_v39, %v8310_v53  ;;  %v6565_v1 = vld [vmem:[%s7308_s28 + $0x7c] sm:$0xf] }
 0x13d   : > { %v5481_v41 = vcombine.low %v8316_v5, %v8328_v51  ;;  %v8375_v34 = vrot.slane %v2386_v23, 4  ;;  %v2410_v36 = vor.u32 %v8186_v30, %v8184_v8  ;;  %v2420_v27 = vor.u32 %v8209_v60, %v8189_v48 }
 0x13e   : > { %v5482_v37 = vcombine.low %v8332_v35, %v8336_v55  ;;  %v5483_v59 = vcombine.low %v8346_v44, %v8350_v38  ;;  %v4407_v29 = vrot.slane %v4405_v6, 4  ;;  %v4408_v54 = vrot.slane %v7970_v9, 5 }
 0x13f   : > { %v8386_v10 = vrot.slane %v2399_v61, 5  ;;  %v8390_v24 = vsel %vm6983_vm7, %v5468_v17, %v4405_v6  ;;  %v2428_v8 = vshrl.u32 %v8233_v15, 16  ;;  %v2431_v30 = vshll.u32 %v8233_v15, 16 }
 0x140   : > { %v8394_v60 = vrot.slane %v2396_v28, 4  ;;  %v5469_v42 = vrot.slane %v6563_v4, 9  ;;  %v2437_v43 = vshll.u32 %v8236_v21, 16  ;;  %v2441_v39 = vshrl.u32 %v8236_v21, 16 }
 0x141   : > { %v2392_v9 = vsel %vm6717_vm4, %v8375_v34, %v8310_v53  ;;  %v8403_v7 = vrot.slane %v2410_v36, 4  ;;  %v8405_v23 = vrot.slane %v2420_v27, 4  ;;  %v4412_v6 = vrot.slane %v6564_v57, 5 }
 0x142   : > { %v8410_v15 = vsel %vm6983_vm7, %v4407_v29, %v4408_v54  ;;  %v4419_v61 = vrot.slane %v6565_v1, 5  ;;  %v2452_v3 = vshrl.u32 %v8253_v18, 16  ;;  %v2455_v21 = vshll.u32 %v8253_v18, 16  ;;  %5949 = vmatmul.mubr.msk.bf16.gmra.mrb[20].mxu1 %vm886_vm3, %v5295_v2  ;;  %6103 = vmatmul.mubr.msk.bf16.gmra.mrb[4].mxu0 %vm886_vm3, %v5479_v52  ;;  %v6566_v54 = vld [vmem:[%s6691_s11 + $0x80] sm:$0x1] }
 0x143   : > { %v2430_v17 = vrot.slane %v2428_v8, 4  ;;  %v2433_v28 = vrot.slane %v2431_v30, 5  ;;  %v2461_v36 = vshll.u32 %v8250_v58, 16  ;;  %v2465_v27 = vshrl.u32 %v8250_v58, 16  ;;  %5952 = vmatprep.mubr.msk.bf16.mxu1 %vm886_vm3, %v5296_v50  ;;  %6106 = vmatprep.mubr.msk.bf16.mxu0 %vm886_vm3, %v5480_v13  ;;  %v6567_v30 = vld [vmem:[%s7308_s28 + $0x78] sm:$0xf] }
 0x144   : > { %v2402_v18 = vsel %vm6717_vm4, %v8394_v60, %v8386_v10  ;;  %v4415_v2 = vrot.slane %v8015_v16, 5  ;;  %v8432_v52 = vrot.slane %v2437_v43, 5  ;;  %v2443_v29 = vrot.slane %v2441_v39, 4 }
 0x145   : > { %v5484_v58 = vcombine.low %v8390_v24, %v8410_v15  ;;  %v2416_v50 = vsel %vm6717_vm4, %v8403_v7, %v8189_v48  ;;  %v4414_v13 = vrot.slane %v4412_v6, 4  ;;  %v2447_v8 = vshll.u32 %v6566_v54, 16 }
 0x146   : > { %v5470_v4 = vrot.slane %v6567_v30, 9  ;;  %v4421_v10 = vrot.slane %v4419_v61, 4  ;;  %v2454_v60 = vrot.slane %v2452_v3, 4  ;;  %v2457_v16 = vrot.slane %v2455_v21, 5  ;;  %v6568_v3 = vld [vmem:[%s7308_s28 + $0x88] sm:$0xf] }
 0x147   : > { %v2434_v43 = vor.u32 %v2433_v28, %v2430_v17  ;;  %v4422_v39 = vrot.slane %v8032_v40, 5  ;;  %v8443_v57 = vrot.slane %v2461_v36, 5  ;;  %v2467_v1 = vrot.slane %v2465_v27, 4 }
 0x148   : > { %v2426_v48 = vsel %vm6717_vm4, %v8405_v23, %v8356_v19  ;;  %v8451_v7 = vsel %vm6983_vm7, %v5469_v42, %v4412_v6  ;;  %v2444_v54 = vor.u32 %v2443_v29, %v8432_v52  ;;  %v4426_v21 = vrot.slane %v6568_v3, 5 }
 0x149   : > { %v8457_v40 = vsel %vm6983_vm7, %v4414_v13, %v4415_v2  ;;  %v2449_v17 = vrot.slane %v2447_v8, 5  ;;  %v2476_v28 = vshrl.u32 %v8262_v63, 16  ;;  %v2479_v36 = vshll.u32 %v8262_v63, 16  ;;  %v6569_v2 = vld [vmem:[%s6691_s11 + $0x8c] sm:$0x1] }
 0x14a   : > { %v8463_v19 = vsel %vm6983_vm7, %v5470_v4, %v4419_v61  ;;  %v2458_v42 = vor.u32 %v2457_v16, %v2454_v60  ;;  %v2485_v23 = vshll.u32 %v8265_v46, 16  ;;  %v2489_v6 = vshrl.u32 %v8265_v46, 16  ;;  %5953 = vmatmul.mubr.msk.bf16.gmra.mrb[24].mxu1 %vm886_vm3, %v5297_v47  ;;  %6107 = vmatmul.mubr.msk.bf16.gmra.mrb[8].mxu0 %vm886_vm3, %v5481_v41  ;;  %v6570_v47 = vld [vmem:[%s7308_s28 + $0x84] sm:$0xf]  ;;  %v6571_v60 = vld [vmem:[%s7308_s28 + $0x94] sm:$0xf] }
 0x14b   : > { %v2435_v63 = vrot.slane %v2434_v43, 4  ;;  %v8477_v61 = vsel %vm6983_vm7, %v4421_v10, %v4422_v39  ;;  %v2468_v27 = vor.u32 %v2467_v1, %v8443_v57  ;;  %v2471_v29 = vshll.u32 %v6569_v2, 16  ;;  %5956 = vmatprep.mubr.msk.bf16.mxu1 %vm886_vm3, %v5298_v49  ;;  %6110 = vmatprep.mubr.msk.bf16.mxu0 %vm886_vm3, %v5482_v37  ;;  %v6572_v43 = vld [vmem:[%s6691_s11 + $0x98] sm:$0x1] }
 0x14c   : > { %v2445_v46 = vrot.slane %v2444_v54, 4  ;;  %v5471_v5 = vrot.slane %v6570_v47, 9  ;;  %v4428_v51 = vrot.slane %v4426_v21, 4  ;;  %v4429_v41 = vrot.slane %v8062_v22, 5 }
 0x14d   : > { %v5324_v13 = vcombine.low %v2392_v9, %v2402_v18  ;;  %v8496_v8 = vcombine.low %v2416_v50, %v2426_v48  ;;  %v2478_v49 = vrot.slane %v2476_v28, 4  ;;  %v2481_v35 = vrot.slane %v2479_v36, 5 }
 0x14e   : > { %v5485_v55 = vcombine.low %v8451_v7, %v8457_v40  ;;  %v2459_v37 = vrot.slane %v2458_v42, 4  ;;  %v8500_v30 = vrot.slane %v2485_v23, 5  ;;  %v2491_v4 = vrot.slane %v2489_v6, 4 }
 0x14f   : > { %v2440_v22 = vsel %vm6717_vm4, %v2435_v63, %v8432_v52  ;;  %v5486_v53 = vcombine.low %v8463_v19, %v8477_v61  ;;  %v2469_v34 = vrot.slane %v2468_v27, 4  ;;  %v2473_v9 = vrot.slane %v2471_v29, 5 }
 0x150   : > { %v2450_v18 = vsel %vm6717_vm4, %v2445_v46, %v2449_v17  ;;  %v8511_v50 = vsel %vm6983_vm7, %v5471_v5, %v4426_v21  ;;  %v8515_v10 = vsel %vm6983_vm7, %v4428_v51, %v4429_v41  ;;  %v4433_v16 = vrot.slane %v6571_v60, 5  ;;  %v6578_v60 = vld [vmem:[%s7308_s28 + $0xac] sm:$0xf] }
 0x151   : > { %v2482_v52 = vor.u32 %v2481_v35, %v2478_v49  ;;  %v2495_v39 = vshll.u32 %v6572_v43, 16  ;;  %v2500_v1 = vshrl.u32 %v8298_v56, 16  ;;  %v2503_v48 = vshll.u32 %v8298_v56, 16  ;;  %v6575_v35 = vld [vmem:[%s7308_s28 + $0x9c] sm:$0xf] }
 0x152   : > { %v2464_v54 = vsel %vm6717_vm4, %v2459_v37, %v8443_v57  ;;  %v2492_v3 = vor.u32 %v2491_v4, %v8500_v30  ;;  %v2509_v21 = vshll.u32 %v8295_v25, 16  ;;  %v2513_v17 = vshrl.u32 %v8295_v25, 16  ;;  %5957 = vmatmul.mubr.msk.bf16.gmra.mrb[28].mxu1 %vm886_vm3, %v5299_v0  ;;  %6111 = vmatmul.mubr.msk.bf16.gmra.mrb[12].mxu0 %vm886_vm3, %v5483_v59  ;;  %v6573_v57 = vld [vmem:[%s7308_s28 + $0x90] sm:$0xf] }
 0x153   : > { %v2474_v56 = vsel %vm6717_vm4, %v2469_v34, %v2473_v9  ;;  %v5472_v28 = vrot.slane %v6573_v57, 9  ;;  %v2524_v36 = vshrl.u32 %v8322_v62, 16  ;;  %v2527_v42 = vshll.u32 %v8322_v62, 16  ;;  %5978 = vmatprep.mubr.msk.bf16.mxu1 %vm886_vm3, %v5324_v13  ;;  %6114 = vmatprep.mubr.msk.bf16.mxu0 %vm886_vm3, %v5484_v58  ;;  %v6574_v13 = vld [vmem:[%s6691_s11 + $0xa4] sm:$0x1] }
 0x154   : > { %v4435_v25 = vrot.slane %v4433_v16, 4  ;;  %v4436_v44 = vrot.slane %v8074_v33, 5  ;;  %v2533_v38 = vshll.u32 %v8319_v26, 16  ;;  %v2537_v0 = vshrl.u32 %v8319_v26, 16  ;;  %v6576_v34 = vld [vmem:[%s7308_s28 + $0xa0] sm:$0xf] }
 0x155   : > { %v5326_v59 = vcombine.low %v2440_v22, %v2450_v18  ;;  %v2483_v23 = vrot.slane %v2482_v52, 4  ;;  %v2502_v6 = vrot.slane %v2500_v1, 4  ;;  %v2505_v63 = vrot.slane %v2503_v48, 5  ;;  %v6577_v18 = vld [vmem:[%s6691_s11 + $0xb0] sm:$0x1] }
 0x156   : > { %v2493_v62 = vrot.slane %v2492_v3, 4  ;;  %v2497_v27 = vrot.slane %v2495_v39, 5  ;;  %v8548_v2 = vrot.slane %v2509_v21, 5  ;;  %v2515_v24 = vrot.slane %v2513_v17, 4  ;;  %v6579_v17 = vld [vmem:[%s7308_s28 + $0xa8] sm:$0xf] }
 0x157   : > { %v5327_v15 = vcombine.low %v2464_v54, %v2474_v56  ;;  %v5487_v33 = vcombine.low %v8511_v50, %v8515_v10  ;;  %v2526_v58 = vrot.slane %v2524_v36, 4  ;;  %v2529_v29 = vrot.slane %v2527_v42, 5 }
 0x158   : > { %v4434_v26 = vsel %vm6983_vm7, %v5472_v28, %v4433_v16  ;;  %v4437_v46 = vsel %vm6983_vm7, %v4435_v25, %v4436_v44  ;;  %v8556_v47 = vrot.slane %v2533_v38, 5  ;;  %v2539_v5 = vrot.slane %v2537_v0, 4 }
 0x159   : > { %v2488_v51 = vsel %vm6717_vm4, %v2483_v23, %v8500_v30  ;;  %v2506_v41 = vor.u32 %v2505_v63, %v2502_v6  ;;  %v2519_v49 = vshll.u32 %v6574_v13, 16  ;;  %v5473_v37 = vrot.slane %v6575_v35, 9 }
 0x15a   : > { %v2498_v4 = vsel %vm6717_vm4, %v2493_v62, %v2497_v27  ;;  %v2516_v22 = vor.u32 %v2515_v24, %v8548_v2  ;;  %v4440_v9 = vrot.slane %v6576_v34, 5  ;;  %v2543_v50 = vshll.u32 %v6577_v18, 16  ;;  %5979 = vmatmul.mubr.msk.bf16.vlgmr.msra.gmra.mrb[16].mxu1 %vm886_vm3, %v8496_v8  ;;  %6115 = vmatmul.mubr.msk.bf16.gmra.mrb[16].mxu0 %vm886_vm3, %v5485_v55  ;;  %v6581_v27 = vld [vmem:[%s7308_s28 + $0xb8] sm:$0xf] }
 0x15b   : > { %v5488_v30 = vcombine.low %v4434_v26, %v4437_v46  ;;  %v2530_v10 = vor.u32 %v2529_v29, %v2526_v58  ;;  %v4447_v16 = vrot.slane %v6578_v60, 5  ;;  %v2548_v52 = vshrl.u32 %v8368_v14, 16  ;;  %5982 = vmatprep.mubr.msk.bf16.mxu1 %vm886_vm3, %v5326_v59  ;;  %6118 = vmatprep.mubr.msk.bf16.mxu0 %vm886_vm3, %v5486_v53  ;;  %v6580_v59 = vld [vmem:[%s6691_s11 + $0xbc] sm:$0x1]  ;;  %v6582_v26 = vld [vmem:[%s7308_s28 + $0xb4] sm:$0xf] }
 0x15c   : > { %v2540_v8 = vor.u32 %v2539_v5, %v8556_v47  ;;  %v2551_v7 = vshll.u32 %v8368_v14, 16  ;;  %v2557_v40 = vshll.u32 %v8365_v45, 16  ;;  %v2561_v55 = vshrl.u32 %v8365_v45, 16 }
 0x15d   : > { %v5328_v43 = vcombine.low %v2488_v51, %v2498_v4  ;;  %v2507_v39 = vrot.slane %v2506_v41, 4  ;;  %v2521_v1 = vrot.slane %v2519_v49, 5  ;;  %v4443_v48 = vrot.slane %v8103_v11, 5 }
 0x15e   : > { %v2517_v54 = vrot.slane %v2516_v22, 4  ;;  %v4442_v3 = vrot.slane %v4440_v9, 4  ;;  %v2545_v21 = vrot.slane %v2543_v50, 5  ;;  %v5474_v19 = vrot.slane %v6579_v17, 9 }
 0x15f   : > { %v2531_v61 = vrot.slane %v2530_v10, 4  ;;  %v4449_v53 = vrot.slane %v4447_v16, 4  ;;  %v4450_v56 = vrot.slane %v8121_v31, 5  ;;  %v2550_v14 = vrot.slane %v2548_v52, 4 }
 0x160   : > { %v2541_v57 = vrot.slane %v2540_v8, 4  ;;  %v2553_v28 = vrot.slane %v2551_v7, 5  ;;  %v2559_v36 = vrot.slane %v2557_v40, 5  ;;  %v2563_v45 = vrot.slane %v2561_v55, 4 }
 0x161   : > { %v2512_v42 = vsel %vm6717_vm4, %v2507_v39, %v8548_v2  ;;  %v2522_v11 = vsel %vm6717_vm4, %v2517_v54, %v2521_v1  ;;  %v4441_v25 = vsel %vm6983_vm7, %v5473_v37, %v4440_v9  ;;  %v4444_v44 = vsel %vm6983_vm7, %v4442_v3, %v4443_v48  ;;  %v8639_v39 = vld [vmem:[%s8712_s4] ss:$0 sm:$0xff] }
 0x162   : > { %5983 = vmatmul.mubr.msk.bf16.gmra.mrb[20].mxu1 %vm886_vm3, %v5327_v15  ;;  %6119 = vmatmul.mubr.msk.bf16.gmra.mrb[20].mxu0 %vm886_vm3, %v5487_v33  ;;  %v2536_v31 = vsel %vm6717_vm4, %v2531_v61, %v8556_v47  ;;  %v4448_v38 = vsel %vm6983_vm7, %v5474_v19, %v4447_v16  ;;  %v4451_v0 = vsel %vm6983_vm7, %v4449_v53, %v4450_v56  ;;  %v2567_v23 = vshll.u32 %v6580_v59, 16 }
 0x163   : > { %5986 = vmatprep.mubr.msk.bf16.mxu1 %vm886_vm3, %v5328_v43  ;;  %6122 = vmatprep.mubr.msk.bf16.mxu0 %vm886_vm3, %v5488_v30  ;;  %v2546_v6 = vsel %vm6717_vm4, %v2541_v57, %v2545_v21  ;;  %v2554_v63 = vor.u32 %v2553_v28, %v2550_v14  ;;  %v2564_v62 = vor.u32 %v2563_v45, %v2559_v36  ;;  %v4454_v2 = vrot.slane %v6581_v27, 5 }
 0x164   : > { %v5329_v24 = vcombine.low %v2512_v42, %v2522_v11  ;;  %v5489_v15 = vcombine.low %v4441_v25, %v4444_v44  ;;  %v5330_v33 = vcombine.low %v2536_v31, %v2546_v6  ;;  %v5490_v58 = vcombine.low %v4448_v38, %v4451_v0 }
 0x165   : > { %v2569_v29 = vrot.slane %v2567_v23, 5  ;;  %v5475_v46 = vrot.slane %v6582_v26, 9  ;;  %v2555_v47 = vrot.slane %v2554_v63, 4  ;;  %v2565_v5 = vrot.slane %v2564_v62, 4 }
 0x166   : > { %v4456_v51 = vrot.slane %v4454_v2, 4  ;;  %v4457_v41 = vrot.slane %v8148_v20, 5 }
 0x167   : > { %v4455_v13 = vsel %vm6983_vm7, %v5475_v46, %v4454_v2  ;;  %v2560_v49 = vsel %vm6717_vm4, %v2555_v47, %v2559_v36  ;;  %v2570_v35 = vsel %vm6717_vm4, %v2565_v5, %v2569_v29 }
 0x168   : > { %v4458_v20 = vsel %vm6983_vm7, %v4456_v51, %v4457_v41  ;;  %v5331_v37 = vcombine.low %v2560_v49, %v2570_v35 }
 0x169   : > { %v5491_v4 = vcombine.low %v4455_v13, %v4458_v20 }
 0x16a   : > { %5987 = vmatmul.mubr.msk.bf16.gmra.mrb[24].mxu1 %vm886_vm3, %v5329_v24  ;;  %6123 = vmatmul.mubr.msk.bf16.gmra.mrb[24].mxu0 %vm886_vm3, %v5489_v15 }
 0x16b   : > { %5990 = vmatprep.mubr.msk.bf16.mxu1 %vm886_vm3, %v5330_v33  ;;  %6126 = vmatprep.mubr.msk.bf16.mxu0 %vm886_vm3, %v5490_v58 }
 0x172   : > { %5991 = vmatmul.mubr.msk.bf16.gmra.mrb[28].mxu1 %vm886_vm3, %v5331_v37  ;;  %6127 = vmatmul.mubr.msk.bf16.gmra.mrb[28].mxu0 %vm886_vm3, %v5491_v4 }
 0x1ed   : > { %v5930_v22 = vpop.f32.mrb[0].mxu1 }
 0x1ee   : > { %v2028_v34 = vpop.f32.mrb[1].mxu1 }
 0x1ef   : > { %v5931_v9 = vpop.f32.mrb[2].mxu1 }
 0x1f0   : > { %v2031_v18 = vpop.f32.mrb[3].mxu1 }
 0x1f5   : > { %v5934_v50 = vpop.f32.mrb[4].mxu1 }
 0x1f6   : > { %v2044_v30 = vpop.f32.mrb[5].mxu1 }
 0x1f7   : > { %v5935_v10 = vpop.f32.mrb[6].mxu1 }
 0x1f8   : > { %v2047_v60 = vpop.f32.mrb[7].mxu1 }
 0x1fd   : > { %v5938_v16 = vpop.f32.mrb[8].mxu1 }
 0x1fe   : > { %v2060_v32 = vpop.f32.mrb[9].mxu1 }
 0x1ff   : > { %v5939_v52 = vpop.f32.mrb[10].mxu1 }
 0x200   : > { %v2063_v8 = vpop.f32.mrb[11].mxu1 }
 0x205   : > { %v8628_v12 = vpop.f32.mrb[12].mxu1 }
 0x206   : > { %v8630_v7 = vpop.f32.mrb[13].mxu1 }
 0x207   : > { %v8632_v40 = vpop.f32.mrb[14].mxu1 }
 0x208   : > { %v8634_v55 = vpop.f32.mrb[15].mxu1 }
 0x20d   : > { %v6100_v43 = vpop.f32.mrb[0].mxu0 }
 0x20e   : > { %v6132_v1 = vadd.f32 %v6100_v43, %v5930_v22  ;;  %v4592_v48 = vpop.f32.mrb[1].mxu0 }
 0x20f   : > { %v6133_v54 = vadd.f32 %v4592_v48, %v2028_v34  ;;  %v6101_v3 = vpop.f32.mrb[2].mxu0 }
 0x210   : > { %v4760_v21 = vadd.f32 %v6132_v1, %v8639_v39  ;;  %v6134_v17 = vadd.f32 %v6101_v3, %v5931_v9  ;;  %v4595_v19 = vpop.f32.mrb[3].mxu0 }
 0x211   : > { %v4758_v61 = vadd.f32 %v6133_v54, %v8639_v39  ;;  %v6135_v53 = vadd.f32 %v4595_v19, %v2031_v18 }
 0x212   : > { %v4761_v56 = vadd.f32 %v6134_v17, %v8639_v39  ;;  %v4792_v57 = vmax.f32 %v4760_v21, 0.0 }
 0x213   : > { %v4759_v14 = vadd.f32 %v6135_v53, %v8639_v39  ;;  %v4790_v36 = vmax.f32 %v4758_v61, 0.0 }
 0x214   : > { %v4793_v28 = vmax.f32 %v4761_v56, 0.0 }
 0x215   : > { %v4791_v45 = vmax.f32 %v4759_v14, 0.0  ;;  %v6104_v42 = vpop.f32.mrb[4].mxu0 }
 0x216   : > { %v5584_v11 = vpack.c.bf16 %v4793_v28, %v4792_v57  ;;  %v6136_v25 = vadd.f32 %v6104_v42, %v5934_v50  ;;  %v4608_v44 = vpop.f32.mrb[5].mxu0 }
 0x217   : > { %v5579_v31 = vpack.c.bf16 %v4791_v45, %v4790_v36  ;;  %v6137_v38 = vadd.f32 %v4608_v44, %v2044_v30  ;;  %v6105_v0 = vpop.f32.mrb[6].mxu0 }
 0x218   : > { %5656 = vst [vmem:[%s8649_s13 + $0x8] sm:$0xff] %v5584_v11   ;;  %v4764_v59 = vadd.f32 %v6136_v25, %v8639_v39  ;;  %v6138_v23 = vadd.f32 %v6105_v0, %v5935_v10  ;;  %v4611_v6 = vpop.f32.mrb[7].mxu0 }
 0x219   : > { %5580 = vst [vmem:[%s8649_s13] sm:$0xff] %v5579_v31   ;;  %v4762_v63 = vadd.f32 %v6137_v38, %v8639_v39  ;;  %v6139_v62 = vadd.f32 %v4611_v6, %v2047_v60 }
 0x21a   : > { %v4765_v27 = vadd.f32 %v6138_v23, %v8639_v39  ;;  %v4796_v24 = vmax.f32 %v4764_v59, 0.0 }
 0x21b   : > { %v4763_v2 = vadd.f32 %v6139_v62, %v8639_v39  ;;  %v4794_v33 = vmax.f32 %v4762_v63, 0.0 }
 0x21c   : > { %v4797_v15 = vmax.f32 %v4765_v27, 0.0 }
 0x21d   : > { %v4795_v58 = vmax.f32 %v4763_v2, 0.0  ;;  %v6108_v29 = vpop.f32.mrb[8].mxu0 }
 0x21e   : > { %v5594_v26 = vpack.c.bf16 %v4797_v15, %v4796_v24  ;;  %v6140_v46 = vadd.f32 %v6108_v29, %v5938_v16  ;;  %v4624_v47 = vpop.f32.mrb[9].mxu0 }
 0x21f   : > { %v5589_v5 = vpack.c.bf16 %v4795_v58, %v4794_v33  ;;  %v6141_v51 = vadd.f32 %v4624_v47, %v2060_v32  ;;  %v6109_v41 = vpop.f32.mrb[10].mxu0 }
 0x220   : > { %5658 = vst [vmem:[%s8649_s13 + $0x18] sm:$0xff] %v5594_v26   ;;  %v4768_v13 = vadd.f32 %v6140_v46, %v8639_v39  ;;  %v6142_v49 = vadd.f32 %v6109_v41, %v5939_v52  ;;  %v4627_v35 = vpop.f32.mrb[11].mxu0 }
 0x221   : > { %5657 = vst [vmem:[%s8649_s13 + $0x10] sm:$0xff] %v5589_v5   ;;  %v4766_v20 = vadd.f32 %v6141_v51, %v8639_v39  ;;  %v6143_v37 = vadd.f32 %v4627_v35, %v2063_v8 }
 0x222   : > { %v4769_v4 = vadd.f32 %v6142_v49, %v8639_v39  ;;  %v4800_v34 = vmax.f32 %v4768_v13, 0.0 }
 0x223   : > { %v4767_v22 = vadd.f32 %v6143_v37, %v8639_v39  ;;  %v4798_v18 = vmax.f32 %v4766_v20, 0.0 }
 0x224   : > { %v4801_v9 = vmax.f32 %v4769_v4, 0.0 }
 0x225   : > { %v4799_v50 = vmax.f32 %v4767_v22, 0.0  ;;  %v6112_v30 = vpop.f32.mrb[12].mxu0 }
 0x226   : > { %v5604_v10 = vpack.c.bf16 %v4801_v9, %v4800_v34  ;;  %v6144_v60 = vadd.f32 %v6112_v30, %v8628_v12  ;;  %v4640_v16 = vpop.f32.mrb[13].mxu0 }
 0x227   : > { %v5599_v32 = vpack.c.bf16 %v4799_v50, %v4798_v18  ;;  %v6145_v52 = vadd.f32 %v4640_v16, %v8630_v7  ;;  %v6113_v43 = vpop.f32.mrb[14].mxu0 }
 0x228   : > { %5660 = vst [vmem:[%s8649_s13 + $0x28] sm:$0xff] %v5604_v10   ;;  %v4772_v8 = vadd.f32 %v6144_v60, %v8639_v39  ;;  %v6146_v1 = vadd.f32 %v6113_v43, %v8632_v40  ;;  %v4643_v48 = vpop.f32.mrb[15].mxu0 }
 0x229   : > { %5659 = vst [vmem:[%s8649_s13 + $0x20] sm:$0xff] %v5599_v32   ;;  %v4770_v54 = vadd.f32 %v6145_v52, %v8639_v39  ;;  %v6147_v3 = vadd.f32 %v4643_v48, %v8634_v55 }
 0x22a   : > { %v4773_v21 = vadd.f32 %v6146_v1, %v8639_v39  ;;  %v4804_v17 = vmax.f32 %v4772_v8, 0.0 }
 0x22b   : > { %v4771_v12 = vadd.f32 %v6147_v3, %v8639_v39  ;;  %v4802_v7 = vmax.f32 %v4770_v54, 0.0 }
 0x22c   : > { %v4805_v19 = vmax.f32 %v4773_v21, 0.0 }
 0x22d   : > { %v4803_v61 = vmax.f32 %v4771_v12, 0.0  ;;  %v5980_v53 = vpop.f32.mrb[16].mxu1  ;;  %v6116_v56 = vpop.f32.mrb[16].mxu0 }
 0x22e   : > { %v5614_v14 = vpack.c.bf16 %v4805_v19, %v4804_v17  ;;  %v6148_v40 = vadd.f32 %v6116_v56, %v5980_v53  ;;  %v2768_v57 = vpop.f32.mrb[17].mxu1  ;;  %v4656_v28 = vpop.f32.mrb[17].mxu0 }
 0x22f   : > { %v5609_v36 = vpack.c.bf16 %v4803_v61, %v4802_v7  ;;  %v6149_v45 = vadd.f32 %v4656_v28, %v2768_v57  ;;  %v5981_v42 = vpop.f32.mrb[18].mxu1  ;;  %v6117_v55 = vpop.f32.mrb[18].mxu0 }
 0x230   : > { %5662 = vst [vmem:[%s8649_s13 + $0x38] sm:$0xff] %v5614_v14   ;;  %v4776_v11 = vadd.f32 %v6148_v40, %v8639_v39  ;;  %v6150_v25 = vadd.f32 %v6117_v55, %v5981_v42  ;;  %v2771_v44 = vpop.f32.mrb[19].mxu1  ;;  %v4659_v31 = vpop.f32.mrb[19].mxu0 }
 0x231   : > { %5661 = vst [vmem:[%s8649_s13 + $0x30] sm:$0xff] %v5609_v36   ;;  %v4774_v38 = vadd.f32 %v6149_v45, %v8639_v39  ;;  %v6151_v0 = vadd.f32 %v4659_v31, %v2771_v44 }
 0x232   : > { %v4777_v59 = vadd.f32 %v6150_v25, %v8639_v39  ;;  %v4808_v6 = vmax.f32 %v4776_v11, 0.0 }
 0x233   : > { %v4775_v23 = vadd.f32 %v6151_v0, %v8639_v39  ;;  %v4806_v62 = vmax.f32 %v4774_v38, 0.0 }
 0x234   : > { %v4809_v63 = vmax.f32 %v4777_v59, 0.0 }
 0x235   : > { %v4807_v27 = vmax.f32 %v4775_v23, 0.0  ;;  %v5984_v2 = vpop.f32.mrb[20].mxu1  ;;  %v6120_v24 = vpop.f32.mrb[20].mxu0 }
 0x236   : > { %v5624_v15 = vpack.c.bf16 %v4809_v63, %v4808_v6  ;;  %v6152_v33 = vadd.f32 %v6120_v24, %v5984_v2  ;;  %v2784_v58 = vpop.f32.mrb[21].mxu1  ;;  %v4672_v29 = vpop.f32.mrb[21].mxu0 }
 0x237   : > { %v5619_v26 = vpack.c.bf16 %v4807_v27, %v4806_v62  ;;  %v6153_v46 = vadd.f32 %v4672_v29, %v2784_v58  ;;  %v5985_v47 = vpop.f32.mrb[22].mxu1  ;;  %v6121_v5 = vpop.f32.mrb[22].mxu0 }
 0x238   : > { %5664 = vst [vmem:[%s8649_s13 + $0x48] sm:$0xff] %v5624_v15   ;;  %v4780_v51 = vadd.f32 %v6152_v33, %v8639_v39  ;;  %v6154_v41 = vadd.f32 %v6121_v5, %v5985_v47  ;;  %v2787_v13 = vpop.f32.mrb[23].mxu1  ;;  %v4675_v49 = vpop.f32.mrb[23].mxu0 }
 0x239   : > { %5663 = vst [vmem:[%s8649_s13 + $0x40] sm:$0xff] %v5619_v26   ;;  %v4778_v35 = vadd.f32 %v6153_v46, %v8639_v39  ;;  %v6155_v20 = vadd.f32 %v4675_v49, %v2787_v13 }
 0x23a   : > { %v4781_v37 = vadd.f32 %v6154_v41, %v8639_v39  ;;  %v4812_v22 = vmax.f32 %v4780_v51, 0.0 }
 0x23b   : > { %v4779_v4 = vadd.f32 %v6155_v20, %v8639_v39  ;;  %v4810_v9 = vmax.f32 %v4778_v35, 0.0 }
 0x23c   : > { %v4813_v34 = vmax.f32 %v4781_v37, 0.0 }
 0x23d   : > { %v4811_v18 = vmax.f32 %v4779_v4, 0.0  ;;  %v5988_v50 = vpop.f32.mrb[24].mxu1  ;;  %v6124_v30 = vpop.f32.mrb[24].mxu0 }
 0x23e   : > { %v5634_v10 = vpack.c.bf16 %v4813_v34, %v4812_v22  ;;  %v6156_v60 = vadd.f32 %v6124_v30, %v5988_v50  ;;  %v2800_v16 = vpop.f32.mrb[25].mxu1  ;;  %v4688_v32 = vpop.f32.mrb[25].mxu0 }
 0x23f   : > { %v5629_v52 = vpack.c.bf16 %v4811_v18, %v4810_v9  ;;  %v6157_v43 = vadd.f32 %v4688_v32, %v2800_v16  ;;  %v5989_v8 = vpop.f32.mrb[26].mxu1  ;;  %v6125_v1 = vpop.f32.mrb[26].mxu0 }
 0x240   : > { %5666 = vst [vmem:[%s8649_s13 + $0x58] sm:$0xff] %v5634_v10   ;;  %v4784_v48 = vadd.f32 %v6156_v60, %v8639_v39  ;;  %v6158_v54 = vadd.f32 %v6125_v1, %v5989_v8  ;;  %v2803_v3 = vpop.f32.mrb[27].mxu1  ;;  %v4691_v21 = vpop.f32.mrb[27].mxu0 }
 0x241   : > { %5665 = vst [vmem:[%s8649_s13 + $0x50] sm:$0xff] %v5629_v52   ;;  %v4782_v12 = vadd.f32 %v6157_v43, %v8639_v39  ;;  %v6159_v17 = vadd.f32 %v4691_v21, %v2803_v3 }
 0x242   : > { %v4785_v19 = vadd.f32 %v6158_v54, %v8639_v39  ;;  %v4816_v61 = vmax.f32 %v4784_v48, 0.0 }
 0x243   : > { %v4783_v7 = vadd.f32 %v6159_v17, %v8639_v39  ;;  %v4814_v56 = vmax.f32 %v4782_v12, 0.0 }
 0x244   : > { %v4817_v53 = vmax.f32 %v4785_v19, 0.0 }
 0x245   : > { %v4815_v14 = vmax.f32 %v4783_v7, 0.0  ;;  %v5992_v40 = vpop.f32.mrb[28].mxu1  ;;  %v6128_v57 = vpop.f32.mrb[28].mxu0 }
 0x246   : > { %v5644_v28 = vpack.c.bf16 %v4817_v53, %v4816_v61  ;;  %v6160_v36 = vadd.f32 %v6128_v57, %v5992_v40  ;;  %v2816_v45 = vpop.f32.mrb[29].mxu1  ;;  %v4704_v42 = vpop.f32.mrb[29].mxu0 }
 0x247   : > { %v5639_v55 = vpack.c.bf16 %v4815_v14, %v4814_v56  ;;  %v6161_v11 = vadd.f32 %v4704_v42, %v2816_v45  ;;  %v5993_v25 = vpop.f32.mrb[30].mxu1  ;;  %v6129_v44 = vpop.f32.mrb[30].mxu0 }
 0x248   : > { %5668 = vst [vmem:[%s8649_s13 + $0x68] sm:$0xff] %v5644_v28   ;;  %v4788_v31 = vadd.f32 %v6160_v36, %v8639_v39  ;;  %v6162_v38 = vadd.f32 %v6129_v44, %v5993_v25  ;;  %v2819_v0 = vpop.f32.mrb[31].mxu1  ;;  %v4707_v59 = vpop.f32.mrb[31].mxu0 }
 0x249   : > { %5667 = vst [vmem:[%s8649_s13 + $0x60] sm:$0xff] %v5639_v55   ;;  %v4786_v23 = vadd.f32 %v6161_v11, %v8639_v39  ;;  %v6163_v6 = vadd.f32 %v4707_v59, %v2819_v0 }
 0x24a   : > { %v4789_v63 = vadd.f32 %v6162_v38, %v8639_v39  ;;  %v4820_v27 = vmax.f32 %v4788_v31, 0.0 }
 0x24b   : > { %v4787_v62 = vadd.f32 %v6163_v6, %v8639_v39  ;;  %v4818_v24 = vmax.f32 %v4786_v23, 0.0 }
 0x24c   : > { %v4821_v2 = vmax.f32 %v4789_v63, 0.0 }
 0x24d   : > { %v4819_v15 = vmax.f32 %v4787_v62, 0.0 }
 0x24e   : > { %v5654_v33 = vpack.c.bf16 %v4821_v2, %v4820_v27 }
 0x24f   : > { %v5649_v58 = vpack.c.bf16 %v4819_v15, %v4818_v24 }
 0x250   : > { %5670 = vst [vmem:[%s8649_s13 + $0x78] sm:$0xff] %v5654_v33  }
 0x251   : > { %5669 = vst [vmem:[%s8649_s13 + $0x70] sm:$0xff] %v5649_v58  }
 0x252 PF: > { %s15_s20 = sadd.s32 1, %s6605_s20   ;;  %s8826_s18 = smov %s6601_s19 }
 0x253   : > { %p12_p5 = scmp.ge.s32.totalorder %s15_s20, 4   ;;  %s8827_s19 = smov %s8829_s21 }
 0x255   :  { %14 = sbr.rel (!%p12_p5) target bundleno = 2 (0x2), region = 82 }

// kernel: segmentor_forward.4
= control target key start
LH: loop header
LB: loop body
LE: loop exit
PB: predicated region body
PF: predicated region fallthrough
CT: control target
= control target key end

     0   :  { %s7096_s18 = smov 0   ;;  %s7098_s19 = smov 0   ;;  %s9166_s0 = inlined_call_operand.vmem [shape: bf16[2,16,18,128], index: 0, kind: input, shape index: {}]   ;;  %s9167_s1 = inlined_call_operand.vmem [shape: bf16[2,16,18,128], index: 1, kind: input, shape index: {}]   ;;  %s9168_s2 = inlined_call_operand.vmem [shape: bf16[2,16,18,128], index: 2, kind: input, shape index: {}]   ;;  %s9169_s3 = inlined_call_operand.vmem [shape: bf16[3,3,128,128], index: 3, kind: input, shape index: {}]   ;;  %s9170_s4 = inlined_call_operand.vmem [shape: f32[1,128], index: 4, kind: input, shape index: {}]   ;;  %s9171_s5 = inlined_call_operand.vmem [shape: bf16[2,16,16,128], index: 5, kind: output, shape index: {}]  }
   0x1   :  { %s7100_s20 = smov 0  }
   0x2 LB: > { %s34_s21 = sadd.s32 1, %s7060_s19  ;;  %p5416_p0 = scmp.ge.s32.totalorder %s7064_s20, 1  ;;  %s7064_s20 = sphi %s7100_s20, %s15_s20   ;;  %s7060_s19 = sphi %s7098_s19, %s9257_s19   ;;  %s7056_s18 = sphi %s7096_s18, %s9256_s18  }
   0x3   : > { %p36_p1 = scmp.ge.s32.totalorder %s34_s21, 2  ;;  %p271_p2 = scmp.lt.s32.totalorder %s7064_s20, 3 }
   0x5   : > { %s9259_s21 = smov (%p36_p1, %s34_s21), 0  ;;  %p272_p3 = pnand %p5416_p0, %p271_p2 }
   0x7   : > { %275 = sbr.rel (%p272_p3) target bundleno = 593 (0x251), region = 40 }
   0xe   : > { %v6794_v0 = vld [vmem:[%s9169_s3 + $0x40] sm:$0xff]   ;;  %p340_p4 = scmp.lt.s32.totalorder %s7056_s18, 1  ;;  %v6796_v2 = vld [vmem:[%s9169_s3 + $0x48] sm:$0xff]   ;;  %v6798_v4 = vld [vmem:[%s9169_s3 + $0x50] sm:$0xff]   ;;  %vm586_vm0 = vsmask.f32 3328 }
   0xf   : > { %v6795_v1 = vld [vmem:[%s9169_s3 + $0x100] sm:$0xff]   ;;  %6065 = vmatprep.subr.bf16.mxu1 %v6794_v0  ;;  %v6797_v3 = vld [vmem:[%s9169_s3 + $0x108] sm:$0xff]   ;;  %v6799_v5 = vld [vmem:[%s9169_s3 + $0x110] sm:$0xff]   ;;  %vm587_vm1 = vsmask.f32 7440  ;;  %vm1567_vm3 = vcmask 1042432  }
  0x10   : > { %6257 = vmatprep.subr.bf16.mxu0 %v6795_v1  ;;  %6066 = vmatpush3.bf16.msra.mxu1 %v6794_v0  ;;  %s9261_s18 = smov (!%p340_p4, %s7056_s18), 1  ;;  %v6800_v6 = vld [vmem:[%s9169_s3 + $0x58] sm:$0xff]   ;;  %v6802_v8 = vld [vmem:[%s9169_s3 + $0x60] sm:$0xff]   ;;  %v6804_v10 = vld [vmem:[%s9169_s3 + $0x68] sm:$0xff]   ;;  %vm1568_vm4 = vcmask 1046532  }
  0x11   : > { %6258 = vmatpush3.bf16.msra.mxu0 %v6795_v1  ;;  %6067 = vmatprep.subr.bf16.mxu1 %v6796_v2  ;;  %v6801_v7 = vld [vmem:[%s9169_s3 + $0x118] sm:$0xff]   ;;  %s7141_s13 = smul.u32 192, %s9261_s18  ;;  %v6803_v9 = vld [vmem:[%s9169_s3 + $0x120] sm:$0xff]   ;;  %v6805_v11 = vld [vmem:[%s9169_s3 + $0x128] sm:$0xff]   ;;  %s5721_s22 = sshll.u32 %s9261_s18, 7 }
  0x12   : > { %6259 = vmatprep.subr.bf16.mxu0 %v6797_v3  ;;  %v6806_v25 = vld [vmem:[%s9169_s3 + $0x70] sm:$0xff]   ;;  %v6808_v36 = vld [vmem:[%s9169_s3 + $0x78] sm:$0xff]   ;;  %vm7195_vm2 = vmor %vm586_vm0, %vm587_vm1  ;;  %s9107_s26 = scalar_lea.vmem %s9171_s5, %s5721_s22 }
  0x13   : > { %s7153_s24 = scalar_lea.vmem %s9166_s0, %s7141_s13  ;;  %s7165_s6 = scalar_lea.vmem %s9167_s1, %s7141_s13  ;;  %v6807_v30 = vld [vmem:[%s9169_s3 + $0x130] sm:$0xff]   ;;  %v6809_v51 = vld [vmem:[%s9169_s3 + $0x138] sm:$0xff]   ;;  %vm7471_vm5 = vmor %vm1567_vm3, %vm1568_vm4 }
  0x14   : > { %6068 = vmatpush3.bf16.msra.mxu1 %v6796_v2  ;;  %v538_v12 = vld [vmem:[%s7153_s24] sm:$0xf]  ;;  %v539_v13 = vld [vmem:[%s7153_s24 + $0x4] sm:$0xf]  ;;  %v540_v14 = vld [vmem:[%s7153_s24 + $0x8] sm:$0x1]  ;;  %s7796_s29 = scalar_lea.vmem %s9168_s2, %s7141_s13 }
  0x15   : > { %6260 = vmatpush3.bf16.msra.mxu0 %v6797_v3  ;;  %6069 = vmatprep.subr.bf16.mxu1 %v6798_v4  ;;  %v590_v15 = vshrl.u32 %v538_v12, 16  ;;  %v593_v16 = vshll.u32 %v538_v12, 16  ;;  %v599_v17 = vshll.u32 %v539_v13, 16  ;;  %v603_v18 = vshrl.u32 %v539_v13, 16  ;;  %v7171_v20 = vld [vmem:[%s7165_s6] sm:$0xf] }
  0x16   : > { %6261 = vmatprep.subr.bf16.mxu0 %v6799_v5  ;;  %v609_v19 = vshll.u32 %v540_v14, 16  ;;  %v7174_v23 = vld [vmem:[%s7165_s6 + $0x4] sm:$0xf]  ;;  %v7177_v24 = vld [vmem:[%s7165_s6 + $0x8] sm:$0x1]  ;;  %v2373_v29 = vshrl.u32 %v7171_v20, 16 }
  0x17   : > { %v592_v21 = vrot.slane %v590_v15, 4  ;;  %v595_v22 = vrot.slane %v593_v16, 5  ;;  %v601_v26 = vrot.slane %v599_v17, 5  ;;  %v605_v27 = vrot.slane %v603_v18, 4  ;;  %v541_v35 = vld [vmem:[%s7153_s24 + $0xc] sm:$0xf] }
  0x18   : > { %6070 = vmatpush3.bf16.msra.mxu1 %v6798_v4  ;;  %v611_v28 = vrot.slane %v609_v19, 5  ;;  %v2376_v32 = vshll.u32 %v7171_v20, 16  ;;  %v2382_v33 = vshll.u32 %v7174_v23, 16  ;;  %v2386_v34 = vshrl.u32 %v7174_v23, 16  ;;  %v542_v42 = vld [vmem:[%s7153_s24 + $0x10] sm:$0xf] }
  0x19   : > { %6262 = vmatpush3.bf16.msra.mxu0 %v6799_v5  ;;  %6071 = vmatprep.subr.bf16.mxu1 %v6800_v6  ;;  %v596_v31 = vor.u32 %v595_v22, %v592_v21  ;;  %v606_v38 = vor.u32 %v605_v27, %v601_v26  ;;  %v2375_v39 = vrot.slane %v2373_v29, 4  ;;  %v2392_v40 = vshll.u32 %v7177_v24, 16  ;;  %v543_v55 = vld [vmem:[%s7153_s24 + $0x14] sm:$0x1]  ;;  %v7209_v57 = vld [vmem:[%s7165_s6 + $0xc] sm:$0xf] }
  0x1a   : > { %6263 = vmatprep.subr.bf16.mxu0 %v6801_v7  ;;  %v3082_v41 = vrot.slane %v7177_v24, 5  ;;  %v2378_v44 = vrot.slane %v2376_v32, 5  ;;  %v2384_v45 = vrot.slane %v2382_v33, 5  ;;  %v2388_v46 = vrot.slane %v2386_v34, 4  ;;  %v7214_v62 = vld [vmem:[%s7165_s6 + $0x10] sm:$0xf] }
  0x1b   : > { %v597_v43 = vrot.slane %v596_v31, 4  ;;  %v607_v47 = vrot.slane %v606_v38, 4  ;;  %v2394_v48 = vrot.slane %v2392_v40, 5  ;;  %v614_v49 = vshrl.u32 %v541_v35, 16  ;;  %v6810_v3 = vld [vmem:[%s9169_s3] sm:$0xff]  }
  0x1c   : > { %6072 = vmatpush3.bf16.msra.mxu1 %v6800_v6  ;;  %v617_v50 = vshll.u32 %v541_v35, 16  ;;  %v2379_v53 = vor.u32 %v2378_v44, %v2375_v39  ;;  %v2389_v54 = vor.u32 %v2388_v46, %v2384_v45  ;;  %v623_v56 = vshll.u32 %v542_v42, 16  ;;  %v7222_v4 = vld [vmem:[%s9169_s3 + $0x140] sm:$0xff]   ;;  %v544_v17 = vld [vmem:[%s7153_s24 + $0x18] sm:$0xf] }
  0x1d   : > { %6264 = vmatpush3.bf16.msra.mxu0 %v6801_v7  ;;  %6073 = vmatprep.subr.bf16.mxu1 %v6802_v8  ;;  %v602_v52 = vsel %vm7195_vm2, %v597_v43, %v601_v26  ;;  %v612_v58 = vsel %vm7195_vm2, %v607_v47, %v611_v28  ;;  %v616_v59 = vrot.slane %v614_v49, 4  ;;  %v627_v61 = vshrl.u32 %v542_v42, 16  ;;  %v546_v33 = vld [vmem:[%s7153_s24 + $0x20] sm:$0x1]  ;;  %v7246_v40 = vld [vmem:[%s7165_s6 + $0x18] sm:$0xf] }
  0x1e   : > { %6265 = vmatprep.subr.bf16.mxu0 %v6803_v9  ;;  %v619_v60 = vrot.slane %v617_v50, 5  ;;  %v5422_v63 = vcombine.low %v602_v52, %v612_v58  ;;  %v2380_v0 = vrot.slane %v2379_v53, 4  ;;  %v2390_v1 = vrot.slane %v2389_v54, 4  ;;  %v7249_v46 = vld [vmem:[%s7165_s6 + $0x1c] sm:$0xf]  ;;  %v6813_v47 = vld [vmem:[%s9169_s3 + $0x8] sm:$0xff]  }
  0x1f   : > { %v625_v2 = vrot.slane %v623_v56, 5  ;;  %v629_v6 = vrot.slane %v627_v61, 4  ;;  %v633_v7 = vshll.u32 %v543_v55, 16  ;;  %v2400_v12 = vshll.u32 %v7209_v57, 16  ;;  %v7255_v52 = vld [vmem:[%s7165_s6 + $0x20] sm:$0x1] }
  0x20   : > { %6074 = vmatpush3.bf16.msra.mxu1 %v6802_v8  ;;  %v620_v5 = vor.u32 %v619_v60, %v616_v59  ;;  %v7225_v8 = vld [vmem:[%s7165_s6 + $0x14] sm:$0x1]  ;;  %6081 = vmatprep.mubr.bf16.mxu1 %v5422_v63  ;;  %v2406_v21 = vshll.u32 %v7214_v62, 16  ;;  %v2410_v22 = vshrl.u32 %v7214_v62, 16  ;;  %v638_v34 = vshrl.u32 %v544_v17, 16 }
  0x21   : > { %6266 = vmatpush3.bf16.msra.mxu0 %v6803_v9  ;;  %6075 = vmatprep.subr.bf16.mxu1 %v6804_v10  ;;  %v2385_v9 = vsel %vm7195_vm2, %v2380_v0, %v2384_v45  ;;  %v630_v15 = vor.u32 %v629_v6, %v625_v2  ;;  %v635_v16 = vrot.slane %v633_v7, 5  ;;  %v2402_v19 = vrot.slane %v2400_v12, 5  ;;  %v547_v53 = vld [vmem:[%s7153_s24 + $0x24] sm:$0xf]  ;;  %v548_v6 = vld [vmem:[%s7153_s24 + $0x28] sm:$0xf] }
  0x22   : > { %6267 = vmatprep.subr.bf16.mxu0 %v6805_v11  ;;  %v621_v14 = vrot.slane %v620_v5, 4  ;;  %v2416_v28 = vshll.u32 %v7225_v8, 16  ;;  %v3089_v29 = vrot.slane %v7225_v8, 5  ;;  %v2408_v31 = vrot.slane %v2406_v21, 5 }
  0x23   : > { %v631_v27 = vrot.slane %v630_v15, 4  ;;  %v2412_v32 = vrot.slane %v2410_v22, 4  ;;  %v641_v38 = vshll.u32 %v544_v17, 16  ;;  %v640_v45 = vrot.slane %v638_v34, 4 }
  0x24   : > { %6076 = vmatpush3.bf16.msra.mxu1 %v6804_v10  ;;  %v2395_v10 = vsel %vm7195_vm2, %v2390_v1, %v2394_v48  ;;  %v626_v26 = vsel %vm7195_vm2, %v621_v14, %v625_v2  ;;  %v2421_v56 = vshrl.u32 %v7246_v40, 16  ;;  %v2424_v58 = vshll.u32 %v7246_v40, 16 }
  0x25   : > { %6268 = vmatpush3.bf16.msra.mxu0 %v6805_v11  ;;  %6077 = vmatprep.subr.bf16.mxu1 %v6806_v25  ;;  %v2397_v11 = vshrl.u32 %v7209_v57, 16  ;;  %v5534_v13 = vcombine.low %v2385_v9, %v2395_v10  ;;  %v636_v35 = vsel %vm7195_vm2, %v631_v27, %v635_v16  ;;  %v2413_v44 = vor.u32 %v2412_v32, %v2408_v31  ;;  %v6812_v9 = vld [vmem:[%s9169_s3 + $0x148] sm:$0xff]   ;;  %v6814_v32 = vld [vmem:[%s9169_s3 + $0x150] sm:$0xff]  }
  0x26   : > { %6269 = vmatprep.subr.bf16.mxu0 %v6807_v30  ;;  %v5423_v42 = vcombine.low %v626_v26, %v636_v35  ;;  %v643_v48 = vrot.slane %v641_v38, 5  ;;  %v2430_v63 = vshll.u32 %v7249_v46, 16  ;;  %v2423_v1 = vrot.slane %v2421_v56, 4  ;;  %v7281_v26 = vld [vmem:[%s7165_s6 + $0x28] sm:$0xf]  ;;  %v6822_v56 = vld [vmem:[%s9169_s3 + $0x20] sm:$0xff]  }
  0x27   : > { %v2399_v18 = vrot.slane %v2397_v11, 4  ;;  %6273 = vmatprep.mubr.bf16.mxu0 %v5534_v13  ;;  %v2414_v55 = vrot.slane %v2413_v44, 4  ;;  %v2426_v2 = vrot.slane %v2424_v58, 5  ;;  %v2434_v5 = vshrl.u32 %v7249_v46, 16  ;;  %v549_v13 = vld [vmem:[%s7153_s24 + $0x2c] sm:$0x1] }
  0x28   : > { %6078 = vmatpush3.bf16.msra.mxu1 %v6806_v25  ;;  %v545_v25 = vld [vmem:[%s7153_s24 + $0x1c] sm:$0xf]  ;;  %v644_v59 = vor.u32 %v643_v48, %v640_v45  ;;  %v2432_v12 = vrot.slane %v2430_v63, 5  ;;  %v2440_v16 = vshll.u32 %v7255_v52, 16  ;;  %v662_v17 = vshrl.u32 %v547_v53, 16 }
  0x29   : > { %6270 = vmatpush3.bf16.msra.mxu0 %v6807_v30  ;;  %6079 = vmatprep.subr.bf16.mxu1 %v6808_v36  ;;  %v2403_v30 = vor.u32 %v2402_v19, %v2399_v18  ;;  %v647_v39 = vshll.u32 %v545_v25, 16  ;;  %v651_v50 = vshrl.u32 %v545_v25, 16  ;;  %v2427_v14 = vor.u32 %v2426_v2, %v2423_v1  ;;  %v7276_v18 = vld [vmem:[%s7165_s6 + $0x24] sm:$0xf]  ;;  %v6815_v63 = vld [vmem:[%s9169_s3 + $0x158] sm:$0xff]  }
  0x2a   : > { %6271 = vmatprep.subr.bf16.mxu0 %v6809_v51  ;;  %v645_v10 = vrot.slane %v644_v59, 4  ;;  %v2436_v15 = vrot.slane %v2434_v5, 4  ;;  %v665_v22 = vshll.u32 %v547_v53, 16  ;;  %v671_v25 = vshll.u32 %v548_v6, 16 }
  0x2b   : > { %v2404_v43 = vrot.slane %v2403_v30, 4  ;;  %v649_v49 = vrot.slane %v647_v39, 5  ;;  %v653_v60 = vrot.slane %v651_v50, 4  ;;  %v2428_v27 = vrot.slane %v2427_v14, 4 }
  0x2c   : > { %6080 = vmatpush3.bf16.msra.mxu1 %v6808_v36  ;;  %v2418_v36 = vrot.slane %v2416_v28, 5  ;;  %v2437_v28 = vor.u32 %v2436_v15, %v2432_v12  ;;  %v2442_v30 = vrot.slane %v2440_v16, 5  ;;  %v667_v34 = vrot.slane %v665_v22, 5 }
  0x2d   : > { %6272 = vmatpush3.bf16.msra.mxu0 %v6809_v51  ;;  %6113 = vmatprep.subr.bf16.mxu1 %v6810_v3  ;;  %v657_v51 = vshll.u32 %v546_v33, 16  ;;  %v2409_v54 = vsel %vm7195_vm2, %v2404_v43, %v2408_v31  ;;  %v654_v11 = vor.u32 %v653_v60, %v649_v49  ;;  %v650_v19 = vsel %vm7195_vm2, %v645_v10, %v649_v49 }
  0x2e   : > { %6305 = vmatprep.subr.bf16.mxu0 %v7222_v4  ;;  %v2419_v0 = vsel %vm7195_vm2, %v2414_v55, %v2418_v36  ;;  %v664_v31 = vrot.slane %v662_v17, 4  ;;  %v673_v35 = vrot.slane %v671_v25, 5  ;;  %v675_v36 = vshrl.u32 %v548_v6, 16  ;;  %v550_v55 = vld [vmem:[%s7153_s24 + $0x30] sm:$0xf] }
  0x2f   : > { %6082 = vmatmul.mubr.bf16.vlgmr.msra.gmra.mrb[0].mxu1 %v5423_v42  ;;  %v659_v61 = vrot.slane %v657_v51, 5  ;;  %v5535_v7 = vcombine.low %v2409_v54, %v2419_v0  ;;  %v655_v21 = vrot.slane %v654_v11, 4  ;;  %v2433_v39 = vsel %vm7195_vm2, %v2428_v27, %v2432_v12  ;;  %v551_v0 = vld [vmem:[%s7153_s24 + $0x34] sm:$0xf]  ;;  %v7316_v12 = vld [vmem:[%s7165_s6 + $0x30] sm:$0xf] }
  0x30   : > { %6114 = vmatpush3.bf16.msra.mxu1 %v6810_v3  ;;  %v6816_v3 = vld [vmem:[%s9169_s3 + $0x10] sm:$0xff]   ;;  %v2438_v42 = vrot.slane %v2437_v28, 4  ;;  %v681_v43 = vshll.u32 %v549_v13, 16  ;;  %v668_v44 = vor.u32 %v667_v34, %v664_v31  ;;  %v677_v45 = vrot.slane %v675_v36, 4  ;;  %v6817_v13 = vld [vmem:[%s9169_s3 + $0x160] sm:$0xff]   ;;  %v6824_v28 = vld [vmem:[%s9169_s3 + $0x28] sm:$0xff]  }
  0x31   : > { %6115 = vmatprep.subr.bf16.mxu1 %v6813_v47  ;;  %6274 = vmatmul.mubr.bf16.vlgmr.msra.gmra.mrb[0].mxu0 %v5535_v7  ;;  %v660_v33 = vsel %vm7195_vm2, %v655_v21, %v659_v61  ;;  %v2445_v48 = vshrl.u32 %v7276_v18, 16  ;;  %v2448_v49 = vshll.u32 %v7276_v18, 16  ;;  %v2454_v53 = vshll.u32 %v7281_v26, 16  ;;  %v7330_v34 = vld [vmem:[%s7165_s6 + $0x38] sm:$0x1] }
  0x32   : > { %6306 = vmatpush3.bf16.msra.mxu0 %v7222_v4  ;;  %v6819_v4 = vld [vmem:[%s9169_s3 + $0x18] sm:$0xff]   ;;  %v5424_v38 = vcombine.low %v650_v19, %v660_v33  ;;  %v2443_v50 = vsel %vm7195_vm2, %v2438_v42, %v2442_v30  ;;  %v683_v51 = vrot.slane %v681_v43, 5  ;;  %v2458_v54 = vshrl.u32 %v7281_v26, 16  ;;  %v7322_v19 = vld [vmem:[%s7165_s6 + $0x34] sm:$0xf]  ;;  %v6818_v42 = vld [vmem:[%s9169_s3 + $0x168] sm:$0xff]  }
  0x33   : > { %6307 = vmatprep.subr.bf16.mxu0 %v6812_v9  ;;  %v5536_v58 = vcombine.low %v2433_v39, %v2443_v50  ;;  %v669_v59 = vrot.slane %v668_v44, 4  ;;  %v678_v60 = vor.u32 %v677_v45, %v673_v35  ;;  %v2447_v61 = vrot.slane %v2445_v48, 4  ;;  %v553_v39 = vld [vmem:[%s7153_s24 + $0x3c] sm:$0xf]  ;;  %v6826_v43 = vld [vmem:[%s9169_s3 + $0x30] sm:$0xff]  }
  0x34   : > { %6116 = vmatpush3.bf16.msra.mxu1 %v6813_v47  ;;  %v7295_v47 = vld [vmem:[%s7165_s6 + $0x2c] sm:$0x1]  ;;  %6085 = vmatprep.mubr.bf16.mxu1 %v5424_v38  ;;  %v2450_v1 = vrot.slane %v2448_v49, 5  ;;  %v2456_v2 = vrot.slane %v2454_v53, 5  ;;  %v2460_v5 = vrot.slane %v2458_v54, 4  ;;  %v686_v10 = vshrl.u32 %v550_v55, 16 }
  0x35   : > { %6117 = vmatprep.subr.bf16.mxu1 %v6816_v3  ;;  %v2464_v6 = vshll.u32 %v7295_v47, 16  ;;  %6277 = vmatprep.mubr.bf16.mxu0 %v5536_v58  ;;  %v674_v7 = vsel %vm7195_vm2, %v669_v59, %v673_v35  ;;  %v689_v11 = vshll.u32 %v550_v55, 16  ;;  %v695_v17 = vshll.u32 %v551_v0, 16  ;;  %v554_v50 = vld [vmem:[%s7153_s24 + $0x40] sm:$0xf] }
  0x36   : > { %6308 = vmatpush3.bf16.msra.mxu0 %v6812_v9  ;;  %v679_v9 = vrot.slane %v678_v60, 4  ;;  %v2451_v14 = vor.u32 %v2450_v1, %v2447_v61  ;;  %v2461_v15 = vor.u32 %v2460_v5, %v2456_v2  ;;  %v688_v22 = vrot.slane %v686_v10, 4  ;;  %v555_v1 = vld [vmem:[%s7153_s24 + $0x44] sm:$0x1] }
  0x37   : > { %6309 = vmatprep.subr.bf16.mxu0 %v6814_v32  ;;  %v2466_v16 = vrot.slane %v2464_v6, 5  ;;  %v691_v25 = vrot.slane %v689_v11, 5  ;;  %v699_v27 = vshrl.u32 %v551_v0, 16  ;;  %v2469_v38 = vshrl.u32 %v7316_v12, 16 }
  0x38   : > { %6118 = vmatpush3.bf16.msra.mxu1 %v6816_v3  ;;  %v552_v3 = vld [vmem:[%s7153_s24 + $0x38] sm:$0x1]  ;;  %v684_v21 = vsel %vm7195_vm2, %v679_v9, %v683_v51  ;;  %v2452_v31 = vrot.slane %v2451_v14, 4  ;;  %v2462_v33 = vrot.slane %v2461_v15, 4  ;;  %v2472_v48 = vshll.u32 %v7316_v12, 16 }
  0x39   : > { %6119 = vmatprep.subr.bf16.mxu1 %v6819_v4  ;;  %v5425_v30 = vcombine.low %v674_v7, %v684_v21  ;;  %v692_v35 = vor.u32 %v691_v25, %v688_v22  ;;  %v701_v36 = vrot.slane %v699_v27, 4  ;;  %v2478_v49 = vshll.u32 %v7322_v19, 16  ;;  %v7353_v9 = vld [vmem:[%s7165_s6 + $0x3c] sm:$0xf]  ;;  %v7364_v27 = vld [vmem:[%s7165_s6 + $0x40] sm:$0xf] }
  0x3a   : > { %6310 = vmatpush3.bf16.msra.mxu0 %v6814_v32  ;;  %v697_v32 = vrot.slane %v695_v17, 5  ;;  %v2457_v44 = vsel %vm7195_vm2, %v2452_v31, %v2456_v2  ;;  %v2467_v45 = vsel %vm7195_vm2, %v2462_v33, %v2466_v16  ;;  %v2474_v58 = vrot.slane %v2472_v48, 5  ;;  %v6820_v16 = vld [vmem:[%s9169_s3 + $0x170] sm:$0xff]   ;;  %v6828_v17 = vld [vmem:[%s9169_s3 + $0x38] sm:$0xff]  }
  0x3b   : > { %6311 = vmatprep.subr.bf16.mxu0 %v6815_v63  ;;  %6086 = vmatmul.mubr.bf16.gmra.mrb[4].mxu1 %v5425_v30  ;;  %v5537_v51 = vcombine.low %v2457_v44, %v2467_v45  ;;  %v693_v53 = vrot.slane %v692_v35, 4  ;;  %v2480_v59 = vrot.slane %v2478_v49, 5  ;;  %v2482_v60 = vshrl.u32 %v7322_v19, 16  ;;  %v556_v44 = vld [vmem:[%s7153_s24 + $0x48] sm:$0xf] }
  0x3c   : > { %6120 = vmatpush3.bf16.msra.mxu1 %v6819_v4  ;;  %v705_v4 = vshll.u32 %v552_v3, 16  ;;  %v702_v54 = vor.u32 %v701_v36, %v697_v32  ;;  %v2488_v0 = vshll.u32 %v7330_v34, 16  ;;  %v710_v2 = vshrl.u32 %v553_v39, 16 }
  0x3d   : > { %6121 = vmatprep.subr.bf16.mxu1 %v6822_v56  ;;  %6278 = vmatmul.mubr.bf16.gmra.mrb[4].mxu0 %v5537_v51  ;;  %v698_v61 = vsel %vm7195_vm2, %v693_v53, %v697_v32  ;;  %v2484_v6 = vrot.slane %v2482_v60, 4  ;;  %v713_v3 = vshll.u32 %v553_v39, 16  ;;  %v719_v7 = vshll.u32 %v554_v50, 16  ;;  %v7370_v32 = vld [vmem:[%s9169_s3 + $0x80] sm:$0xff]   ;;  %v6821_v51 = vld [vmem:[%s9169_s3 + $0x178] sm:$0xff]  }
  0x3e   : > { %6312 = vmatpush3.bf16.msra.mxu0 %v6815_v63  ;;  %v707_v55 = vrot.slane %v705_v4, 5  ;;  %v703_v63 = vrot.slane %v702_v54, 4  ;;  %v2490_v11 = vrot.slane %v2488_v0, 5  ;;  %v712_v14 = vrot.slane %v710_v2, 4 }
  0x3f   : > { %6313 = vmatprep.subr.bf16.mxu0 %v6817_v13  ;;  %v723_v15 = vshrl.u32 %v554_v50, 16  ;;  %v715_v25 = vrot.slane %v713_v3, 5  ;;  %v729_v31 = vshll.u32 %v555_v1, 16  ;;  %v2493_v33 = vshrl.u32 %v7353_v9, 16  ;;  %v557_v50 = vld [vmem:[%s7153_s24 + $0x4c] sm:$0xf] }
  0x40   : > { %6122 = vmatpush3.bf16.msra.mxu1 %v6822_v56  ;;  %v2471_v56 = vrot.slane %v2469_v38, 4  ;;  %v708_v10 = vsel %vm7195_vm2, %v703_v63, %v707_v55  ;;  %v7375_v38 = vld [vmem:[%s7165_s6 + $0x44] sm:$0x1]  ;;  %v2496_v39 = vshll.u32 %v7353_v9, 16  ;;  %v2502_v49 = vshll.u32 %v7364_v27, 16 }
  0x41   : > { %6123 = vmatprep.subr.bf16.mxu1 %v6824_v28  ;;  %v5426_v21 = vcombine.low %v698_v61, %v708_v10  ;;  %v725_v30 = vrot.slane %v723_v15, 4  ;;  %v716_v4 = vor.u32 %v715_v25, %v712_v14  ;;  %v731_v48 = vrot.slane %v729_v31, 5  ;;  %v558_v1 = vld [vmem:[%s7153_s24 + $0x50] sm:$0x1]  ;;  %v7403_v14 = vld [vmem:[%s9169_s3 + $0x180] sm:$0xff]  }
  0x42   : > { %v2475_v5 = vor.u32 %v2474_v58, %v2471_v56  ;;  %6314 = vmatpush3.bf16.msra.mxu0 %v6817_v13  ;;  %v2485_v13 = vor.u32 %v2484_v6, %v2480_v59  ;;  %v2506_v55 = vshrl.u32 %v7364_v27, 16  ;;  %v2512_v60 = vshll.u32 %v7375_v38, 16 }
  0x43   : > { %6315 = vmatprep.subr.bf16.mxu0 %v6818_v42  ;;  %6089 = vmatprep.mubr.bf16.mxu1 %v5426_v21  ;;  %v717_v54 = vrot.slane %v716_v4, 4  ;;  %v734_v2 = vshrl.u32 %v556_v44, 16  ;;  %v743_v10 = vshll.u32 %v557_v50, 16  ;;  %v747_v25 = vshrl.u32 %v557_v50, 16 }
  0x44   : > { %6124 = vmatpush3.bf16.msra.mxu1 %v6824_v28  ;;  %v2476_v22 = vrot.slane %v2475_v5, 4  ;;  %v721_v28 = vrot.slane %v719_v7, 5  ;;  %v2486_v36 = vrot.slane %v2485_v13, 4  ;;  %v2508_v0 = vrot.slane %v2506_v55, 4  ;;  %v7392_v5 = vld [vmem:[%s7165_s6 + $0x48] sm:$0xf] }
  0x45   : > { %6125 = vmatprep.subr.bf16.mxu1 %v6826_v43  ;;  %v2514_v3 = vrot.slane %v2512_v60, 5  ;;  %v737_v7 = vshll.u32 %v556_v44, 16  ;;  %v736_v21 = vrot.slane %v734_v2, 4  ;;  %v745_v13 = vrot.slane %v743_v10, 5 }
  0x46   : > { %v2481_v35 = vsel %vm7195_vm2, %v2476_v22, %v2480_v59  ;;  %6316 = vmatpush3.bf16.msra.mxu0 %v6818_v42  ;;  %v726_v45 = vor.u32 %v725_v30, %v721_v28  ;;  %v2491_v53 = vsel %vm7195_vm2, %v2486_v36, %v2490_v11  ;;  %v2498_v42 = vrot.slane %v2496_v39, 5  ;;  %v7398_v11 = vld [vmem:[%s7165_s6 + $0x4c] sm:$0xf]  ;;  %v7406_v30 = vld [vmem:[%s7165_s6 + $0x50] sm:$0x1] }
  0x47   : > { %6317 = vmatprep.subr.bf16.mxu0 %v6820_v16  ;;  %v5538_v56 = vcombine.low %v2481_v35, %v2491_v53  ;;  %v2504_v59 = vrot.slane %v2502_v49, 5  ;;  %v722_v61 = vsel %vm7195_vm2, %v717_v54, %v721_v28  ;;  %v739_v22 = vrot.slane %v737_v7, 5  ;;  %v7421_v54 = vld [vmem:[%s7153_s24 + $0x58] sm:$0xf] }
  0x48   : > { %6126 = vmatpush3.bf16.msra.mxu1 %v6826_v43  ;;  %v2495_v43 = vrot.slane %v2493_v33, 4  ;;  %v727_v58 = vrot.slane %v726_v45, 4  ;;  %v753_v28 = vshll.u32 %v558_v1, 16  ;;  %v2517_v35 = vshrl.u32 %v7392_v5, 16  ;;  %v7434_v7 = vld [vmem:[%s7165_s6 + $0x58] sm:$0xf] }
  0x49   : > { %6127 = vmatprep.subr.bf16.mxu1 %v6828_v17  ;;  %6281 = vmatprep.mubr.bf16.mxu0 %v5538_v56  ;;  %v2520_v36 = vshll.u32 %v7392_v5, 16  ;;  %v740_v4 = vor.u32 %v739_v22, %v736_v21  ;;  %v749_v39 = vrot.slane %v747_v25, 4  ;;  %v2526_v45 = vshll.u32 %v7398_v11, 16 }
  0x4a   : > { %v2499_v63 = vor.u32 %v2498_v42, %v2495_v43  ;;  %6318 = vmatpush3.bf16.msra.mxu0 %v6820_v16  ;;  %v732_v6 = vsel %vm7195_vm2, %v727_v58, %v731_v48  ;;  %v755_v44 = vrot.slane %v753_v28, 5  ;;  %v7414_v48 = vld [vmem:[%s7153_s24 + $0x54] sm:$0xf]  ;;  %v2519_v49 = vrot.slane %v2517_v35, 4  ;;  %v561_v58 = vld [vmem:[%s7153_s24 + $0x5c] sm:$0x1] }
  0x4b   : > { %6319 = vmatprep.subr.bf16.mxu0 %v6821_v51  ;;  %v5427_v15 = vcombine.low %v722_v61, %v732_v6  ;;  %v2522_v50 = vrot.slane %v2520_v36, 5  ;;  %v2530_v53 = vshrl.u32 %v7398_v11, 16  ;;  %v741_v42 = vrot.slane %v740_v4, 4 }
  0x4c   : > { %6128 = vmatpush3.bf16.msra.mxu1 %v6828_v17  ;;  %v2500_v16 = vrot.slane %v2499_v63, 4  ;;  %v2509_v17 = vor.u32 %v2508_v0, %v2504_v59  ;;  %v750_v55 = vor.u32 %v749_v39, %v745_v13  ;;  %v2528_v56 = vrot.slane %v2526_v45, 5  ;;  %v7427_v0 = vld [vmem:[%s7165_s6 + $0x54] sm:$0xf]  ;;  %v7442_v39 = vld [vmem:[%s7165_s6 + $0x5c] sm:$0x1] }
  0x4d   : > { %6161 = vmatprep.subr.bf16.mxu1 %v7370_v32  ;;  %6090 = vmatmul.mubr.bf16.gmra.mrb[8].mxu1 %v5427_v15  ;;  %v2532_v60 = vrot.slane %v2530_v53, 4  ;;  %v2536_v61 = vshll.u32 %v7406_v30, 16  ;;  %v758_v63 = vshrl.u32 %v7414_v48, 16  ;;  %v746_v1 = vsel %vm7195_vm2, %v741_v42, %v745_v13 }
  0x4e   : > { %v2505_v31 = vsel %vm7195_vm2, %v2500_v16, %v2504_v59  ;;  %v2510_v33 = vrot.slane %v2509_v17, 4  ;;  %6320 = vmatpush3.bf16.msra.mxu0 %v6821_v51  ;;  %v2523_v59 = vor.u32 %v2522_v50, %v2519_v49  ;;  %v751_v2 = vrot.slane %v750_v55, 4 }
  0x4f   : > { %6353 = vmatprep.subr.bf16.mxu0 %v7403_v14  ;;  %v761_v6 = vshll.u32 %v7414_v48, 16  ;;  %v2533_v15 = vor.u32 %v2532_v60, %v2528_v56  ;;  %v2538_v16 = vrot.slane %v2536_v61, 5  ;;  %v760_v17 = vrot.slane %v758_v63, 4 }
  0x50   : > { %v2515_v43 = vsel %vm7195_vm2, %v2510_v33, %v2514_v3  ;;  %v767_v3 = vshll.u32 %v7421_v54, 16  ;;  %v2524_v10 = vrot.slane %v2523_v59, 4  ;;  %v756_v21 = vsel %vm7195_vm2, %v751_v2, %v755_v44  ;;  %v7454_v59 = vld [vmem:[%s7153_s24 + $0x64] sm:$0xf]  ;;  %v564_v2 = vld [vmem:[%s7153_s24 + $0x68] sm:$0x1] }
  0x51   : > { %v5539_v51 = vcombine.low %v2505_v31, %v2515_v43  ;;  %v763_v22 = vrot.slane %v761_v6, 5  ;;  %v771_v13 = vshrl.u32 %v7421_v54, 16  ;;  %v5428_v28 = vcombine.low %v746_v1, %v756_v21 }
  0x52   : > { %v769_v25 = vrot.slane %v767_v3, 5  ;;  %v2529_v31 = vsel %vm7195_vm2, %v2524_v10, %v2528_v56  ;;  %v2534_v33 = vrot.slane %v2533_v15, 4  ;;  %v777_v35 = vshll.u32 %v561_v58, 16 }
  0x53   : > { %6282 = vmatmul.mubr.bf16.gmra.mrb[8].mxu0 %v5539_v51  ;;  %v764_v36 = vor.u32 %v763_v22, %v760_v17  ;;  %v773_v4 = vrot.slane %v771_v13, 4  ;;  %v2541_v45 = vshrl.u32 %v7427_v0, 16  ;;  %v2544_v44 = vshll.u32 %v7427_v0, 16  ;;  %6093 = vmatprep.mubr.bf16.mxu1 %v5428_v28  ;;  %v7451_v51 = vld [vmem:[%s7153_s24 + $0x60] sm:$0xf] }
  0x54   : > { %v2539_v43 = vsel %vm7195_vm2, %v2534_v33, %v2538_v16  ;;  %v779_v49 = vrot.slane %v777_v35, 5  ;;  %v2550_v50 = vshll.u32 %v7434_v7, 16  ;;  %v2554_v53 = vshrl.u32 %v7434_v7, 16  ;;  %v7463_v16 = vld [vmem:[%s7153_s24 + $0x6c] sm:$0xf] }
  0x55   : > { %v5540_v42 = vcombine.low %v2529_v31, %v2539_v43  ;;  %v765_v55 = vrot.slane %v764_v36, 4  ;;  %v774_v56 = vor.u32 %v773_v4, %v769_v25  ;;  %v2543_v58 = vrot.slane %v2541_v45, 4 }
  0x56   : > { %v2546_v60 = vrot.slane %v2544_v44, 5  ;;  %v2552_v61 = vrot.slane %v2550_v50, 5  ;;  %v2556_v63 = vrot.slane %v2554_v53, 4  ;;  %v2560_v1 = vshll.u32 %v7442_v39, 16 }
  0x57   : > { %6285 = vmatprep.mubr.bf16.mxu0 %v5540_v42  ;;  %v770_v6 = vsel %vm7195_vm2, %v765_v55, %v769_v25  ;;  %v775_v3 = vrot.slane %v774_v56, 4  ;;  %v782_v10 = vshrl.u32 %v7451_v51, 16  ;;  %v785_v15 = vshll.u32 %v7451_v51, 16 }
  0x58   : > { %v2547_v17 = vor.u32 %v2546_v60, %v2543_v58  ;;  %v2557_v21 = vor.u32 %v2556_v63, %v2552_v61  ;;  %v2562_v22 = vrot.slane %v2560_v1, 5  ;;  %v791_v13 = vshll.u32 %v7454_v59, 16  ;;  %v7482_v58 = vld [vmem:[%s7153_s24 + $0x70] sm:$0xf] }
  0x59   : > { %v780_v28 = vsel %vm7195_vm2, %v775_v3, %v779_v49  ;;  %v784_v31 = vrot.slane %v782_v10, 4  ;;  %v787_v33 = vrot.slane %v785_v15, 5  ;;  %v795_v25 = vshrl.u32 %v7454_v59, 16 }
  0x5a   : > { %v5429_v35 = vcombine.low %v770_v6, %v780_v28  ;;  %v2548_v36 = vrot.slane %v2547_v17, 4  ;;  %v2558_v4 = vrot.slane %v2557_v21, 4  ;;  %v793_v45 = vrot.slane %v791_v13, 5  ;;  %v7490_v17 = vld [vmem:[%s7153_s24 + $0x78] sm:$0xf] }
  0x5b   : > { %v788_v44 = vor.u32 %v787_v33, %v784_v31  ;;  %v797_v43 = vrot.slane %v795_v25, 4  ;;  %v801_v50 = vshll.u32 %v564_v2, 16  ;;  %v5558_v49 = vrot.slane %v7171_v20, 9  ;;  %v567_v20 = vld [vmem:[%s7153_s24 + $0x74] sm:$0x1] }
  0x5c   : > { %6094 = vmatmul.mubr.bf16.gmra.mrb[12].mxu1 %v5429_v35  ;;  %v2553_v42 = vsel %vm7195_vm2, %v2548_v36, %v2552_v61  ;;  %v2563_v55 = vsel %vm7195_vm2, %v2558_v4, %v2562_v22  ;;  %v3079_v56 = vrot.slane %v7174_v23, 5  ;;  %v806_v60 = vshrl.u32 %v7463_v16, 16  ;;  %v7493_v21 = vld [vmem:[%s7153_s24 + $0x7c] sm:$0xf] }
  0x5d   : > { %v5541_v63 = vcombine.low %v2553_v42, %v2563_v55  ;;  %v789_v1 = vrot.slane %v788_v44, 4  ;;  %v798_v2 = vor.u32 %v797_v43, %v793_v45  ;;  %v803_v6 = vrot.slane %v801_v50, 5  ;;  %v570_v55 = vld [vmem:[%s7153_s24 + $0x80] sm:$0x1] }
  0x5e   : > { %v3080_v3 = vsel %vm7471_vm5, %v5558_v49, %v3079_v56  ;;  %v3081_v10 = vrot.slane %v3079_v56, 4  ;;  %v808_v15 = vrot.slane %v806_v60, 4  ;;  %v809_v61 = vshll.u32 %v7463_v16, 16 }
  0x5f   : > { %6286 = vmatmul.mubr.bf16.gmra.mrb[12].mxu0 %v5541_v63  ;;  %v794_v23 = vsel %vm7195_vm2, %v789_v1, %v793_v45  ;;  %v799_v22 = vrot.slane %v798_v2, 4  ;;  %v815_v13 = vshll.u32 %v7482_v58, 16  ;;  %v819_v28 = vshrl.u32 %v7482_v58, 16 }
  0x60   : > { %v3083_v31 = vsel %vm7471_vm5, %v3081_v10, %v3082_v41  ;;  %v811_v33 = vrot.slane %v809_v61, 5  ;;  %v825_v25 = vshll.u32 %v567_v20, 16  ;;  %v5559_v35 = vrot.slane %v7209_v57, 9  ;;  %v7515_v10 = vld [vmem:[%s7153_s24 + $0x84] sm:$0xf] }
  0x61   : > { %v804_v36 = vsel %vm7195_vm2, %v799_v22, %v803_v6  ;;  %v5574_v4 = vcombine.low %v3080_v3, %v3083_v31  ;;  %v817_v45 = vrot.slane %v815_v13, 5  ;;  %v821_v44 = vrot.slane %v819_v28, 4  ;;  %v7524_v13 = vld [vmem:[%s7153_s24 + $0x88] sm:$0xf] }
  0x62   : > { %v5430_v43 = vcombine.low %v794_v23, %v804_v36  ;;  %v812_v50 = vor.u32 %v811_v33, %v808_v15  ;;  %v827_v49 = vrot.slane %v825_v25, 5  ;;  %v3086_v42 = vrot.slane %v7214_v62, 5 }
  0x63   : > { %6321 = vmatprep.mubr.bf16.mxu0 %v5574_v4  ;;  %v822_v24 = vor.u32 %v821_v44, %v817_v45  ;;  %v830_v41 = vshrl.u32 %v7490_v17, 16  ;;  %v833_v56 = vshll.u32 %v7490_v17, 16  ;;  %v839_v57 = vshll.u32 %v7493_v21, 16 }
  0x64   : > { %6097 = vmatprep.mubr.bf16.mxu1 %v5430_v43  ;;  %v813_v60 = vrot.slane %v812_v50, 4  ;;  %v3087_v63 = vsel %vm7471_vm5, %v5559_v35, %v3086_v42  ;;  %v3088_v1 = vrot.slane %v3086_v42, 4  ;;  %v843_v2 = vshrl.u32 %v7493_v21, 16  ;;  %v6825_v35 = vld [vmem:[%s9169_s3 + $0x188] sm:$0xff]  }
  0x65   : > { %v823_v62 = vrot.slane %v822_v24, 4  ;;  %v832_v6 = vrot.slane %v830_v41, 4  ;;  %v835_v20 = vrot.slane %v833_v56, 5  ;;  %v841_v3 = vrot.slane %v839_v57, 5  ;;  %v573_v43 = vld [vmem:[%s7153_s24 + $0x8c] sm:$0x1] }
  0x66   : > { %v818_v15 = vsel %vm7195_vm2, %v813_v60, %v817_v45  ;;  %v3090_v61 = vsel %vm7471_vm5, %v3088_v1, %v3089_v29  ;;  %v845_v23 = vrot.slane %v843_v2, 4  ;;  %v849_v22 = vshll.u32 %v570_v55, 16  ;;  %v7552_v2 = vld [vmem:[%s7153_s24 + $0x90] sm:$0xf] }
  0x67   : > { %v828_v28 = vsel %vm7195_vm2, %v823_v62, %v827_v49  ;;  %v5575_v31 = vcombine.low %v3087_v63, %v3090_v61  ;;  %v836_v33 = vor.u32 %v835_v20, %v832_v6  ;;  %v5560_v25 = vrot.slane %v7246_v40, 9  ;;  %v576_v61 = vld [vmem:[%s7153_s24 + $0x98] sm:$0x1] }
  0x68   : > { %v5431_v8 = vcombine.low %v818_v15, %v828_v28  ;;  %v846_v36 = vor.u32 %v845_v23, %v841_v3  ;;  %v851_v4 = vrot.slane %v849_v22, 5  ;;  %v3093_v29 = vrot.slane %v7249_v46, 5  ;;  %v7555_v15 = vld [vmem:[%s7153_s24 + $0x94] sm:$0xf] }
  0x69   : > { %6322 = vmatmul.mubr.bf16.vlgmr.msra.gmra.mrb[0].mxu0 %v5575_v31  ;;  %v837_v45 = vrot.slane %v836_v33, 4  ;;  %v3096_v44 = vrot.slane %v7255_v52, 5  ;;  %v854_v50 = vshrl.u32 %v7515_v10, 16  ;;  %v857_v49 = vshll.u32 %v7515_v10, 16 }
  0x6a   : > { %6098 = vmatmul.mubr.bf16.gmra.mrb[16].mxu1 %v5431_v8  ;;  %6354 = vmatpush3.bf16.msra.mxu0 %v7403_v14  ;;  %v847_v40 = vrot.slane %v846_v36, 4  ;;  %v3094_v42 = vsel %vm7471_vm5, %v5560_v25, %v3093_v29  ;;  %v3095_v24 = vrot.slane %v3093_v29, 4  ;;  %v863_v46 = vshll.u32 %v7524_v13, 16  ;;  %v6827_v14 = vld [vmem:[%s9169_s3 + $0x190] sm:$0xff]  }
  0x6b   : > { %v842_v52 = vsel %vm7195_vm2, %v837_v45, %v841_v3  ;;  %v856_v55 = vrot.slane %v854_v50, 4  ;;  %v859_v41 = vrot.slane %v857_v49, 5  ;;  %v867_v56 = vshrl.u32 %v7524_v13, 16  ;;  %6355 = vmatprep.subr.bf16.mxu0 %v6825_v35  ;;  %v7573_v50 = vld [vmem:[%s7153_s24 + $0x9c] sm:$0xf] }
  0x6c   : > { %v852_v57 = vsel %vm7195_vm2, %v847_v40, %v851_v4  ;;  %v3097_v60 = vsel %vm7471_vm5, %v3095_v24, %v3096_v44  ;;  %v865_v63 = vrot.slane %v863_v46, 5  ;;  %v873_v1 = vshll.u32 %v573_v43, 16  ;;  %v6829_v4 = vld [vmem:[%s9169_s3 + $0x198] sm:$0xff]   ;;  %v7578_v46 = vld [vmem:[%s7153_s24 + $0xa0] sm:$0xf] }
  0x6d   : > { %v5432_v62 = vcombine.low %v842_v52, %v852_v57  ;;  %v5576_v6 = vcombine.low %v3094_v42, %v3097_v60  ;;  %v860_v20 = vor.u32 %v859_v41, %v856_v55  ;;  %v869_v3 = vrot.slane %v867_v56, 4  ;;  %v6833_v57 = vld [vmem:[%s9169_s3 + $0x1a0] sm:$0xff]  }
  0x6e   : > { %v875_v23 = vrot.slane %v873_v1, 5  ;;  %v5561_v22 = vrot.slane %v7276_v18, 9  ;;  %v3100_v28 = vrot.slane %v7281_v26, 5  ;;  %v3103_v31 = vrot.slane %v7295_v47, 5  ;;  %6356 = vmatpush3.bf16.msra.mxu0 %v6825_v35 }
  0x6f   : > { %6101 = vmatprep.mubr.bf16.mxu1 %v5432_v62  ;;  %6325 = vmatprep.mubr.bf16.mxu0 %v5576_v6  ;;  %v861_v33 = vrot.slane %v860_v20, 4  ;;  %v870_v25 = vor.u32 %v869_v3, %v865_v63  ;;  %v878_v8 = vshrl.u32 %v7552_v2, 16  ;;  %v881_v36 = vshll.u32 %v7552_v2, 16  ;;  %v579_v20 = vld [vmem:[%s7153_s24 + $0xa4] sm:$0x1] }
  0x70   : > { %v3101_v18 = vsel %vm7471_vm5, %v5561_v22, %v3100_v28  ;;  %v3102_v26 = vrot.slane %v3100_v28, 4  ;;  %v887_v47 = vshll.u32 %v7555_v15, 16  ;;  %v891_v35 = vshrl.u32 %v7555_v15, 16  ;;  %6357 = vmatprep.subr.bf16.mxu0 %v6827_v14 }
  0x71   : > { %v866_v29 = vsel %vm7195_vm2, %v861_v33, %v865_v63  ;;  %v871_v45 = vrot.slane %v870_v25, 4  ;;  %v880_v44 = vrot.slane %v878_v8, 4  ;;  %v883_v43 = vrot.slane %v881_v36, 5 }
  0x72   : > { %v3104_v49 = vsel %vm7471_vm5, %v3102_v26, %v3103_v31  ;;  %v889_v40 = vrot.slane %v887_v47, 5  ;;  %v893_v42 = vrot.slane %v891_v35, 4  ;;  %v897_v24 = vshll.u32 %v576_v61, 16  ;;  %6358 = vmatpush3.bf16.msra.mxu0 %v6827_v14  ;;  %v7602_v26 = vld [vmem:[%s7153_s24 + $0xa8] sm:$0xf] }
  0x73   : > { %v876_v52 = vsel %vm7195_vm2, %v871_v45, %v875_v23  ;;  %v5577_v55 = vcombine.low %v3101_v18, %v3104_v49  ;;  %v884_v41 = vor.u32 %v883_v43, %v880_v44  ;;  %v5562_v56 = vrot.slane %v7316_v12, 9  ;;  %6359 = vmatprep.subr.bf16.mxu0 %v6829_v4  ;;  %v7608_v44 = vld [vmem:[%s7153_s24 + $0xac] sm:$0xf] }
  0x74   : > { %v5433_v60 = vcombine.low %v866_v29, %v876_v52  ;;  %v894_v63 = vor.u32 %v893_v42, %v889_v40  ;;  %v899_v1 = vrot.slane %v897_v24, 5  ;;  %v3107_v62 = vrot.slane %v7322_v19, 5 }
  0x75   : > { %6326 = vmatmul.mubr.bf16.gmra.mrb[4].mxu0 %v5577_v55  ;;  %v885_v6 = vrot.slane %v884_v41, 4  ;;  %v3110_v14 = vrot.slane %v7330_v34, 5  ;;  %v902_v3 = vshrl.u32 %v7573_v50, 16  ;;  %v905_v61 = vshll.u32 %v7573_v50, 16  ;;  %v582_v55 = vld [vmem:[%s7153_s24 + $0xb0] sm:$0x1] }
  0x76   : > { %6102 = vmatmul.mubr.bf16.gmra.mrb[20].mxu1 %v5433_v60  ;;  %v895_v12 = vrot.slane %v894_v63, 4  ;;  %v3108_v23 = vsel %vm7471_vm5, %v5562_v56, %v3107_v62  ;;  %v3109_v22 = vrot.slane %v3107_v62, 4  ;;  %v911_v28 = vshll.u32 %v7578_v46, 16  ;;  %6360 = vmatpush3.bf16.msra.mxu0 %v6829_v4  ;;  %v6837_v4 = vld [vmem:[%s9169_s3 + $0x1a8] sm:$0xff]   ;;  %v6841_v60 = vld [vmem:[%s9169_s3 + $0x1b0] sm:$0xff]  }
  0x77   : > { %v890_v19 = vsel %vm7195_vm2, %v885_v6, %v889_v40  ;;  %v904_v34 = vrot.slane %v902_v3, 4  ;;  %v907_v31 = vrot.slane %v905_v61, 5  ;;  %v915_v33 = vshrl.u32 %v7578_v46, 16  ;;  %6361 = vmatprep.subr.bf16.mxu0 %v6833_v57 }
  0x78   : > { %v900_v25 = vsel %vm7195_vm2, %v895_v12, %v899_v1  ;;  %v3111_v8 = vsel %vm7471_vm5, %v3109_v22, %v3110_v14  ;;  %v913_v36 = vrot.slane %v911_v28, 5  ;;  %v921_v18 = vshll.u32 %v579_v20, 16  ;;  %v7626_v14 = vld [vmem:[%s7153_s24 + $0xb4] sm:$0xf] }
  0x79   : > { %v5434_v47 = vcombine.low %v890_v19, %v900_v25  ;;  %v5578_v35 = vcombine.low %v3108_v23, %v3111_v8  ;;  %v908_v29 = vor.u32 %v907_v31, %v904_v34  ;;  %v917_v45 = vrot.slane %v915_v33, 4  ;;  %v7634_v34 = vld [vmem:[%s7153_s24 + $0xb8] sm:$0xf] }
  0x7a   : > { %v923_v43 = vrot.slane %v921_v18, 5  ;;  %v5563_v49 = vrot.slane %v7353_v9, 9  ;;  %v3114_v40 = vrot.slane %v7364_v27, 5  ;;  %v3117_v42 = vrot.slane %v7375_v38, 5  ;;  %6362 = vmatpush3.bf16.msra.mxu0 %v6833_v57  ;;  %v6845_v31 = vld [vmem:[%s9169_s3 + $0x1b8] sm:$0xff]  }
  0x7b   : > { %6105 = vmatprep.mubr.bf16.mxu1 %v5434_v47  ;;  %6329 = vmatprep.mubr.bf16.mxu0 %v5578_v35  ;;  %v909_v24 = vrot.slane %v908_v29, 4  ;;  %v918_v52 = vor.u32 %v917_v45, %v913_v36  ;;  %v926_v41 = vshrl.u32 %v7602_v26, 16  ;;  %v929_v56 = vshll.u32 %v7602_v26, 16  ;;  %v585_v18 = vld [vmem:[%s7153_s24 + $0xbc] sm:$0x1] }
  0x7c   : > { %v3115_v9 = vsel %vm7471_vm5, %v5563_v49, %v3114_v40  ;;  %v3116_v27 = vrot.slane %v3114_v40, 4  ;;  %v935_v38 = vshll.u32 %v7608_v44, 16  ;;  %v939_v57 = vshrl.u32 %v7608_v44, 16  ;;  %6363 = vmatprep.subr.bf16.mxu0 %v6837_v4 }
  0x7d   : > { %v914_v63 = vsel %vm7195_vm2, %v909_v24, %v913_v36  ;;  %v919_v1 = vrot.slane %v918_v52, 4  ;;  %v928_v62 = vrot.slane %v926_v41, 4  ;;  %v931_v6 = vrot.slane %v929_v56, 5  ;;  %v2011_v24 = vld [vmem:[%s7165_s6 + $0x60] sm:$0xf] }
  0x7e   : > { %v3118_v20 = vsel %vm7471_vm5, %v3116_v27, %v3117_v42  ;;  %v937_v3 = vrot.slane %v935_v38, 5  ;;  %v941_v61 = vrot.slane %v939_v57, 4  ;;  %v945_v12 = vshll.u32 %v582_v55, 16  ;;  %6364 = vmatpush3.bf16.msra.mxu0 %v6837_v4  ;;  %v7654_v52 = vld [vmem:[%s9169_s3 + $0x1c0] sm:$0xff]   ;;  %v2013_v27 = vld [vmem:[%s7165_s6 + $0x68] sm:$0x1] }
  0x7f   : > { %v924_v23 = vsel %vm7195_vm2, %v919_v1, %v923_v43  ;;  %v5579_v22 = vcombine.low %v3115_v9, %v3118_v20  ;;  %v932_v28 = vor.u32 %v931_v6, %v928_v62  ;;  %v5564_v19 = vrot.slane %v7392_v5, 9  ;;  %6365 = vmatprep.subr.bf16.mxu0 %v6841_v60  ;;  %v2012_v9 = vld [vmem:[%s7165_s6 + $0x64] sm:$0xf] }
  0x80   : > { %v5435_v33 = vcombine.low %v914_v63, %v924_v23  ;;  %v942_v25 = vor.u32 %v941_v61, %v937_v3  ;;  %v947_v8 = vrot.slane %v945_v12, 5  ;;  %v3121_v36 = vrot.slane %v7398_v11, 5 }
  0x81   : > { %6330 = vmatmul.mubr.bf16.gmra.mrb[8].mxu0 %v5579_v22  ;;  %v933_v4 = vrot.slane %v932_v28, 4  ;;  %v3124_v47 = vrot.slane %v7406_v30, 5  ;;  %v950_v5 = vshrl.u32 %v7626_v14, 16  ;;  %v953_v35 = vshll.u32 %v7626_v14, 16 }
  0x82   : > { %6106 = vmatmul.mubr.bf16.gmra.mrb[24].mxu1 %v5435_v33  ;;  %v943_v29 = vrot.slane %v942_v25, 4  ;;  %v3122_v45 = vsel %vm7471_vm5, %v5564_v19, %v3121_v36  ;;  %v3123_v43 = vrot.slane %v3121_v36, 4  ;;  %v959_v11 = vshll.u32 %v7634_v34, 16  ;;  %6366 = vmatpush3.bf16.msra.mxu0 %v6841_v60  ;;  %v2014_v25 = vld [vmem:[%s7165_s6 + $0x6c] sm:$0xf] }
  0x83   : > { %v938_v49 = vsel %vm7195_vm2, %v933_v4, %v937_v3  ;;  %v952_v40 = vrot.slane %v950_v5, 4  ;;  %v955_v30 = vrot.slane %v953_v35, 5  ;;  %v963_v42 = vshrl.u32 %v7634_v34, 16  ;;  %6367 = vmatprep.subr.bf16.mxu0 %v6845_v31  ;;  %v2017_v4 = vld [vmem:[%s7165_s6 + $0x78] sm:$0xf] }
  0x84   : > { %v948_v55 = vsel %vm7195_vm2, %v943_v29, %v947_v8  ;;  %v3125_v41 = vsel %vm7471_vm5, %v3123_v43, %v3124_v47  ;;  %v961_v56 = vrot.slane %v959_v11, 5  ;;  %v969_v60 = vshll.u32 %v585_v18, 16  ;;  %v2015_v8 = vld [vmem:[%s7165_s6 + $0x70] sm:$0xf]  ;;  %v2016_v18 = vld [vmem:[%s7165_s6 + $0x74] sm:$0x1] }
  0x85   : > { %v5436_v38 = vcombine.low %v938_v49, %v948_v55  ;;  %v5580_v57 = vcombine.low %v3122_v45, %v3125_v41  ;;  %v956_v63 = vor.u32 %v955_v30, %v952_v40  ;;  %v965_v1 = vrot.slane %v963_v42, 4  ;;  %v7681_v35 = vld [vmem:[%s7153_s24] sm:$0xf]  ;;  %v7684_v29 = vld [vmem:[%s7153_s24 + $0x4] sm:$0xf] }
  0x86   : > { %v971_v62 = vrot.slane %v969_v60, 5  ;;  %v5565_v6 = vrot.slane %v7427_v0, 9  ;;  %v3128_v20 = vrot.slane %v7434_v7, 5  ;;  %v3131_v3 = vrot.slane %v7442_v39, 5  ;;  %6368 = vmatpush3.bf16.msra.mxu0 %v6845_v31  ;;  %v2018_v11 = vld [vmem:[%s7165_s6 + $0x7c] sm:$0xf] }
  0x87   : > { %6109 = vmatprep.mubr.bf16.mxu1 %v5436_v38  ;;  %6333 = vmatprep.mubr.bf16.mxu0 %v5580_v57  ;;  %v957_v61 = vrot.slane %v956_v63, 4  ;;  %v966_v12 = vor.u32 %v965_v1, %v961_v56  ;;  %v5566_v23 = vrot.slane %v2011_v24, 9  ;;  %v3135_v22 = vrot.slane %v2012_v9, 5  ;;  %v2019_v49 = vld [vmem:[%s7165_s6 + $0x80] sm:$0x1] }
  0x88   : > { %v3129_v28 = vsel %vm7471_vm5, %v5565_v6, %v3128_v20  ;;  %v3130_v0 = vrot.slane %v3128_v20, 4  ;;  %v3138_v7 = vrot.slane %v2013_v27, 5  ;;  %6401 = vmatprep.subr.bf16.mxu0 %v7654_v52  ;;  %v5446_v45 = vcombine.low %v7681_v35, %v7684_v29  ;;  %v2020_v42 = vld [vmem:[%s7165_s6 + $0x84] sm:$0xf]  ;;  %v2021_v24 = vld [vmem:[%s7165_s6 + $0x88] sm:$0xf] }
  0x89   : > { %v962_v39 = vsel %vm7195_vm2, %v957_v61, %v961_v56  ;;  %v967_v19 = vrot.slane %v966_v12, 4  ;;  %v3136_v31 = vsel %vm7471_vm5, %v5566_v23, %v3135_v22  ;;  %v3137_v33 = vrot.slane %v3135_v22, 4  ;;  %v2022_v56 = vld [vmem:[%s7165_s6 + $0x8c] sm:$0x1]  ;;  %v2023_v38 = vld [vmem:[%s7165_s6 + $0x90] sm:$0xf] }
  0x8a   : > { %v3132_v36 = vsel %vm7471_vm5, %v3130_v0, %v3131_v3  ;;  %v5567_v55 = vrot.slane %v2014_v25, 9  ;;  %v3142_v41 = vrot.slane %v2015_v8, 5  ;;  %v3145_v60 = vrot.slane %v2016_v18, 5  ;;  %v2025_v6 = vld [vmem:[%s7165_s6 + $0x98] sm:$0x1] }
  0x8b   : > { %v972_v47 = vsel %vm7195_vm2, %v967_v19, %v971_v62  ;;  %v5581_v5 = vcombine.low %v3129_v28, %v3132_v36  ;;  %v3139_v43 = vsel %vm7471_vm5, %v3137_v33, %v3138_v7  ;;  %v5568_v9 = vrot.slane %v2017_v4, 9  ;;  %v2024_v62 = vld [vmem:[%s7165_s6 + $0x94] sm:$0xf]  ;;  %v7701_v20 = vld [vmem:[%s7153_s24 + $0xc] sm:$0xf] }
  0x8c   : > { %v5437_v40 = vcombine.low %v962_v39, %v972_v47  ;;  %v5582_v30 = vcombine.low %v3136_v31, %v3139_v43  ;;  %v3149_v27 = vrot.slane %v2018_v11, 5  ;;  %v3143_v57 = vsel %vm7471_vm5, %v5567_v55, %v3142_v41  ;;  %v7704_v3 = vld [vmem:[%s7153_s24 + $0x10] sm:$0xf]  ;;  %v7713_v28 = vld [vmem:[%s7153_s24 + $0x18] sm:$0xf]  ;;  %v6836_v43 = vld [vmem:[%s9169_s3 + $0x88] sm:$0xff]  }
  0x8d   : > { %6334 = vmatmul.mubr.bf16.gmra.mrb[12].mxu0 %v5581_v5  ;;  %v3144_v63 = vrot.slane %v3142_v41, 4  ;;  %v3152_v1 = vrot.slane %v2019_v49, 5  ;;  %v5447_v61 = vcombine.low %v7701_v20, %v7704_v3  ;;  %v7716_v0 = vld [vmem:[%s7153_s24 + $0x1c] sm:$0xf]  ;;  %v5569_v39 = vrot.slane %v2020_v42, 9  ;;  %v6840_v41 = vld [vmem:[%s9169_s3 + $0x90] sm:$0xff]  }
  0x8e   : > { %6110 = vmatmul.mubr.bf16.gmra.mrb[28].mxu1 %v5437_v40  ;;  %6337 = vmatprep.mubr.bf16.mxu0 %v5582_v30  ;;  %v3150_v12 = vsel %vm7471_vm5, %v5568_v9, %v3149_v27  ;;  %v3151_v23 = vrot.slane %v3149_v27, 4  ;;  %v5448_v7 = vcombine.low %v7713_v28, %v7716_v0  ;;  %v3156_v19 = vrot.slane %v2021_v24, 5  ;;  %v2027_v31 = vld [vmem:[%s7165_s6 + $0xa0] sm:$0xf]  ;;  %v2026_v49 = vld [vmem:[%s7165_s6 + $0x9c] sm:$0xf] }
  0x8f   : > { %6129 = vmatprep.mubr.bf16.mxu1 %v5446_v45  ;;  %v3146_v22 = vsel %vm7471_vm5, %v3144_v63, %v3145_v60  ;;  %v3159_v8 = vrot.slane %v2022_v56, 5  ;;  %v3163_v36 = vrot.slane %v2024_v62, 5  ;;  %v5570_v47 = vrot.slane %v2023_v38, 9  ;;  %v2030_v45 = vld [vmem:[%s7165_s6 + $0xac] sm:$0xf] }
  0x90   : > { %v5583_v33 = vcombine.low %v3143_v57, %v3146_v22  ;;  %v3153_v25 = vsel %vm7471_vm5, %v3151_v23, %v3152_v1  ;;  %v3158_v4 = vrot.slane %v3156_v19, 4  ;;  %v3166_v5 = vrot.slane %v2025_v6, 5  ;;  %v2028_v56 = vld [vmem:[%s7165_s6 + $0xa4] sm:$0x1]  ;;  %v2029_v60 = vld [vmem:[%s7165_s6 + $0xa8] sm:$0xf] }
  0x91   : > { %v5584_v18 = vcombine.low %v3150_v12, %v3153_v25  ;;  %v3165_v11 = vrot.slane %v3163_v36, 4  ;;  %v3157_v40 = vsel %vm7471_vm5, %v5569_v39, %v3156_v19  ;;  %v3170_v42 = vrot.slane %v2027_v31, 5  ;;  %v2031_v27 = vld [vmem:[%s7165_s6 + $0xb0] sm:$0x1]  ;;  %v7744_v57 = vld [vmem:[%s7153_s24 + $0x24] sm:$0xf] }
  0x92   : > { %v3160_v30 = vsel %vm7471_vm5, %v3158_v4, %v3159_v8  ;;  %v3164_v24 = vsel %vm7471_vm5, %v5570_v47, %v3163_v36  ;;  %v3177_v9 = vrot.slane %v2030_v45, 5  ;;  %v5571_v38 = vrot.slane %v2026_v49, 9  ;;  %v7747_v63 = vld [vmem:[%s7153_s24 + $0x28] sm:$0xf]  ;;  %v7752_v12 = vld [vmem:[%s7153_s24 + $0x30] sm:$0xf] }
  0x93   : > { %v3167_v55 = vsel %vm7471_vm5, %v3165_v11, %v3166_v5  ;;  %v5449_v1 = vcombine.low %v7744_v57, %v7747_v63  ;;  %v3172_v6 = vrot.slane %v3170_v42, 4  ;;  %v7755_v23 = vld [vmem:[%s7153_s24 + $0x34] sm:$0xf]  ;;  %v3180_v19 = vrot.slane %v2031_v27, 5  ;;  %v2033_v31 = vld [vmem:[%s7165_s6 + $0xb8] sm:$0xf] }
  0x94   : > { %v5586_v62 = vcombine.low %v3164_v24, %v3167_v55  ;;  %v5450_v22 = vcombine.low %v7752_v12, %v7755_v23  ;;  %v3179_v39 = vrot.slane %v3177_v9, 4  ;;  %v3171_v25 = vsel %vm7471_vm5, %v5571_v38, %v3170_v42  ;;  %v2032_v47 = vld [vmem:[%s7165_s6 + $0xb4] sm:$0xf]  ;;  %v2034_v5 = vld [vmem:[%s7165_s6 + $0xbc] sm:$0x1]  ;;  %v6849_v45 = vld [vmem:[%s9169_s3 + $0xa0] sm:$0xff]  }
  0x95   : > { %6338 = vmatmul.mubr.bf16.gmra.mrb[16].mxu0 %v5583_v33  ;;  %v6844_v33 = vld [vmem:[%s9169_s3 + $0x98] sm:$0xff]   ;;  %v3184_v36 = vrot.slane %v2033_v31, 5  ;;  %v7780_v11 = vld [vmem:[%s7153_s24 + $0x40] sm:$0xf]  ;;  %v5573_v42 = vrot.slane %v2032_v47, 9  ;;  %v3187_v55 = vrot.slane %v2034_v5, 5 }
  0x96   : > { %6130 = vmatmul.mubr.bf16.vlgmr.msra.gmra.mrb[0].mxu1 %v5447_v61  ;;  %6341 = vmatprep.mubr.bf16.mxu0 %v5584_v18  ;;  %v3173_v61 = vrot.slane %v2028_v56, 5  ;;  %v3181_v4 = vsel %vm7471_vm5, %v3179_v39, %v3180_v19  ;;  %v7788_v56 = vld [vmem:[%s7153_s24 + $0x4c] sm:$0xf]  ;;  %v7806_v38 = vld [vmem:[%s7796_s29] sm:$0xf]  ;;  %v6867_v39 = vld [vmem:[%s9169_s3 + $0xb8] sm:$0xff]  }
  0x97   : > { %6162 = vmatpush3.bf16.msra.mxu1 %v7370_v32  ;;  %6133 = vmatprep.mubr.bf16.mxu1 %v5448_v7  ;;  %v5585_v32 = vcombine.low %v3157_v40, %v3160_v30  ;;  %v5572_v7 = vrot.slane %v2029_v60, 9  ;;  %v3186_v24 = vrot.slane %v3184_v36, 4  ;;  %v3185_v27 = vsel %vm7471_vm5, %v5573_v42, %v3184_v36  ;;  %v7824_v19 = vld [vmem:[%s7796_s29 + $0xc] sm:$0xf]  ;;  %v7827_v31 = vld [vmem:[%s7796_s29 + $0x10] sm:$0xf] }
  0x98   : > { %6163 = vmatprep.subr.bf16.mxu1 %v6836_v43  ;;  %v3174_v8 = vsel %vm7471_vm5, %v3172_v6, %v3173_v61  ;;  %v5453_v61 = vcombine.low %v7414_v48, %v7421_v54  ;;  %v7832_v48 = vld [vmem:[%s9169_s3 + $0xc0] sm:$0xff]   ;;  %v7835_v54 = vld [vmem:[%s7796_s29 + $0x18] sm:$0xf]  ;;  %v6857_v36 = vld [vmem:[%s9169_s3 + $0x1c8] sm:$0xff]  }
  0x99   : > { %v3178_v18 = vsel %vm7471_vm5, %v5572_v7, %v3177_v9  ;;  %v5587_v40 = vcombine.low %v3171_v25, %v3174_v8  ;;  %v6855_v9 = vld [vmem:[%s9169_s3 + $0xa8] sm:$0xff]   ;;  %v5454_v7 = vcombine.low %v7451_v51, %v7454_v59  ;;  %v7838_v51 = vld [vmem:[%s7796_s29 + $0x1c] sm:$0xf]  ;;  %v5599_v59 = vcombine.low %v7824_v19, %v7827_v31  ;;  %v7873_v5 = vld [vmem:[%s7153_s24 + $0x14] sm:$0x1] }
  0x9a   : > { %v5588_v30 = vcombine.low %v3178_v18, %v3181_v4  ;;  %v5456_v25 = vcombine.low %v7490_v17, %v7493_v21  ;;  %v5600_v8 = vcombine.low %v7835_v54, %v7838_v51  ;;  %v7860_v17 = vld [vmem:[%s7796_s29 + $0x28] sm:$0xf]  ;;  %v7863_v21 = vld [vmem:[%s7796_s29 + $0x30] sm:$0xf]  ;;  %v7866_v18 = vld [vmem:[%s7796_s29 + $0x34] sm:$0xf] }
  0x9b   : > { %6164 = vmatpush3.bf16.msra.mxu1 %v6836_v43  ;;  %v7777_v43 = vld [vmem:[%s7153_s24 + $0x3c] sm:$0xf]  ;;  %v7869_v4 = vld [vmem:[%s7153_s24 + $0x8] sm:$0x1] }
  0x9c   : > { %6165 = vmatprep.subr.bf16.mxu1 %v6840_v41  ;;  %v5451_v49 = vcombine.low %v7777_v43, %v7780_v11  ;;  %v1575_v47 = vrot.slane %v7869_v4, 5  ;;  %v7882_v42 = vld [vmem:[%s7796_s29 + $0x3c] sm:$0xf] }
  0x9d   : > { %6342 = vmatmul.mubr.bf16.gmra.mrb[20].mxu0 %v5585_v32  ;;  %v3188_v32 = vsel %vm7471_vm5, %v3186_v24, %v3187_v55  ;;  %v7885_v24 = vld [vmem:[%s7796_s29 + $0x40] sm:$0xf]  ;;  %v7986_v4 = vld [vmem:[%s7796_s29 + $0x7c] sm:$0xf] }
  0x9e   : > { %6134 = vmatmul.mubr.bf16.gmra.mrb[4].mxu1 %v5449_v1  ;;  %6345 = vmatprep.mubr.bf16.mxu0 %v5586_v62  ;;  %v7809_v1 = vld [vmem:[%s7796_s29 + $0x4] sm:$0xf]  ;;  %v6861_v62 = vld [vmem:[%s9169_s3 + $0xb0] sm:$0xff]   ;;  %v5589_v6 = vcombine.low %v3185_v27, %v3188_v32  ;;  %v5602_v27 = vcombine.low %v7863_v21, %v7866_v18  ;;  %9196 = vst [vmem:[#allocation7_spill] sm:$0xff] %v7986_v4 }
  0x9f   : > { %6137 = vmatprep.mubr.bf16.mxu1 %v5450_v22  ;;  %6166 = vmatpush3.bf16.msra.mxu1 %v6840_v41  ;;  %v7785_v41 = vld [vmem:[%s7153_s24 + $0x48] sm:$0xf]  ;;  %v5598_v22 = vcombine.low %v7806_v38, %v7809_v1 }
  0xa0   : > { %6167 = vmatprep.subr.bf16.mxu1 %v6844_v33  ;;  %v5452_v60 = vcombine.low %v7785_v41, %v7788_v56 }
  0xa3   : > { %6168 = vmatpush3.bf16.msra.mxu1 %v6844_v33  ;;  %v5455_v33 = vcombine.low %v7463_v16, %v7482_v58  ;;  %v6863_v16 = vld [vmem:[%s9169_s3 + $0x1d0] sm:$0xff]   ;;  %v7857_v58 = vld [vmem:[%s7796_s29 + $0x24] sm:$0xf] }
  0xa4   : > { %6169 = vmatprep.subr.bf16.mxu1 %v6849_v45 }
  0xa5   : > { %6346 = vmatmul.mubr.bf16.gmra.mrb[24].mxu0 %v5587_v40  ;;  %v3893_v40 = vshrl.u32 %v7809_v1, 16 }
  0xa6   : > { %6138 = vmatmul.mubr.bf16.gmra.mrb[8].mxu1 %v5451_v49  ;;  %6349 = vmatprep.mubr.bf16.mxu0 %v5588_v30  ;;  %v3883_v49 = vshll.u32 %v7806_v38, 16  ;;  %v5601_v30 = vcombine.low %v7857_v58, %v7860_v17 }
  0xa7   : > { %6141 = vmatprep.mubr.bf16.mxu1 %v5452_v60  ;;  %6170 = vmatpush3.bf16.msra.mxu1 %v6849_v45  ;;  %v3880_v45 = vshrl.u32 %v7806_v38, 16  ;;  %v6877_v60 = vld [vmem:[%s9169_s3 + $0x1e8] sm:$0xff]   ;;  %v3895_v38 = vrot.slane %v3893_v40, 4  ;;  %v6939_v40 = vld [vmem:[%s7153_s24 + $0x60] sm:$0xf] }
  0xa8   : > { %6171 = vmatprep.subr.bf16.mxu1 %v6855_v9 }
  0xab   : > { %6172 = vmatpush3.bf16.msra.mxu1 %v6855_v9  ;;  %v5457_v9 = vcombine.low %v7515_v10, %v7524_v13  ;;  %v6869_v10 = vld [vmem:[%s9169_s3 + $0x1d8] sm:$0xff]   ;;  %v5460_v13 = vcombine.low %v7602_v26, %v7608_v44 }
  0xac   : > { %6173 = vmatprep.subr.bf16.mxu1 %v6861_v62  ;;  %v7979_v26 = vld [vmem:[%s7796_s29 + $0x78] sm:$0xf] }
  0xad   : > { %6350 = vmatmul.mubr.bf16.gmra.mrb[28].mxu0 %v5589_v6  ;;  %9195 = vst [vmem:[#allocation6_spill] sm:$0xff] %v7979_v26 }
  0xae   : > { %6142 = vmatmul.mubr.bf16.gmra.mrb[12].mxu1 %v5453_v61  ;;  %6369 = vmatprep.mubr.bf16.mxu0 %v5598_v22  ;;  %v5458_v61 = vcombine.low %v7552_v2, %v7555_v15  ;;  %v7899_v22 = vld [vmem:[%s7796_s29 + $0x48] sm:$0xf]  ;;  %v7926_v15 = vld [vmem:[%s7796_s29 + $0x60] sm:$0xf] }
  0xaf   : > { %6145 = vmatprep.mubr.bf16.mxu1 %v5454_v7  ;;  %6174 = vmatpush3.bf16.msra.mxu1 %v6861_v62  ;;  %v7902_v7 = vld [vmem:[%s7796_s29 + $0x4c] sm:$0xf]  ;;  %9192 = vst [vmem:[#allocation3_spill] sm:$0xff] %v7926_v15  ;;  %v5471_v62 = vrot.slane %v7701_v20, 9 }
  0xb0   : > { %6175 = vmatprep.subr.bf16.mxu1 %v6867_v39 }
  0xb3   : > { %6176 = vmatpush3.bf16.msra.mxu1 %v6867_v39  ;;  %v1572_v39 = vrot.slane %v7684_v29, 5  ;;  %v5459_v29 = vcombine.low %v7573_v50, %v7578_v46  ;;  %v5604_v50 = vcombine.low %v7899_v22, %v7902_v7  ;;  %v5470_v46 = vrot.slane %v7681_v35, 9 }
  0xb4   : > { %6209 = vmatprep.subr.bf16.mxu1 %v7832_v48  ;;  %v5461_v35 = vcombine.low %v7626_v14, %v7634_v34  ;;  %v5476_v14 = vrot.slane %v7785_v41, 9 }
  0xb5   : > { %6370 = vmatmul.mubr.bf16.vlgmr.msra.gmra.mrb[0].mxu0 %v5599_v59  ;;  %v1574_v2 = vrot.slane %v1572_v39, 4  ;;  %v1579_v59 = vrot.slane %v7704_v3, 5  ;;  %v7969_v6 = vsel %vm7471_vm5, %v5470_v46, %v1572_v39 }
  0xb6   : > { %6146 = vmatmul.mubr.bf16.gmra.mrb[16].mxu1 %v5455_v33  ;;  %6402 = vmatpush3.bf16.msra.mxu0 %v7654_v52  ;;  %v1582_v52 = vrot.slane %v7873_v5, 5  ;;  %v7929_v33 = vld [vmem:[%s7796_s29 + $0x64] sm:$0xf] }
  0xb7   : > { %6149 = vmatprep.mubr.bf16.mxu1 %v5456_v25  ;;  %6373 = vmatprep.mubr.bf16.mxu0 %v5600_v8  ;;  %v7914_v25 = vld [vmem:[%s7796_s29 + $0x54] sm:$0xf]  ;;  %v7917_v8 = vld [vmem:[%s7796_s29 + $0x58] sm:$0xf]  ;;  %v5606_v44 = vcombine.low %v7926_v15, %v7929_v33  ;;  %v7975_v20 = vsel %vm7471_vm5, %v1574_v2, %v1575_v47  ;;  %v1581_v32 = vrot.slane %v1579_v59, 4  ;;  %v1593_v47 = vrot.slane %v7747_v63, 5 }
  0xb8   : > { %6403 = vmatprep.subr.bf16.mxu0 %v6857_v36  ;;  %9191 = vst [vmem:[#allocation2_spill] sm:$0xff] %v7914_v25  ;;  %v5605_v3 = vcombine.low %v7914_v25, %v7917_v8  ;;  %v7991_v2 = vsel %vm7471_vm5, %v5471_v62, %v1579_v59  ;;  %v5486_v46 = vcombine.low %v7969_v6, %v7975_v20  ;;  %v5472_v63 = vrot.slane %v7713_v28, 9  ;;  %v8011_v59 = vld [vmem:[%s7796_s29 + $0x84] sm:$0xf]  ;;  %v6881_v28 = vld [vmem:[%s9169_s3 + $0x1f0] sm:$0xff]  }
  0xb9   : > { %v8004_v62 = vsel %vm7471_vm5, %v1581_v32, %v1582_v52  ;;  %v5473_v6 = vrot.slane %v7744_v57, 9  ;;  %v1595_v52 = vrot.slane %v1593_v47, 4  ;;  %v6931_v32 = vld [vmem:[%s7153_s24 + $0x2c] sm:$0x1]  ;;  %v8019_v20 = vld [vmem:[%s7796_s29 + $0x88] sm:$0xf] }
  0xba   : > { %6404 = vmatpush3.bf16.msra.mxu0 %v6857_v36  ;;  %v1586_v36 = vrot.slane %v7716_v0, 5  ;;  %v5474_v57 = vrot.slane %v7752_v12, 9  ;;  %v1614_v12 = vrot.slane %v7788_v56, 5  ;;  %v6940_v15 = vld [vmem:[%s7153_s24 + $0x68] sm:$0x1] }
  0xbb   : > { %6405 = vmatprep.subr.bf16.mxu0 %v6863_v16  ;;  %v1631_v25 = vrot.slane %v6940_v15, 5 }
  0xbc   : > { %v8029_v5 = vsel %vm7471_vm5, %v5472_v63, %v1586_v36  ;;  %v8051_v63 = vld [vmem:[%s7796_s29 + $0x94] sm:$0xf]  ;;  %v1616_v34 = vrot.slane %v1614_v12, 4 }
  0xbd   : > { %6374 = vmatmul.mubr.bf16.gmra.mrb[4].mxu0 %v5601_v30  ;;  %v5603_v30 = vcombine.low %v7882_v42, %v7885_v24 }
  0xbe   : > { %6150 = vmatmul.mubr.bf16.gmra.mrb[20].mxu1 %v5457_v9  ;;  %6377 = vmatprep.mubr.bf16.mxu0 %v5602_v27  ;;  %v7944_v9 = vld [vmem:[%s7796_s29 + $0x70] sm:$0xf] }
  0xbf   : > { %6153 = vmatprep.mubr.bf16.mxu1 %v5458_v61  ;;  %6406 = vmatpush3.bf16.msra.mxu0 %v6863_v16  ;;  %v7941_v61 = vld [vmem:[%s7796_s29 + $0x6c] sm:$0xf]  ;;  %9194 = vst [vmem:[#allocation5_spill] sm:$0xff] %v7944_v9  ;;  %v6873_v16 = vld [vmem:[%s9169_s3 + $0x1e0] sm:$0xff]  }
  0xc0   : > { %6407 = vmatprep.subr.bf16.mxu0 %v6869_v10  ;;  %9193 = vst [vmem:[#allocation4_spill] sm:$0xff] %v7941_v61  ;;  %v5607_v39 = vcombine.low %v7941_v61, %v7944_v9 }
  0xc3   : > { %6408 = vmatpush3.bf16.msra.mxu0 %v6869_v10  ;;  %v1600_v10 = vrot.slane %v7755_v23, 5  ;;  %v8121_v23 = vld [vmem:[%s7796_s29 + $0xb4] sm:$0xf] }
  0xc4   : > { %6409 = vmatprep.subr.bf16.mxu0 %v6873_v16 }
  0xc5   : > { %6378 = vmatmul.mubr.bf16.gmra.mrb[8].mxu0 %v5603_v30  ;;  %v1602_v0 = vrot.slane %v1600_v10, 4  ;;  %v6932_v30 = vld [vmem:[%s7153_s24 + $0x38] sm:$0x1] }
  0xc6   : > { %6154 = vmatmul.mubr.bf16.gmra.mrb[24].mxu1 %v5459_v29  ;;  %6381 = vmatprep.mubr.bf16.mxu0 %v5604_v50  ;;  %v1588_v29 = vrot.slane %v1586_v36, 4  ;;  %v6930_v50 = vld [vmem:[%s7153_s24 + $0x20] sm:$0x1]  ;;  %v1603_v55 = vrot.slane %v6932_v30, 5  ;;  %v6885_v30 = vld [vmem:[%s9169_s3 + $0x1f8] sm:$0xff]  }
  0xc7   : > { %6157 = vmatprep.mubr.bf16.mxu1 %v5460_v13  ;;  %6410 = vmatpush3.bf16.msra.mxu0 %v6873_v16  ;;  %v1589_v27 = vrot.slane %v6930_v50, 5  ;;  %v1596_v16 = vrot.slane %v6931_v32, 5  ;;  %v1607_v50 = vrot.slane %v7780_v11, 5  ;;  %v8036_v11 = vld [vmem:[%s7796_s29 + $0x90] sm:$0xf]  ;;  %v8044_v13 = vsel %vm7471_vm5, %v5473_v6, %v1593_v47 }
  0xc8   : > { %6411 = vmatprep.subr.bf16.mxu0 %v6877_v60  ;;  %v5475_v47 = vrot.slane %v7777_v43, 9  ;;  %v8066_v36 = vld [vmem:[%s7796_s29 + $0xa0] sm:$0xf]  ;;  %v6936_v43 = vld [vmem:[%s7153_s24 + $0x64] sm:$0xf] }
  0xc9   : > { %v8033_v32 = vsel %vm7471_vm5, %v1588_v29, %v1589_v27  ;;  %v8054_v29 = vld [vmem:[%s7796_s29 + $0x9c] sm:$0xf]  ;;  %v8061_v56 = vsel %vm7471_vm5, %v1595_v52, %v1596_v16  ;;  %v1609_v6 = vrot.slane %v1607_v50, 4  ;;  %v6933_v27 = vld [vmem:[%s7153_s24 + $0x44] sm:$0x1]  ;;  %v8079_v52 = vsel %vm7471_vm5, %v5474_v57, %v1600_v10 }
  0xca   : > { %v8083_v16 = vsel %vm7471_vm5, %v1602_v0, %v1603_v55  ;;  %v3889_v10 = vshll.u32 %v7809_v1, 16  ;;  %v8108_v57 = vsel %vm7471_vm5, %v5475_v47, %v1607_v50  ;;  %v1628_v41 = vrot.slane %v6936_v43, 5  ;;  %v8136_v43 = vld [vmem:[%s7796_s29 + $0xb8] sm:$0xf] }
  0xcb   : > { %6412 = vmatpush3.bf16.msra.mxu0 %v6877_v60  ;;  %v1610_v60 = vrot.slane %v6933_v27, 5  ;;  %v8086_v27 = vld [vmem:[%s7796_s29 + $0xa8] sm:$0xf]  ;;  %v3882_v50 = vrot.slane %v3880_v45, 4  ;;  %v8129_v47 = vsel %vm7471_vm5, %v5476_v14, %v1614_v12  ;;  %v6937_v12 = vld [vmem:[%s7153_s24 + $0x54] sm:$0xf] }
  0xcc   : > { %6413 = vmatprep.subr.bf16.mxu0 %v6881_v28  ;;  %v8141_v55 = vrot.slane %v3889_v10, 5  ;;  %v6875_v45 = vld [vmem:[%s9169_s3 + $0xc8] sm:$0xff]   ;;  %v5477_v14 = vrot.slane %v6937_v12, 9  ;;  %v5478_v10 = vrot.slane %v6939_v40, 9  ;;  %v1630_v0 = vrot.slane %v1628_v41, 4 }
  0xcd   : > { %6382 = vmatmul.mubr.bf16.gmra.mrb[12].mxu0 %v5605_v3  ;;  %v5488_v3 = vcombine.low %v8029_v5, %v8033_v32  ;;  %v8091_v5 = vld [vmem:[%s7796_s29 + $0xac] sm:$0xf]  ;;  %v8112_v32 = vsel %vm7471_vm5, %v1609_v6, %v1610_v60  ;;  %v3885_v60 = vrot.slane %v3883_v49, 5  ;;  %v9199_v12 = vcombine.low %v7991_v2, %v8004_v62  ;;  %v6941_v2 = vld [vmem:[%s7153_s24 + $0x70] sm:$0xf] }
  0xce   : > { %6158 = vmatmul.mubr.bf16.gmra.mrb[28].mxu1 %v5461_v35  ;;  %6385 = vmatprep.mubr.bf16.mxu0 %v5606_v44  ;;  %v6934_v44 = vld [vmem:[%s7153_s24 + $0x50] sm:$0x1]  ;;  %v3896_v15 = vor.u32 %v3895_v38, %v8141_v55  ;;  %v1635_v62 = vrot.slane %v6941_v2, 5  ;;  %v9202_v49 = vshll.u32 %v7824_v19, 16  ;;  %v9204_v38 = vshrl.u32 %v7827_v31, 16 }
  0xcf   : > { %6177 = vmatprep.mubr.bf16.mxu1 %v5486_v46  ;;  %6414 = vmatpush3.bf16.msra.mxu0 %v6881_v28  ;;  %v1617_v35 = vrot.slane %v6934_v44, 5  ;;  %v8104_v28 = vld [vmem:[%s9169_s3 + $0x200] sm:$0xff]   ;;  %v6935_v44 = vld [vmem:[%s7153_s24 + $0x58] sm:$0xf]  ;;  %v3886_v40 = vor.u32 %v3885_v60, %v3882_v50  ;;  %v6879_v50 = vld [vmem:[%s9169_s3 + $0xd0] sm:$0xff]  }
  0xd0   : > { %6415 = vmatprep.subr.bf16.mxu0 %v6885_v30  ;;  %9197 = vst [vmem:[#allocation8_spill] sm:$0xff] %v8104_v28  ;;  %v1621_v46 = vrot.slane %v6935_v44, 5  ;;  %v8139_v44 = vld [vmem:[%s7796_s29 + $0x8] sm:$0x1]  ;;  %v3919_v2 = vrot.slane %v9204_v38, 4 }
  0xd1   : > { %v8133_v6 = vsel %vm7471_vm5, %v1616_v34, %v1617_v35  ;;  %9198 = vst [vmem:[#allocation9_spill] sm:$0xff] %v8139_v44  ;;  %v6938_v34 = vld [vmem:[%s7153_s24 + $0x5c] sm:$0x1]  ;;  %v3899_v61 = vshll.u32 %v8139_v44, 16  ;;  %v3887_v44 = vrot.slane %v3886_v40, 4 }
  0xd2   : > { %v1624_v35 = vrot.slane %v6938_v34, 5  ;;  %v1623_v1 = vrot.slane %v1621_v46, 4  ;;  %v9200_v34 = vcombine.low %v7979_v26, %v7986_v4  ;;  %v3909_v26 = vrot.slane %v9202_v49, 5  ;;  %v6944_v38 = vld [vmem:[%s7153_s24 + $0x74] sm:$0x1] }
  0xd3   : > { %6416 = vmatpush3.bf16.msra.mxu0 %v6885_v30  ;;  %v3913_v30 = vshll.u32 %v7827_v31, 16  ;;  %v3901_v31 = vrot.slane %v3899_v61, 5  ;;  %v3937_v4 = vshll.u32 %v7838_v51, 16 }
  0xd4   : > { %6449 = vmatprep.subr.bf16.mxu0 %v8104_v28  ;;  %v8194_v49 = vsel %vm7471_vm5, %v1623_v1, %v1624_v35  ;;  %v3897_v35 = vrot.slane %v3896_v15, 4  ;;  %v1637_v1 = vrot.slane %v1635_v62, 4 }
  0xd5   : > { %6386 = vmatmul.mubr.bf16.gmra.mrb[16].mxu0 %v5607_v39  ;;  %v8187_v60 = vrot.slane %v3913_v30, 5  ;;  %v8198_v39 = vsel %vm7471_vm5, %v5478_v10, %v1628_v41  ;;  %v6945_v10 = vld [vmem:[%s7153_s24 + $0x78] sm:$0xf]  ;;  %v8238_v15 = vrot.slane %v3937_v4, 5 }
  0xd6   : > { %6178 = vmatmul.mubr.bf16.vlgmr.msra.gmra.mrb[0].mxu1 %v9199_v12  ;;  %6389 = vmatprep.mubr.bf16.mxu0 %v9200_v34  ;;  %v9201_v12 = vshrl.u32 %v7824_v19, 16  ;;  %v5480_v61 = vrot.slane %v6945_v10, 9  ;;  %v9208_v10 = vcombine.low %v8044_v13, %v8061_v56  ;;  %v9211_v13 = vcombine.low %v8079_v52, %v8083_v16 }
  0xd7   : > { %6210 = vmatpush3.bf16.msra.mxu1 %v7832_v48  ;;  %6181 = vmatprep.mubr.bf16.mxu1 %v5488_v3  ;;  %v8182_v48 = vsel %vm7471_vm5, %v5477_v14, %v1621_v46  ;;  %v8185_v3 = vld [vmem:[%s7796_s29 + $0x14] sm:$0x1]  ;;  %v8202_v46 = vsel %vm7471_vm5, %v1630_v0, %v1631_v25  ;;  %v6943_v14 = vld [vmem:[%s7153_s24 + $0x6c] sm:$0xf]  ;;  %v6883_v25 = vld [vmem:[%s9169_s3 + $0xd8] sm:$0xff]   ;;  %v3920_v0 = vor.u32 %v3919_v2, %v8187_v60  ;;  %v9207_v2 = vshll.u32 %v7835_v54, 16 }
  0xd8   : > { %v3906_v34 = vrot.slane %v9201_v12, 4  ;;  %6211 = vmatprep.subr.bf16.mxu1 %v6875_v45  ;;  %9203 = vst [vmem:[#allocation10_spill] sm:$0xff] %v8185_v3  ;;  %v6942_v12 = vld [vmem:[%s7153_s24 + $0x7c] sm:$0xf]  ;;  %v5479_v30 = vrot.slane %v6943_v14, 9  ;;  %v3923_v41 = vshll.u32 %v8185_v3, 16  ;;  %v3892_v56 = vsel %vm7195_vm2, %v3887_v44, %v8141_v55 }
  0xd9   : > { %v1642_v19 = vrot.slane %v6942_v12, 5  ;;  %v1638_v12 = vrot.slane %v6944_v38, 5  ;;  %v6946_v14 = vld [vmem:[%s7153_s24 + $0x80] sm:$0x1]  ;;  %v3933_v28 = vrot.slane %v9207_v2, 5  ;;  %v3961_v2 = vshll.u32 %v7860_v17, 16 }
  0xda   : > { %v3910_v9 = vor.u32 %v3909_v26, %v3906_v34  ;;  %v1645_v38 = vrot.slane %v6946_v14, 5  ;;  %v9206_v34 = vshrl.u32 %v7835_v54, 16  ;;  %v9209_v14 = vcombine.low %v8036_v11, %v8051_v63  ;;  %v8236_v26 = vld [vmem:[%s7796_s29 + $0x20] sm:$0x1] }
  0xdb   : > { %6212 = vmatpush3.bf16.msra.mxu1 %v6875_v45  ;;  %v1644_v40 = vrot.slane %v1642_v19, 4  ;;  %v9205_v45 = vcombine.low %v8011_v59, %v8019_v20  ;;  %v8253_v4 = vsel %vm7471_vm5, %v1637_v1, %v1638_v12  ;;  %v3921_v52 = vrot.slane %v3920_v0, 4 }
  0xdc   : > { %6213 = vmatprep.subr.bf16.mxu1 %v6879_v50  ;;  %v3930_v3 = vrot.slane %v9206_v34, 4  ;;  %v9210_v34 = vshrl.u32 %v7838_v51, 16  ;;  %v3911_v51 = vrot.slane %v3910_v9, 4  ;;  %v3925_v16 = vrot.slane %v3923_v41, 5 }
  0xdd   : > { %6390 = vmatmul.mubr.bf16.gmra.mrb[20].mxu0 %v9205_v45  ;;  %v8233_v45 = vsel %vm7471_vm5, %v5479_v30, %v1635_v62  ;;  %v3902_v62 = vsel %vm7195_vm2, %v3897_v35, %v3901_v31  ;;  %v6886_v30 = vld [vmem:[%s9169_s3 + $0xe0] sm:$0xff]   ;;  %v8264_v55 = vsel %vm7471_vm5, %v1644_v40, %v1645_v38  ;;  %v3947_v9 = vshll.u32 %v8236_v26, 16  ;;  %v6947_v31 = vld [vmem:[%s7153_s24 + $0x88] sm:$0xf] }
  0xde   : > { %6182 = vmatmul.mubr.bf16.gmra.mrb[4].mxu1 %v9208_v10  ;;  %6393 = vmatprep.mubr.bf16.mxu0 %v9209_v14  ;;  %v3943_v54 = vrot.slane %v9210_v34, 4  ;;  %v3934_v44 = vor.u32 %v3933_v28, %v3930_v3  ;;  %v1649_v12 = vrot.slane %v6947_v31, 5  ;;  %v9212_v35 = vshrl.u32 %v7857_v58, 16  ;;  %v6948_v14 = vld [vmem:[%s7153_s24 + $0x84] sm:$0xf] }
  0xdf   : > { %6185 = vmatprep.mubr.bf16.mxu1 %v9211_v13  ;;  %6214 = vmatpush3.bf16.msra.mxu1 %v6879_v50  ;;  %v8260_v50 = vsel %vm7471_vm5, %v5480_v61, %v1642_v19  ;;  %v9213_v0 = vshll.u32 %v7857_v58, 16  ;;  %v8273_v61 = vrot.slane %v3961_v2, 5  ;;  %v9214_v40 = vshrl.u32 %v7860_v17, 16  ;;  %v8286_v58 = vld [vmem:[%s7796_s29 + $0x2c] sm:$0x1] }
  0xe0   : > { %6215 = vmatprep.subr.bf16.mxu1 %v6883_v25  ;;  %v3954_v1 = vrot.slane %v9212_v35, 4  ;;  %v3944_v41 = vor.u32 %v3943_v54, %v8238_v15  ;;  %v8277_v28 = vcombine.low %v3892_v56, %v3902_v62  ;;  %v5495_v3 = vcombine.low %v8233_v45, %v8253_v4  ;;  %v6888_v54 = vld [vmem:[%s9169_s3 + $0xe8] sm:$0xff]   ;;  %v6949_v2 = vld [vmem:[%s7153_s24 + $0x94] sm:$0xf]  ;;  %v8451_v45 = vld [vmem:[%s7796_s29 + $0x5c] sm:$0x1] }
  0xe1   : > { %v3957_v19 = vrot.slane %v9213_v0, 5  ;;  %v3967_v38 = vrot.slane %v9214_v40, 4  ;;  %v3916_v10 = vsel %vm7195_vm2, %v3911_v51, %v8187_v60  ;;  %v5481_v34 = vrot.slane %v6948_v14, 9 }
  0xe2   : > { %v3926_v17 = vsel %vm7195_vm2, %v3921_v52, %v3925_v16  ;;  %v1656_v13 = vrot.slane %v6949_v2, 5  ;;  %v3985_v56 = vshll.u32 %v7866_v18, 16  ;;  %v9215_v60 = vcombine.low %v8054_v29, %v8066_v36  ;;  %v6950_v52 = vld [vmem:[%s7153_s24 + $0x8c] sm:$0x1] }
  0xe3   : > { %6216 = vmatpush3.bf16.msra.mxu1 %v6883_v25  ;;  %v5496_v25 = vcombine.low %v8260_v50, %v8264_v55  ;;  %v3935_v62 = vrot.slane %v3934_v44, 4  ;;  %v3949_v51 = vrot.slane %v3947_v9, 5  ;;  %v1651_v31 = vrot.slane %v1649_v12, 4 }
  0xe4   : > { %6217 = vmatprep.subr.bf16.mxu1 %v6886_v30  ;;  %v1652_v16 = vrot.slane %v6950_v52, 5  ;;  %v9216_v35 = vcombine.low %v8108_v57, %v8112_v32  ;;  %v9217_v0 = vcombine.low %v8086_v27, %v8091_v5  ;;  %v3945_v40 = vrot.slane %v3944_v41, 4  ;;  %v6951_v57 = vld [vmem:[%s7153_s24 + $0x90] sm:$0xf] }
  0xe5   : > { %6394 = vmatmul.mubr.bf16.gmra.mrb[24].mxu0 %v9215_v60  ;;  %v3958_v14 = vor.u32 %v3957_v19, %v3954_v1  ;;  %v3968_v2 = vor.u32 %v3967_v38, %v8273_v61  ;;  %v3971_v44 = vshll.u32 %v8286_v58, 16  ;;  %v9218_v9 = vcombine.low %v8129_v47, %v8133_v6  ;;  %v6890_v1 = vld [vmem:[%s9169_s3 + $0xf0] sm:$0xff]   ;;  %v6952_v38 = vld [vmem:[%s7153_s24 + $0x98] sm:$0x1] }
  0xe6   : > { %6186 = vmatmul.mubr.bf16.gmra.mrb[8].mxu1 %v9216_v35  ;;  %6397 = vmatprep.mubr.bf16.mxu0 %v9217_v0  ;;  %v8312_v60 = vcombine.low %v3916_v10, %v3926_v17  ;;  %v5482_v32 = vrot.slane %v6951_v57, 9  ;;  %v9219_v52 = vshrl.u32 %v7863_v21, 16  ;;  %v9220_v41 = vshll.u32 %v7863_v21, 16  ;;  %v8324_v6 = vld [vmem:[%s7796_s29 + $0x38] sm:$0x1] }
  0xe7   : > { %6189 = vmatprep.mubr.bf16.mxu1 %v9218_v9  ;;  %6218 = vmatpush3.bf16.msra.mxu1 %v6886_v30  ;;  %v1658_v19 = vrot.slane %v1656_v13, 4  ;;  %v1659_v47 = vrot.slane %v6952_v38, 5  ;;  %v8326_v30 = vrot.slane %v3985_v56, 5  ;;  %v9221_v10 = vshrl.u32 %v7866_v18, 16 }
  0xe8   : > { %v3978_v35 = vrot.slane %v9219_v52, 4  ;;  %v3981_v0 = vrot.slane %v9220_v41, 5  ;;  %6219 = vmatprep.subr.bf16.mxu1 %v6888_v54  ;;  %v3940_v21 = vsel %vm7195_vm2, %v3935_v62, %v8238_v15  ;;  %v8335_v9 = vsel %vm7471_vm5, %v5481_v34, %v1649_v12  ;;  %v6953_v62 = vld [vmem:[%s7153_s24 + $0xa0] sm:$0xf] }
  0xe9   : > { %v3991_v17 = vrot.slane %v9221_v10, 4  ;;  %v8339_v57 = vsel %vm7471_vm5, %v1651_v31, %v1652_v16  ;;  %v4009_v52 = vshll.u32 %v7885_v24, 16  ;;  %v3950_v56 = vsel %vm7195_vm2, %v3945_v40, %v3949_v51 }
  0xea   : > { %v3959_v41 = vrot.slane %v3958_v14, 4  ;;  %v3969_v18 = vrot.slane %v3968_v2, 4  ;;  %v3973_v38 = vrot.slane %v3971_v44, 5  ;;  %v8346_v15 = vsel %vm7471_vm5, %v5482_v32, %v1656_v13  ;;  %v6892_v13 = vld [vmem:[%s9169_s3 + $0xf8] sm:$0xff]  }
  0xeb   : > { %6220 = vmatpush3.bf16.msra.mxu1 %v6888_v54  ;;  %v3982_v12 = vor.u32 %v3981_v0, %v3978_v35  ;;  %v3995_v34 = vshll.u32 %v8324_v6, 16  ;;  %v1663_v31 = vrot.slane %v6953_v62, 5  ;;  %v8352_v16 = vsel %vm7471_vm5, %v1658_v19, %v1659_v47  ;;  %v6954_v35 = vld [vmem:[%s7153_s24 + $0x9c] sm:$0xf]  ;;  %v8369_v19 = vld [vmem:[%s7796_s29 + $0x44] sm:$0x1] }
  0xec   : > { %v3992_v51 = vor.u32 %v3991_v17, %v8326_v30  ;;  %6221 = vmatprep.subr.bf16.mxu1 %v6890_v1  ;;  %v9222_v40 = vshrl.u32 %v7882_v42, 16  ;;  %v9223_v14 = vshll.u32 %v7882_v42, 16  ;;  %v9224_v44 = vcombine.low %v8121_v23, %v8136_v43 }
  0xed   : > { %v5497_v32 = vcombine.low %v8335_v9, %v8339_v57  ;;  %v5483_v0 = vrot.slane %v6954_v35, 9  ;;  %v8371_v47 = vrot.slane %v4009_v52, 5  ;;  %v9225_v42 = vshrl.u32 %v7885_v24, 16  ;;  %v9242_v57 = vld [vmem:[#allocation4_spill] sm:$0xff] }
  0xee   : > { %v4002_v54 = vrot.slane %v9222_v40, 4  ;;  %v4005_v2 = vrot.slane %v9223_v14, 5  ;;  %6398 = vmatmul.mubr.bf16.gmra.mrb[28].mxu0 %v9224_v44  ;;  %v9226_v17 = vcombine.low %v8182_v48, %v8194_v49  ;;  %v5624_v62 = vcombine.low %v3940_v21, %v3950_v56  ;;  %v6955_v21 = vld [vmem:[%s7153_s24 + $0xa4] sm:$0x1] }
  0xef   : > { %v4015_v10 = vrot.slane %v9225_v42, 4  ;;  %6417 = vmatprep.mubr.bf16.mxu0 %v8277_v28  ;;  %v3964_v40 = vsel %vm7195_vm2, %v3959_v41, %v8273_v61  ;;  %v3974_v14 = vsel %vm7195_vm2, %v3969_v18, %v3973_v38  ;;  %v4033_v52 = vshll.u32 %v7902_v7, 16  ;;  %6222 = vmatpush3.bf16.msra.mxu1 %v6890_v1  ;;  %v8401_v42 = vld [vmem:[%s7796_s29 + $0x50] sm:$0x1] }
  0xf0   : > { %6190 = vmatmul.mubr.bf16.gmra.mrb[12].mxu1 %v9226_v17  ;;  %v9227_v24 = vcombine.low %v8198_v39, %v8202_v46  ;;  %v5498_v48 = vcombine.low %v8346_v15, %v8352_v16  ;;  %v3983_v49 = vrot.slane %v3982_v12, 4  ;;  %v1665_v28 = vrot.slane %v1663_v31, 4  ;;  %6223 = vmatprep.subr.bf16.mxu1 %v6892_v13  ;;  %v6956_v12 = vld [vmem:[%s7153_s24 + $0xac] sm:$0xf] }
  0xf1   : > { %v1666_v56 = vrot.slane %v6955_v21, 5  ;;  %v3993_v61 = vrot.slane %v3992_v51, 4  ;;  %v3997_v41 = vrot.slane %v3995_v34, 5  ;;  %v4006_v18 = vor.u32 %v4005_v2, %v4002_v54 }
  0xf2   : > { %6193 = vmatprep.mubr.bf16.mxu1 %v9227_v24  ;;  %v4019_v38 = vshll.u32 %v8369_v19, 16  ;;  %v8392_v44 = vcombine.low %v3964_v40, %v3974_v14  ;;  %v8396_v39 = vsel %vm7471_vm5, %v5483_v0, %v1663_v31  ;;  %v4016_v46 = vor.u32 %v4015_v10, %v8371_v47  ;;  %v6957_v10 = vld [vmem:[%s7153_s24 + $0xa8] sm:$0xf] }
  0xf3   : > { %v1670_v35 = vrot.slane %v6956_v12, 5  ;;  %v9228_v1 = vshrl.u32 %v7899_v22, 16  ;;  %v9229_v51 = vshll.u32 %v7899_v22, 16  ;;  %v8407_v2 = vrot.slane %v4033_v52, 5  ;;  %6224 = vmatpush3.bf16.msra.mxu1 %v6892_v13  ;;  %v6889_v22 = vld [vmem:[%s9169_s3 + $0x208] sm:$0xff]  }
  0xf4   : > { %v9230_v17 = vshrl.u32 %v7902_v7, 16  ;;  %v3988_v31 = vsel %vm7195_vm2, %v3983_v49, %v8326_v30  ;;  %v8416_v0 = vsel %vm7471_vm5, %v1665_v28, %v1666_v56  ;;  %v5484_v14 = vrot.slane %v6957_v10, 9  ;;  %v8429_v49 = vld [vmem:[%s9169_s3 + $0x100] sm:$0xff]   ;;  %v6959_v56 = vld [vmem:[%s7153_s24 + $0xb0] sm:$0x1] }
  0xf5   : > { %v4026_v34 = vrot.slane %v9228_v1, 4  ;;  %v4029_v54 = vrot.slane %v9229_v51, 5  ;;  %v4057_v24 = vshll.u32 %v7917_v8, 16  ;;  %v3998_v7 = vsel %vm7195_vm2, %v3993_v61, %v3997_v41  ;;  %6497 = vmatprep.subr.bf16.mxu1 %v8429_v49  ;;  %v9231_v41 = vld [vmem:[#allocation8_spill] sm:$0xff] }
  0xf6   : > { %v4039_v40 = vrot.slane %v9230_v17, 4  ;;  %v4007_v52 = vrot.slane %v4006_v18, 4  ;;  %v4021_v21 = vrot.slane %v4019_v38, 5  ;;  %v4081_v30 = vshll.u32 %v7929_v33, 16  ;;  %6418 = vmatmul.mubr.bf16.vlgmr.msra.gmra.mrb[0].mxu0 %v8312_v60  ;;  %v6891_v18 = vld [vmem:[%s9169_s3 + $0x210] sm:$0xff]   ;;  %v9232_v60 = vld [vmem:[#allocation2_spill] sm:$0xff] }
  0xf7   : > { %v4017_v13 = vrot.slane %v4016_v46, 4  ;;  %v1672_v28 = vrot.slane %v1670_v35, 4  ;;  %v1673_v12 = vrot.slane %v6959_v56, 5  ;;  %v4043_v61 = vshll.u32 %v8401_v42, 16  ;;  %6450 = vmatpush3.bf16.msra.mxu0 %v9231_v41  ;;  %6421 = vmatprep.mubr.bf16.mxu0 %v5624_v62 }
  0xf8   : > { %6194 = vmatmul.mubr.bf16.gmra.mrb[16].mxu1 %v5495_v3  ;;  %v4030_v38 = vor.u32 %v4029_v54, %v4026_v34  ;;  %v4040_v1 = vor.u32 %v4039_v40, %v8407_v2  ;;  %v9233_v46 = vshrl.u32 %v9232_v60, 16  ;;  %v9234_v17 = vshll.u32 %v9232_v60, 16  ;;  %v9236_v54 = vld [vmem:[#allocation3_spill] sm:$0xff]  ;;  %6451 = vmatprep.subr.bf16.mxu0 %v6889_v22 }
  0xf9   : > { %6197 = vmatprep.mubr.bf16.mxu1 %v5496_v25  ;;  %v8453_v4 = vrot.slane %v4057_v24, 5  ;;  %v9235_v3 = vshrl.u32 %v7917_v8, 16  ;;  %v9237_v40 = vshrl.u32 %v9236_v54, 16  ;;  %v9238_v41 = vshll.u32 %v9236_v54, 16 }
  0xfa   : > { %v4050_v51 = vrot.slane %v9233_v46, 4  ;;  %v4053_v10 = vrot.slane %v9234_v17, 5  ;;  %v5626_v46 = vcombine.low %v3988_v31, %v3998_v7  ;;  %v5499_v50 = vcombine.low %v8396_v39, %v8416_v0  ;;  %v8474_v31 = vld [vmem:[%s7796_s29 + $0x68] sm:$0x1] }
  0xfb   : > { %v4063_v34 = vrot.slane %v9235_v3, 4  ;;  %v4074_v56 = vrot.slane %v9237_v40, 4  ;;  %v4077_v60 = vrot.slane %v9238_v41, 5  ;;  %v8463_v55 = vrot.slane %v4081_v30, 5  ;;  %v6960_v3 = vld [vmem:[%s7153_s24 + $0xb8] sm:$0xf]  ;;  %6452 = vmatpush3.bf16.msra.mxu0 %v6889_v22 }
  0xfc   : > { %v9239_v25 = vshrl.u32 %v7929_v33, 16  ;;  %v4012_v8 = vsel %vm7195_vm2, %v4007_v52, %v8371_v47  ;;  %v4022_v24 = vsel %vm7195_vm2, %v4017_v13, %v4021_v21  ;;  %v4045_v17 = vrot.slane %v4043_v61, 5  ;;  %6453 = vmatprep.subr.bf16.mxu0 %v6891_v18  ;;  %v6961_v61 = vld [vmem:[%s7153_s24 + $0xb4] sm:$0xf] }
  0xfd   : > { %v1677_v54 = vrot.slane %v6960_v3, 5  ;;  %v4031_v7 = vrot.slane %v4030_v38, 4  ;;  %v4041_v30 = vrot.slane %v4040_v1, 4  ;;  %v4054_v40 = vor.u32 %v4053_v10, %v4050_v51  ;;  %v6893_v38 = vld [vmem:[%s9169_s3 + $0x218] sm:$0xff]  }
  0xfe   : > { %v4087_v62 = vrot.slane %v9239_v25, 4  ;;  %v4067_v33 = vshll.u32 %v8451_v45, 16  ;;  %v8479_v47 = vsel %vm7471_vm5, %v5484_v14, %v1670_v35  ;;  %v8483_v52 = vsel %vm7471_vm5, %v1672_v28, %v1673_v12  ;;  %v9240_v10 = vld [vmem:[#allocation5_spill] sm:$0xff]  ;;  %6422 = vmatmul.mubr.bf16.gmra.mrb[4].mxu0 %v8392_v44 }
  0xff   : > { %v4064_v21 = vor.u32 %v4063_v34, %v8453_v4  ;;  %v4078_v13 = vor.u32 %v4077_v60, %v4074_v56  ;;  %v5485_v22 = vrot.slane %v6961_v61, 9  ;;  %v4091_v51 = vshll.u32 %v8474_v31, 16  ;;  %v6962_v12 = vld [vmem:[%s7153_s24 + $0xbc] sm:$0x1]  ;;  %v9241_v34 = vld [vmem:[#allocation7_spill] sm:$0xff]  ;;  %6425 = vmatprep.mubr.bf16.mxu0 %v5626_v46  ;;  %6454 = vmatpush3.bf16.msra.mxu0 %v6891_v18 }
 0x100   : > { %v4088_v1 = vor.u32 %v4087_v62, %v8463_v55  ;;  %v4105_v35 = vshll.u32 %v9240_v10, 16  ;;  %v5627_v14 = vcombine.low %v4012_v8, %v4022_v24  ;;  %v1679_v28 = vrot.slane %v1677_v54, 4  ;;  %6198 = vmatmul.mubr.bf16.gmra.mrb[20].mxu1 %v5497_v32  ;;  %6455 = vmatprep.subr.bf16.mxu0 %v6893_v38  ;;  %v8522_v18 = vld [vmem:[%s7796_s29 + $0x80] sm:$0x1] }
 0x101   : > { %v1680_v41 = vrot.slane %v6962_v12, 5  ;;  %v4129_v56 = vshll.u32 %v9241_v34, 16  ;;  %v4036_v60 = vsel %vm7195_vm2, %v4031_v7, %v8407_v2  ;;  %v4046_v25 = vsel %vm7195_vm2, %v4041_v30, %v4045_v17  ;;  %6201 = vmatprep.mubr.bf16.mxu1 %v5498_v48  ;;  %v6896_v2 = vld [vmem:[%s9169_s3 + $0x220] sm:$0xff]   ;;  %v8515_v30 = vld [vmem:[%s7796_s29 + $0x74] sm:$0x1] }
 0x102   : > { %v4055_v44 = vrot.slane %v4054_v40, 4  ;;  %v4069_v62 = vrot.slane %v4067_v33, 5  ;;  %v4065_v8 = vrot.slane %v4064_v21, 4  ;;  %v4079_v9 = vrot.slane %v4078_v13, 4  ;;  %v9246_v40 = vld [vmem:[#allocation6_spill] sm:$0xff] }
 0x103   : > { %v9243_v32 = vshrl.u32 %v9242_v57, 16  ;;  %v9244_v24 = vshll.u32 %v9242_v57, 16  ;;  %v4089_v17 = vrot.slane %v4088_v1, 4  ;;  %v4093_v7 = vrot.slane %v4091_v51, 5  ;;  %6456 = vmatpush3.bf16.msra.mxu0 %v6893_v38 }
 0x104   : > { %v8517_v15 = vrot.slane %v4105_v35, 5  ;;  %v9245_v16 = vshrl.u32 %v9240_v10, 16  ;;  %v9247_v33 = vshrl.u32 %v9246_v40, 16  ;;  %v9248_v13 = vshll.u32 %v9246_v40, 16  ;;  %6457 = vmatprep.subr.bf16.mxu0 %v6896_v2 }
 0x105   : > { %v4098_v46 = vrot.slane %v9243_v32, 4  ;;  %v4101_v3 = vrot.slane %v9244_v24, 5  ;;  %v8528_v12 = vrot.slane %v4129_v56, 5  ;;  %v9249_v1 = vshrl.u32 %v9241_v34, 16 }
 0x106   : > { %v4111_v48 = vrot.slane %v9245_v16, 4  ;;  %v4122_v21 = vrot.slane %v9247_v33, 4  ;;  %v4125_v61 = vrot.slane %v9248_v13, 5  ;;  %v5500_v35 = vcombine.low %v8479_v47, %v8483_v52  ;;  %6426 = vmatmul.mubr.bf16.gmra.mrb[8].mxu0 %v5627_v14  ;;  %v8577_v33 = vld [vmem:[%s7796_s29 + $0x8c] sm:$0x1] }
 0x107   : > { %v4135_v51 = vrot.slane %v9249_v1, 4  ;;  %v5628_v57 = vcombine.low %v4036_v60, %v4046_v25  ;;  %v8536_v10 = vsel %vm7471_vm5, %v5485_v22, %v1677_v54  ;;  %v8540_v32 = vsel %vm7471_vm5, %v1679_v28, %v1680_v41  ;;  %6458 = vmatpush3.bf16.msra.mxu0 %v6896_v2 }
 0x108   : > { %v4060_v56 = vsel %vm7195_vm2, %v4055_v44, %v8453_v4  ;;  %v4070_v34 = vsel %vm7195_vm2, %v4065_v8, %v4069_v62  ;;  %v4102_v24 = vor.u32 %v4101_v3, %v4098_v46  ;;  %v4115_v47 = vshll.u32 %v8515_v30, 16  ;;  %v6899_v4 = vld [vmem:[%s9169_s3 + $0x228] sm:$0xff]   ;;  %6202 = vmatmul.mubr.bf16.gmra.mrb[24].mxu1 %v5499_v50 }
 0x109   : > { %v4084_v54 = vsel %vm7195_vm2, %v4079_v9, %v8463_v55  ;;  %v4094_v52 = vsel %vm7195_vm2, %v4089_v17, %v4093_v7  ;;  %v4112_v22 = vor.u32 %v4111_v48, %v8517_v15  ;;  %v4139_v28 = vshll.u32 %v8522_v18, 16  ;;  %6429 = vmatprep.mubr.bf16.mxu0 %v5628_v57  ;;  %6205 = vmatprep.mubr.bf16.mxu1 %v5500_v35 }
 0x10a   : > { %v4171_v38 = vshll.u32 %v8036_v11, 16  ;;  %v4126_v41 = vor.u32 %v4125_v61, %v4122_v21  ;;  %v4136_v60 = vor.u32 %v4135_v51, %v8528_v12  ;;  %v4153_v55 = vshll.u32 %v8019_v20, 16  ;;  %6459 = vmatprep.subr.bf16.mxu0 %v6899_v4 }
 0x10b   : > { %v4181_v25 = vshrl.u32 %v8051_v63, 16  ;;  %v4192_v44 = vshrl.u32 %v8054_v29, 16  ;;  %v5501_v62 = vcombine.low %v8536_v10, %v8540_v32  ;;  %v4177_v14 = vshll.u32 %v8051_v63, 16  ;;  %v6902_v63 = vld [vmem:[%s9169_s3 + $0x230] sm:$0xff]   ;;  %6460 = vmatpush3.bf16.msra.mxu0 %v6899_v4 }
 0x10c   : > { %v5629_v8 = vcombine.low %v4060_v56, %v4070_v34  ;;  %v5630_v9 = vcombine.low %v4084_v54, %v4094_v52  ;;  %v4103_v46 = vrot.slane %v4102_v24, 4  ;;  %v4117_v3 = vrot.slane %v4115_v47, 5  ;;  %v6963_v56 = vld [vmem:[%s7165_s6] sm:$0xf]  ;;  %v6964_v34 = vld [vmem:[%s7165_s6 + $0x4] sm:$0xf]  ;;  %6461 = vmatprep.subr.bf16.mxu0 %v6902_v63 }
 0x10d   : > { %v4113_v17 = vrot.slane %v4112_v22, 4  ;;  %v4141_v7 = vrot.slane %v4139_v28, 5  ;;  %v9250_v16 = vshrl.u32 %v8011_v59, 16  ;;  %v9251_v39 = vshll.u32 %v8011_v59, 16  ;;  %v8593_v47 = vld [vmem:[%s7796_s29 + $0x98] sm:$0x1] }
 0x10e   : > { %v4127_v50 = vrot.slane %v4126_v41, 4  ;;  %v4137_v40 = vrot.slane %v4136_v60, 4  ;;  %v8579_v2 = vrot.slane %v4153_v55, 5  ;;  %v9252_v21 = vshrl.u32 %v8019_v20, 16  ;;  %v6905_v22 = vld [vmem:[%s9169_s3 + $0x238] sm:$0xff]   ;;  %6430 = vmatmul.mubr.bf16.gmra.mrb[12].mxu0 %v5629_v8 }
 0x10f   : > { %v4146_v48 = vrot.slane %v9250_v16, 4  ;;  %v4149_v0 = vrot.slane %v9251_v39, 5  ;;  %v9253_v59 = vshrl.u32 %v8036_v11, 16  ;;  %v4173_v1 = vrot.slane %v4171_v38, 5  ;;  %6433 = vmatprep.mubr.bf16.mxu0 %v5630_v9  ;;  %v6966_v8 = vld [vmem:[%s7165_s6 + $0x10] sm:$0xf]  ;;  %6462 = vmatpush3.bf16.msra.mxu0 %v6902_v63 }
 0x110   : > { %v4159_v13 = vrot.slane %v9252_v21, 4  ;;  %v8585_v51 = vrot.slane %v4177_v14, 5  ;;  %v4183_v35 = vrot.slane %v4181_v25, 4  ;;  %v4195_v57 = vshll.u32 %v8054_v29, 16  ;;  %6206 = vmatmul.mubr.bf16.gmra.mrb[28].mxu1 %v5501_v62  ;;  %v6965_v14 = vld [vmem:[%s7165_s6 + $0xc] sm:$0xf]  ;;  %6463 = vmatprep.subr.bf16.mxu0 %v6905_v22 }
 0x111   : > { %v4170_v61 = vrot.slane %v9253_v59, 4  ;;  %v4205_v10 = vshrl.u32 %v8066_v36, 16  ;;  %v4216_v32 = vshrl.u32 %v8086_v27, 16  ;;  %v5510_v24 = vcombine.low %v6963_v56, %v6964_v34  ;;  %v8625_v63 = vld [vmem:[%s7796_s29 + $0xa4] sm:$0x1] }
 0x112   : > { %v4219_v20 = vshll.u32 %v8086_v27, 16  ;;  %v4108_v11 = vsel %vm7195_vm2, %v4103_v46, %v8517_v15  ;;  %v4150_v54 = vor.u32 %v4149_v0, %v4146_v48  ;;  %v4163_v52 = vshll.u32 %v8577_v33, 16  ;;  %v6967_v46 = vld [vmem:[%s7165_s6 + $0x18] sm:$0xf] }
 0x113   : > { %v4118_v28 = vsel %vm7195_vm2, %v4113_v17, %v4117_v3  ;;  %v4132_v27 = vsel %vm7195_vm2, %v4127_v50, %v8528_v12  ;;  %v4142_v15 = vsel %vm7195_vm2, %v4137_v40, %v4141_v7  ;;  %v4201_v4 = vshll.u32 %v8066_v36, 16  ;;  %6225 = vmatprep.mubr.bf16.mxu1 %v5510_v24  ;;  %v6968_v3 = vld [vmem:[%s7165_s6 + $0x1c] sm:$0xf]  ;;  %6464 = vmatpush3.bf16.msra.mxu0 %v6905_v22 }
 0x114   : > { %v4160_v38 = vor.u32 %v4159_v13, %v8579_v2  ;;  %v4174_v41 = vor.u32 %v4173_v1, %v4170_v61  ;;  %v4184_v60 = vor.u32 %v4183_v35, %v8585_v51  ;;  %v4187_v55 = vshll.u32 %v8593_v47, 16 }
 0x115   : > { %v4229_v25 = vshrl.u32 %v8091_v5, 16  ;;  %v5511_v12 = vcombine.low %v6965_v14, %v6966_v8  ;;  %v5512_v17 = vcombine.low %v6967_v46, %v6968_v3  ;;  %v4225_v36 = vshll.u32 %v8091_v5, 16  ;;  %v6972_v8 = vld [vmem:[%s7165_s6 + $0x30] sm:$0xf] }
 0x116   : > { %v5631_v62 = vcombine.low %v4108_v11, %v4118_v28  ;;  %v5632_v9 = vcombine.low %v4132_v27, %v4142_v15  ;;  %v4151_v7 = vrot.slane %v4150_v54, 4  ;;  %v4165_v16 = vrot.slane %v4163_v52, 5 }
 0x117   : > { %v4194_v48 = vrot.slane %v4192_v44, 4  ;;  %v4197_v39 = vrot.slane %v4195_v57, 5  ;;  %v8622_v0 = vrot.slane %v4201_v4, 5  ;;  %v4207_v50 = vrot.slane %v4205_v10, 4  ;;  %v8632_v57 = vld [vmem:[%s7796_s29 + $0xb0] sm:$0x1] }
 0x118   : > { %v4161_v40 = vrot.slane %v4160_v38, 4  ;;  %v4175_v21 = vrot.slane %v4174_v41, 4  ;;  %v4185_v13 = vrot.slane %v4184_v60, 4  ;;  %v4189_v59 = vrot.slane %v4187_v55, 5  ;;  %6434 = vmatmul.mubr.bf16.gmra.mrb[16].mxu0 %v5631_v62  ;;  %6226 = vmatmul.mubr.bf16.vlgmr.msra.gmra.mrb[0].mxu1 %v5511_v12  ;;  %v6970_v38 = vld [vmem:[%s7165_s6 + $0x24] sm:$0xf] }
 0x119   : > { %v4218_v5 = vrot.slane %v4216_v32, 4  ;;  %v4221_v61 = vrot.slane %v4219_v20, 5  ;;  %v8627_v1 = vrot.slane %v4225_v36, 5  ;;  %v4231_v35 = vrot.slane %v4229_v25, 4  ;;  %6437 = vmatprep.mubr.bf16.mxu0 %v5632_v9  ;;  %6505 = vmatpush3.bf16.msra.mxu1 %v8429_v49  ;;  %v6971_v41 = vld [vmem:[%s7165_s6 + $0x28] sm:$0xf] }
 0x11a   : > { %v4240_v29 = vshrl.u32 %v8121_v23, 16  ;;  %v4243_v44 = vshll.u32 %v8121_v23, 16  ;;  %v4253_v10 = vshrl.u32 %v8136_v43, 16  ;;  %v4198_v56 = vor.u32 %v4197_v39, %v4194_v48  ;;  %6229 = vmatprep.mubr.bf16.mxu1 %v5512_v17  ;;  %v6973_v12 = vld [vmem:[%s7165_s6 + $0x34] sm:$0xf] }
 0x11b   : > { %v4208_v34 = vor.u32 %v4207_v50, %v8622_v0  ;;  %v4211_v24 = vshll.u32 %v8625_v63, 16  ;;  %v4156_v32 = vsel %vm7195_vm2, %v4151_v7, %v8579_v2  ;;  %v4166_v20 = vsel %vm7195_vm2, %v4161_v40, %v4165_v16  ;;  %v8661_v62 = vld [vmem:[%s7796_s29 + $0xbc] sm:$0x1]  ;;  %v6974_v9 = vld [vmem:[%s9169_s3 + $0x110] sm:$0xff]   ;;  %v6975_v39 = vld [vmem:[%s7796_s29 + $0x4] sm:$0xf] }
 0x11c   : > { %v4180_v23 = vsel %vm7195_vm2, %v4175_v21, %v8585_v51  ;;  %v4249_v11 = vshll.u32 %v8136_v43, 16  ;;  %v4190_v54 = vsel %vm7195_vm2, %v4185_v13, %v4189_v59  ;;  %v4222_v52 = vor.u32 %v4221_v61, %v4218_v5  ;;  %v6969_v51 = vld [vmem:[%s9169_s3 + $0x108] sm:$0xff]   ;;  %v6976_v59 = vld [vmem:[%s7165_s6 + $0x3c] sm:$0xf]  ;;  %v6977_v5 = vld [vmem:[%s7165_s6 + $0x40] sm:$0xf] }
 0x11d   : > { %v4232_v2 = vor.u32 %v4231_v35, %v8627_v1  ;;  %v4235_v22 = vshll.u32 %v8632_v57, 16  ;;  %6498 = vmatprep.subr.bf16.mxu1 %v6969_v51  ;;  %v4242_v43 = vrot.slane %v4240_v29, 4  ;;  %v4245_v28 = vrot.slane %v4243_v44, 5  ;;  %v6978_v29 = vld [vmem:[%s9169_s3 + $0x118] sm:$0xff]  }
 0x11e   : > { %v5633_v27 = vcombine.low %v4156_v32, %v4166_v20  ;;  %v4199_v49 = vrot.slane %v4198_v56, 4  ;;  %v4209_v15 = vrot.slane %v4208_v34, 4  ;;  %v4213_v4 = vrot.slane %v4211_v24, 5  ;;  %6506 = vmatpush3.bf16.msra.mxu1 %v6969_v51  ;;  %v9254_v34 = vld [vmem:[#allocation9_spill] sm:$0xff]  ;;  %v6980_v32 = vld [vmem:[%s7796_s29 + $0x10] sm:$0xf] }
 0x11f   : > { %v5513_v60 = vcombine.low %v6970_v38, %v6971_v41  ;;  %v5634_v55 = vcombine.low %v4180_v23, %v4190_v54  ;;  %v8656_v25 = vrot.slane %v4249_v11, 5  ;;  %v4255_v14 = vrot.slane %v4253_v10, 4  ;;  %6499 = vmatprep.subr.bf16.mxu1 %v6974_v9  ;;  %v6979_v10 = vld [vmem:[%s7796_s29] sm:$0xf]  ;;  %v6983_v51 = vld [vmem:[%s7165_s6 + $0x4c] sm:$0xf] }
 0x120   : > { %v5514_v46 = vcombine.low %v6972_v8, %v6973_v12  ;;  %v4223_v3 = vrot.slane %v4222_v52, 4  ;;  %v4233_v17 = vrot.slane %v4232_v2, 4  ;;  %v4237_v36 = vrot.slane %v4235_v22, 5  ;;  %6438 = vmatmul.mubr.bf16.gmra.mrb[20].mxu0 %v5633_v27  ;;  %v6981_v52 = vld [vmem:[%s7796_s29 + $0x1c] sm:$0xf]  ;;  %v9255_v8 = vld [vmem:[#allocation10_spill] sm:$0xff] }
 0x121   : > { %v4246_v7 = vor.u32 %v4245_v28, %v4242_v43  ;;  %v4204_v16 = vsel %vm7195_vm2, %v4199_v49, %v8622_v0  ;;  %v4214_v48 = vsel %vm7195_vm2, %v4209_v15, %v4213_v4  ;;  %v4586_v50 = vrot.slane %v6975_v39, 5  ;;  %6230 = vmatmul.mubr.bf16.gmra.mrb[4].mxu1 %v5513_v60  ;;  %6441 = vmatprep.mubr.bf16.mxu0 %v5634_v55  ;;  %v6982_v22 = vld [vmem:[%s7165_s6 + $0x48] sm:$0xf]  ;;  %v8691_v28 = vld [vmem:[%s7165_s6 + $0x6c] sm:$0xf]  ;;  %v6985_v4 = vld [vmem:[%s9169_s3 + $0x120] sm:$0xff]  }
 0x122   : > { %v4256_v40 = vor.u32 %v4255_v14, %v8656_v25  ;;  %v4259_v21 = vshll.u32 %v8661_v62, 16  ;;  %6233 = vmatprep.mubr.bf16.mxu1 %v5514_v46  ;;  %6507 = vmatpush3.bf16.msra.mxu1 %v6974_v9  ;;  %v4228_v13 = vsel %vm7195_vm2, %v4223_v3, %v8627_v1  ;;  %v4238_v0 = vsel %vm7195_vm2, %v4233_v17, %v4237_v36  ;;  %v6986_v38 = vld [vmem:[%s7796_s29 + $0xc] sm:$0xf]  ;;  %v6987_v46 = vld [vmem:[%s7796_s29 + $0x18] sm:$0xf] }
 0x123   : > { %v5515_v61 = vcombine.low %v6976_v59, %v6977_v5  ;;  %v5635_v35 = vcombine.low %v4204_v16, %v4214_v48  ;;  %6500 = vmatprep.subr.bf16.mxu1 %v6978_v29  ;;  %v4247_v44 = vrot.slane %v4246_v7, 4  ;;  %v5646_v56 = vrot.slane %v6979_v10, 9  ;;  %v8714_v9 = vld [vmem:[%s7165_s6 + $0x70] sm:$0xf]  ;;  %v6989_v48 = vld [vmem:[%s7165_s6 + $0x74] sm:$0x1] }
 0x124   : > { %v4588_v1 = vrot.slane %v4586_v50, 4  ;;  %v4589_v24 = vrot.slane %v9254_v34, 5  ;;  %v4593_v20 = vrot.slane %v6980_v32, 5  ;;  %v5636_v23 = vcombine.low %v4228_v13, %v4238_v0  ;;  %v6991_v13 = vld [vmem:[%s7165_s6 + $0x58] sm:$0xf]  ;;  %v6992_v59 = vld [vmem:[%s9169_s3 + $0x128] sm:$0xff]  }
 0x125   : > { %v4257_v11 = vrot.slane %v4256_v40, 4  ;;  %v4261_v54 = vrot.slane %v4259_v21, 5  ;;  %v4600_v2 = vrot.slane %v6981_v52, 5  ;;  %v5516_v43 = vcombine.low %v6982_v22, %v6983_v51  ;;  %v6990_v21 = vld [vmem:[%s7165_s6 + $0x54] sm:$0xf] }
 0x126   : > { %6508 = vmatpush3.bf16.msra.mxu1 %v6978_v29  ;;  %v2589_v27 = vshrl.u32 %v8691_v28, 16  ;;  %v2592_v49 = vshll.u32 %v8691_v28, 16  ;;  %v4252_v15 = vsel %vm7195_vm2, %v4247_v44, %v8656_v25  ;;  %v5647_v41 = vrot.slane %v6986_v38, 9  ;;  %v6993_v29 = vld [vmem:[%s7796_s29 + $0x28] sm:$0xf] }
 0x127   : > { %6501 = vmatprep.subr.bf16.mxu1 %v6985_v4  ;;  %v8704_v60 = vsel %vm7471_vm5, %v5646_v56, %v4586_v50  ;;  %v4590_v55 = vsel %vm7471_vm5, %v4588_v1, %v4589_v24  ;;  %v4595_v14 = vrot.slane %v4593_v20, 4  ;;  %v4596_v25 = vrot.slane %v9255_v8, 5  ;;  %v6994_v1 = vld [vmem:[%s7796_s29 + $0x24] sm:$0xf]  ;;  %v6995_v24 = vld [vmem:[%s7796_s29 + $0x34] sm:$0xf] }
 0x128   : > { %6442 = vmatmul.mubr.bf16.gmra.mrb[24].mxu0 %v5635_v35  ;;  %v4262_v12 = vsel %vm7195_vm2, %v4257_v11, %v4261_v54  ;;  %v5648_v3 = vrot.slane %v6987_v46, 9  ;;  %v4602_v17 = vrot.slane %v4600_v2, 4  ;;  %v4603_v36 = vrot.slane %v8236_v26, 5  ;;  %v6996_v11 = vld [vmem:[%s7165_s6 + $0x60] sm:$0xf] }
 0x129   : > { %6234 = vmatmul.mubr.bf16.gmra.mrb[8].mxu1 %v5515_v61  ;;  %6445 = vmatprep.mubr.bf16.mxu0 %v5636_v23  ;;  %v2598_v7 = vshll.u32 %v8714_v9, 16  ;;  %v2602_v16 = vshrl.u32 %v8714_v9, 16  ;;  %v2608_v39 = vshll.u32 %v6989_v48, 16  ;;  %v8719_v50 = vrot.slane %v2589_v27, 4  ;;  %v6997_v54 = vld [vmem:[%s7165_s6 + $0x64] sm:$0xf] }
 0x12a   : > { %6237 = vmatprep.mubr.bf16.mxu1 %v5516_v43  ;;  %6509 = vmatpush3.bf16.msra.mxu1 %v6985_v4  ;;  %v8721_v40 = vrot.slane %v2592_v49, 5  ;;  %v5517_v26 = vcombine.low %v6990_v21, %v6991_v13  ;;  %v5662_v0 = vcombine.low %v8704_v60, %v4590_v55  ;;  %v5637_v5 = vcombine.low %v4252_v15, %v4262_v12  ;;  %v8759_v51 = vld [vmem:[%s7165_s6 + $0x78] sm:$0xf]  ;;  %v8762_v43 = vld [vmem:[%s7165_s6 + $0x7c] sm:$0xf] }
 0x12b   : > { %6502 = vmatprep.subr.bf16.mxu1 %v6992_v59  ;;  %v8731_v61 = vsel %vm7471_vm5, %v5647_v41, %v4593_v20  ;;  %v8735_v35 = vsel %vm7471_vm5, %v4595_v14, %v4596_v25  ;;  %v4607_v44 = vrot.slane %v6993_v29, 5  ;;  %v8740_v10 = vsel %vm7471_vm5, %v5648_v3, %v4600_v2  ;;  %v8767_v49 = vld [vmem:[%s7165_s6 + $0x84] sm:$0xf]  ;;  %v8770_v15 = vld [vmem:[%s7165_s6 + $0x88] sm:$0xf]  ;;  %v7002_v41 = vld [vmem:[%s9169_s3 + $0x130] sm:$0xff]  }
 0x12c   : > { %v8744_v56 = vsel %vm7471_vm5, %v4602_v17, %v4603_v36  ;;  %v5649_v34 = vrot.slane %v6994_v1, 9  ;;  %v4614_v32 = vrot.slane %v6995_v24, 5  ;;  %v8748_v20 = vrot.slane %v2602_v16, 4  ;;  %v8781_v14 = vld [vmem:[%s7165_s6 + $0x90] sm:$0xf]  ;;  %v7011_v29 = vld [vmem:[%s9169_s3 + $0x138] sm:$0xff]  }
 0x12d   : > { %v8750_v23 = vrot.slane %v2608_v39, 5  ;;  %v5518_v52 = vcombine.low %v6996_v11, %v6997_v54  ;;  %v5519_v2 = vcombine.low %v8691_v28, %v8714_v9  ;;  %v5663_v22 = vcombine.low %v8731_v61, %v8735_v35  ;;  %v8784_v8 = vld [vmem:[%s7165_s6 + $0x94] sm:$0xf]  ;;  %v7006_v36 = vld [vmem:[%s7796_s29 + $0x40] sm:$0xf] }
 0x12e   : > { %6510 = vmatpush3.bf16.msra.mxu1 %v6992_v59  ;;  %v5520_v27 = vcombine.low %v8759_v51, %v8762_v43  ;;  %v5521_v4 = vcombine.low %v8767_v49, %v8770_v15  ;;  %v4610_v38 = vrot.slane %v8286_v58, 5  ;;  %v5664_v60 = vcombine.low %v8740_v10, %v8744_v56  ;;  %v7005_v58 = vld [vmem:[%s7796_s29 + $0x30] sm:$0xf]  ;;  %v7010_v61 = vld [vmem:[%s7796_s29 + $0x4c] sm:$0xf] }
 0x12f   : > { %6503 = vmatprep.subr.bf16.mxu1 %v7002_v41  ;;  %v4609_v55 = vrot.slane %v4607_v44, 4  ;;  %v5522_v25 = vcombine.low %v8781_v14, %v8784_v8  ;;  %v5650_v12 = vrot.slane %v7005_v58, 9  ;;  %v8791_v46 = vsel %vm7471_vm5, %v5649_v34, %v4607_v44  ;;  %v7012_v44 = vld [vmem:[%s7796_s29 + $0x58] sm:$0xf]  ;;  %v8819_v24 = vld [vmem:[%s7165_s6 + $0xac] sm:$0xf] }
 0x130   : > { %6446 = vmatmul.mubr.bf16.gmra.mrb[28].mxu0 %v5637_v5  ;;  %v4616_v3 = vrot.slane %v4614_v32, 4  ;;  %v4617_v17 = vrot.slane %v8324_v6, 5  ;;  %v4621_v16 = vrot.slane %v7006_v36, 5  ;;  %v2565_v48 = vshrl.u32 %v6996_v11, 16  ;;  %v7009_v5 = vld [vmem:[%s7796_s29 + $0x3c] sm:$0xf] }
 0x131   : > { %6238 = vmatmul.mubr.bf16.gmra.mrb[12].mxu1 %v5517_v26  ;;  %6465 = vmatprep.mubr.bf16.mxu0 %v5662_v0  ;;  %v2568_v39 = vshll.u32 %v6996_v11, 16  ;;  %v2574_v21 = vshll.u32 %v6997_v54, 16  ;;  %v2578_v13 = vshrl.u32 %v6997_v54, 16  ;;  %v8796_v26 = vld [vmem:[%s7165_s6 + $0xa0] sm:$0xf]  ;;  %v5651_v6 = vrot.slane %v7009_v5, 9 }
 0x132   : > { %6241 = vmatprep.mubr.bf16.mxu1 %v5518_v52  ;;  %6511 = vmatpush3.bf16.msra.mxu1 %v7002_v41  ;;  %v8799_v0 = vld [vmem:[%s7165_s6 + $0x9c] sm:$0xf]  ;;  %v4628_v35 = vrot.slane %v7010_v61, 5  ;;  %v4635_v10 = vrot.slane %v7012_v44, 5  ;;  %v8811_v56 = vsel %vm7471_vm5, %v4609_v55, %v4610_v38  ;;  %v8815_v1 = vsel %vm7471_vm5, %v5650_v12, %v4614_v32  ;;  %v8822_v11 = vld [vmem:[%s7165_s6 + $0xa8] sm:$0xf] }
 0x133   : > { %v5523_v59 = vcombine.low %v8799_v0, %v8796_v26  ;;  %6504 = vmatprep.subr.bf16.mxu1 %v7011_v29  ;;  %v4624_v34 = vrot.slane %v8369_v19, 5  ;;  %v5524_v54 = vcombine.low %v8822_v11, %v8819_v24  ;;  %v8828_v52 = vsel %vm7471_vm5, %v4616_v3, %v4617_v17  ;;  %v7015_v41 = vld [vmem:[%s7796_s29 + $0x48] sm:$0xf]  ;;  %v7016_v61 = vld [vmem:[%s7796_s29 + $0x54] sm:$0xf] }
 0x134   : > { %v4623_v38 = vrot.slane %v4621_v16, 4  ;;  %v5652_v55 = vrot.slane %v7015_v41, 9  ;;  %v4631_v32 = vrot.slane %v8401_v42, 5  ;;  %v2567_v19 = vrot.slane %v2565_v48, 4 }
 0x135   : > { %v2570_v58 = vrot.slane %v2568_v39, 5  ;;  %v8832_v12 = vrot.slane %v2574_v21, 5  ;;  %v2580_v36 = vrot.slane %v2578_v13, 4  ;;  %v4630_v5 = vrot.slane %v4628_v35, 4  ;;  %v8845_v39 = vld [vmem:[%s7165_s6 + $0xb8] sm:$0xf] }
 0x136   : > { %6512 = vmatpush3.bf16.msra.mxu1 %v7011_v29  ;;  %v5653_v44 = vrot.slane %v7016_v61, 9  ;;  %v4637_v3 = vrot.slane %v4635_v10, 4  ;;  %v4638_v17 = vrot.slane %v8451_v45, 5  ;;  %v5665_v41 = vcombine.low %v8791_v46, %v8811_v56  ;;  %v8848_v21 = vld [vmem:[%s7165_s6 + $0xb4] sm:$0xf] }
 0x137   : > { %v5666_v42 = vcombine.low %v8815_v1, %v8828_v52  ;;  %v8842_v48 = vsel %vm7471_vm5, %v5651_v6, %v4621_v16  ;;  %v5525_v13 = vcombine.low %v8848_v21, %v8845_v39  ;;  %v8857_v45 = vsel %vm7471_vm5, %v4623_v38, %v4624_v34  ;;  %v7019_v46 = vld [vmem:[%s7165_s6 + $0x68] sm:$0x1]  ;;  %v7020_v6 = vld [vmem:[%s7796_s29 + $0x64] sm:$0xf]  ;;  %v7021_v34 = vld [vmem:[%s7796_s29 + $0x60] sm:$0xf] }
 0x138   : > { %6466 = vmatmul.mubr.bf16.vlgmr.msra.gmra.mrb[0].mxu0 %v5663_v22  ;;  %v8861_v22 = vsel %vm7471_vm5, %v5652_v55, %v4628_v35  ;;  %v2584_v16 = vshll.u32 %v7019_v46, 16  ;;  %v4642_v29 = vrot.slane %v7020_v6, 5  ;;  %v2571_v28 = vor.u32 %v2570_v58, %v2567_v19  ;;  %v7022_v61 = vld [vmem:[%s7796_s29 + $0x6c] sm:$0xf] }
 0x139   : > { %6242 = vmatmul.mubr.bf16.gmra.mrb[16].mxu1 %v5519_v2  ;;  %6469 = vmatprep.mubr.bf16.mxu0 %v5664_v60  ;;  %v2581_v2 = vor.u32 %v2580_v36, %v8832_v12  ;;  %v2595_v60 = vor.u32 %v8721_v40, %v8719_v50  ;;  %v8873_v56 = vrot.slane %v2598_v7, 5  ;;  %v8877_v35 = vsel %vm7471_vm5, %v4630_v5, %v4631_v32 }
 0x13a   : > { %6245 = vmatprep.mubr.bf16.mxu1 %v5520_v27  ;;  %v8881_v1 = vsel %vm7471_vm5, %v5653_v44, %v4635_v10  ;;  %v8885_v27 = vsel %vm7471_vm5, %v4637_v3, %v4638_v17  ;;  %v5654_v52 = vrot.slane %v7021_v34, 9  ;;  %v2613_v50 = vshrl.u32 %v8759_v51, 16 }
 0x13b   : > { %v2616_v9 = vshll.u32 %v8759_v51, 16  ;;  %v2622_v7 = vshll.u32 %v8762_v43, 16  ;;  %v2626_v40 = vshrl.u32 %v8762_v43, 16  ;;  %v5667_v38 = vcombine.low %v8842_v48, %v8857_v45 }
 0x13c   : > { %v8894_v10 = vrot.slane %v2584_v16, 5  ;;  %v4644_v55 = vrot.slane %v4642_v29, 4  ;;  %v4645_v32 = vrot.slane %v8474_v31, 5  ;;  %v8897_v19 = vrot.slane %v2571_v28, 4 }
 0x13d   : > { %v8899_v58 = vrot.slane %v2581_v2, 4  ;;  %v8901_v36 = vrot.slane %v2595_v60, 4  ;;  %v2605_v51 = vor.u32 %v8748_v20, %v8873_v56  ;;  %v5668_v43 = vcombine.low %v8861_v22, %v8877_v35  ;;  %v7023_v22 = vld [vmem:[%s7796_s29 + $0x70] sm:$0xf] }
 0x13e   : > { %v5669_v5 = vcombine.low %v8881_v1, %v8885_v27  ;;  %v8911_v31 = vsel %vm7471_vm5, %v5654_v52, %v4642_v29  ;;  %v5655_v44 = vrot.slane %v7022_v61, 9  ;;  %v2615_v3 = vrot.slane %v2613_v50, 4  ;;  %v7025_v52 = vld [vmem:[%s7165_s6 + $0x80] sm:$0x1] }
 0x13f   : > { %v2618_v17 = vrot.slane %v2616_v9, 5  ;;  %v8914_v48 = vrot.slane %v2622_v7, 5  ;;  %v2628_v45 = vrot.slane %v2626_v40, 4  ;;  %v8921_v20 = vsel %vm7471_vm5, %v4644_v55, %v4645_v32 }
 0x140   : > { %6470 = vmatmul.mubr.bf16.gmra.mrb[4].mxu0 %v5665_v41  ;;  %v4649_v46 = vrot.slane %v7023_v22, 5  ;;  %v4652_v16 = vrot.slane %v8515_v30, 5  ;;  %v7024_v41 = vld [vmem:[%s7796_s29 + $0x7c] sm:$0xf]  ;;  %v2601_v30 = vsel %vm7195_vm2, %v8901_v36, %v8873_v56  ;;  %v2606_v29 = vrot.slane %v2605_v51, 4 }
 0x141   : > { %6246 = vmatmul.mubr.bf16.gmra.mrb[20].mxu1 %v5521_v4  ;;  %6473 = vmatprep.mubr.bf16.mxu0 %v5666_v42  ;;  %v4656_v6 = vrot.slane %v7024_v41, 5  ;;  %v2577_v4 = vsel %vm7195_vm2, %v8897_v19, %v8832_v12  ;;  %v2587_v42 = vsel %vm7195_vm2, %v8899_v58, %v8894_v10  ;;  %v2637_v28 = vshrl.u32 %v8767_v49, 16  ;;  %v7026_v56 = vld [vmem:[%s7796_s29 + $0x78] sm:$0xf] }
 0x142   : > { %6249 = vmatprep.mubr.bf16.mxu1 %v5522_v25  ;;  %v2640_v25 = vshll.u32 %v8767_v49, 16  ;;  %v2646_v2 = vshll.u32 %v8770_v15, 16  ;;  %v2650_v60 = vshrl.u32 %v8770_v15, 16  ;;  %v8947_v12 = vsel %vm7471_vm5, %v5655_v44, %v4649_v46 }
 0x143   : > { %v2619_v35 = vor.u32 %v2618_v17, %v2615_v3  ;;  %v2629_v34 = vor.u32 %v2628_v45, %v8914_v48  ;;  %v2632_v50 = vshll.u32 %v7025_v52, 16  ;;  %v4651_v9 = vrot.slane %v4649_v46, 4 }
 0x144   : > { %v5656_v7 = vrot.slane %v7026_v56, 9  ;;  %v4658_v40 = vrot.slane %v4656_v6, 4  ;;  %v4659_v10 = vrot.slane %v8522_v18, 5  ;;  %v2661_v49 = vshrl.u32 %v8781_v14, 16 }
 0x145   : > { %v2664_v55 = vshll.u32 %v8781_v14, 16  ;;  %v2670_v15 = vshll.u32 %v8784_v8, 16  ;;  %v2674_v32 = vshrl.u32 %v8784_v8, 16  ;;  %v2639_v19 = vrot.slane %v2637_v28, 4  ;;  %v7028_v28 = vld [vmem:[%s7796_s29 + $0x84] sm:$0xf] }
 0x146   : > { %v2642_v58 = vrot.slane %v2640_v25, 5  ;;  %v8957_v36 = vrot.slane %v2646_v2, 5  ;;  %v2652_v51 = vrot.slane %v2650_v60, 4  ;;  %v2611_v61 = vsel %vm7195_vm2, %v2606_v29, %v8750_v23  ;;  %v7029_v2 = vld [vmem:[%s7796_s29 + $0x88] sm:$0xf] }
 0x147   : > { %v2620_v18 = vrot.slane %v2619_v35, 4  ;;  %v2630_v44 = vrot.slane %v2629_v34, 4  ;;  %v2634_v3 = vrot.slane %v2632_v50, 5  ;;  %v8967_v14 = vsel %vm7471_vm5, %v4651_v9, %v4652_v16  ;;  %v7031_v50 = vld [vmem:[%s7796_s29 + $0x94] sm:$0xf] }
 0x148   : > { %6474 = vmatmul.mubr.bf16.gmra.mrb[8].mxu0 %v5667_v38  ;;  %v8971_v8 = vsel %vm7471_vm5, %v5656_v7, %v4656_v6  ;;  %v8975_v23 = vsel %vm7471_vm5, %v4658_v40, %v4659_v10  ;;  %v7027_v38 = vld [vmem:[%s7165_s6 + $0x8c] sm:$0x1]  ;;  %v8981_v45 = vrot.slane %v2670_v15, 5  ;;  %v2676_v22 = vrot.slane %v2674_v32, 4 }
 0x149   : > { %6250 = vmatmul.mubr.bf16.gmra.mrb[24].mxu1 %v5523_v59  ;;  %6477 = vmatprep.mubr.bf16.mxu0 %v5668_v43  ;;  %v2656_v17 = vshll.u32 %v7027_v38, 16  ;;  %v2663_v59 = vrot.slane %v2661_v49, 4  ;;  %v2666_v43 = vrot.slane %v2664_v55, 5  ;;  %v5542_v46 = vcombine.low %v2577_v4, %v2587_v42 }
 0x14a   : > { %6253 = vmatprep.mubr.bf16.mxu1 %v5524_v54  ;;  %v5670_v16 = vcombine.low %v8911_v31, %v8921_v20  ;;  %v2643_v41 = vor.u32 %v2642_v58, %v2639_v19  ;;  %v2653_v6 = vor.u32 %v2652_v51, %v8957_v36  ;;  %v2625_v29 = vsel %vm7195_vm2, %v2620_v18, %v8914_v48  ;;  %v7030_v20 = vld [vmem:[%s7165_s6 + $0x98] sm:$0x1] }
 0x14b   : > { %v2635_v54 = vsel %vm7195_vm2, %v2630_v44, %v2634_v3  ;;  %v5657_v25 = vrot.slane %v7028_v28, 9  ;;  %v4663_v60 = vrot.slane %v7029_v2, 5  ;;  %v5543_v35 = vcombine.low %v2601_v30, %v2611_v61 }
 0x14c   : > { %v5671_v4 = vcombine.low %v8947_v12, %v8967_v14  ;;  %v5672_v31 = vcombine.low %v8971_v8, %v8975_v23  ;;  %v2680_v42 = vshll.u32 %v7030_v20, 16  ;;  %v2658_v34 = vrot.slane %v2656_v17, 5  ;;  %v7033_v17 = vld [vmem:[%s7165_s6 + $0xa4] sm:$0x1] }
 0x14d   : > { %v2667_v52 = vor.u32 %v2666_v43, %v2663_v59  ;;  %v2677_v48 = vor.u32 %v2676_v22, %v8981_v45  ;;  %v4670_v9 = vrot.slane %v7031_v50, 5  ;;  %v5544_v56 = vcombine.low %v2625_v29, %v2635_v54  ;;  %v7036_v50 = vld [vmem:[%s7165_s6 + $0xb0] sm:$0x1] }
 0x14e   : > { %v2644_v7 = vrot.slane %v2643_v41, 4  ;;  %v2654_v40 = vrot.slane %v2653_v6, 4  ;;  %v4666_v30 = vrot.slane %v8577_v33, 5  ;;  %v9006_v12 = vsel %vm7471_vm5, %v5657_v25, %v4663_v60  ;;  %v7032_v33 = vld [vmem:[%s7796_s29 + $0x90] sm:$0xf] }
 0x14f   : > { %v4665_v10 = vrot.slane %v4663_v60, 4  ;;  %v2685_v49 = vshrl.u32 %v8799_v0, 16  ;;  %v2688_v55 = vshll.u32 %v8799_v0, 16  ;;  %v2682_v15 = vrot.slane %v2680_v42, 5  ;;  %v7035_v60 = vld [vmem:[%s7796_s29 + $0xac] sm:$0xf] }
 0x150   : > { %6478 = vmatmul.mubr.bf16.gmra.mrb[12].mxu0 %v5669_v5  ;;  %v5658_v32 = vrot.slane %v7032_v33, 9  ;;  %v2694_v1 = vshll.u32 %v8796_v26, 16  ;;  %v2698_v27 = vshrl.u32 %v8796_v26, 16  ;;  %v2668_v5 = vrot.slane %v2667_v52, 4 }
 0x151   : > { %6254 = vmatmul.mubr.bf16.gmra.mrb[28].mxu1 %v5525_v13  ;;  %6481 = vmatprep.mubr.bf16.mxu0 %v5670_v16  ;;  %v2678_v19 = vrot.slane %v2677_v48, 4  ;;  %v4672_v58 = vrot.slane %v4670_v9, 4  ;;  %v4673_v51 = vrot.slane %v8593_v47, 5  ;;  %v2709_v0 = vshrl.u32 %v8822_v11, 16 }
 0x152   : > { %6289 = vmatprep.mubr.bf16.mxu1 %v5542_v46  ;;  %v2712_v61 = vshll.u32 %v8822_v11, 16  ;;  %v2718_v13 = vshll.u32 %v8819_v24, 16  ;;  %v2722_v18 = vshrl.u32 %v8819_v24, 16  ;;  %v2649_v44 = vsel %vm7195_vm2, %v2644_v7, %v8957_v36 }
 0x153   : > { %v2659_v26 = vsel %vm7195_vm2, %v2654_v40, %v2658_v34  ;;  %v2687_v3 = vrot.slane %v2685_v49, 4  ;;  %v2690_v14 = vrot.slane %v2688_v55, 5  ;;  %v4667_v47 = vsel %vm7471_vm5, %v4665_v10, %v4666_v30  ;;  %v7037_v40 = vld [vmem:[%s7796_s29 + $0x9c] sm:$0xf]  ;;  %v7038_v49 = vld [vmem:[%s7796_s29 + $0xa8] sm:$0xf] }
 0x154   : > { %v4671_v8 = vsel %vm7471_vm5, %v5658_v32, %v4670_v9  ;;  %v9030_v11 = vrot.slane %v2694_v1, 5  ;;  %v2700_v23 = vrot.slane %v2698_v27, 4  ;;  %v2673_v24 = vsel %vm7195_vm2, %v2668_v5, %v8981_v45  ;;  %v7034_v45 = vld [vmem:[%s7796_s29 + $0xa0] sm:$0xf] }
 0x155   : > { %v2683_v36 = vsel %vm7195_vm2, %v2678_v19, %v2682_v15  ;;  %v4674_v38 = vsel %vm7471_vm5, %v4672_v58, %v4673_v51  ;;  %v2704_v59 = vshll.u32 %v7033_v17, 16  ;;  %v2711_v43 = vrot.slane %v2709_v0, 4 }
 0x156   : > { %v2714_v22 = vrot.slane %v2712_v61, 5  ;;  %v9040_v46 = vrot.slane %v2718_v13, 5  ;;  %v2724_v16 = vrot.slane %v2722_v18, 4  ;;  %v5545_v41 = vcombine.low %v2649_v44, %v2659_v26  ;;  %v7039_v61 = vld [vmem:[%s7796_s29 + $0xb8] sm:$0xf] }
 0x157   : > { %v5673_v6 = vcombine.low %v9006_v12, %v4667_v47  ;;  %v2691_v29 = vor.u32 %v2690_v14, %v2687_v3  ;;  %v4677_v54 = vrot.slane %v7034_v45, 5  ;;  %v5546_v28 = vcombine.low %v2673_v24, %v2683_v36  ;;  %v7040_v3 = vld [vmem:[%s7165_s6 + $0xbc] sm:$0x1]  ;;  %v7041_v36 = vld [vmem:[%s7796_s29 + $0xb4] sm:$0xf] }
 0x158   : > { %6482 = vmatmul.mubr.bf16.gmra.mrb[16].mxu0 %v5671_v4  ;;  %v5674_v25 = vcombine.low %v4671_v8, %v4674_v38  ;;  %v2701_v2 = vor.u32 %v2700_v23, %v9030_v11  ;;  %v4684_v20 = vrot.slane %v7035_v60, 5  ;;  %v2733_v4 = vshrl.u32 %v8848_v21, 16 }
 0x159   : > { %6290 = vmatmul.mubr.bf16.vlgmr.msra.gmra.mrb[16].mxu1 %v5543_v35  ;;  %6485 = vmatprep.mubr.bf16.mxu0 %v5672_v31  ;;  %v2736_v42 = vshll.u32 %v8848_v21, 16  ;;  %v2742_v34 = vshll.u32 %v8845_v39, 16  ;;  %v2746_v52 = vshrl.u32 %v8845_v39, 16  ;;  %v2706_v48 = vrot.slane %v2704_v59, 5 }
 0x15a   : > { %6293 = vmatprep.mubr.bf16.mxu1 %v5544_v56  ;;  %v2715_v35 = vor.u32 %v2714_v22, %v2711_v43  ;;  %v2725_v31 = vor.u32 %v2724_v16, %v9040_v46  ;;  %v2728_v9 = vshll.u32 %v7036_v50, 16  ;;  %v2692_v7 = vrot.slane %v2691_v29, 4 }
 0x15b   : > { %v5659_v30 = vrot.slane %v7037_v40, 9  ;;  %v4679_v12 = vrot.slane %v4677_v54, 4  ;;  %v4680_v56 = vrot.slane %v8625_v63, 5  ;;  %v2702_v10 = vrot.slane %v2701_v2, 4  ;;  %v9097_v40 = vld [vmem:[%s9170_s4] ss:$0 sm:$0xff] }
 0x15c   : > { %v5660_v55 = vrot.slane %v7038_v49, 9  ;;  %v4686_v21 = vrot.slane %v4684_v20, 4  ;;  %v4687_v15 = vrot.slane %v8632_v57, 5  ;;  %v2735_v39 = vrot.slane %v2733_v4, 4 }
 0x15d   : > { %v2738_v33 = vrot.slane %v2736_v42, 5  ;;  %v2744_v32 = vrot.slane %v2742_v34, 5  ;;  %v2748_v1 = vrot.slane %v2746_v52, 4  ;;  %v2716_v27 = vrot.slane %v2715_v35, 4 }
 0x15e   : > { %v2726_v5 = vrot.slane %v2725_v31, 4  ;;  %v2730_v19 = vrot.slane %v2728_v9, 5  ;;  %v2697_v63 = vsel %vm7195_vm2, %v2692_v7, %v9030_v11  ;;  %v4678_v58 = vsel %vm7471_vm5, %v5659_v30, %v4677_v54 }
 0x15f   : > { %v2707_v57 = vsel %vm7195_vm2, %v2702_v10, %v2706_v48  ;;  %v4681_v51 = vsel %vm7471_vm5, %v4679_v12, %v4680_v56  ;;  %v4685_v0 = vsel %vm7471_vm5, %v5660_v55, %v4684_v20  ;;  %v4691_v13 = vrot.slane %v7039_v61, 5 }
 0x160   : > { %6486 = vmatmul.mubr.bf16.gmra.mrb[20].mxu0 %v5673_v6  ;;  %v4688_v18 = vsel %vm7471_vm5, %v4686_v21, %v4687_v15  ;;  %v2739_v44 = vor.u32 %v2738_v33, %v2735_v39  ;;  %v2749_v26 = vor.u32 %v2748_v1, %v2744_v32  ;;  %v2752_v14 = vshll.u32 %v7040_v3, 16 }
 0x161   : > { %6294 = vmatmul.mubr.bf16.gmra.mrb[20].mxu1 %v5545_v41  ;;  %6489 = vmatprep.mubr.bf16.mxu0 %v5674_v25  ;;  %v2721_v47 = vsel %vm7195_vm2, %v2716_v27, %v9040_v46  ;;  %v2731_v8 = vsel %vm7195_vm2, %v2726_v5, %v2730_v19  ;;  %v5547_v11 = vcombine.low %v2697_v63, %v2707_v57  ;;  %v5661_v38 = vrot.slane %v7041_v36, 9 }
 0x162   : > { %6297 = vmatprep.mubr.bf16.mxu1 %v5546_v28  ;;  %v5675_v23 = vcombine.low %v4678_v58, %v4681_v51  ;;  %v5676_v24 = vcombine.low %v4685_v0, %v4688_v18  ;;  %v4693_v17 = vrot.slane %v4691_v13, 4  ;;  %v4694_v59 = vrot.slane %v8661_v62, 5 }
 0x163   : > { %v5548_v43 = vcombine.low %v2721_v47, %v2731_v8  ;;  %v2740_v22 = vrot.slane %v2739_v44, 4  ;;  %v2750_v16 = vrot.slane %v2749_v26, 4  ;;  %v2754_v41 = vrot.slane %v2752_v14, 5 }
 0x164   : > { %v4692_v46 = vsel %vm7471_vm5, %v5661_v38, %v4691_v13  ;;  %v4695_v6 = vsel %vm7471_vm5, %v4693_v17, %v4694_v59 }
 0x165   : > { %v2745_v29 = vsel %vm7195_vm2, %v2740_v22, %v2744_v32  ;;  %v2755_v62 = vsel %vm7195_vm2, %v2750_v16, %v2754_v41  ;;  %v5677_v45 = vcombine.low %v4692_v46, %v4695_v6 }
 0x166   : > { %v5549_v54 = vcombine.low %v2745_v29, %v2755_v62 }
 0x168   : > { %6490 = vmatmul.mubr.bf16.gmra.mrb[24].mxu0 %v5675_v23 }
 0x169   : > { %6298 = vmatmul.mubr.bf16.gmra.mrb[24].mxu1 %v5547_v11  ;;  %6493 = vmatprep.mubr.bf16.mxu0 %v5676_v24 }
 0x16a   : > { %6301 = vmatprep.mubr.bf16.mxu1 %v5548_v43 }
 0x170   : > { %6494 = vmatmul.mubr.bf16.gmra.mrb[28].mxu0 %v5677_v45 }
 0x171   : > { %6302 = vmatmul.mubr.bf16.gmra.mrb[28].mxu1 %v5549_v54 }
 0x1eb   : > { %v6227_v28 = vpop.f32.mrb[0].mxu1 }
 0x1ec   : > { %v2213_v25 = vpop.f32.mrb[1].mxu1 }
 0x1ed   : > { %v6228_v2 = vpop.f32.mrb[2].mxu1 }
 0x1ee   : > { %v2216_v60 = vpop.f32.mrb[3].mxu1 }
 0x1f4   : > { %v6231_v20 = vpop.f32.mrb[4].mxu1 }
 0x1f5   : > { %v2229_v4 = vpop.f32.mrb[5].mxu1 }
 0x1f6   : > { %v6232_v42 = vpop.f32.mrb[6].mxu1 }
 0x1f7   : > { %v2232_v53 = vpop.f32.mrb[7].mxu1 }
 0x1fc   : > { %v6235_v34 = vpop.f32.mrb[8].mxu1 }
 0x1fd   : > { %v2245_v52 = vpop.f32.mrb[9].mxu1 }
 0x1fe   : > { %v6236_v48 = vpop.f32.mrb[10].mxu1 }
 0x1ff   : > { %v2248_v35 = vpop.f32.mrb[11].mxu1 }
 0x204   : > { %v9086_v31 = vpop.f32.mrb[12].mxu1 }
 0x205   : > { %v9088_v37 = vpop.f32.mrb[13].mxu1 }
 0x206   : > { %v9090_v50 = vpop.f32.mrb[14].mxu1 }
 0x207   : > { %v9092_v9 = vpop.f32.mrb[15].mxu1 }
 0x20b   : > { %v6467_v7 = vpop.f32.mrb[0].mxu0 }
 0x20c   : > { %v6513_v30 = vadd.f32 %v6467_v7, %v6227_v28  ;;  %v4842_v12 = vpop.f32.mrb[1].mxu0 }
 0x20d   : > { %v6514_v56 = vadd.f32 %v4842_v12, %v2213_v25  ;;  %v6468_v10 = vpop.f32.mrb[2].mxu0 }
 0x20e   : > { %v5010_v49 = vadd.f32 %v6513_v30, %v9097_v40  ;;  %v6515_v55 = vadd.f32 %v6468_v10, %v6228_v2  ;;  %v4845_v21 = vpop.f32.mrb[3].mxu0 }
 0x20f   : > { %v5008_v15 = vadd.f32 %v6514_v56, %v9097_v40  ;;  %v6516_v39 = vadd.f32 %v4845_v21, %v2216_v60 }
 0x210   : > { %v5011_v33 = vadd.f32 %v6515_v55, %v9097_v40  ;;  %v5042_v1 = vmax.f32 %v5010_v49, 0.0 }
 0x211   : > { %v5009_v32 = vadd.f32 %v6516_v39, %v9097_v40  ;;  %v5040_v5 = vmax.f32 %v5008_v15, 0.0 }
 0x212   : > { %v5043_v27 = vmax.f32 %v5011_v33, 0.0 }
 0x213   : > { %v5041_v19 = vmax.f32 %v5009_v32, 0.0  ;;  %v6471_v63 = vpop.f32.mrb[4].mxu0 }
 0x214   : > { %v5762_v58 = vpack.c.bf16 %v5043_v27, %v5042_v1  ;;  %v6517_v57 = vadd.f32 %v6471_v63, %v6231_v20  ;;  %v4858_v51 = vpop.f32.mrb[5].mxu0 }
 0x215   : > { %v5757_v0 = vpack.c.bf16 %v5041_v19, %v5040_v5  ;;  %v6518_v61 = vadd.f32 %v4858_v51, %v2229_v4  ;;  %v6472_v13 = vpop.f32.mrb[6].mxu0 }
 0x216   : > { %5834 = vst [vmem:[%s9107_s26 + $0x8] sm:$0xff] %v5762_v58   ;;  %v5014_v18 = vadd.f32 %v6517_v57, %v9097_v40  ;;  %v6519_v44 = vadd.f32 %v6472_v13, %v6232_v42  ;;  %v4861_v26 = vpop.f32.mrb[7].mxu0 }
 0x217   : > { %5758 = vst [vmem:[%s9107_s26] sm:$0xff] %v5757_v0   ;;  %v5012_v3 = vadd.f32 %v6518_v61, %v9097_v40  ;;  %v6520_v14 = vadd.f32 %v4861_v26, %v2232_v53 }
 0x218   : > { %v5015_v47 = vadd.f32 %v6519_v44, %v9097_v40  ;;  %v5046_v11 = vmax.f32 %v5014_v18, 0.0 }
 0x219   : > { %v5013_v8 = vadd.f32 %v6520_v14, %v9097_v40  ;;  %v5044_v24 = vmax.f32 %v5012_v3, 0.0 }
 0x21a   : > { %v5047_v23 = vmax.f32 %v5015_v47, 0.0 }
 0x21b   : > { %v5045_v36 = vmax.f32 %v5013_v8, 0.0  ;;  %v6475_v38 = vpop.f32.mrb[8].mxu0 }
 0x21c   : > { %v5772_v17 = vpack.c.bf16 %v5047_v23, %v5046_v11  ;;  %v6521_v59 = vadd.f32 %v6475_v38, %v6235_v34  ;;  %v4874_v43 = vpop.f32.mrb[9].mxu0 }
 0x21d   : > { %v5767_v22 = vpack.c.bf16 %v5045_v36, %v5044_v24  ;;  %v6522_v16 = vadd.f32 %v4874_v43, %v2245_v52  ;;  %v6476_v41 = vpop.f32.mrb[10].mxu0 }
 0x21e   : > { %5836 = vst [vmem:[%s9107_s26 + $0x18] sm:$0xff] %v5772_v17   ;;  %v5018_v46 = vadd.f32 %v6521_v59, %v9097_v40  ;;  %v6523_v6 = vadd.f32 %v6476_v41, %v6236_v48  ;;  %v4877_v29 = vpop.f32.mrb[11].mxu0 }
 0x21f   : > { %5835 = vst [vmem:[%s9107_s26 + $0x10] sm:$0xff] %v5767_v22   ;;  %v5016_v62 = vadd.f32 %v6522_v16, %v9097_v40  ;;  %v6524_v45 = vadd.f32 %v4877_v29, %v2248_v35 }
 0x220   : > { %v5019_v54 = vadd.f32 %v6523_v6, %v9097_v40  ;;  %v5050_v25 = vmax.f32 %v5018_v46, 0.0 }
 0x221   : > { %v5017_v28 = vadd.f32 %v6524_v45, %v9097_v40  ;;  %v5048_v60 = vmax.f32 %v5016_v62, 0.0 }
 0x222   : > { %v5051_v2 = vmax.f32 %v5019_v54, 0.0 }
 0x223   : > { %v5049_v20 = vmax.f32 %v5017_v28, 0.0  ;;  %v6479_v4 = vpop.f32.mrb[12].mxu0 }
 0x224   : > { %v5782_v42 = vpack.c.bf16 %v5051_v2, %v5050_v25  ;;  %v6525_v53 = vadd.f32 %v6479_v4, %v9086_v31  ;;  %v4890_v34 = vpop.f32.mrb[13].mxu0 }
 0x225   : > { %v5777_v52 = vpack.c.bf16 %v5049_v20, %v5048_v60  ;;  %v6526_v48 = vadd.f32 %v4890_v34, %v9088_v37  ;;  %v6480_v7 = vpop.f32.mrb[14].mxu0 }
 0x226   : > { %5838 = vst [vmem:[%s9107_s26 + $0x28] sm:$0xff] %v5782_v42   ;;  %v5022_v35 = vadd.f32 %v6525_v53, %v9097_v40  ;;  %v6527_v30 = vadd.f32 %v6480_v7, %v9090_v50  ;;  %v4893_v12 = vpop.f32.mrb[15].mxu0 }
 0x227   : > { %5837 = vst [vmem:[%s9107_s26 + $0x20] sm:$0xff] %v5777_v52   ;;  %v5020_v56 = vadd.f32 %v6526_v48, %v9097_v40  ;;  %v6528_v10 = vadd.f32 %v4893_v12, %v9092_v9 }
 0x228   : > { %v5023_v49 = vadd.f32 %v6527_v30, %v9097_v40  ;;  %v5054_v55 = vmax.f32 %v5022_v35, 0.0 }
 0x229   : > { %v5021_v31 = vadd.f32 %v6528_v10, %v9097_v40  ;;  %v5052_v21 = vmax.f32 %v5020_v56, 0.0 }
 0x22a   : > { %v5055_v37 = vmax.f32 %v5023_v49, 0.0 }
 0x22b   : > { %v5053_v15 = vmax.f32 %v5021_v31, 0.0  ;;  %v6483_v39 = vpop.f32.mrb[16].mxu0 }
 0x22c   : > { %v5792_v33 = vpack.c.bf16 %v5055_v37, %v5054_v55  ;;  %v6291_v32 = vpop.f32.mrb[16].mxu1  ;;  %v4906_v50 = vpop.f32.mrb[17].mxu0 }
 0x22d   : > { %v5787_v1 = vpack.c.bf16 %v5053_v15, %v5052_v21  ;;  %v6529_v27 = vadd.f32 %v6483_v39, %v6291_v32  ;;  %v2966_v5 = vpop.f32.mrb[17].mxu1  ;;  %v6484_v19 = vpop.f32.mrb[18].mxu0 }
 0x22e   : > { %5840 = vst [vmem:[%s9107_s26 + $0x38] sm:$0xff] %v5792_v33   ;;  %v6530_v63 = vadd.f32 %v4906_v50, %v2966_v5  ;;  %v6292_v9 = vpop.f32.mrb[18].mxu1  ;;  %v4909_v58 = vpop.f32.mrb[19].mxu0 }
 0x22f   : > { %5839 = vst [vmem:[%s9107_s26 + $0x30] sm:$0xff] %v5787_v1   ;;  %v5026_v57 = vadd.f32 %v6529_v27, %v9097_v40  ;;  %v6531_v51 = vadd.f32 %v6484_v19, %v6292_v9  ;;  %v2969_v0 = vpop.f32.mrb[19].mxu1 }
 0x230   : > { %v5024_v61 = vadd.f32 %v6530_v63, %v9097_v40  ;;  %v6532_v13 = vadd.f32 %v4909_v58, %v2969_v0 }
 0x231   : > { %v5027_v18 = vadd.f32 %v6531_v51, %v9097_v40  ;;  %v5058_v26 = vmax.f32 %v5026_v57, 0.0 }
 0x232   : > { %v5025_v44 = vadd.f32 %v6532_v13, %v9097_v40  ;;  %v5056_v47 = vmax.f32 %v5024_v61, 0.0 }
 0x233   : > { %v5059_v3 = vmax.f32 %v5027_v18, 0.0  ;;  %v6487_v14 = vpop.f32.mrb[20].mxu0 }
 0x234   : > { %v5057_v8 = vmax.f32 %v5025_v44, 0.0  ;;  %v6295_v11 = vpop.f32.mrb[20].mxu1  ;;  %v4922_v23 = vpop.f32.mrb[21].mxu0 }
 0x235   : > { %v5802_v24 = vpack.c.bf16 %v5059_v3, %v5058_v26  ;;  %v6533_v36 = vadd.f32 %v6487_v14, %v6295_v11  ;;  %v2982_v38 = vpop.f32.mrb[21].mxu1  ;;  %v6488_v17 = vpop.f32.mrb[22].mxu0 }
 0x236   : > { %v5797_v59 = vpack.c.bf16 %v5057_v8, %v5056_v47  ;;  %v6534_v43 = vadd.f32 %v4922_v23, %v2982_v38  ;;  %v6296_v22 = vpop.f32.mrb[22].mxu1  ;;  %v4925_v16 = vpop.f32.mrb[23].mxu0 }
 0x237   : > { %5842 = vst [vmem:[%s9107_s26 + $0x48] sm:$0xff] %v5802_v24   ;;  %v5030_v41 = vadd.f32 %v6533_v36, %v9097_v40  ;;  %v6535_v46 = vadd.f32 %v6488_v17, %v6296_v22  ;;  %v2985_v6 = vpop.f32.mrb[23].mxu1 }
 0x238   : > { %5841 = vst [vmem:[%s9107_s26 + $0x40] sm:$0xff] %v5797_v59   ;;  %v5028_v29 = vadd.f32 %v6534_v43, %v9097_v40  ;;  %v6536_v62 = vadd.f32 %v4925_v16, %v2985_v6 }
 0x239   : > { %v5031_v45 = vadd.f32 %v6535_v46, %v9097_v40  ;;  %v5062_v28 = vmax.f32 %v5030_v41, 0.0 }
 0x23a   : > { %v5029_v54 = vadd.f32 %v6536_v62, %v9097_v40  ;;  %v5060_v60 = vmax.f32 %v5028_v29, 0.0 }
 0x23b   : > { %v5063_v25 = vmax.f32 %v5031_v45, 0.0  ;;  %v6491_v2 = vpop.f32.mrb[24].mxu0 }
 0x23c   : > { %v5061_v20 = vmax.f32 %v5029_v54, 0.0  ;;  %v6299_v4 = vpop.f32.mrb[24].mxu1  ;;  %v4938_v42 = vpop.f32.mrb[25].mxu0 }
 0x23d   : > { %v5812_v53 = vpack.c.bf16 %v5063_v25, %v5062_v28  ;;  %v6537_v34 = vadd.f32 %v6491_v2, %v6299_v4  ;;  %v2998_v52 = vpop.f32.mrb[25].mxu1  ;;  %v6492_v48 = vpop.f32.mrb[26].mxu0 }
 0x23e   : > { %v5807_v7 = vpack.c.bf16 %v5061_v20, %v5060_v60  ;;  %v6538_v35 = vadd.f32 %v4938_v42, %v2998_v52  ;;  %v6300_v30 = vpop.f32.mrb[26].mxu1  ;;  %v4941_v12 = vpop.f32.mrb[27].mxu0 }
 0x23f   : > { %5844 = vst [vmem:[%s9107_s26 + $0x58] sm:$0xff] %v5812_v53   ;;  %v5034_v56 = vadd.f32 %v6537_v34, %v9097_v40  ;;  %v6539_v10 = vadd.f32 %v6492_v48, %v6300_v30  ;;  %v3001_v49 = vpop.f32.mrb[27].mxu1 }
 0x240   : > { %5843 = vst [vmem:[%s9107_s26 + $0x50] sm:$0xff] %v5807_v7   ;;  %v5032_v31 = vadd.f32 %v6538_v35, %v9097_v40  ;;  %v6540_v55 = vadd.f32 %v4941_v12, %v3001_v49 }
 0x241   : > { %v5035_v37 = vadd.f32 %v6539_v10, %v9097_v40  ;;  %v5066_v15 = vmax.f32 %v5034_v56, 0.0 }
 0x242   : > { %v5033_v21 = vadd.f32 %v6540_v55, %v9097_v40  ;;  %v5064_v32 = vmax.f32 %v5032_v31, 0.0 }
 0x243   : > { %v5067_v39 = vmax.f32 %v5035_v37, 0.0  ;;  %v6495_v33 = vpop.f32.mrb[28].mxu0 }
 0x244   : > { %v5065_v50 = vmax.f32 %v5033_v21, 0.0  ;;  %v6303_v1 = vpop.f32.mrb[28].mxu1  ;;  %v4954_v27 = vpop.f32.mrb[29].mxu0 }
 0x245   : > { %v5822_v5 = vpack.c.bf16 %v5067_v39, %v5066_v15  ;;  %v6541_v19 = vadd.f32 %v6495_v33, %v6303_v1  ;;  %v3014_v63 = vpop.f32.mrb[29].mxu1  ;;  %v6496_v9 = vpop.f32.mrb[30].mxu0 }
 0x246   : > { %v5817_v58 = vpack.c.bf16 %v5065_v50, %v5064_v32  ;;  %v6542_v57 = vadd.f32 %v4954_v27, %v3014_v63  ;;  %v6304_v51 = vpop.f32.mrb[30].mxu1  ;;  %v4957_v0 = vpop.f32.mrb[31].mxu0 }
 0x247   : > { %5846 = vst [vmem:[%s9107_s26 + $0x68] sm:$0xff] %v5822_v5   ;;  %v5038_v61 = vadd.f32 %v6541_v19, %v9097_v40  ;;  %v6543_v13 = vadd.f32 %v6496_v9, %v6304_v51  ;;  %v3017_v18 = vpop.f32.mrb[31].mxu1 }
 0x248   : > { %5845 = vst [vmem:[%s9107_s26 + $0x60] sm:$0xff] %v5817_v58   ;;  %v5036_v44 = vadd.f32 %v6542_v57, %v9097_v40  ;;  %v6544_v26 = vadd.f32 %v4957_v0, %v3017_v18 }
 0x249   : > { %v5039_v3 = vadd.f32 %v6543_v13, %v9097_v40  ;;  %v5070_v47 = vmax.f32 %v5038_v61, 0.0 }
 0x24a   : > { %v5037_v14 = vadd.f32 %v6544_v26, %v9097_v40  ;;  %v5068_v11 = vmax.f32 %v5036_v44, 0.0 }
 0x24b   : > { %v5071_v8 = vmax.f32 %v5039_v3, 0.0 }
 0x24c   : > { %v5069_v23 = vmax.f32 %v5037_v14, 0.0 }
 0x24d   : > { %v5832_v24 = vpack.c.bf16 %v5071_v8, %v5070_v47 }
 0x24e   : > { %v5827_v36 = vpack.c.bf16 %v5069_v23, %v5068_v11 }
 0x24f   : > { %5848 = vst [vmem:[%s9107_s26 + $0x78] sm:$0xff] %v5832_v24  }
 0x250   : > { %5847 = vst [vmem:[%s9107_s26 + $0x70] sm:$0xff] %v5827_v36  }
 0x251 PF: > { %s15_s20 = sadd.s32 1, %s7064_s20   ;;  %s9256_s18 = smov %s7060_s19 }
 0x252   : > { %p12_p5 = scmp.ge.s32.totalorder %s15_s20, 4   ;;  %s9257_s19 = smov %s9259_s21 }
 0x254   :  { %14 = sbr.rel (!%p12_p5) target bundleno = 2 (0x2), region = 82 }

</bundles_post_ra>
